<compile_context>
chip_gen: v6e
topology: v6e:2x2x1
jax: 0.10.0
libtpu: 0.0.40
codegen_flags: <defaults>
</compile_context>

<pallas_src>
import functools
import math

import numpy as np
import jax
import jax.numpy as jnp
from jax.experimental import pallas as pl
from jax.experimental.pallas import tpu as pltpu

# Worst-case per-call VMEM (conv_more) is ~14 MiB incl. double-buffered
# weights; keep the scoped limit well under v7x's 64 MiB per-TensorCore VMEM.
_VMEM_LIMIT = 28 * 1024 * 1024


# ----------------------------------------------------------------------------
# Host-side constant / geometry helpers
# ----------------------------------------------------------------------------
def _bilinear_matrix(n_in, n_out):
    """1-D align_corners=True bilinear interpolation matrix (n_out, n_in)."""
    a = np.zeros((n_out, n_in), np.float32)
    scale = (n_in - 1) / (n_out - 1) if n_out > 1 else 0.0
    for j in range(n_out):
        src = j * scale
        i0 = min(int(np.floor(src)), n_in - 1)
        i1 = min(i0 + 1, n_in - 1)
        f = src - i0
        a[j, i0] += 1.0 - f
        a[j, i1] += f
    return a


def _geom(h, w):
    """Padded-slab geometry for an (h, w) image.

    Returns (wp, pdl, rows):
      wp  : flattened row stride of the padded slab,
      pdl : left pad (first data column inside a padded row),
      rows: total slab rows (>= max conv-tap read index + 1; VMEM refs have
            no runtime bounds check, so this slack is load-bearing).

    For w >= 32 we use an 8-aligned layout (pdl=8, wp=w+8, both multiples of
    8) so every row-copy base and the dj=1 conv-tap base are sublane-aligned;
    the 8 leading pad columns of each row double as the previous row's right
    pad.  Small stages keep the compact w+2 stride (alignment is not worth
    the extra MXU rows there).
    """
    if w >= 32:
        pdl, wp = 8, w + 8
    else:
        pdl, wp = 1, w + 2
    rows = (h + 2) * wp + pdl + 1          # max tap read index + 1
    rows = ((rows + 7) // 8) * 8
    return wp, pdl, rows


def _height_taps(h, h2):
    """Per-output-row (i0, i1, frac) for align_corners=True 1-D upsampling."""
    scale = (h - 1) / (h2 - 1) if h2 > 1 else 0.0
    taps = []
    for i2 in range(h2):
        src = i2 * scale
        i0 = min(int(np.floor(src)), h - 1)
        i1 = min(i0 + 1, h - 1)
        taps.append((i0, i1, float(src - i0)))
    return taps


# ----------------------------------------------------------------------------
# Pallas kernels
# ----------------------------------------------------------------------------
def _conv3x3_taps(pad_ref, w_ref, lw, wp, pdl, acc):
    """Accumulate the 9 shifted-matmul taps of a 3x3 (pad=1) convolution.

    pad_ref: (P, Cin) bf16 VMEM scratch: flattened zero-padded image; image
             pixel (i, j) lives at slab row (i+1)*wp + pdl + j.
    w_ref  : (9, Cin, Cout) bf16.
    acc    : (lw, Cout) f32 accumulator or None (first tap initializes it);
             output pixel (i, j) lands at acc row i*wp + j ("padded-width"
             layout -- the junk columns per row are dropped by the caller).
    """
    for di in range(3):
        for dj in range(3):
            off = di * wp + dj + (pdl - 1)
            patch = pad_ref[off:off + lw, :]             # bf16, no cast needed
            tap = jnp.dot(patch, w_ref[3 * di + dj],
                          preferred_element_type=jnp.float32)
            acc = tap if acc is None else acc + tap
    return acc


def _conv_more_kernel(x_ref, w_ref, s_ref, b_ref, o_ref, xpad, *, geom):
    """conv_more: 3x3/pad=1 conv + folded BN + ReLU on one batch element.

    x_ref: (1, h*w, Cin) bf16      o_ref: (1, h*w, Cout)
    xpad : (P, Cin) bf16 scratch (flattened zero-padded image).
    """
    h, w, wp, pdl = geom
    lw = h * wp

    # Halo zeroed once; interior is fully rewritten on every grid step.
    @pl.when(pl.program_id(0) == 0)
    def _init():
        xpad[...] = jnp.zeros_like(xpad)

    for i in range(h):
        base = (i + 1) * wp + pdl
        xpad[base:base + w, :] = x_ref[0, i * w:(i + 1) * w, :]

    acc = _conv3x3_taps(xpad, w_ref, lw, wp, pdl, None)
    y = jnp.maximum(acc * s_ref[...] + b_ref[...], 0.0)

    for i in range(h):                       # drop the junk columns per row
        o_ref[0, i * w:(i + 1) * w, :] = y[i * wp:i * wp + w, :].astype(o_ref.dtype)


def _decoder_block_kernel(*refs, geom, has_skip):
    """Fused DecoderBlock (one batch element): separable 2x bilinear upsample
    + (optional) skip concat + conv1+BN+ReLU + conv2+BN+ReLU, all in VMEM."""
    h, w, h2, w2, wp, pdl = geom
    lw = h2 * wp

    if has_skip:
        (x_ref, skip_ref, aw_ref, w1x_ref, w1s_ref, s1_ref, b1_ref,
         w2_ref, s2_ref, b2_ref, o_ref, xpad, spad, mpad) = refs
    else:
        (x_ref, aw_ref, w1x_ref, s1_ref, b1_ref,
         w2_ref, s2_ref, b2_ref, o_ref, xpad, mpad) = refs
        skip_ref = w1s_ref = spad = None

    # Halos zeroed once; interiors are fully rewritten on every grid step.
    @pl.when(pl.program_id(0) == 0)
    def _init():
        xpad[...] = jnp.zeros_like(xpad)
        if has_skip:
            spad[...] = jnp.zeros_like(spad)
        mpad[...] = jnp.zeros_like(mpad)

    # 1) Separable 2x bilinear upsample (align_corners=True) straight into the
    #    zero-padded slab: per output row, a 2-tap height lerp (constant
    #    weights) then a tiny (w2, w) width-interp matmul.
    aw = aw_ref[...]                                   # (w2, w) f32
    for i2, (i0, i1, f) in enumerate(_height_taps(h, h2)):
        r0 = x_ref[0, i0 * w:(i0 + 1) * w, :].astype(jnp.float32)
        if f > 0.0 and i1 != i0:
            r1 = x_ref[0, i1 * w:(i1 + 1) * w, :].astype(jnp.float32)
            row = (1.0 - f) * r0 + f * r1
        else:
            row = r0
        up = jnp.dot(aw, row, preferred_element_type=jnp.float32)   # (w2, C)
        base = (i2 + 1) * wp + pdl
        xpad[base:base + w2, :] = up.astype(xpad.dtype)

    # 2) Place the skip feature map inside a zero-padded slab (no HBM concat).
    if has_skip:
        for i in range(h2):
            base = (i + 1) * wp + pdl
            spad[base:base + w2, :] = skip_ref[0, i * w2:(i + 1) * w2, :]

    # 3) conv1 over x-channels (+ skip-channels) + BN + ReLU.
    acc = _conv3x3_taps(xpad, w1x_ref, lw, wp, pdl, None)
    if has_skip:
        acc = _conv3x3_taps(spad, w1s_ref, lw, wp, pdl, acc)
    y1 = jnp.maximum(acc * s1_ref[...] + b1_ref[...], 0.0)

    # 4) Stage conv1 result into a zero-padded slab (valid columns only, so
    #    the junk columns never reach conv2).
    for i in range(h2):
        base = (i + 1) * wp + pdl
        mpad[base:base + w2, :] = y1[i * wp:i * wp + w2, :].astype(mpad.dtype)

    # 5) conv2 + BN + ReLU.
    acc2 = _conv3x3_taps(mpad, w2_ref, lw, wp, pdl, None)
    y2 = jnp.maximum(acc2 * s2_ref[...] + b2_ref[...], 0.0)

    # 6) Exact flattened (h2*w2, Cout) output (junk columns dropped in VMEM).
    # TODO(synk): lane-dense tail layout for Cout=16 to avoid masked stores.
    for i in range(h2):
        o_ref[0, i * w2:(i + 1) * w2, :] = \
            y2[i * wp:i * wp + w2, :].astype(o_ref.dtype)


# ----------------------------------------------------------------------------
# pallas_call wrappers
# ----------------------------------------------------------------------------
def conv_more_call(x, p, h, w):
    """x: (B, h*w, 768) bf16 -> (B, h*w, 512) bf16."""
    b, l, cin = x.shape
    cout = p["w"].shape[-1]
    wp, pdl, prows = _geom(h, w)
    kernel = functools.partial(_conv_more_kernel, geom=(h, w, wp, pdl))
    return pl.pallas_call(
        kernel,
        out_shape=jax.ShapeDtypeStruct((b, l, cout), jnp.bfloat16),
        grid=(b,),
        in_specs=[
            pl.BlockSpec((1, l, cin), lambda i: (i, 0, 0)),
            pl.BlockSpec((9, cin, cout), lambda i: (0, 0, 0)),
            pl.BlockSpec((1, cout), lambda i: (0, 0)),
            pl.BlockSpec((1, cout), lambda i: (0, 0)),
        ],
        out_specs=pl.BlockSpec((1, l, cout), lambda i: (i, 0, 0)),
        scratch_shapes=[pltpu.VMEM((prows, cin), jnp.bfloat16)],
        compiler_params=pltpu.CompilerParams(
            # "arbitrary": sequential batch loop so the halo-zeroing at
            # program_id==0 is valid on every generation (scratch is per-core).
            dimension_semantics=("arbitrary",),
            vmem_limit_bytes=_VMEM_LIMIT),
    )(x, p["w"], p["scale"], p["bias"])


def decoder_block_call(x, skip, p, h, w, out_dtype=jnp.bfloat16):
    """Fused DecoderBlock.
    x: (B, h*w, Cin) bf16, skip: (B, (2h)*(2w), Csk) bf16 or None.
    Returns (B, (2h)*(2w), Cout)."""
    b, l, cin = x.shape
    h2, w2 = 2 * h, 2 * w
    l2 = h2 * w2
    cout = p["w2"].shape[-1]
    wp, pdl, prows = _geom(h2, w2)
    has_skip = (skip is not None) and (p["w1s"] is not None)

    aw = jnp.asarray(_bilinear_matrix(w, w2), jnp.float32)       # (w2, w)
    kernel = functools.partial(_decoder_block_kernel,
                               geom=(h, w, h2, w2, wp, pdl),
                               has_skip=has_skip)

    in_specs = [pl.BlockSpec((1, l, cin), lambda i: (i, 0, 0))]
    args = [x]
    if has_skip:
        csk = skip.shape[-1]
        in_specs.append(pl.BlockSpec((1, l2, csk), lambda i: (i, 0, 0)))
        args.append(skip)
    in_specs.append(pl.BlockSpec((w2, w), lambda i: (0, 0)))
    args.append(aw)
    in_specs.append(pl.BlockSpec((9, cin, cout), lambda i: (0, 0, 0)))
    args.append(p["w1x"])
    if has_skip:
        in_specs.append(pl.BlockSpec((9, csk, cout), lambda i: (0, 0, 0)))
        args.append(p["w1s"])
    in_specs += [
        pl.BlockSpec((1, cout), lambda i: (0, 0)),
        pl.BlockSpec((1, cout), lambda i: (0, 0)),
        pl.BlockSpec((9, cout, cout), lambda i: (0, 0, 0)),
        pl.BlockSpec((1, cout), lambda i: (0, 0)),
        pl.BlockSpec((1, cout), lambda i: (0, 0)),
    ]
    args += [p["s1"], p["b1"], p["w2"], p["s2"], p["b2"]]

    scratch = [pltpu.VMEM((prows, cin), jnp.bfloat16)]
    if has_skip:
        scratch.append(pltpu.VMEM((prows, csk), jnp.bfloat16))
    scratch.append(pltpu.VMEM((prows, cout), jnp.bfloat16))

    return pl.pallas_call(
        kernel,
        out_shape=jax.ShapeDtypeStruct((b, l2, cout), out_dtype),
        grid=(b,),
        in_specs=in_specs,
        out_specs=pl.BlockSpec((1, l2, cout), lambda i: (i, 0, 0)),
        scratch_shapes=scratch,
        compiler_params=pltpu.CompilerParams(
            dimension_semantics=("arbitrary",),
            vmem_limit_bytes=_VMEM_LIMIT),
    )(*args)


# ----------------------------------------------------------------------------
# Parameters (deterministic synthetic init; shapes follow DecoderCup.__init__)
# ----------------------------------------------------------------------------
def _init_conv_bn(key, cin, cout):
    k1, k2, k3, k4, k5 = jax.random.split(key, 5)
    w = jax.random.normal(k1, (9, cin, cout), jnp.float32) / math.sqrt(9 * cin)
    gamma = 1.0 + 0.1 * jax.random.normal(k2, (cout,), jnp.float32)
    beta = 0.1 * jax.random.normal(k3, (cout,), jnp.float32)
    mean = 0.1 * jax.random.normal(k4, (cout,), jnp.float32)
    var = jax.random.uniform(k5, (cout,), jnp.float32, minval=0.5, maxval=1.5)
    eps = 1e-5
    scale = gamma / jnp.sqrt(var + eps)       # eval-mode BN folded into conv
    bias = beta - mean * scale
    return {"w": w.astype(jnp.bfloat16),
            "scale": scale.reshape(1, cout).astype(jnp.float32),
            "bias": bias.reshape(1, cout).astype(jnp.float32)}


def init_decoder_cup_params(key):
    head_channels = 512
    decoder_channels = (256, 128, 64, 16)
    in_channels = [head_channels] + list(decoder_channels[:-1])
    out_channels = list(decoder_channels)
    n_skip = 3
    skip_channels = [512, 256, 64, 16]
    for i in range(4 - n_skip):
        skip_channels[3 - i] = 0

    keys = jax.random.split(key, 9)
    params = {"conv_more": _init_conv_bn(keys[0], 768, head_channels),
              "blocks": []}
    for i, (ic, oc, sc) in enumerate(zip(in_channels, out_channels,
                                         skip_channels)):
        c1 = _init_conv_bn(keys[1 + 2 * i], ic + sc, oc)
        c2 = _init_conv_bn(keys[2 + 2 * i], oc, oc)
        params["blocks"].append({
            # conv1 weight split along Cin: first `ic` channels act on the
            # upsampled x, the rest on skip (matches torch.cat([x, skip], 1)).
            "w1x": c1["w"][:, :ic, :],
            "w1s": c1["w"][:, ic:, :] if sc > 0 else None,
            "s1": c1["scale"], "b1": c1["bias"],
            "w2": c2["w"], "s2": c2["scale"], "b2": c2["bias"],
        })
    return params


# ----------------------------------------------------------------------------
# DecoderCup forward
# ----------------------------------------------------------------------------
def decoder_cup_forward(params, hidden_states, features=None):
    """hidden_states: (B, n_patch, 768).  Returns NHWC (B, 16h, 16w, 16)
    (== the PyTorch NCHW output (B, 16, 16h, 16w) in channels-last form)."""
    b, n_patch, _ = hidden_states.shape
    h = w = int(math.sqrt(n_patch))
    n_skip = 3

    # PyTorch: x = hidden.permute(0,2,1).view(B, hidden, h, w) (NCHW); in the
    # flattened channels-last layout that is hidden_states itself.
    x = conv_more_call(hidden_states.astype(jnp.bfloat16),
                       params["conv_more"], h, w)

    for i in range(4):
        blk = params["blocks"][i]
        skip = None
        if features is not None and i < n_skip and blk["w1s"] is not None:
            f = features[i]                              # NHWC (B, 2h, 2w, Csk)
            skip = f.reshape(f.shape[0], -1, f.shape[-1]).astype(jnp.bfloat16)
        out_dtype = jnp.float32 if i == 3 else jnp.bfloat16
        x = decoder_block_call(x, skip, blk, h, w, out_dtype=out_dtype)
        h, w = 2 * h, 2 * w

    return x.reshape(b, h, w, -1)


# ----------------------------------------------------------------------------
if __name__ == "__main__":
    key = jax.random.PRNGKey(0)
    kp, kh, kf0, kf1, kf2 = jax.random.split(key, 5)

    params = init_decoder_cup_params(kp)

    B = 2
    n_patch = 16          # h = w = 4
    hidden = 768          # fixed by DecoderCup.__init__ (conv_more: 768 -> 512)
    hidden_states = jax.random.normal(kh, (B, n_patch, hidden), jnp.float32)

    # encoder skip features, NHWC (PyTorch passes NCHW with identical contents)
    features = [
        jax.random.normal(kf0, (B, 8, 8, 512), jnp.float32),
        jax.random.normal(kf1, (B, 16, 16, 256), jnp.float32),
        jax.random.normal(kf2, (B, 32, 32, 64), jnp.float32),
    ]

    out = decoder_cup_forward(params, hidden_states, features)
    out = jax.block_until_ready(out)
    assert out.shape == (B, 64, 64, 16), out.shape   # PyTorch NCHW: (B,16,64,64)
    assert bool(jnp.all(jnp.isfinite(out)))
    print("KERNEL_OK")
</pallas_src>

<mosaic_0001>
module attributes {stable_mosaic.version = 11 : i64} {
  func.func @_conv_more_kernel(%arg0: i32, %arg1: memref<1x16x768xbf16, #tpu.memory_space<vmem>>, %arg2: memref<9x768x512xbf16, #tpu.memory_space<vmem>>, %arg3: memref<1x512xf32, #tpu.memory_space<vmem>>, %arg4: memref<1x512xf32, #tpu.memory_space<vmem>>, %arg5: memref<1x16x512xbf16, #tpu.memory_space<vmem>>, %arg6: memref<40x768xbf16, #tpu.memory_space<vmem>>) attributes {dimension_semantics = [#tpu.dimension_semantics<arbitrary>], iteration_bounds = array<i64: 2>, scalar_prefetch = 0 : i64, scratch_operands = 1 : i64, tpu.core_type = #tpu.core_type<tc>, window_params = [{transform_indices = @transform_0, window_bounds = array<i64: 1, 16, 768>}, {pipeline_mode = #tpu.pipeline_mode<synchronous>, transform_indices = @transform_1, window_bounds = array<i64: 9, 768, 512>}, {pipeline_mode = #tpu.pipeline_mode<synchronous>, transform_indices = @transform_2, window_bounds = array<i64: 1, 512>}, {pipeline_mode = #tpu.pipeline_mode<synchronous>, transform_indices = @transform_3, window_bounds = array<i64: 1, 512>}, {transform_indices = @transform_4, window_bounds = array<i64: 1, 16, 512>}]} {
    %c0_i32 = arith.constant 0 : i32
    %0 = arith.cmpi eq, %arg0, %c0_i32 : i32
    %1 = arith.extui %0 : i1 to i32
    %c0_i32_0 = arith.constant 0 : i32
    %2 = arith.cmpi ne, %1, %c0_i32_0 : i32
    scf.if %2 {
      %cst_77 = arith.constant 0.000000e+00 : bf16
      %87 = vector.broadcast %cst_77 : bf16 to vector<40x768xbf16>
      %c0_78 = arith.constant 0 : index
      %c0_79 = arith.constant 0 : index
      %88 = vector.load %arg6[%c0_78, %c0_79] : memref<40x768xbf16, #tpu.memory_space<vmem>>, vector<40x768xbf16>
      tpu.vector_store %arg6[%c0_78, %c0_79], %87 {strides = array<i32>} : memref<40x768xbf16, #tpu.memory_space<vmem>>, vector<40x768xbf16>,
    } else {
    }
    %c0 = arith.constant 0 : index
    %c0_1 = arith.constant 0 : index
    %c0_2 = arith.constant 0 : index
    %3 = vector.load %arg1[%c0, %c0_1, %c0_2] : memref<1x16x768xbf16, #tpu.memory_space<vmem>>, vector<1x4x768xbf16>
    %4 = vector.shape_cast %3 : vector<1x4x768xbf16> to vector<4x768xbf16>
    %c7 = arith.constant 7 : index
    %c0_3 = arith.constant 0 : index
    %5 = vector.load %arg6[%c7, %c0_3] : memref<40x768xbf16, #tpu.memory_space<vmem>>, vector<4x768xbf16>
    tpu.vector_store %arg6[%c7, %c0_3], %4 {strides = array<i32>} : memref<40x768xbf16, #tpu.memory_space<vmem>>, vector<4x768xbf16>,
    %c0_4 = arith.constant 0 : index
    %c4 = arith.constant 4 : index
    %c0_5 = arith.constant 0 : index
    %6 = vector.load %arg1[%c0_4, %c4, %c0_5] : memref<1x16x768xbf16, #tpu.memory_space<vmem>>, vector<1x4x768xbf16>
    %7 = vector.shape_cast %6 : vector<1x4x768xbf16> to vector<4x768xbf16>
    %c13 = arith.constant 13 : index
    %c0_6 = arith.constant 0 : index
    %8 = vector.load %arg6[%c13, %c0_6] : memref<40x768xbf16, #tpu.memory_space<vmem>>, vector<4x768xbf16>
    tpu.vector_store %arg6[%c13, %c0_6], %7 {strides = array<i32>} : memref<40x768xbf16, #tpu.memory_space<vmem>>, vector<4x768xbf16>,
    %c0_7 = arith.constant 0 : index
    %c8 = arith.constant 8 : index
    %c0_8 = arith.constant 0 : index
    %9 = vector.load %arg1[%c0_7, %c8, %c0_8] : memref<1x16x768xbf16, #tpu.memory_space<vmem>>, vector<1x4x768xbf16>
    %10 = vector.shape_cast %9 : vector<1x4x768xbf16> to vector<4x768xbf16>
    %c19 = arith.constant 19 : index
    %c0_9 = arith.constant 0 : index
    %11 = vector.load %arg6[%c19, %c0_9] : memref<40x768xbf16, #tpu.memory_space<vmem>>, vector<4x768xbf16>
    tpu.vector_store %arg6[%c19, %c0_9], %10 {strides = array<i32>} : memref<40x768xbf16, #tpu.memory_space<vmem>>, vector<4x768xbf16>,
    %c0_10 = arith.constant 0 : index
    %c12 = arith.constant 12 : index
    %c0_11 = arith.constant 0 : index
    %12 = vector.load %arg1[%c0_10, %c12, %c0_11] : memref<1x16x768xbf16, #tpu.memory_space<vmem>>, vector<1x4x768xbf16>
    %13 = vector.shape_cast %12 : vector<1x4x768xbf16> to vector<4x768xbf16>
    %c25 = arith.constant 25 : index
    %c0_12 = arith.constant 0 : index
    %14 = vector.load %arg6[%c25, %c0_12] : memref<40x768xbf16, #tpu.memory_space<vmem>>, vector<4x768xbf16>
    tpu.vector_store %arg6[%c25, %c0_12], %13 {strides = array<i32>} : memref<40x768xbf16, #tpu.memory_space<vmem>>, vector<4x768xbf16>,
    %c0_13 = arith.constant 0 : index
    %c0_14 = arith.constant 0 : index
    %15 = vector.load %arg6[%c0_13, %c0_14] : memref<40x768xbf16, #tpu.memory_space<vmem>>, vector<24x768xbf16>
    %c0_15 = arith.constant 0 : index
    %c0_16 = arith.constant 0 : index
    %c0_17 = arith.constant 0 : index
    %16 = vector.load %arg2[%c0_15, %c0_16, %c0_17] : memref<9x768x512xbf16, #tpu.memory_space<vmem>>, vector<1x768x512xbf16>
    %17 = vector.shape_cast %16 : vector<1x768x512xbf16> to vector<768x512xbf16>
    %cst = arith.constant dense<0.000000e+00> : vector<24x512xf32>
    %18 = tpu.matmul %15, %17, %cst {dimension_numbers = #tpu.dot_dimension_numbers<[1], [0], [0], [1], [0, 0, 1, 1], [], []>} : vector<24x768xbf16>, vector<768x512xbf16>, vector<24x512xf32> -> vector<24x512xf32>
    %c1 = arith.constant 1 : index
    %c0_18 = arith.constant 0 : index
    %19 = vector.load %arg6[%c1, %c0_18] : memref<40x768xbf16, #tpu.memory_space<vmem>>, vector<24x768xbf16>
    %c1_19 = arith.constant 1 : index
    %c0_20 = arith.constant 0 : index
    %c0_21 = arith.constant 0 : index
    %20 = vector.load %arg2[%c1_19, %c0_20, %c0_21] : memref<9x768x512xbf16, #tpu.memory_space<vmem>>, vector<1x768x512xbf16>
    %21 = vector.shape_cast %20 : vector<1x768x512xbf16> to vector<768x512xbf16>
    %cst_22 = arith.constant dense<0.000000e+00> : vector<24x512xf32>
    %22 = tpu.matmul %19, %21, %cst_22 {dimension_numbers = #tpu.dot_dimension_numbers<[1], [0], [0], [1], [0, 0, 1, 1], [], []>} : vector<24x768xbf16>, vector<768x512xbf16>, vector<24x512xf32> -> vector<24x512xf32>
    %23 = arith.addf %18, %22 : vector<24x512xf32>
    %c2 = arith.constant 2 : index
    %c0_23 = arith.constant 0 : index
    %24 = vector.load %arg6[%c2, %c0_23] : memref<40x768xbf16, #tpu.memory_space<vmem>>, vector<24x768xbf16>
    %c2_24 = arith.constant 2 : index
    %c0_25 = arith.constant 0 : index
    %c0_26 = arith.constant 0 : index
    %25 = vector.load %arg2[%c2_24, %c0_25, %c0_26] : memref<9x768x512xbf16, #tpu.memory_space<vmem>>, vector<1x768x512xbf16>
    %26 = vector.shape_cast %25 : vector<1x768x512xbf16> to vector<768x512xbf16>
    %cst_27 = arith.constant dense<0.000000e+00> : vector<24x512xf32>
    %27 = tpu.matmul %24, %26, %cst_27 {dimension_numbers = #tpu.dot_dimension_numbers<[1], [0], [0], [1], [0, 0, 1, 1], [], []>} : vector<24x768xbf16>, vector<768x512xbf16>, vector<24x512xf32> -> vector<24x512xf32>
    %28 = arith.addf %23, %27 : vector<24x512xf32>
    %c6 = arith.constant 6 : index
    %c0_28 = arith.constant 0 : index
    %29 = vector.load %arg6[%c6, %c0_28] : memref<40x768xbf16, #tpu.memory_space<vmem>>, vector<24x768xbf16>
    %c3 = arith.constant 3 : index
    %c0_29 = arith.constant 0 : index
    %c0_30 = arith.constant 0 : index
    %30 = vector.load %arg2[%c3, %c0_29, %c0_30] : memref<9x768x512xbf16, #tpu.memory_space<vmem>>, vector<1x768x512xbf16>
    %31 = vector.shape_cast %30 : vector<1x768x512xbf16> to vector<768x512xbf16>
    %cst_31 = arith.constant dense<0.000000e+00> : vector<24x512xf32>
    %32 = tpu.matmul %29, %31, %cst_31 {dimension_numbers = #tpu.dot_dimension_numbers<[1], [0], [0], [1], [0, 0, 1, 1], [], []>} : vector<24x768xbf16>, vector<768x512xbf16>, vector<24x512xf32> -> vector<24x512xf32>
    %33 = arith.addf %28, %32 : vector<24x512xf32>
    %c7_32 = arith.constant 7 : index
    %c0_33 = arith.constant 0 : index
    %34 = vector.load %arg6[%c7_32, %c0_33] : memref<40x768xbf16, #tpu.memory_space<vmem>>, vector<24x768xbf16>
    %c4_34 = arith.constant 4 : index
    %c0_35 = arith.constant 0 : index
    %c0_36 = arith.constant 0 : index
    %35 = vector.load %arg2[%c4_34, %c0_35, %c0_36] : memref<9x768x512xbf16, #tpu.memory_space<vmem>>, vector<1x768x512xbf16>
    %36 = vector.shape_cast %35 : vector<1x768x512xbf16> to vector<768x512xbf16>
    %cst_37 = arith.constant dense<0.000000e+00> : vector<24x512xf32>
    %37 = tpu.matmul %34, %36, %cst_37 {dimension_numbers = #tpu.dot_dimension_numbers<[1], [0], [0], [1], [0, 0, 1, 1], [], []>} : vector<24x768xbf16>, vector<768x512xbf16>, vector<24x512xf32> -> vector<24x512xf32>
    %38 = arith.addf %33, %37 : vector<24x512xf32>
    %c8_38 = arith.constant 8 : index
    %c0_39 = arith.constant 0 : index
    %39 = vector.load %arg6[%c8_38, %c0_39] : memref<40x768xbf16, #tpu.memory_space<vmem>>, vector<24x768xbf16>
    %c5 = arith.constant 5 : index
    %c0_40 = arith.constant 0 : index
    %c0_41 = arith.constant 0 : index
    %40 = vector.load %arg2[%c5, %c0_40, %c0_41] : memref<9x768x512xbf16, #tpu.memory_space<vmem>>, vector<1x768x512xbf16>
    %41 = vector.shape_cast %40 : vector<1x768x512xbf16> to vector<768x512xbf16>
    %cst_42 = arith.constant dense<0.000000e+00> : vector<24x512xf32>
    %42 = tpu.matmul %39, %41, %cst_42 {dimension_numbers = #tpu.dot_dimension_numbers<[1], [0], [0], [1], [0, 0, 1, 1], [], []>} : vector<24x768xbf16>, vector<768x512xbf16>, vector<24x512xf32> -> vector<24x512xf32>
    %43 = arith.addf %38, %42 : vector<24x512xf32>
    %c12_43 = arith.constant 12 : index
    %c0_44 = arith.constant 0 : index
    %44 = vector.load %arg6[%c12_43, %c0_44] : memref<40x768xbf16, #tpu.memory_space<vmem>>, vector<24x768xbf16>
    %c6_45 = arith.constant 6 : index
    %c0_46 = arith.constant 0 : index
    %c0_47 = arith.constant 0 : index
    %45 = vector.load %arg2[%c6_45, %c0_46, %c0_47] : memref<9x768x512xbf16, #tpu.memory_space<vmem>>, vector<1x768x512xbf16>
    %46 = vector.shape_cast %45 : vector<1x768x512xbf16> to vector<768x512xbf16>
    %cst_48 = arith.constant dense<0.000000e+00> : vector<24x512xf32>
    %47 = tpu.matmul %44, %46, %cst_48 {dimension_numbers = #tpu.dot_dimension_numbers<[1], [0], [0], [1], [0, 0, 1, 1], [], []>} : vector<24x768xbf16>, vector<768x512xbf16>, vector<24x512xf32> -> vector<24x512xf32>
    %48 = arith.addf %43, %47 : vector<24x512xf32>
    %c13_49 = arith.constant 13 : index
    %c0_50 = arith.constant 0 : index
    %49 = vector.load %arg6[%c13_49, %c0_50] : memref<40x768xbf16, #tpu.memory_space<vmem>>, vector<24x768xbf16>
    %c7_51 = arith.constant 7 : index
    %c0_52 = arith.constant 0 : index
    %c0_53 = arith.constant 0 : index
    %50 = vector.load %arg2[%c7_51, %c0_52, %c0_53] : memref<9x768x512xbf16, #tpu.memory_space<vmem>>, vector<1x768x512xbf16>
    %51 = vector.shape_cast %50 : vector<1x768x512xbf16> to vector<768x512xbf16>
    %cst_54 = arith.constant dense<0.000000e+00> : vector<24x512xf32>
    %52 = tpu.matmul %49, %51, %cst_54 {dimension_numbers = #tpu.dot_dimension_numbers<[1], [0], [0], [1], [0, 0, 1, 1], [], []>} : vector<24x768xbf16>, vector<768x512xbf16>, vector<24x512xf32> -> vector<24x512xf32>
    %53 = arith.addf %48, %52 : vector<24x512xf32>
    %c14 = arith.constant 14 : index
    %c0_55 = arith.constant 0 : index
    %54 = vector.load %arg6[%c14, %c0_55] : memref<40x768xbf16, #tpu.memory_space<vmem>>, vector<24x768xbf16>
    %c8_56 = arith.constant 8 : index
    %c0_57 = arith.constant 0 : index
    %c0_58 = arith.constant 0 : index
    %55 = vector.load %arg2[%c8_56, %c0_57, %c0_58] : memref<9x768x512xbf16, #tpu.memory_space<vmem>>, vector<1x768x512xbf16>
    %56 = vector.shape_cast %55 : vector<1x768x512xbf16> to vector<768x512xbf16>
    %cst_59 = arith.constant dense<0.000000e+00> : vector<24x512xf32>
    %57 = tpu.matmul %54, %56, %cst_59 {dimension_numbers = #tpu.dot_dimension_numbers<[1], [0], [0], [1], [0, 0, 1, 1], [], []>} : vector<24x768xbf16>, vector<768x512xbf16>, vector<24x512xf32> -> vector<24x512xf32>
    %58 = arith.addf %53, %57 : vector<24x512xf32>
    %c0_60 = arith.constant 0 : index
    %c0_61 = arith.constant 0 : index
    %59 = vector.load %arg3[%c0_60, %c0_61] : memref<1x512xf32, #tpu.memory_space<vmem>>, vector<1x512xf32>
    %60 = vector.broadcast %59 : vector<1x512xf32> to vector<24x512xf32>
    %61 = arith.mulf %58, %60 : vector<24x512xf32>
    %c0_62 = arith.constant 0 : index
    %c0_63 = arith.constant 0 : index
    %62 = vector.load %arg4[%c0_62, %c0_63] : memref<1x512xf32, #tpu.memory_space<vmem>>, vector<1x512xf32>
    %63 = vector.broadcast %62 : vector<1x512xf32> to vector<24x512xf32>
    %64 = arith.addf %61, %63 : vector<24x512xf32>
    %cst_64 = arith.constant 0.000000e+00 : f32
    %65 = vector.broadcast %cst_64 : f32 to vector<24x512xf32>
    %66 = arith.maximumf %64, %65 : vector<24x512xf32>
    %67 = vector.extract_strided_slice %66 {offsets = [0, 0], sizes = [4, 512], strides = [1, 1]} : vector<24x512xf32> to vector<4x512xf32>
    %68 = arith.truncf %67 : vector<4x512xf32> to vector<4x512xbf16>
    %c0_65 = arith.constant 0 : index
    %c0_66 = arith.constant 0 : index
    %c0_67 = arith.constant 0 : index
    %69 = vector.load %arg5[%c0_65, %c0_66, %c0_67] : memref<1x16x512xbf16, #tpu.memory_space<vmem>>, vector<1x4x512xbf16>
    %70 = vector.shape_cast %69 : vector<1x4x512xbf16> to vector<4x512xbf16>
    %71 = vector.shape_cast %68 : vector<4x512xbf16> to vector<1x4x512xbf16>
    tpu.vector_store %arg5[%c0_65, %c0_66, %c0_67], %71 {strides = array<i32>} : memref<1x16x512xbf16, #tpu.memory_space<vmem>>, vector<1x4x512xbf16>,
    %72 = vector.extract_strided_slice %66 {offsets = [6, 0], sizes = [4, 512], strides = [1, 1]} : vector<24x512xf32> to vector<4x512xf32>
    %73 = arith.truncf %72 : vector<4x512xf32> to vector<4x512xbf16>
    %c0_68 = arith.constant 0 : index
    %c4_69 = arith.constant 4 : index
    %c0_70 = arith.constant 0 : index
    %74 = vector.load %arg5[%c0_68, %c4_69, %c0_70] : memref<1x16x512xbf16, #tpu.memory_space<vmem>>, vector<1x4x512xbf16>
    %75 = vector.shape_cast %74 : vector<1x4x512xbf16> to vector<4x512xbf16>
    %76 = vector.shape_cast %73 : vector<4x512xbf16> to vector<1x4x512xbf16>
    tpu.vector_store %arg5[%c0_68, %c4_69, %c0_70], %76 {strides = array<i32>} : memref<1x16x512xbf16, #tpu.memory_space<vmem>>, vector<1x4x512xbf16>,
    %77 = vector.extract_strided_slice %66 {offsets = [12, 0], sizes = [4, 512], strides = [1, 1]} : vector<24x512xf32> to vector<4x512xf32>
    %78 = arith.truncf %77 : vector<4x512xf32> to vector<4x512xbf16>
    %c0_71 = arith.constant 0 : index
    %c8_72 = arith.constant 8 : index
    %c0_73 = arith.constant 0 : index
    %79 = vector.load %arg5[%c0_71, %c8_72, %c0_73] : memref<1x16x512xbf16, #tpu.memory_space<vmem>>, vector<1x4x512xbf16>
    %80 = vector.shape_cast %79 : vector<1x4x512xbf16> to vector<4x512xbf16>
    %81 = vector.shape_cast %78 : vector<4x512xbf16> to vector<1x4x512xbf16>
    tpu.vector_store %arg5[%c0_71, %c8_72, %c0_73], %81 {strides = array<i32>} : memref<1x16x512xbf16, #tpu.memory_space<vmem>>, vector<1x4x512xbf16>,
    %82 = vector.extract_strided_slice %66 {offsets = [18, 0], sizes = [4, 512], strides = [1, 1]} : vector<24x512xf32> to vector<4x512xf32>
    %83 = arith.truncf %82 : vector<4x512xf32> to vector<4x512xbf16>
    %c0_74 = arith.constant 0 : index
    %c12_75 = arith.constant 12 : index
    %c0_76 = arith.constant 0 : index
    %84 = vector.load %arg5[%c0_74, %c12_75, %c0_76] : memref<1x16x512xbf16, #tpu.memory_space<vmem>>, vector<1x4x512xbf16>
    %85 = vector.shape_cast %84 : vector<1x4x512xbf16> to vector<4x512xbf16>
    %86 = vector.shape_cast %83 : vector<4x512xbf16> to vector<1x4x512xbf16>
    tpu.vector_store %arg5[%c0_74, %c12_75, %c0_76], %86 {strides = array<i32>} : memref<1x16x512xbf16, #tpu.memory_space<vmem>>, vector<1x4x512xbf16>,
    return
  }
  func.func @transform_0(%arg0: i32) -> (i32, i32, i32) {
    %c0_i32 = arith.constant 0 : i32
    %c0_i32_0 = arith.constant 0 : i32
    %c0_i32_1 = arith.constant 0 : i32
    return %arg0, %c0_i32, %c0_i32_0 : i32, i32, i32
  }
  func.func @transform_1(%arg0: i32) -> (i32, i32, i32) {
    %c0_i32 = arith.constant 0 : i32
    %c0_i32_0 = arith.constant 0 : i32
    %c0_i32_1 = arith.constant 0 : i32
    %c0_i32_2 = arith.constant 0 : i32
    return %c0_i32, %c0_i32_0, %c0_i32_1 : i32, i32, i32
  }
  func.func @transform_2(%arg0: i32) -> (i32, i32) {
    %c0_i32 = arith.constant 0 : i32
    %c0_i32_0 = arith.constant 0 : i32
    %c0_i32_1 = arith.constant 0 : i32
    return %c0_i32, %c0_i32_0 : i32, i32
  }
  func.func @transform_3(%arg0: i32) -> (i32, i32) {
    %c0_i32 = arith.constant 0 : i32
    %c0_i32_0 = arith.constant 0 : i32
    %c0_i32_1 = arith.constant 0 : i32
    return %c0_i32, %c0_i32_0 : i32, i32
  }
  func.func @transform_4(%arg0: i32) -> (i32, i32, i32) {
    %c0_i32 = arith.constant 0 : i32
    %c0_i32_0 = arith.constant 0 : i32
    %c0_i32_1 = arith.constant 0 : i32
    return %arg0, %c0_i32, %c0_i32_0 : i32, i32, i32
  }
}

</mosaic_0001>

<bundles_post_ra>
// kernel: tpu_custom_call.1
= control target key start
LH: loop header
LB: loop body
LE: loop exit
PB: predicated region body
PF: predicated region fallthrough
CT: control target
= control target key end

     0   :  { %9 = vsyncpa [#allocation4], 0  ;;  %s21398_s0 = inlined_call_operand.hbm [shape: bf16[2,16,768], index: 0, kind: input, shape index: {}]   ;;  %s21399_s1 = inlined_call_operand.hbm [shape: bf16[9,768,512], index: 1, kind: input, shape index: {}]   ;;  %s21400_s2 = inlined_call_operand.hbm [shape: f32[1,512], index: 2, kind: input, shape index: {}]   ;;  %s21401_s3 = inlined_call_operand.hbm [shape: f32[1,512], index: 3, kind: input, shape index: {}]   ;;  %s21402_s4 = inlined_call_operand.hbm [shape: bf16[2,16,512], index: 4, kind: output, shape index: {}]  }
   0x1   :  { %11 = vsyncpa [#allocation4 + $0x1], 0 }
   0x2   :  { %12 = vsyncpa [#allocation7], 0 }
   0x3   :  { %13 = vsyncpa [#allocation10], 0 }
   0x4   :  { %14 = vsyncpa [#allocation5], 0 }
   0x5   :  { %16 = vsyncpa [#allocation5 + $0x1], 0  ;;  %s19576_s15 = smov 0   ;;  %s19578_s16 = smov 0  }
   0x6   :  { %s19580_s17 = smov 0   ;;  %s19582_s18 = smov 0  }
   0x7 LB: > { %s19597_s19 = sadd.s32 4294967295, %s19537_s18   ;;  %s14731_s20 = sadd.s32 4294967294, %s19537_s18   ;;  %s19537_s18 = sphi %s19582_s18, %s21495_s18   ;;  %s19533_s17 = sphi %s19580_s17, %s21494_s17   ;;  %s19529_s16 = sphi %s19578_s16, %s21493_s16   ;;  %s19525_s15 = sphi %s19576_s15, %s21492_s15  }
   0x8   : > { %p42_p0 = scmp.ne.s32.totalorder %s19529_s16, %s19525_s15  ;;  %p21403_p1 = scmp.eq.s32.totalorder %s19597_s19, 0 }
   0x9   : > { %p135_p3 = scmp.eq.s32.totalorder %s14731_s20, 1  ;;  %p14732_p5 = scmp.ge.s32.totalorder %s19537_s18, 1 }
   0xa   : > { %p19606_p4 = por %p21403_p1, %p42_p0  ;;  %p142_p7 = scmp.lt.s32.totalorder %s19537_s18, 3 }
   0xb   : > { %p19611_p6 = por %p135_p3, %p42_p0  ;;  %s19539_s24 = smov [#allocation6]  }
   0xc   : > { %s21414_s21 = scalar_select %p19606_p4, 1, 0 }
   0xd   : > { %s21415_s22 = scalar_select %p19611_p6, 1, 0 }
   0xe   : > { %p19617_p9 = pnand %p14732_p5, %p142_p7  ;;  %s154_s25 = sshll.u32 %s19539_s24, 4  ;;  %s155_s25 = int_to_ptr.vmem [resolvable:$true] %s154_s25 }
   0xf   : > { %s19540_s27 = smov [#allocation8]   ;;  %s19541_s29 = smov [#allocation9]  }
  0x10   : > { %s21416_s23 = scalar_select %p19617_p9, 1, 0 }
  0x11   : > { %p16599_p10 = pneg %p19617_p9  ;;  %s168_s28 = sshll.u32 %s19540_s27, 4  ;;  %s169_s28 = int_to_ptr.vmem [resolvable:$true] %s168_s28 }
  0x12   : > { %s179_s30 = sshll.u32 %s19541_s29, 4  ;;  %s19370_s5 = scalar_lea.vmem %s155_s25, 221184  ;;  %s180_s30 = int_to_ptr.vmem [resolvable:$true] %s179_s30 }
  0x13   : > { %p19626_p12 = pnand %p16599_p10, %p21403_p1  ;;  %p19371_p0 = scmp.ne.s32.totalorder %s155_s25, %s19370_s5 }
  0x14   : > { %p19378_p7 = scmp.lt.s32.totalorder %s155_s25, %s155_s25  ;;  %p19379_p10 = scmp.lt.s32.totalorder %s19370_s5, %s19370_s5 }
  0x15   : > { %p19361_p13 = pneg %p19626_p12 }
  0x16   : > { %p19380_p11 = por %p19379_p10, %p19378_p7 }
  0x17   : > { %p19373_p3 = pnand %p19371_p0, %p19361_p13 }
  0x19   : > { %p19374_p5 = pneg %p19373_p3 }
  0x1b   : > { %p19381_p8 = pnand %p19380_p11, %p19374_p5 }
  0x1d   : > { %19384 = shalt.err (!%p19381_p8)
}
  0x1e   : > { %s19542_s6 = smov 256   ;;  %s19543_s7 = smov 16  }
  0x1f   : > { %16602 = dma.hbm_to_vmem [thread:$0]  (!%p19626_p12), %s21399_s1, 221184, %s155_s25, [#allocation7], %s19542_s6, %s19542_s6, %s19543_s7  }
  0x20   : > { %s19396_s10 = scalar_lea.vmem %s169_s28, 64  ;;  %p19404_p2 = scmp.lt.s32.totalorder %s169_s28, %s169_s28 }
  0x21   : > { %p19397_p1 = scmp.ne.s32.totalorder %s169_s28, %s19396_s10  ;;  %p19405_p6 = scmp.lt.s32.totalorder %s19396_s10, %s19396_s10 }
  0x23   : > { %p19399_p0 = pnand %p19397_p1, %p19361_p13  ;;  %p19406_p7 = por %p19405_p6, %p19404_p2 }
  0x25   : > { %p19400_p3 = pneg %p19399_p0 }
  0x27   : > { %p19407_p11 = pnand %p19406_p7, %p19400_p3 }
  0x29   : > { %19410 = shalt.err (!%p19407_p11)
}
  0x2a   : > { %16605 = dma.hbm_to_vmem [thread:$0]  (!%p19626_p12), %s21400_s2, 64, %s169_s28, [#allocation7]  }
  0x2b   : > { %s19422_s13 = scalar_lea.vmem %s180_s30, 64  ;;  %p19430_p10 = scmp.lt.s32.totalorder %s180_s30, %s180_s30 }
  0x2c   : > { %p19423_p8 = scmp.ne.s32.totalorder %s180_s30, %s19422_s13  ;;  %p19431_p0 = scmp.lt.s32.totalorder %s19422_s13, %s19422_s13 }
  0x2e   : > { %p19425_p5 = pnand %p19423_p8, %p19361_p13  ;;  %p19432_p4 = por %p19431_p0, %p19430_p10 }
  0x30   : > { %p19426_p1 = pneg %p19425_p5 }
  0x32   : > { %p19433_p2 = pnand %p19432_p4, %p19426_p1 }
  0x34   : > { %19436 = shalt.err (!%p19433_p2)
}
  0x35   : > { %16608 = dma.hbm_to_vmem [thread:$0]  (!%p19626_p12), %s21401_s3, 64, %s180_s30, [#allocation10]  }
  0x36   : > { %s19657_s24 = sadd.s32 1, %s19537_s18   ;;  %s29_s26 = sadd.s32 1, %s19533_s17 }
  0x37   : > { %s26_s25 = ssub.s32 %s19537_s18, %s19657_s24  ;;  %p36_p6 = scmp.ne.s32.totalorder %s19533_s17, %s19529_s16 }
  0x38   : > { %p27_p4 = scmp.eq.s32.totalorder %s26_s25, 0  ;;  %p37_p13 = scmp.eq.s32.totalorder %s19537_s18, 0 }
  0x39   : > { %p16620_p3 = scmp.lt.s32.totalorder %s19537_s18, 2  ;;  %p21418_p11 = scmp.eq.s32.totalorder %s19597_s19, 1 }
  0x3a   : > { %s19667_s27 = scalar_select %p27_p4, %s19533_s17, %s29_s26  }
  0x3b   : > { %p38_p7 = por %p37_p13, %p36_p6  ;;  %p19671_p8 = por %p21418_p11, %p36_p6 }
  0x3c   : > { %s190_s29 = sand.u32 1, %s19533_s17   ;;  %s16581_s5 = smul.u32 768, %s19537_s18 }
  0x3d   : > { %s21419_s28 = scalar_select %p19671_p8, 1, 0 }
  0x3e   : > { %s16580_s30 = smul.u32 48, %s190_s29  ;;  %s19680_s8 = scalar_lea.hbm %s21398_s0, %s16581_s5 }
  0x3f   : > { %p19682_p12 = pnand %p16620_p3, %p38_p7  ;;  %s19688_s12 = scalar_lea.sflag [#allocation4], %s190_s29 }
  0x40   : > { %s194_s10 = scalar_lea.vmem [#allocation3], %s16580_s30  ;;  %s19437_s13 = scalar_lea.hbm %s19680_s8, 768 }
  0x41   : > { %s201_s11 = sshll.u32 %s194_s10, 4  ;;  %p19438_p5 = scmp.ne.s32.totalorder %s19680_s8, %s19437_s13  ;;  %s19686_s11 = int_to_ptr.vmem [resolvable:$true] %s201_s11 }
  0x42   : > { %p19439_p1 = pneg %p19682_p12  ;;  %s19442_s25 = scalar_lea.hbm %s21398_s0, 1536 }
  0x43   : > { %p19443_p2 = scmp.lt.s32.totalorder %s19680_s8, %s21398_s0  ;;  %p19444_p4 = scmp.lt.s32.totalorder %s19442_s25, %s19437_s13 }
  0x44   : > { %p19440_p10 = pnand %p19439_p1, %p19438_p5 }
  0x45   : > { %p19445_p6 = por %p19444_p4, %p19443_p2 }
  0x46   : > { %p19441_p0 = pneg %p19440_p10 }
  0x48   : > { %p19446_p13 = pnand %p19445_p6, %p19441_p0 }
  0x4a   : > { %19449 = shalt.err (!%p19446_p13)
}
  0x4b   : > { %s19450_s29 = scalar_lea.vmem %s19686_s11, 768  ;;  %s19544_s30 = smov [#allocation3]  }
  0x4c   : > { %p19451_p3 = scmp.ne.s32.totalorder %s19686_s11, %s19450_s29  ;;  %s19455_s6 = sshll.u32 %s19544_s30, 4  ;;  %s19456_s6 = int_to_ptr.vmem [resolvable:$false] %s19455_s6 }
  0x4d   : > { %s19457_s7 = scalar_lea.vmem %s19456_s6, 1536  ;;  %p19458_p5 = scmp.lt.s32.totalorder %s19686_s11, %s19456_s6 }
  0x4e   : > { %p19453_p7 = pnand %p19451_p3, %p19439_p1  ;;  %p19459_p10 = scmp.lt.s32.totalorder %s19457_s7, %s19450_s29 }
  0x50   : > { %p19454_p11 = pneg %p19453_p7  ;;  %p19460_p8 = por %p19459_p10, %p19458_p5 }
  0x52   : > { %p19461_p9 = pnand %p19460_p8, %p19454_p11 }
  0x54   : > { %19464 = shalt.err (!%p19461_p9)
}
  0x55   : > { %s19545_s10 = smov 384   ;;  %s19546_s13 = smov 24  }
  0x56   : > { %16612 = dma.hbm_to_vmem [thread:$0]  (!%p19682_p12), %s19680_s8, 768, %s19686_s11, %s19688_s12, %s19545_s10, %s19545_s10, %s19546_s13  }
  0x57   : > { %p21421_p1 = scmp.ne.s32.totalorder %s21416_s23, 0 }
  0x59   : > { %213 = sbr.rel (%p21421_p1) target bundleno = 2090 (0x82a), region = 36 }
  0x5e   : > { %s19712_s14 = sand.u32 1, %s19529_s16   ;;  %p21422_p9 = scmp.ne.s32.totalorder %s21414_s21, 0 }
  0x5f   : > { %s16582_s20 = smul.u32 48, %s19712_s14  ;;  %s216_s25 = scalar_lea.sflag [#allocation4], %s19712_s14 }
  0x61   : > { %s19716_s26 = scalar_lea.vmem [#allocation3], %s16582_s20 }
  0x62   : > { %19508 = dma.done.wait (%p21422_p9), %s216_s25, 768  }
  0x63   : > { %19510 = vsyncadd (%p21422_p9), %s216_s25, 4294966528  ;;  %p21423_p8 = scmp.eq.s32.totalorder %s19597_s19, 0 }
  0x65   : > { %19512 = dma.done.wait (%p21423_p8), [#allocation7], 221248   ;;  %p21424_p12 = pmov %p21423_p8 }
  0x66   : > { %p21425_p0 = pmov %p21423_p8 }
  0x67   : > { %19514 = vsyncadd (%p21424_p12), [#allocation7], 4294746048 }
  0x68   : > { %19516 = dma.done.wait (%p21425_p0), [#allocation10], 64   ;;  %p21426_p2 = pmov %p21425_p0 }
  0x69   : > { %s14742_s23 = sshll.u32 %s19712_s14, 5  ;;  %p21427_p4 = scmp.ne.s32.totalorder %s19597_s19, 0 }
  0x6a   : > { %19518 = vsyncadd (%p21426_p2), [#allocation10], 4294967232  ;;  %s19731_s8 = scalar_lea.vmem [#allocation11], %s14742_s23 }
  0x6b   : > { %260 = sbr.rel (%p21427_p4) target bundleno = 121 (0x79), region = 56 }
  0x70   : > { %v19547_v0 = vmov 0  }
  0x71   : > { %261 = vst [vmem:[#allocation2 + $0x30] sm:$0xff] %v19547_v0  ;;  %262 = vst [vmem:[#allocation2] sm:$0xff] %v19547_v0 }
  0x72   : > { %263 = vst [vmem:[#allocation2 + $0x58] sm:$0xff] %v19547_v0  ;;  %264 = vst [vmem:[#allocation2 + $0x18] sm:$0xff] %v19547_v0 }
  0x73   : > { %265 = vst [vmem:[#allocation2 + $0x50] sm:$0xff] %v19547_v0  ;;  %266 = vst [vmem:[#allocation2 + $0x68] sm:$0xff] %v19547_v0 }
  0x74   : > { %267 = vst [vmem:[#allocation2 + $0x8] sm:$0xff] %v19547_v0  ;;  %268 = vst [vmem:[#allocation2 + $0x48] sm:$0xff] %v19547_v0 }
  0x75   : > { %269 = vst [vmem:[#allocation2 + $0x40] sm:$0xff] %v19547_v0  ;;  %270 = vst [vmem:[#allocation2 + $0x20] sm:$0xff] %v19547_v0 }
  0x76   : > { %271 = vst [vmem:[#allocation2 + $0x10] sm:$0xff] %v19547_v0  ;;  %272 = vst [vmem:[#allocation2 + $0x38] sm:$0xff] %v19547_v0 }
  0x77   : > { %273 = vst [vmem:[#allocation2 + $0x60] sm:$0xff] %v19547_v0  ;;  %274 = vst [vmem:[#allocation2 + $0x70] sm:$0xff] %v19547_v0 }
  0x78   : > { %275 = vst [vmem:[#allocation2 + $0x28] sm:$0xff] %v19547_v0 }
  0x79 PF: > { %v16667_v1 = vld [vmem:[#allocation6 + $0x6e4] ss:$16 sps:$4 sm:$0xff]   ;;  %v16671_v3 = vld [vmem:[#allocation6 + $0x6e0] ss:$16 sps:$4 sm:$0xff]   ;;  %vm312_vm0 = vcmask 1043459   ;;  %vm315_vm2 = vcmask 1047559  }
  0x7a   : > { %v16669_v2 = vld [vmem:[#allocation6 + $0x8e4] ss:$16 sps:$4 sm:$0xff]   ;;  %2012 = vmatprep.subr.bf16.mxu0 %v16667_v1  ;;  %v16672_v4 = vld [vmem:[#allocation6 + $0x8e0] ss:$16 sps:$4 sm:$0xff]   ;;  %vm313_vm1 = vsmask.f32 7950 }
  0x7b   : > { %2063 = vmatprep.subr.bf16.mxu1 %v16669_v2  ;;  %v16673_v5 = vld [vmem:[#allocation6 + $0x6c4] ss:$16 sps:$4 sm:$0xff]   ;;  %2013 = vmatpush1.bf16.msra.mxu0 %v16671_v3  ;;  %v16677_v7 = vld [vmem:[#allocation6 + $0x6c0] ss:$16 sps:$4 sm:$0xff]   ;;  %vm316_vm3 = vsmask.f32 7966  ;;  %vm314_vm10 = vmand %vm312_vm0, %vm313_vm1 }
  0x7c   : > { %2064 = vmatpush1.bf16.msra.mxu1 %v16672_v4  ;;  %v16675_v6 = vld [vmem:[#allocation6 + $0x8c4] ss:$16 sps:$4 sm:$0xff]   ;;  %2014 = vmatprep.subr.bf16.mxu0 %v16673_v5  ;;  %v16678_v8 = vld [vmem:[#allocation6 + $0x8c0] ss:$16 sps:$4 sm:$0xff]   ;;  %vm328_vm4 = vcmask 1041408   ;;  %vm331_vm6 = vcmask 1045508   ;;  %vm317_vm11 = vmand %vm315_vm2, %vm316_vm3 }
  0x7d   : > { %2065 = vmatprep.subr.bf16.mxu1 %v16675_v6  ;;  %v16679_v9 = vld [vmem:[#allocation6 + $0x6a4] ss:$16 sps:$4 sm:$0xff]   ;;  %v16683_v11 = vld [vmem:[#allocation6 + $0x6a0] ss:$16 sps:$4 sm:$0xff]   ;;  %vm329_vm5 = vsmask.f32 1280  ;;  %vm19741_vm14 = vmor %vm317_vm11, %vm314_vm10 }
  0x7e   : > { %v16681_v10 = vld [vmem:[#allocation6 + $0x8a4] ss:$16 sps:$4 sm:$0xff]   ;;  %v16684_v12 = vld [vmem:[#allocation6 + $0x8a0] ss:$16 sps:$4 sm:$0xff]   ;;  %vm21407_vm7 = vsmask.f32 5376  ;;  %vm19747_vm0 = vmand %vm328_vm4, %vm329_vm5 }
  0x7f   : > { %2015 = vmatpush1.bf16.msra.mxu0 %v16677_v7  ;;  %v16685_v13 = vld [vmem:[#allocation6 + $0x684] ss:$16 sps:$4 sm:$0xff]   ;;  %v16689_v15 = vld [vmem:[#allocation6 + $0x680] ss:$16 sps:$4 sm:$0xff]   ;;  %vm377_vm8 = vcmask 1043458   ;;  %vm439_vm12 = vcmask 1043457   ;;  %vm333_vm2 = vmand %vm331_vm6, %vm21407_vm7 }
  0x80   : > { %2066 = vmatpush1.bf16.msra.mxu1 %v16678_v8  ;;  %2016 = vmatprep.subr.bf16.mxu0 %v16679_v9  ;;  %v16687_v14 = vld [vmem:[#allocation6 + $0x884] ss:$16 sps:$4 sm:$0xff]   ;;  %v16690_v16 = vld [vmem:[#allocation6 + $0x880] ss:$16 sps:$4 sm:$0xff]   ;;  %vm378_vm9 = vsmask.f32 7946  ;;  %vm19761_vm4 = vmor %vm333_vm2, %vm19747_vm0 }
  0x81   : > { %2067 = vmatprep.subr.bf16.mxu1 %v16681_v10  ;;  %v16691_v17 = vld [vmem:[#allocation6 + $0x664] ss:$16 sps:$4 sm:$0xff]   ;;  %v16695_v19 = vld [vmem:[#allocation6 + $0x660] ss:$16 sps:$4 sm:$0xff]   ;;  %vm397_vm15 = vsmask.f32 4352  ;;  %vm379_vm6 = vmand %vm377_vm8, %vm378_vm9 }
  0x82   : > { %v16693_v18 = vld [vmem:[#allocation6 + $0x864] ss:$16 sps:$4 sm:$0xff]   ;;  %v16696_v20 = vld [vmem:[#allocation6 + $0x860] ss:$16 sps:$4 sm:$0xff]   ;;  %v319_v53 = vld [vmem:[#allocation2 + $0x30] sm:$0x88] }
  0x83   : > { %2017 = vmatpush1.bf16.msra.mxu0 %v16683_v11  ;;  %v16697_v21 = vld [vmem:[#allocation6 + $0x644] ss:$16 sps:$4 sm:$0xff]   ;;  %v16701_v23 = vld [vmem:[#allocation6 + $0x640] ss:$16 sps:$4 sm:$0xff]   ;;  %vm440_vm13 = vsmask.f32 3334 }
  0x84   : > { %2068 = vmatpush1.bf16.msra.mxu1 %v16684_v12  ;;  %2018 = vmatprep.subr.bf16.mxu0 %v16685_v13  ;;  %v16699_v22 = vld [vmem:[#allocation6 + $0x844] ss:$16 sps:$4 sm:$0xff]   ;;  %v16702_v24 = vld [vmem:[#allocation6 + $0x840] ss:$16 sps:$4 sm:$0xff]   ;;  %v409_v0 = vld [vmem:[%s19716_s26 + $0x18] sm:$0x33] }
  0x85   : > { %2069 = vmatprep.subr.bf16.mxu1 %v16687_v14  ;;  %v16703_v25 = vld [vmem:[#allocation6 + $0x624] ss:$16 sps:$4 sm:$0xff]   ;;  %v16707_v27 = vld [vmem:[#allocation6 + $0x620] ss:$16 sps:$4 sm:$0xff]   ;;  %vm443_vm1 = vsmask.f32 7446 }
  0x86   : > { %v16705_v26 = vld [vmem:[#allocation6 + $0x824] ss:$16 sps:$4 sm:$0xff]   ;;  %v16708_v28 = vld [vmem:[#allocation6 + $0x820] ss:$16 sps:$4 sm:$0xff]   ;;  %v413_v7 = vshrl.u32 %v409_v0, 16  ;;  %v416_v10 = vshll.u32 %v409_v0, 16 }
  0x87   : > { %2019 = vmatpush1.bf16.msra.mxu0 %v16689_v15  ;;  %v16709_v29 = vld [vmem:[#allocation6 + $0x604] ss:$16 sps:$4 sm:$0xff]   ;;  %v16713_v31 = vld [vmem:[#allocation6 + $0x600] ss:$16 sps:$4 sm:$0xff]   ;;  %v455_v8 = vld [vmem:[%s19716_s26 + $0x18] sm:$0xcc] }
  0x88   : > { %2070 = vmatpush1.bf16.msra.mxu1 %v16690_v16  ;;  %2020 = vmatprep.subr.bf16.mxu0 %v16691_v17  ;;  %v16711_v30 = vld [vmem:[#allocation6 + $0x804] ss:$16 sps:$4 sm:$0xff]   ;;  %v16714_v32 = vld [vmem:[#allocation6 + $0x800] ss:$16 sps:$4 sm:$0xff]   ;;  %vm489_vm3 = vsmask.f32 2306 }
  0x89   : > { %2071 = vmatprep.subr.bf16.mxu1 %v16693_v18  ;;  %v16715_v33 = vld [vmem:[#allocation6 + $0x7e4] ss:$16 sps:$4 sm:$0xff]   ;;  %v16719_v35 = vld [vmem:[#allocation6 + $0x7e0] ss:$16 sps:$4 sm:$0xff]   ;;  %v459_v11 = vshrl.u32 %v455_v8, 16  ;;  %v462_v12 = vshll.u32 %v455_v8, 16 }
  0x8a   : > { %v16717_v34 = vld [vmem:[#allocation6 + $0x9e4] ss:$16 sps:$4 sm:$0xff]   ;;  %v16720_v36 = vld [vmem:[#allocation6 + $0x9e0] ss:$16 sps:$4 sm:$0xff]   ;;  %vm492_vm5 = vsmask.f32 6418 }
  0x8b   : > { %2021 = vmatpush1.bf16.msra.mxu0 %v16695_v19  ;;  %v16721_v37 = vld [vmem:[#allocation6 + $0x7c4] ss:$16 sps:$4 sm:$0xff]   ;;  %v16725_v39 = vld [vmem:[#allocation6 + $0x7c0] ss:$16 sps:$4 sm:$0xff]   ;;  %v277_v13 = vld [vmem:[%s19716_s26 + $0x8] sm:$0x33] }
  0x8c   : > { %2072 = vmatpush1.bf16.msra.mxu1 %v16696_v20  ;;  %2022 = vmatprep.subr.bf16.mxu0 %v16697_v21  ;;  %v16723_v38 = vld [vmem:[#allocation6 + $0x9c4] ss:$16 sps:$4 sm:$0xff]   ;;  %v16726_v40 = vld [vmem:[#allocation6 + $0x9c0] ss:$16 sps:$4 sm:$0xff]   ;;  %v19769_v17 = vrot.slane %v413_v7, 6  ;;  %vm442_vm10 = vcmask 1047557  }
  0x8d   : > { %2073 = vmatprep.subr.bf16.mxu1 %v16699_v22  ;;  %v16727_v41 = vld [vmem:[#allocation6 + $0x7a4] ss:$16 sps:$4 sm:$0xff]   ;;  %v16731_v43 = vld [vmem:[#allocation6 + $0x7a0] ss:$16 sps:$4 sm:$0xff]   ;;  %vm21434_vm11 = vsmask.f32 7962 }
  0x8e   : > { %v16729_v42 = vld [vmem:[#allocation6 + $0x9a4] ss:$16 sps:$4 sm:$0xff]   ;;  %v16732_v44 = vld [vmem:[#allocation6 + $0x9a0] ss:$16 sps:$4 sm:$0xff]   ;;  %vm21435_vm0 = vcmask 1047558   ;;  %v19773_v20 = vrot.slane %v416_v10, 7 }
  0x8f   : > { %2023 = vmatpush1.bf16.msra.mxu0 %v16701_v23  ;;  %v16733_v45 = vld [vmem:[#allocation6 + $0x784] ss:$16 sps:$4 sm:$0xff]   ;;  %v16737_v47 = vld [vmem:[#allocation6 + $0x780] ss:$16 sps:$4 sm:$0xff]   ;;  %vm382_vm2 = vmand %vm21435_vm0, %vm21434_vm11  ;;  %v461_v21 = vrot.slane %v459_v11, 5  ;;  %v464_v22 = vrot.slane %v462_v12, 6 }
  0x90   : > { %2074 = vmatpush1.bf16.msra.mxu1 %v16702_v24  ;;  %2024 = vmatprep.subr.bf16.mxu0 %v16703_v25  ;;  %v16735_v46 = vld [vmem:[#allocation6 + $0x984] ss:$16 sps:$4 sm:$0xff]   ;;  %v16738_v49 = vld [vmem:[#allocation6 + $0x980] ss:$16 sps:$4 sm:$0xff]   ;;  %v284_v23 = vshll.u32 %v277_v13, 16  ;;  %vm19778_vm8 = vmor %vm382_vm2, %vm379_vm6  ;;  %vm21439_vm11 = vcmask 1040384  }
  0x91   : > { %2075 = vmatprep.subr.bf16.mxu1 %v16705_v26  ;;  %v276_v48 = vld [vmem:[%s19716_s26] sm:$0x33]  ;;  %v344_v54 = vld [vmem:[%s19716_s26] sm:$0xcc]  ;;  %vm21438_vm9 = vsmask.f32 256 }
  0x92   : > { %v16739_v50 = vld [vmem:[#allocation6 + $0x764] ss:$16 sps:$4 sm:$0xff]   ;;  %v280_v51 = vshll.u32 %v276_v48, 16  ;;  %v291_v52 = vshrl.u32 %v276_v48, 16  ;;  %v348_v59 = vshrl.u32 %v344_v54, 16  ;;  %v351_v60 = vshll.u32 %v344_v54, 16  ;;  %vm19787_vm0 = vmand %vm21439_vm11, %vm21438_vm9 }
  0x93   : > { %2025 = vmatpush1.bf16.msra.mxu0 %v16707_v27  ;;  %v16741_v55 = vld [vmem:[#allocation6 + $0x964] ss:$16 sps:$4 sm:$0xff]   ;;  %v16743_v61 = vld [vmem:[#allocation6 + $0x760] ss:$16 sps:$4 sm:$0xff]   ;;  %vm488_vm6 = vcmask 1042432   ;;  %vm21442_vm2 = vcmask 1044484  }
  0x94   : > { %2076 = vmatpush1.bf16.msra.mxu1 %v16708_v28  ;;  %2026 = vmatprep.subr.bf16.mxu0 %v16709_v29  ;;  %v282_v56 = vrot.slane %v280_v51, 5  ;;  %v293_v57 = vrot.slane %v291_v52, 4  ;;  %v16744_v62 = vld [vmem:[#allocation6 + $0x960] ss:$16 sps:$4 sm:$0xff]   ;;  %v16745_v1 = vld [vmem:[#allocation6 + $0x744] ss:$16 sps:$4 sm:$0xff]   ;;  %vm398_vm7 = vmand %vm21442_vm2, %vm397_vm15 }
  0x95   : > { %2077 = vmatprep.subr.bf16.mxu1 %v16711_v30  ;;  %v16747_v2 = vld [vmem:[#allocation6 + $0x944] ss:$16 sps:$4 sm:$0xff]   ;;  %v19756_v6 = vrot.slane %v348_v59, 7  ;;  %v16749_v18 = vld [vmem:[#allocation6 + $0x740] ss:$16 sps:$4 sm:$0xff]   ;;  %v296_v28 = vshrl.u32 %v277_v13, 16  ;;  %vm19796_vm9 = vmor %vm398_vm7, %vm19787_vm0 }
  0x96   : > { %v294_v3 = vor.u32 %v293_v57, %v282_v56  ;;  %v320_v4 = vsel %vm19741_vm14, %v282_v56, %v319_v53  ;;  %v335_v5 = vld [vmem:[#allocation2 + $0x18] sm:$0x33]  ;;  %v384_v16 = vld [vmem:[#allocation2 + $0x18] sm:$0xcc]  ;;  %v322_v29 = vld [vmem:[#allocation2] sm:$0x88] }
  0x97   : > { %2027 = vmatpush1.bf16.msra.mxu0 %v16713_v31  ;;  %321 = vst [vmem:[#allocation2 + $0x30] sm:$0x88] %v320_v4  ;;  %v353_v15 = vor.u32 %v351_v60, %v19756_v6  ;;  %v16750_v19 = vld [vmem:[#allocation6 + $0x940] ss:$16 sps:$4 sm:$0xff]   ;;  %v16751_v24 = vld [vmem:[#allocation6 + $0x724] ss:$16 sps:$4 sm:$0xff]   ;;  %vm19809_vm7 = vmand %vm439_vm12, %vm440_vm13 }
  0x98   : > { %2078 = vmatpush1.bf16.msra.mxu1 %v16714_v32  ;;  %2028 = vmatprep.subr.bf16.mxu0 %v16715_v33  ;;  %v295_v14 = vrot.slane %v294_v3, 4  ;;  %v368_v26 = vrot.slane %v19756_v6, 4  ;;  %v345_v30 = vld [vmem:[%s19716_s26 + $0x8] sm:$0xcc]  ;;  %v400_v33 = vld [vmem:[#allocation2 + $0x8] sm:$0x11]  ;;  %vm444_vm0 = vmand %vm442_vm10, %vm443_vm1 }
  0x99   : > { %2079 = vmatprep.subr.bf16.mxu1 %v16717_v34  ;;  %v385_v31 = vsel %vm19778_vm8, %v353_v15, %v384_v16  ;;  %v465_v34 = vor.u32 %v464_v22, %v461_v21  ;;  %vm491_vm11 = vcmask 1046532   ;;  %v16759_v51 = vld [vmem:[#allocation6 + $0x904] ss:$16 sps:$4 sm:$0xff]   ;;  %v387_v57 = vld [vmem:[#allocation2 + $0x50] sm:$0xcc]  ;;  %vm19817_vm12 = vmor %vm444_vm0, %vm19809_vm7  ;;  %s16579_s21 = sshll.u32 %s19597_s19, 9 }
  0x9a   : > { %v336_v25 = vsel %vm19761_vm4, %v295_v14, %v335_v5  ;;  %386 = vst [vmem:[#allocation2 + $0x18] sm:$0xcc] %v385_v31  ;;  %v401_v52 = vsel %vm19796_vm9, %v368_v26, %v400_v33  ;;  %v495_v60 = vld [vmem:[#allocation2 + $0x20] sm:$0x77]  ;;  %v449_v6 = vld [vmem:[#allocation2 + $0x48] sm:$0xee]  ;;  %vm490_vm13 = vmand %vm488_vm6, %vm489_vm3  ;;  %s21352_s5 = scalar_lea.hbm %s21402_s4, %s16579_s21 }
  0x9b   : > { %2029 = vmatpush2.bf16.msra.mxu0 %v16719_v35  ;;  %337 = vst [vmem:[#allocation2 + $0x18] sm:$0x33] %v336_v25  ;;  %v286_v35 = vrot.slane %v284_v23, 5  ;;  %402 = vst [vmem:[#allocation2 + $0x8] sm:$0x11] %v401_v52  ;;  %s14629_s9 = sshll.u32 %s19731_s8, 4  ;;  %s21354_s9 = int_to_ptr.vmem [resolvable:$true] %s14629_s9 }
  0x9c   : > { %2080 = vmatpush2.bf16.msra.mxu1 %v16720_v36  ;;  %2030 = vmatprep.subr.bf16.mxu0 %v16721_v37  ;;  %v410_v36 = vld [vmem:[%s19716_s26 + $0x20] sm:$0x33]  ;;  %vm493_vm1 = vmand %vm491_vm11, %vm492_vm5  ;;  %vm949_vm5 = vsmask.f32 7424  ;;  %vm21477_vm10 = vsmask.f32 5376 }
  0x9d   : > { %2081 = vmatprep.subr.bf16.mxu1 %v16723_v38  ;;  %v16753_v37 = vld [vmem:[#allocation6 + $0x924] ss:$16 sps:$4 sm:$0xff]   ;;  %v298_v38 = vrot.slane %v296_v28, 4  ;;  %v424_v48 = vshll.u32 %v410_v36, 16  ;;  %v16761_v7 = vld [vmem:[#allocation6 + $0x700] ss:$16 sps:$4 sm:$0xff]   ;;  %vm19833_vm3 = vmor %vm493_vm1, %vm490_vm13 }
  0x9e   : > { %v16762_v8 = vld [vmem:[#allocation6 + $0x900] ss:$16 sps:$4 sm:$0xff]   ;;  %v504_v11 = vld [vmem:[#allocation2 + $0x30] sm:$0xff]  ;;  %v16773_v23 = vld [vmem:[#allocation6 + $0xae4] ss:$16 sps:$4 sm:$0xff]   ;;  %s14616_s19 = scalar_lea.sflag [#allocation5], %s19712_s14 }
  0x9f   : > { %2031 = vmatpush2.bf16.msra.mxu0 %v16725_v39  ;;  %v355_v39 = vshrl.u32 %v345_v30, 16  ;;  %v299_v54 = vor.u32 %v298_v38, %v286_v35  ;;  %v16776_v28 = vld [vmem:[#allocation6 + $0x6ec] ss:$16 sps:$4 sm:$0xff]   ;;  %v16831_v27 = vld [vmem:[#allocation6 + $0xba0] ss:$16 sps:$4 sm:$0xff]   ;;  %s19465_s29 = scalar_lea.vmem %s21354_s9, 512 }
  0xa0   : > { %2082 = vmatpush2.bf16.msra.mxu1 %v16726_v40  ;;  %2032 = vmatprep.subr.bf16.mxu0 %v16727_v41  ;;  %v358_v40 = vshll.u32 %v345_v30, 16  ;;  %v421_v41 = vshrl.u32 %v410_v36, 16  ;;  %p19466_p6 = scmp.ne.s32.totalorder %s21354_s9, %s19465_s29  ;;  %p21489_p13 = scmp.ne.s32.totalorder %s21419_s28, 0 }
  0xa1   : > { %2083 = vmatprep.subr.bf16.mxu1 %v16729_v42  ;;  %v16755_v42 = vld [vmem:[#allocation6 + $0x720] ss:$16 sps:$4 sm:$0xff]   ;;  %v357_v56 = vrot.slane %v355_v39, 7  ;;  %v300_v3 = vrot.slane %v299_v54, 4  ;;  %s19548_s30 = smov [#allocation11]  }
  0xa2   : > { %v423_v59 = vrot.slane %v421_v41, 6  ;;  %p19467_p3 = pnand %p19466_p6, %p21489_p13  ;;  %s19469_s6 = sshll.u32 %s19548_s30, 4  ;;  %s19470_s6 = int_to_ptr.vmem [resolvable:$false] %s19469_s6 }
  0xa3   : > { %2033 = vmatpush2.bf16.msra.mxu0 %v16731_v43  ;;  %v16756_v43 = vld [vmem:[#allocation6 + $0x920] ss:$16 sps:$4 sm:$0xff]   ;;  %v360_v4 = vor.u32 %v358_v40, %v357_v56  ;;  %v369_v5 = vrot.slane %v357_v56, 4  ;;  %s19471_s7 = scalar_lea.vmem %s19470_s6, 1024  ;;  %p19472_p11 = scmp.lt.s32.totalorder %s21354_s9, %s19470_s6 }
  0xa4   : > { %2084 = vmatpush2.bf16.msra.mxu1 %v16732_v44  ;;  %2034 = vmatprep.subr.bf16.mxu0 %v16733_v45  ;;  %v419_v45 = vor.u32 %v19773_v20, %v19769_v17  ;;  %v507_v20 = vld [vmem:[#allocation2 + $0x18] sm:$0xff]  ;;  %p19468_p7 = pneg %p19467_p3  ;;  %p19473_p5 = scmp.lt.s32.totalorder %s19471_s7, %s19465_s29 }
  0xa5   : > { %2085 = vmatprep.subr.bf16.mxu1 %v16735_v46  ;;  %v446_v46 = vld [vmem:[#allocation2 + $0x8] sm:$0xee]  ;;  %v388_v16 = vsel %vm19778_vm8, %v360_v4, %v387_v57  ;;  %v19841_v25 = vcombine.high %v504_v11, %v507_v20  ;;  %v19843_v26 = vcombine.low %v504_v11, %v507_v20  ;;  %v16782_v20 = vld [vmem:[#allocation6 + $0x6cc] ss:$16 sps:$4 sm:$0xff]  }
  0xa6   : > { %v447_v10 = vsel %vm19817_vm12, %v419_v45, %v446_v46  ;;  %389 = vst [vmem:[#allocation2 + $0x50] sm:$0xcc] %v388_v16  ;;  %v16771_v4 = vld [vmem:[#allocation6 + $0xae0] ss:$16 sps:$4 sm:$0xff]   ;;  %p19474_p10 = por %p19473_p5, %p19472_p11 }
  0xa7   : > { %2035 = vmatpush2.bf16.msra.mxu0 %v16737_v47  ;;  %v323_v47 = vsel %vm19741_vm14, %v286_v35, %v322_v29  ;;  %448 = vst [vmem:[#allocation2 + $0x8] sm:$0xee] %v447_v10  ;;  %v965_v30 = vshll.u32 %v19841_v25, 16  ;;  %v953_v32 = vshll.u32 %v19843_v26, 16  ;;  %v963_v35 = vshrl.u32 %v19841_v25, 16 }
  0xa8   : > { %2086 = vmatpush2.bf16.msra.mxu1 %v16738_v49  ;;  %2036 = vmatprep.subr.bf16.mxu0 %v16739_v50  ;;  %v456_v49 = vld [vmem:[%s19716_s26 + $0x20] sm:$0xcc]  ;;  %324 = vst [vmem:[#allocation2] sm:$0x88] %v323_v47  ;;  %v951_v39 = vshrl.u32 %v19843_v26, 16  ;;  %p19475_p1 = pnand %p19474_p10, %p19468_p7 }
  0xa9   : > { %2087 = vmatprep.subr.bf16.mxu1 %v16741_v55  ;;  %v16757_v50 = vld [vmem:[#allocation6 + $0x704] ss:$16 sps:$4 sm:$0xff]   ;;  %v338_v55 = vld [vmem:[#allocation2 + $0x50] sm:$0x33]  ;;  %v468_v63 = vshrl.u32 %v456_v49, 16  ;;  %v471_v0 = vshll.u32 %v456_v49, 16 }
  0xaa   : > { %v339_v15 = vsel %vm19761_vm4, %v300_v3, %v338_v55  ;;  %v967_v36 = vrot.slane %v965_v30, 1  ;;  %v955_v40 = vrot.slane %v953_v32, 1  ;;  %v16788_v30 = vld [vmem:[#allocation6 + $0x6ac] ss:$16 sps:$4 sm:$0xff]   ;;  %v16786_v32 = vld [vmem:[#allocation6 + $0x6a8] ss:$16 sps:$4 sm:$0xff]  }
  0xab   : > { %2037 = vmatpush2.bf16.msra.mxu0 %v16743_v61  ;;  %v403_v61 = vld [vmem:[#allocation2 + $0x48] sm:$0x11]  ;;  %v470_v13 = vrot.slane %v468_v63, 5  ;;  %v473_v14 = vrot.slane %v471_v0, 6  ;;  %340 = vst [vmem:[#allocation2 + $0x50] sm:$0x33] %v339_v15 }
  0xac   : > { %2088 = vmatpush2.bf16.msra.mxu1 %v16744_v62  ;;  %2038 = vmatprep.subr.bf16.mxu0 %v16745_v1  ;;  %v426_v62 = vrot.slane %v424_v48, 7  ;;  %v404_v17 = vsel %vm19796_vm9, %v369_v5, %v403_v61  ;;  %v968_v48 = vor.u32 %v967_v36, %v963_v35  ;;  %v956_v55 = vor.u32 %v955_v40, %v951_v39  ;;  %v16794_v35 = vld [vmem:[#allocation6 + $0x68c] ss:$16 sps:$4 sm:$0xff]   ;;  %v16797_v36 = vld [vmem:[#allocation6 + $0xa64] ss:$16 sps:$4 sm:$0xff]  }
  0xad   : > { %2089 = vmatprep.subr.bf16.mxu1 %v16747_v2  ;;  %v466_v2 = vrot.slane %v465_v34, 4  ;;  %405 = vst [vmem:[#allocation2 + $0x48] sm:$0x11] %v404_v17  ;;  %v474_v22 = vor.u32 %v473_v14, %v470_v13  ;;  %v16777_v13 = vld [vmem:[#allocation6 + $0xac0] ss:$16 sps:$4 sm:$0xff]  }
  0xae   : > { %v427_v12 = vor.u32 %v426_v62, %v423_v59  ;;  %v510_v34 = vld [vmem:[#allocation2 + $0x8] sm:$0xff]  ;;  %v16800_v40 = vld [vmem:[#allocation6 + $0x66c] ss:$16 sps:$4 sm:$0xff]  }
  0xaf   : > { %2039 = vmatpush2.bf16.msra.mxu0 %v16749_v18  ;;  %v498_v18 = vld [vmem:[#allocation2 + $0x10] sm:$0x77]  ;;  %v475_v29 = vrot.slane %v474_v22, 4  ;;  %v505_v33 = vld [vmem:[#allocation2] sm:$0xff]  ;;  %v16795_v39 = vld [vmem:[#allocation6 + $0xa60] ss:$16 sps:$4 sm:$0xff]  }
  0xb0   : > { %2090 = vmatpush2.bf16.msra.mxu1 %v16750_v19  ;;  %2040 = vmatprep.subr.bf16.mxu0 %v16751_v24  ;;  %v450_v21 = vsel %vm19817_vm12, %v427_v12, %v449_v6  ;;  %v496_v24 = vsel %vm19833_vm3, %v466_v2, %v495_v60  ;;  %v16774_v12 = vld [vmem:[#allocation6 + $0x6e8] ss:$16 sps:$4 sm:$0xff]   ;;  %v16837_v1 = vld [vmem:[#allocation6 + $0xb80] ss:$16 sps:$4 sm:$0xff]   ;;  %v16848_v19 = vld [vmem:[#allocation6 + $0x76c] ss:$16 sps:$4 sm:$0xff]  }
  0xb1   : > { %2091 = vmatprep.subr.bf16.mxu1 %v16753_v37  ;;  %451 = vst [vmem:[#allocation2 + $0x48] sm:$0xee] %v450_v21  ;;  %497 = vst [vmem:[#allocation2 + $0x20] sm:$0x77] %v496_v24  ;;  %v499_v31 = vsel %vm19833_vm3, %v475_v29, %v498_v18  ;;  %v16785_v21 = vld [vmem:[#allocation6 + $0xaa4] ss:$16 sps:$4 sm:$0xff]  }
  0xb2   : > { %500 = vst [vmem:[#allocation2 + $0x10] sm:$0x77] %v499_v31  ;;  %v508_v37 = vld [vmem:[#allocation2 + $0x50] sm:$0xff]  ;;  %v16791_v31 = vld [vmem:[#allocation6 + $0xa84] ss:$16 sps:$4 sm:$0xff]  }
  0xb3   : > { %2041 = vmatpush2.bf16.msra.mxu0 %v16755_v42  ;;  %v19850_v38 = vcombine.high %v505_v33, %v508_v37  ;;  %v19853_v41 = vcombine.low %v505_v33, %v508_v37  ;;  %v16792_v37 = vld [vmem:[#allocation6 + $0x688] ss:$16 sps:$4 sm:$0xff]  }
  0xb4   : > { %2092 = vmatpush2.bf16.msra.mxu1 %v16756_v43  ;;  %2042 = vmatprep.subr.bf16.mxu0 %v16757_v50 }
  0xb5   : > { %2093 = vmatprep.subr.bf16.mxu1 %v16759_v51  ;;  %v989_v46 = vshll.u32 %v19850_v38, 16  ;;  %v987_v49 = vshrl.u32 %v19850_v38, 16  ;;  %v975_v50 = vshrl.u32 %v19853_v41, 16  ;;  %v977_v51 = vshll.u32 %v19853_v41, 16 }
  0xb7   : > { %2043 = vmatpush2.bf16.msra.mxu0 %v16761_v7  ;;  %v991_v54 = vrot.slane %v989_v46, 1  ;;  %v979_v60 = vrot.slane %v977_v51, 1  ;;  %v16779_v7 = vld [vmem:[#allocation6 + $0xac4] ss:$16 sps:$4 sm:$0xff]   ;;  %v16801_v46 = vld [vmem:[#allocation6 + $0xa40] ss:$16 sps:$4 sm:$0xff]  }
  0xb8   : > { %2094 = vmatpush2.bf16.msra.mxu1 %v16762_v8  ;;  %2114 = vmatprep.subr.bf16.mxu0 %v16773_v23  ;;  %v705_v42 = vld [vmem:[#allocation2 + $0x20] sm:$0x11]  ;;  %v511_v45 = vld [vmem:[#allocation2 + $0x48] sm:$0xff] }
  0xb9   : > { %2165 = vmatprep.subr.bf16.mxu1 %v16776_v28  ;;  %v19855_v43 = vcombine.high %v510_v34, %v705_v42  ;;  %v19858_v47 = vcombine.low %v510_v34, %v705_v42  ;;  %v706_v53 = vld [vmem:[#allocation2 + $0x10] sm:$0x11]  ;;  %v992_v63 = vor.u32 %v991_v54, %v987_v49  ;;  %v980_v2 = vor.u32 %v979_v60, %v975_v50  ;;  %v16783_v28 = vld [vmem:[#allocation6 + $0xaa0] ss:$16 sps:$4 sm:$0xff]   ;;  %v16803_v42 = vld [vmem:[#allocation6 + $0xa44] ss:$16 sps:$4 sm:$0xff]  }
  0xba   : > { %v19865_v57 = vcombine.high %v511_v45, %v706_v53  ;;  %v19867_v59 = vcombine.low %v511_v45, %v706_v53  ;;  %v16780_v23 = vld [vmem:[#allocation6 + $0x6c8] ss:$16 sps:$4 sm:$0xff]   ;;  %v16789_v34 = vld [vmem:[#allocation6 + $0xa80] ss:$16 sps:$4 sm:$0xff]   ;;  %v16809_v49 = vld [vmem:[#allocation6 + $0xa24] ss:$16 sps:$4 sm:$0xff]  }
  0xbb   : > { %v970_v52 = vshll.u32 %v19855_v43, 16  ;;  %v958_v56 = vshll.u32 %v19858_v47, 16  ;;  %v1025_v8 = vshrl.u32 %v19855_v43, 16  ;;  %v1022_v15 = vshrl.u32 %v19858_v47, 16  ;;  %v16798_v45 = vld [vmem:[#allocation6 + $0x668] ss:$16 sps:$4 sm:$0xff]  }
  0xbc   : > { %v994_v0 = vshll.u32 %v19865_v57, 16  ;;  %v982_v3 = vshll.u32 %v19867_v59, 16  ;;  %v1031_v16 = vshrl.u32 %v19865_v57, 16  ;;  %v1028_v24 = vshrl.u32 %v19867_v59, 16  ;;  %v16804_v50 = vld [vmem:[#allocation6 + $0x648] ss:$16 sps:$4 sm:$0xff]  }
  0xbd   : > { %v972_v61 = vrot.slane %v970_v52, 1  ;;  %v960_v62 = vrot.slane %v958_v56, 1  ;;  %v16807_v51 = vld [vmem:[#allocation6 + $0xa20] ss:$16 sps:$4 sm:$0xff]   ;;  %v16812_v52 = vld [vmem:[#allocation6 + $0x62c] ss:$16 sps:$4 sm:$0xff]  }
  0xbe   : > { %v996_v10 = vrot.slane %v994_v0, 1  ;;  %v984_v11 = vrot.slane %v982_v3, 1  ;;  %v16815_v53 = vld [vmem:[#allocation6 + $0xa04] ss:$16 sps:$4 sm:$0xff]   ;;  %v16810_v54 = vld [vmem:[#allocation6 + $0x628] ss:$16 sps:$4 sm:$0xff]  }
  0xbf   : > { %v973_v5 = vsel %vm949_vm5, %v968_v48, %v972_v61  ;;  %v19873_v6 = vsel %vm949_vm5, %v956_v55, %v960_v62  ;;  %v19877_v14 = vor.u32 %v1025_v8, %v972_v61  ;;  %v19893_v29 = vor.u32 %v1022_v15, %v960_v62  ;;  %v16806_v48 = vld [vmem:[#allocation6 + $0x64c] ss:$16 sps:$4 sm:$0xff]   ;;  %v16813_v55 = vld [vmem:[#allocation6 + $0xa00] ss:$16 sps:$4 sm:$0xff]   ;;  %v16816_v61 = vld [vmem:[#allocation6 + $0x608] ss:$16 sps:$4 sm:$0xff]  }
  0xc0   : > { %2044 = vmatprep.mubr.bf16.mxu0 %v973_v5  ;;  %v19882_v17 = vsel %vm949_vm5, %v992_v63, %v996_v10  ;;  %v19885_v18 = vsel %vm949_vm5, %v980_v2, %v984_v11  ;;  %v19888_v22 = vor.u32 %v1031_v16, %v996_v10  ;;  %v19896_v33 = vor.u32 %v1028_v24, %v984_v11  ;;  %v16818_v56 = vld [vmem:[#allocation6 + $0x60c] ss:$16 sps:$4 sm:$0xff]   ;;  %v278_v60 = vld [vmem:[%s19716_s26 + $0x10] sm:$0x33]  ;;  %v346_v2 = vld [vmem:[%s19716_s26 + $0x10] sm:$0xcc] }
  0xc1   : > { %2045 = vmatmul.mubr.bf16.vlgmr.msra.gmra.mxu0 %v19873_v6  ;;  %2095 = vmatprep.mubr.bf16.mxu1 %v19882_v17  ;;  %v16821_v62 = vld [vmem:[#allocation6 + $0xbe4] ss:$16 sps:$4 sm:$0xff]   ;;  %v288_v63 = vshll.u32 %v278_v60, 16  ;;  %v301_v0 = vshrl.u32 %v278_v60, 16  ;;  %v16819_v3 = vld [vmem:[#allocation6 + $0xbe0] ss:$16 sps:$4 sm:$0xff]  }
  0xc2   : > { %2115 = vmatpush1.bf16.msra.mxu0 %v16771_v4  ;;  %2096 = vmatmul.mubr.bf16.vlgmr.msra.gmra.mxu1 %v19885_v18  ;;  %v16824_v4 = vld [vmem:[#allocation6 + $0x7ec] ss:$16 sps:$4 sm:$0xff]   ;;  %v365_v8 = vshll.u32 %v346_v2, 16  ;;  %v16827_v10 = vld [vmem:[#allocation6 + $0xbc4] ss:$16 sps:$4 sm:$0xff]  }
  0xc3   : > { %2116 = vmatprep.subr.bf16.mxu0 %v16779_v7  ;;  %2054 = vmatprep.mubr.bf16.mxu0 %v19877_v14  ;;  %v362_v7 = vshrl.u32 %v346_v2, 16  ;;  %v290_v11 = vrot.slane %v288_v63, 5  ;;  %v411_v15 = vld [vmem:[%s19716_s26 + $0x28] sm:$0x33]  ;;  %v16839_v63 = vld [vmem:[#allocation6 + $0xb84] ss:$16 sps:$4 sm:$0xff]  }
  0xc4   : > { %2166 = vmatpush1.bf16.msra.mxu1 %v16774_v12  ;;  %2105 = vmatprep.mubr.bf16.mxu1 %v19888_v22  ;;  %v303_v12 = vrot.slane %v301_v0, 4  ;;  %v16822_v24 = vld [vmem:[#allocation6 + $0x7e8] ss:$16 sps:$4 sm:$0xff]  }
  0xc5   : > { %2167 = vmatprep.subr.bf16.mxu1 %v16782_v20  ;;  %v364_v16 = vrot.slane %v362_v7, 7  ;;  %v429_v20 = vshrl.u32 %v411_v15, 16  ;;  %v16834_v0 = vld [vmem:[#allocation6 + $0x7a8] ss:$16 sps:$4 sm:$0xff]  }
  0xc6   : > { %2117 = vmatpush1.bf16.msra.mxu0 %v16777_v13  ;;  %v390_v13 = vld [vmem:[#allocation2 + $0x68] sm:$0xcc]  ;;  %v16840_v7 = vld [vmem:[#allocation6 + $0x788] ss:$16 sps:$4 sm:$0xff]  }
  0xc7   : > { %2118 = vmatprep.subr.bf16.mxu0 %v16785_v21  ;;  %v432_v21 = vshll.u32 %v411_v15, 16 }
  0xc8   : > { %2168 = vmatpush1.bf16.msra.mxu1 %v16780_v23  ;;  %v457_v23 = vld [vmem:[%s19716_s26 + $0x28] sm:$0xcc] }
  0xc9   : > { %2055 = vmatmul.mubr.bf16.gmra.mxu0 %v19893_v29  ;;  %2169 = vmatprep.subr.bf16.mxu1 %v16788_v30 }
  0xca   : > { %2119 = vmatpush1.bf16.msra.mxu0 %v16783_v28  ;;  %2106 = vmatmul.mubr.bf16.gmra.mxu1 %v19896_v33  ;;  %v304_v28 = vor.u32 %v303_v12, %v290_v11 }
  0xcb   : > { %2120 = vmatprep.subr.bf16.mxu0 %v16791_v31  ;;  %2197 = vmatprep.mubr.bf16.mxu1 %v973_v5  ;;  %v325_v5 = vld [vmem:[#allocation2 + $0x58] sm:$0x88]  ;;  %v406_v31 = vld [vmem:[#allocation2 + $0x40] sm:$0x11] }
  0xcc   : > { %2170 = vmatpush1.bf16.msra.mxu1 %v16786_v32  ;;  %v326_v30 = vsel %vm19741_vm14, %v290_v11, %v325_v5  ;;  %v477_v32 = vshrl.u32 %v457_v23, 16  ;;  %vm3813_vm14 = vcmask 1046528  }
  0xcd   : > { %2171 = vmatprep.subr.bf16.mxu1 %v16794_v35  ;;  %327 = vst [vmem:[#allocation2 + $0x58] sm:$0x88] %v326_v30  ;;  %v341_v35 = vld [vmem:[#allocation2 + $0x68] sm:$0x33]  ;;  %v16854_v30 = vld [vmem:[#allocation6 + $0x74c] ss:$16 sps:$4 sm:$0xff]  }
  0xce   : > { %2121 = vmatpush1.bf16.msra.mxu0 %v16789_v34  ;;  %v480_v34 = vshll.u32 %v457_v23, 16 }
  0xcf   : > { %2122 = vmatprep.subr.bf16.mxu0 %v16797_v36  ;;  %v367_v36 = vor.u32 %v365_v8, %v364_v16 }
  0xd0   : > { %2172 = vmatpush1.bf16.msra.mxu1 %v16792_v37  ;;  %v370_v37 = vrot.slane %v364_v16, 4  ;;  %v16851_v16 = vld [vmem:[#allocation6 + $0xb44] ss:$16 sps:$4 sm:$0xff]  }
  0xd1   : > { %2173 = vmatprep.subr.bf16.mxu1 %v16800_v40  ;;  %v434_v40 = vrot.slane %v432_v21, 7  ;;  %v391_v58 = vsel %vm19778_vm8, %v367_v36, %v390_v13  ;;  %v16857_v36 = vld [vmem:[#allocation6 + $0xb24] ss:$16 sps:$4 sm:$0xff]   ;;  %vm21478_vm8 = vmmov %vm21477_vm10 }
  0xd2   : > { %2123 = vmatpush1.bf16.msra.mxu0 %v16795_v39  ;;  %v431_v39 = vrot.slane %v429_v20, 6  ;;  %392 = vst [vmem:[#allocation2 + $0x68] sm:$0xcc] %v391_v58  ;;  %v16858_v58 = vld [vmem:[#allocation6 + $0x728] ss:$16 sps:$4 sm:$0xff]   ;;  %vm21483_vm2 = vmmov %vm21478_vm8 }
  0xd3   : > { %2124 = vmatprep.subr.bf16.mxu0 %v16803_v42  ;;  %v305_v42 = vrot.slane %v304_v28, 4  ;;  %v16849_v28 = vld [vmem:[#allocation6 + $0xb40] ss:$16 sps:$4 sm:$0xff]   ;;  %vm21485_vm7 = vmmov %vm21483_vm2 }
  0xd4   : > { %2174 = vmatpush1.bf16.msra.mxu1 %v16798_v45  ;;  %v452_v45 = vld [vmem:[#allocation2 + $0x40] sm:$0xee]  ;;  %v506_v2 = vld [vmem:[#allocation2 + $0x58] sm:$0xff]  ;;  %vm21486_vm0 = vmmov %vm21483_vm2 }
  0xd5   : > { %2175 = vmatprep.subr.bf16.mxu1 %v16806_v48  ;;  %v482_v48 = vrot.slane %v480_v34, 6 }
  0xd6   : > { %2125 = vmatpush1.bf16.msra.mxu0 %v16801_v46  ;;  %v479_v46 = vrot.slane %v477_v32, 5 }
  0xd7   : > { %2126 = vmatprep.subr.bf16.mxu0 %v16809_v49  ;;  %v16825_v49 = vld [vmem:[#allocation6 + $0xbc0] ss:$16 sps:$4 sm:$0xff]  }
  0xd8   : > { %2176 = vmatpush1.bf16.msra.mxu1 %v16804_v50  ;;  %v16830_v50 = vld [vmem:[#allocation6 + $0x7cc] ss:$16 sps:$4 sm:$0xff]  }
  0xd9   : > { %2177 = vmatprep.subr.bf16.mxu1 %v16812_v52  ;;  %v435_v52 = vor.u32 %v434_v40, %v431_v39  ;;  %v16852_v39 = vld [vmem:[#allocation6 + $0x748] ss:$16 sps:$4 sm:$0xff]   ;;  %v16855_v40 = vld [vmem:[#allocation6 + $0xb20] ss:$16 sps:$4 sm:$0xff]  }
  0xda   : > { %2127 = vmatpush1.bf16.msra.mxu0 %v16807_v51  ;;  %v407_v51 = vsel %vm19796_vm9, %v370_v37, %v406_v31  ;;  %vm21484_vm9 = vmmov %vm21483_vm2 }
  0xdb   : > { %2128 = vmatprep.subr.bf16.mxu0 %v16815_v53  ;;  %v16833_v53 = vld [vmem:[#allocation6 + $0xba4] ss:$16 sps:$4 sm:$0xff]   ;;  %408 = vst [vmem:[#allocation2 + $0x40] sm:$0x11] %v407_v51  ;;  %v453_v60 = vsel %vm19817_vm12, %v435_v52, %v452_v45  ;;  %v16861_v51 = vld [vmem:[#allocation6 + $0xb00] ss:$16 sps:$4 sm:$0xff]   ;;  %vm21321_vm12 = vmor %vm488_vm6, %vm491_vm11 }
  0xdc   : > { %2178 = vmatpush1.bf16.msra.mxu1 %v16810_v54  ;;  %v342_v54 = vsel %vm19761_vm4, %v305_v42, %v341_v35  ;;  %454 = vst [vmem:[#allocation2 + $0x40] sm:$0xee] %v453_v60  ;;  %v16860_v42 = vld [vmem:[#allocation6 + $0x72c] ss:$16 sps:$4 sm:$0xff]   ;;  %v16864_v60 = vld [vmem:[#allocation6 + $0x708] ss:$16 sps:$4 sm:$0xff]  }
  0xdd   : > { %2179 = vmatprep.subr.bf16.mxu1 %v16818_v56  ;;  %v16828_v56 = vld [vmem:[#allocation6 + $0x7c8] ss:$16 sps:$4 sm:$0xff]   ;;  %343 = vst [vmem:[#allocation2 + $0x68] sm:$0x33] %v342_v54  ;;  %v16866_v52 = vld [vmem:[#allocation6 + $0x70c] ss:$16 sps:$4 sm:$0xff]  }
  0xde   : > { %2129 = vmatpush1.bf16.msra.mxu0 %v16813_v55  ;;  %v483_v55 = vor.u32 %v482_v48, %v479_v46  ;;  %vm5351_vm4 = vcmask 1044480  }
  0xdf   : > { %2130 = vmatprep.subr.bf16.mxu0 %v16821_v62  ;;  %v16836_v62 = vld [vmem:[#allocation6 + $0x7ac] ss:$16 sps:$4 sm:$0xff]  }
  0xe0   : > { %2180 = vmatpush1.bf16.msra.mxu1 %v16816_v61  ;;  %v501_v61 = vld [vmem:[#allocation2 + $0x38] sm:$0x77]  ;;  %v484_v44 = vrot.slane %v483_v55, 4  ;;  %v16873_v55 = vld [vmem:[#allocation6 + $0x8ec] ss:$16 sps:$4 sm:$0xff]  }
  0xe1   : > { %2181 = vmatprep.subr.bf16.mxu1 %v16824_v4  ;;  %v16845_v4 = vld [vmem:[#allocation6 + $0xb64] ss:$16 sps:$4 sm:$0xff]  }
  0xe2   : > { %2131 = vmatpush2.bf16.msra.mxu0 %v16819_v3  ;;  %v502_v9 = vsel %vm19833_vm3, %v484_v44, %v501_v61  ;;  %v16842_v3 = vld [vmem:[#allocation6 + $0x78c] ss:$16 sps:$4 sm:$0xff]  }
  0xe3   : > { %2132 = vmatprep.subr.bf16.mxu0 %v16827_v10  ;;  %503 = vst [vmem:[#allocation2 + $0x38] sm:$0x77] %v502_v9  ;;  %v16843_v10 = vld [vmem:[#allocation6 + $0xb60] ss:$16 sps:$4 sm:$0xff]   ;;  %v512_v11 = vld [vmem:[#allocation2 + $0x40] sm:$0xff] }
  0xe4   : > { %2182 = vmatpush2.bf16.msra.mxu1 %v16822_v24  ;;  %v509_v5 = vld [vmem:[#allocation2 + $0x68] sm:$0xff]  ;;  %v16846_v24 = vld [vmem:[#allocation6 + $0x768] ss:$16 sps:$4 sm:$0xff]   ;;  %v16876_v44 = vld [vmem:[#allocation6 + $0xaec] ss:$16 sps:$4 sm:$0xff]  }
  0xe5   : > { %2183 = vmatprep.subr.bf16.mxu1 %v16830_v50  ;;  %v19916_v8 = vcombine.high %v506_v2, %v509_v5  ;;  %v19918_v12 = vcombine.low %v506_v2, %v509_v5  ;;  %v16863_v50 = vld [vmem:[#allocation6 + $0xb04] ss:$16 sps:$4 sm:$0xff]   ;;  %v16874_v9 = vld [vmem:[#allocation6 + $0xae8] ss:$16 sps:$4 sm:$0xff]  }
  0xe6   : > { %2133 = vmatpush2.bf16.msra.mxu0 %v16825_v49  ;;  %v16877_v2 = vld [vmem:[#allocation6 + $0x8c8] ss:$16 sps:$4 sm:$0xff]  }
  0xe7   : > { %2134 = vmatprep.subr.bf16.mxu0 %v16833_v53  ;;  %v1011_v13 = vshrl.u32 %v19916_v8, 16  ;;  %v1013_v15 = vshll.u32 %v19916_v8, 16  ;;  %v1001_v35 = vshll.u32 %v19918_v12, 16  ;;  %v999_v46 = vshrl.u32 %v19918_v12, 16 }
  0xe8   : > { %2184 = vmatpush2.bf16.msra.mxu1 %v16828_v56 }
  0xe9   : > { %2185 = vmatprep.subr.bf16.mxu1 %v16836_v62  ;;  %v1015_v23 = vrot.slane %v1013_v15, 1  ;;  %v1003_v48 = vrot.slane %v1001_v35, 1  ;;  %v16879_v62 = vld [vmem:[#allocation6 + $0x8cc] ss:$16 sps:$4 sm:$0xff]  }
  0xea   : > { %2135 = vmatpush2.bf16.msra.mxu0 %v16831_v27  ;;  %v707_v20 = vld [vmem:[#allocation2 + $0x38] sm:$0x11]  ;;  %v16871_v27 = vld [vmem:[#allocation6 + $0x8e8] ss:$16 sps:$4 sm:$0xff]   ;;  %v16897_v15 = vld [vmem:[#allocation6 + $0x86c] ss:$16 sps:$4 sm:$0xff]  }
  0xeb   : > { %2136 = vmatprep.subr.bf16.mxu0 %v16839_v63  ;;  %v19922_v21 = vcombine.high %v512_v11, %v707_v20  ;;  %v19924_v31 = vcombine.low %v512_v11, %v707_v20  ;;  %v1016_v32 = vor.u32 %v1015_v23, %v1011_v13  ;;  %v1004_v53 = vor.u32 %v1003_v48, %v999_v46  ;;  %v16891_v11 = vld [vmem:[#allocation6 + $0x88c] ss:$16 sps:$4 sm:$0xff]   ;;  %v16889_v13 = vld [vmem:[#allocation6 + $0x888] ss:$16 sps:$4 sm:$0xff]  }
  0xec   : > { %2186 = vmatpush2.bf16.msra.mxu1 %v16834_v0  ;;  %v16900_v20 = vld [vmem:[#allocation6 + $0xa6c] ss:$16 sps:$4 sm:$0xff]  }
  0xed   : > { %2187 = vmatprep.subr.bf16.mxu1 %v16842_v3  ;;  %v1018_v34 = vshll.u32 %v19922_v21, 16  ;;  %v1006_v49 = vshll.u32 %v19924_v31, 16  ;;  %v1037_v56 = vshrl.u32 %v19922_v21, 16  ;;  %v1034_v0 = vshrl.u32 %v19924_v31, 16  ;;  %v16885_v3 = vld [vmem:[#allocation6 + $0x8ac] ss:$16 sps:$4 sm:$0xff]  }
  0xee   : > { %2137 = vmatpush2.bf16.msra.mxu0 %v16837_v1  ;;  %v16882_v1 = vld [vmem:[#allocation6 + $0xacc] ss:$16 sps:$4 sm:$0xff]  }
  0xef   : > { %2138 = vmatprep.subr.bf16.mxu0 %v16845_v4  ;;  %v1020_v37 = vrot.slane %v1018_v34, 1  ;;  %v1008_v54 = vrot.slane %v1006_v49, 1  ;;  %v16880_v4 = vld [vmem:[#allocation6 + $0xac8] ss:$16 sps:$4 sm:$0xff]   ;;  %v16903_v23 = vld [vmem:[#allocation6 + $0x84c] ss:$16 sps:$4 sm:$0xff]  }
  0xf0   : > { %2188 = vmatpush2.bf16.msra.mxu1 %v16840_v7  ;;  %v16883_v7 = vld [vmem:[#allocation6 + $0x8a8] ss:$16 sps:$4 sm:$0xff]   ;;  %v16912_v34 = vld [vmem:[#allocation6 + $0xa2c] ss:$16 sps:$4 sm:$0xff]  }
  0xf1   : > { %2189 = vmatprep.subr.bf16.mxu1 %v16848_v19  ;;  %v1021_v45 = vsel %vm949_vm5, %v1016_v32, %v1020_v37  ;;  %v19933_v61 = vsel %vm949_vm5, %v1004_v53, %v1008_v54  ;;  %v19935_v63 = vor.u32 %v1037_v56, %v1020_v37  ;;  %v19941_v5 = vor.u32 %v1034_v0, %v1008_v54  ;;  %v16886_v19 = vld [vmem:[#allocation6 + $0xaa8] ss:$16 sps:$4 sm:$0xff]   ;;  %v16909_v32 = vld [vmem:[#allocation6 + $0x82c] ss:$16 sps:$4 sm:$0xff]  }
  0xf2   : > { %2139 = vmatpush2.bf16.msra.mxu0 %v16843_v10  ;;  %2146 = vmatprep.mubr.bf16.mxu0 %v1021_v45  ;;  %v16888_v10 = vld [vmem:[#allocation6 + $0xaac] ss:$16 sps:$4 sm:$0xff]   ;;  %v16913_v37 = vld [vmem:[#allocation6 + $0x808] ss:$16 sps:$4 sm:$0xff]  }
  0xf3   : > { %2140 = vmatprep.subr.bf16.mxu0 %v16851_v16  ;;  %v16895_v16 = vld [vmem:[#allocation6 + $0x868] ss:$16 sps:$4 sm:$0xff]   ;;  %v16915_v35 = vld [vmem:[#allocation6 + $0x80c] ss:$16 sps:$4 sm:$0xff]  }
  0xf4   : > { %2190 = vmatpush2.bf16.msra.mxu1 %v16846_v24  ;;  %v16898_v24 = vld [vmem:[#allocation6 + $0xa68] ss:$16 sps:$4 sm:$0xff]   ;;  %v16924_v46 = vld [vmem:[#allocation6 + $0xbec] ss:$16 sps:$4 sm:$0xff]  }
  0xf5   : > { %2191 = vmatprep.subr.bf16.mxu1 %v16854_v30  ;;  %v16906_v30 = vld [vmem:[#allocation6 + $0xa4c] ss:$16 sps:$4 sm:$0xff]   ;;  %v16922_v49 = vld [vmem:[#allocation6 + $0xbe8] ss:$16 sps:$4 sm:$0xff]  }
  0xf6   : > { %2141 = vmatpush2.bf16.msra.mxu0 %v16849_v28  ;;  %v16901_v28 = vld [vmem:[#allocation6 + $0x848] ss:$16 sps:$4 sm:$0xff]   ;;  %v16927_v48 = vld [vmem:[#allocation6 + $0x9cc] ss:$16 sps:$4 sm:$0xff]  }
  0xf7   : > { %2142 = vmatprep.subr.bf16.mxu0 %v16857_v36  ;;  %v16910_v36 = vld [vmem:[#allocation6 + $0xa28] ss:$16 sps:$4 sm:$0xff]   ;;  %v16936_v54 = vld [vmem:[#allocation6 + $0xbac] ss:$16 sps:$4 sm:$0xff]  }
  0xf8   : > { %2192 = vmatpush2.bf16.msra.mxu1 %v16852_v39  ;;  %v16918_v39 = vld [vmem:[#allocation6 + $0xa0c] ss:$16 sps:$4 sm:$0xff]   ;;  %v16931_v53 = vld [vmem:[#allocation6 + $0x9a8] ss:$16 sps:$4 sm:$0xff]  }
  0xf9   : > { %2193 = vmatprep.subr.bf16.mxu1 %v16860_v42  ;;  %v16916_v42 = vld [vmem:[#allocation6 + $0xa08] ss:$16 sps:$4 sm:$0xff]   ;;  %v16948_v0 = vld [vmem:[#allocation6 + $0xb6c] ss:$16 sps:$4 sm:$0xff]  }
  0xfa   : > { %2143 = vmatpush2.bf16.msra.mxu0 %v16855_v40  ;;  %v16921_v40 = vld [vmem:[#allocation6 + $0x9ec] ss:$16 sps:$4 sm:$0xff]   ;;  %v16934_v56 = vld [vmem:[#allocation6 + $0xba8] ss:$16 sps:$4 sm:$0xff]  }
  0xfb   : > { %2144 = vmatprep.subr.bf16.mxu0 %v16863_v50  ;;  %v16925_v50 = vld [vmem:[#allocation6 + $0x9c8] ss:$16 sps:$4 sm:$0xff]  }
  0xfc   : > { %2194 = vmatpush2.bf16.msra.mxu1 %v16858_v58  ;;  %v16930_v58 = vld [vmem:[#allocation6 + $0xbcc] ss:$16 sps:$4 sm:$0xff]  }
  0xfd   : > { %2195 = vmatprep.subr.bf16.mxu1 %v16866_v52  ;;  %v16928_v52 = vld [vmem:[#allocation6 + $0xbc8] ss:$16 sps:$4 sm:$0xff]  }
  0xfe   : > { %2145 = vmatpush2.bf16.msra.mxu0 %v16861_v51  ;;  %v16933_v51 = vld [vmem:[#allocation6 + $0x9ac] ss:$16 sps:$4 sm:$0xff]  }
  0xff   : > { %2216 = vmatprep.subr.bf16.mxu0 %v16873_v55  ;;  %v16939_v55 = vld [vmem:[#allocation6 + $0x98c] ss:$16 sps:$4 sm:$0xff]  }
 0x100   : > { %2196 = vmatpush2.bf16.msra.mxu1 %v16864_v60  ;;  %v16937_v60 = vld [vmem:[#allocation6 + $0x988] ss:$16 sps:$4 sm:$0xff]  }
 0x101   : > { %2147 = vmatmul.mubr.bf16.vlgmr.msra.gmra.mxu0 %v19933_v61  ;;  %2267 = vmatprep.subr.bf16.mxu1 %v16876_v44  ;;  %v16945_v44 = vld [vmem:[#allocation6 + $0x96c] ss:$16 sps:$4 sm:$0xff]  }
 0x102   : > { %2217 = vmatpush1.bf16.msra.mxu0 %v16871_v27  ;;  %2156 = vmatprep.mubr.bf16.mxu0 %v19935_v63  ;;  %v16942_v27 = vld [vmem:[#allocation6 + $0xb8c] ss:$16 sps:$4 sm:$0xff]  }
 0x103   : > { %2218 = vmatprep.subr.bf16.mxu0 %v16879_v62  ;;  %2198 = vmatmul.mubr.bf16.vlgmr.msra.gmra.mxu1 %v19873_v6  ;;  %v16894_v6 = vld [vmem:[#allocation6 + $0xa8c] ss:$16 sps:$4 sm:$0xff]   ;;  %v16940_v62 = vld [vmem:[#allocation6 + $0xb88] ss:$16 sps:$4 sm:$0xff]  }
 0x104   : > { %2268 = vmatpush1.bf16.msra.mxu1 %v16874_v9  ;;  %2207 = vmatprep.mubr.bf16.mxu1 %v19877_v14  ;;  %v16892_v14 = vld [vmem:[#allocation6 + $0xa88] ss:$16 sps:$4 sm:$0xff]  }
 0x105   : > { %2269 = vmatprep.subr.bf16.mxu1 %v16882_v1  ;;  %v16943_v9 = vld [vmem:[#allocation6 + $0x968] ss:$16 sps:$4 sm:$0xff]  }
 0x106   : > { %2219 = vmatpush1.bf16.msra.mxu0 %v16877_v2  ;;  %v16951_v2 = vld [vmem:[#allocation6 + $0x94c] ss:$16 sps:$4 sm:$0xff]   ;;  %v16946_v1 = vld [vmem:[#allocation6 + $0xb68] ss:$16 sps:$4 sm:$0xff]  }
 0x107   : > { %2220 = vmatprep.subr.bf16.mxu0 %v16885_v3  ;;  %v16949_v3 = vld [vmem:[#allocation6 + $0x948] ss:$16 sps:$4 sm:$0xff]  }
 0x108   : > { %2270 = vmatpush1.bf16.msra.mxu1 %v16880_v4  ;;  %v16954_v4 = vld [vmem:[#allocation6 + $0xb4c] ss:$16 sps:$4 sm:$0xff]  }
 0x109   : > { %2157 = vmatmul.mubr.bf16.gmra.mxu0 %v19941_v5  ;;  %2271 = vmatprep.subr.bf16.mxu1 %v16888_v10  ;;  %v16952_v10 = vld [vmem:[#allocation6 + $0xb48] ss:$16 sps:$4 sm:$0xff]  }
 0x10a   : > { %2221 = vmatpush1.bf16.msra.mxu0 %v16883_v7  ;;  %2248 = vmatprep.mubr.bf16.mxu0 %v19882_v17  ;;  %v16904_v17 = vld [vmem:[#allocation6 + $0xa48] ss:$16 sps:$4 sm:$0xff]   ;;  %v16957_v7 = vld [vmem:[#allocation6 + $0x92c] ss:$16 sps:$4 sm:$0xff]  }
 0x10b   : > { %2222 = vmatprep.subr.bf16.mxu0 %v16891_v11  ;;  %2208 = vmatmul.mubr.bf16.gmra.mxu1 %v19893_v29  ;;  %v16907_v29 = vld [vmem:[#allocation6 + $0x828] ss:$16 sps:$4 sm:$0xff]  }
 0x10c   : > { %2272 = vmatpush1.bf16.msra.mxu1 %v16886_v19  ;;  %2299 = vmatprep.mubr.bf16.mxu1 %v1021_v45  ;;  %v16919_v45 = vld [vmem:[#allocation6 + $0x9e8] ss:$16 sps:$4 sm:$0xff]   ;;  %v16960_v19 = vld [vmem:[#allocation6 + $0xb2c] ss:$16 sps:$4 sm:$0xff]  }
 0x10d   : > { %2273 = vmatprep.subr.bf16.mxu1 %v16894_v6  ;;  %v16955_v11 = vld [vmem:[#allocation6 + $0x928] ss:$16 sps:$4 sm:$0xff]  }
 0x10e   : > { %2223 = vmatpush1.bf16.msra.mxu0 %v16889_v13  ;;  %v16963_v13 = vld [vmem:[#allocation6 + $0x90c] ss:$16 sps:$4 sm:$0xff]   ;;  %v16958_v6 = vld [vmem:[#allocation6 + $0xb28] ss:$16 sps:$4 sm:$0xff]  }
 0x10f   : > { %2224 = vmatprep.subr.bf16.mxu0 %v16897_v15  ;;  %v16961_v15 = vld [vmem:[#allocation6 + $0x908] ss:$16 sps:$4 sm:$0xff]  }
 0x110   : > { %2274 = vmatpush1.bf16.msra.mxu1 %v16892_v14  ;;  %v16966_v14 = vld [vmem:[#allocation6 + $0xb0c] ss:$16 sps:$4 sm:$0xff]  }
 0x111   : > { %2275 = vmatprep.subr.bf16.mxu1 %v16900_v20  ;;  %v16964_v20 = vld [vmem:[#allocation6 + $0xb08] ss:$16 sps:$4 sm:$0xff]  }
 0x112   : > { %2225 = vmatpush1.bf16.msra.mxu0 %v16895_v16  ;;  %v16969_v16 = vld [vmem:[#allocation6 + $0xe4] ss:$16 sps:$4 sm:$0xff]  }
 0x113   : > { %2226 = vmatprep.subr.bf16.mxu0 %v16903_v23  ;;  %v16967_v23 = vld [vmem:[#allocation6 + $0xe0] ss:$16 sps:$4 sm:$0xff]  }
 0x114   : > { %2276 = vmatpush1.bf16.msra.mxu1 %v16898_v24  ;;  %v16972_v24 = vld [vmem:[#allocation6 + $0x2e4] ss:$16 sps:$4 sm:$0xff]  }
 0x115   : > { %2277 = vmatprep.subr.bf16.mxu1 %v16906_v30  ;;  %v16970_v30 = vld [vmem:[#allocation6 + $0x2e0] ss:$16 sps:$4 sm:$0xff]  }
 0x116   : > { %2227 = vmatpush1.bf16.msra.mxu0 %v16901_v28  ;;  %v16975_v28 = vld [vmem:[#allocation6 + $0xc4] ss:$16 sps:$4 sm:$0xff]  }
 0x117   : > { %2228 = vmatprep.subr.bf16.mxu0 %v16909_v32  ;;  %v16973_v32 = vld [vmem:[#allocation6 + $0xc0] ss:$16 sps:$4 sm:$0xff]  }
 0x118   : > { %2278 = vmatpush1.bf16.msra.mxu1 %v16904_v17  ;;  %v16978_v17 = vld [vmem:[#allocation6 + $0x2c4] ss:$16 sps:$4 sm:$0xff]  }
 0x119   : > { %2279 = vmatprep.subr.bf16.mxu1 %v16912_v34  ;;  %v16976_v34 = vld [vmem:[#allocation6 + $0x2c0] ss:$16 sps:$4 sm:$0xff]  }
 0x11a   : > { %2229 = vmatpush1.bf16.msra.mxu0 %v16907_v29  ;;  %v16981_v29 = vld [vmem:[#allocation6 + $0xa4] ss:$16 sps:$4 sm:$0xff]  }
 0x11b   : > { %2230 = vmatprep.subr.bf16.mxu0 %v16915_v35  ;;  %v16979_v35 = vld [vmem:[#allocation6 + $0xa0] ss:$16 sps:$4 sm:$0xff]  }
 0x11c   : > { %2280 = vmatpush1.bf16.msra.mxu1 %v16910_v36  ;;  %v16984_v36 = vld [vmem:[#allocation6 + $0x2a4] ss:$16 sps:$4 sm:$0xff]  }
 0x11d   : > { %2281 = vmatprep.subr.bf16.mxu1 %v16918_v39  ;;  %v16990_v39 = vld [vmem:[#allocation6 + $0x284] ss:$16 sps:$4 sm:$0xff]  }
 0x11e   : > { %2231 = vmatpush1.bf16.msra.mxu0 %v16913_v37  ;;  %v16982_v37 = vld [vmem:[#allocation6 + $0x2a0] ss:$16 sps:$4 sm:$0xff]  }
 0x11f   : > { %2232 = vmatprep.subr.bf16.mxu0 %v16921_v40  ;;  %v16991_v40 = vld [vmem:[#allocation6 + $0x60] ss:$16 sps:$4 sm:$0xff]  }
 0x120   : > { %2282 = vmatpush1.bf16.msra.mxu1 %v16916_v42  ;;  %v16996_v42 = vld [vmem:[#allocation6 + $0x264] ss:$16 sps:$4 sm:$0xff]  }
 0x121   : > { %2283 = vmatprep.subr.bf16.mxu1 %v16924_v46  ;;  %v16997_v46 = vld [vmem:[#allocation6 + $0x40] ss:$16 sps:$4 sm:$0xff]  }
 0x122   : > { %2233 = vmatpush2.bf16.msra.mxu0 %v16919_v45  ;;  %v16994_v45 = vld [vmem:[#allocation6 + $0x260] ss:$16 sps:$4 sm:$0xff]  }
 0x123   : > { %2234 = vmatprep.subr.bf16.mxu0 %v16927_v48  ;;  %v17002_v48 = vld [vmem:[#allocation6 + $0x244] ss:$16 sps:$4 sm:$0xff]  }
 0x124   : > { %2284 = vmatpush2.bf16.msra.mxu1 %v16922_v49  ;;  %v17005_v49 = vld [vmem:[#allocation6 + $0x24] ss:$16 sps:$4 sm:$0xff]  }
 0x125   : > { %2285 = vmatprep.subr.bf16.mxu1 %v16930_v58  ;;  %v17008_v58 = vld [vmem:[#allocation6 + $0x224] ss:$16 sps:$4 sm:$0xff]  }
 0x126   : > { %2235 = vmatpush2.bf16.msra.mxu0 %v16925_v50  ;;  %v17003_v50 = vld [vmem:[#allocation6 + $0x20] ss:$16 sps:$4 sm:$0xff]  }
 0x127   : > { %2236 = vmatprep.subr.bf16.mxu0 %v16933_v51  ;;  %v17011_v51 = vld [vmem:[#allocation6 + $0x4] ss:$16 sps:$4 sm:$0xff]  }
 0x128   : > { %2286 = vmatpush2.bf16.msra.mxu1 %v16928_v52  ;;  %v17006_v52 = vld [vmem:[#allocation6 + $0x220] ss:$16 sps:$4 sm:$0xff]  }
 0x129   : > { %2287 = vmatprep.subr.bf16.mxu1 %v16936_v54  ;;  %v17014_v54 = vld [vmem:[#allocation6 + $0x204] ss:$16 sps:$4 sm:$0xff]  }
 0x12a   : > { %2237 = vmatpush2.bf16.msra.mxu0 %v16931_v53  ;;  %v17009_v53 = vld [vmem:[#allocation6] ss:$16 sps:$4 sm:$0xff]  }
 0x12b   : > { %2238 = vmatprep.subr.bf16.mxu0 %v16939_v55  ;;  %v17017_v55 = vld [vmem:[#allocation6 + $0x1e4] ss:$16 sps:$4 sm:$0xff]  }
 0x12c   : > { %2288 = vmatpush2.bf16.msra.mxu1 %v16934_v56  ;;  %v17012_v56 = vld [vmem:[#allocation6 + $0x200] ss:$16 sps:$4 sm:$0xff]  }
 0x12d   : > { %2289 = vmatprep.subr.bf16.mxu1 %v16942_v27  ;;  %v17020_v27 = vld [vmem:[#allocation6 + $0x3e4] ss:$16 sps:$4 sm:$0xff]  }
 0x12e   : > { %2239 = vmatpush2.bf16.msra.mxu0 %v16937_v60  ;;  %v17015_v60 = vld [vmem:[#allocation6 + $0x1e0] ss:$16 sps:$4 sm:$0xff]  }
 0x12f   : > { %2240 = vmatprep.subr.bf16.mxu0 %v16945_v44  ;;  %v17023_v44 = vld [vmem:[#allocation6 + $0x1c4] ss:$16 sps:$4 sm:$0xff]  }
 0x130   : > { %2290 = vmatpush2.bf16.msra.mxu1 %v16940_v62  ;;  %v17018_v62 = vld [vmem:[#allocation6 + $0x3e0] ss:$16 sps:$4 sm:$0xff]  }
 0x131   : > { %2291 = vmatprep.subr.bf16.mxu1 %v16948_v0  ;;  %v17026_v0 = vld [vmem:[#allocation6 + $0x3c4] ss:$16 sps:$4 sm:$0xff]  }
 0x132   : > { %2241 = vmatpush2.bf16.msra.mxu0 %v16943_v9  ;;  %v17021_v9 = vld [vmem:[#allocation6 + $0x1c0] ss:$16 sps:$4 sm:$0xff]  }
 0x133   : > { %2242 = vmatprep.subr.bf16.mxu0 %v16951_v2  ;;  %v17029_v2 = vld [vmem:[#allocation6 + $0x1a4] ss:$16 sps:$4 sm:$0xff]  }
 0x134   : > { %2292 = vmatpush2.bf16.msra.mxu1 %v16946_v1  ;;  %v17024_v1 = vld [vmem:[#allocation6 + $0x3c0] ss:$16 sps:$4 sm:$0xff]  }
 0x135   : > { %2293 = vmatprep.subr.bf16.mxu1 %v16954_v4  ;;  %v17032_v4 = vld [vmem:[#allocation6 + $0x3a4] ss:$16 sps:$4 sm:$0xff]  }
 0x136   : > { %2243 = vmatpush2.bf16.msra.mxu0 %v16949_v3  ;;  %v17027_v3 = vld [vmem:[#allocation6 + $0x1a0] ss:$16 sps:$4 sm:$0xff]  }
 0x137   : > { %2244 = vmatprep.subr.bf16.mxu0 %v16957_v7  ;;  %v17035_v7 = vld [vmem:[#allocation6 + $0x184] ss:$16 sps:$4 sm:$0xff]  }
 0x138   : > { %2294 = vmatpush2.bf16.msra.mxu1 %v16952_v10  ;;  %v17030_v10 = vld [vmem:[#allocation6 + $0x3a0] ss:$16 sps:$4 sm:$0xff]  }
 0x139   : > { %2295 = vmatprep.subr.bf16.mxu1 %v16960_v19  ;;  %v17038_v19 = vld [vmem:[#allocation6 + $0x384] ss:$16 sps:$4 sm:$0xff]  }
 0x13a   : > { %2245 = vmatpush2.bf16.msra.mxu0 %v16955_v11  ;;  %v17033_v11 = vld [vmem:[#allocation6 + $0x180] ss:$16 sps:$4 sm:$0xff]  }
 0x13b   : > { %2246 = vmatprep.subr.bf16.mxu0 %v16963_v13  ;;  %v17041_v13 = vld [vmem:[#allocation6 + $0x164] ss:$16 sps:$4 sm:$0xff]  }
 0x13c   : > { %2296 = vmatpush2.bf16.msra.mxu1 %v16958_v6  ;;  %v17036_v6 = vld [vmem:[#allocation6 + $0x380] ss:$16 sps:$4 sm:$0xff]  }
 0x13d   : > { %2297 = vmatprep.subr.bf16.mxu1 %v16966_v14  ;;  %v17044_v14 = vld [vmem:[#allocation6 + $0x364] ss:$16 sps:$4 sm:$0xff]  }
 0x13e   : > { %2247 = vmatpush2.bf16.msra.mxu0 %v16961_v15  ;;  %v17039_v15 = vld [vmem:[#allocation6 + $0x160] ss:$16 sps:$4 sm:$0xff]  }
 0x13f   : > { %3296 = vmatprep.subr.bf16.mxu0 %v16969_v16  ;;  %v17047_v16 = vld [vmem:[#allocation6 + $0x144] ss:$16 sps:$4 sm:$0xff]  }
 0x140   : > { %2298 = vmatpush2.bf16.msra.mxu1 %v16964_v20  ;;  %v17042_v20 = vld [vmem:[#allocation6 + $0x360] ss:$16 sps:$4 sm:$0xff]  }
 0x141   : > { %2249 = vmatmul.mubr.bf16.vlgmr.msra.gmra.mxu0 %v19885_v18  ;;  %3347 = vmatprep.subr.bf16.mxu1 %v16972_v24  ;;  %v16987_v18 = vld [vmem:[#allocation6 + $0x84] ss:$16 sps:$4 sm:$0xff]  }
 0x142   : > { %3297 = vmatpush1.bf16.msra.mxu0 %v16967_v23  ;;  %2258 = vmatprep.mubr.bf16.mxu0 %v19888_v22  ;;  %v16985_v22 = vld [vmem:[#allocation6 + $0x80] ss:$16 sps:$4 sm:$0xff]   ;;  %v17050_v24 = vld [vmem:[#allocation6 + $0x344] ss:$16 sps:$4 sm:$0xff]  }
 0x143   : > { %3298 = vmatprep.subr.bf16.mxu0 %v16975_v28  ;;  %2300 = vmatmul.mubr.bf16.vlgmr.msra.gmra.mxu1 %v19933_v61  ;;  %v16993_v61 = vld [vmem:[#allocation6 + $0x64] ss:$16 sps:$4 sm:$0xff]   ;;  %v17045_v23 = vld [vmem:[#allocation6 + $0x140] ss:$16 sps:$4 sm:$0xff]  }
 0x144   : > { %3348 = vmatpush1.bf16.msra.mxu1 %v16970_v30  ;;  %2309 = vmatprep.mubr.bf16.mxu1 %v19935_v63  ;;  %v16988_v63 = vld [vmem:[#allocation6 + $0x280] ss:$16 sps:$4 sm:$0xff]   ;;  %v17053_v28 = vld [vmem:[#allocation6 + $0x124] ss:$16 sps:$4 sm:$0xff]  }
 0x145   : > { %3349 = vmatprep.subr.bf16.mxu1 %v16978_v17  ;;  %v17048_v30 = vld [vmem:[#allocation6 + $0x340] ss:$16 sps:$4 sm:$0xff]   ;;  %v17056_v17 = vld [vmem:[#allocation6 + $0x324] ss:$16 sps:$4 sm:$0xff]  }
 0x146   : > { %3299 = vmatpush1.bf16.msra.mxu0 %v16973_v32  ;;  %v17051_v32 = vld [vmem:[#allocation6 + $0x120] ss:$16 sps:$4 sm:$0xff]  }
 0x147   : > { %3300 = vmatprep.subr.bf16.mxu0 %v16981_v29  ;;  %v17059_v29 = vld [vmem:[#allocation6 + $0x104] ss:$16 sps:$4 sm:$0xff]  }
 0x148   : > { %3350 = vmatpush1.bf16.msra.mxu1 %v16976_v34  ;;  %v17054_v34 = vld [vmem:[#allocation6 + $0x320] ss:$16 sps:$4 sm:$0xff]  }
 0x149   : > { %2259 = vmatmul.mubr.bf16.gmra.mxu0 %v19896_v33  ;;  %3351 = vmatprep.subr.bf16.mxu1 %v16984_v36  ;;  %v16999_v33 = vld [vmem:[#allocation6 + $0x44] ss:$16 sps:$4 sm:$0xff]  }
 0x14a   : > { %3301 = vmatpush1.bf16.msra.mxu0 %v16979_v35  ;;  %3328 = vmatprep.mubr.bf16.mxu0 %v19841_v25  ;;  %v17057_v35 = vld [vmem:[#allocation6 + $0x100] ss:$16 sps:$4 sm:$0xff]   ;;  %v17062_v36 = vld [vmem:[#allocation6 + $0x304] ss:$16 sps:$4 sm:$0xff]  }
 0x14b   : > { %3302 = vmatprep.subr.bf16.mxu0 %v16987_v18  ;;  %2310 = vmatmul.mubr.bf16.gmra.mxu1 %v19941_v5  ;;  %v17000_v5 = vld [vmem:[#allocation6 + $0x240] ss:$16 sps:$4 sm:$0xff]   ;;  %v17065_v18 = vld [vmem:[#allocation6 + $0x4e4] ss:$16 sps:$4 sm:$0xff]  }
 0x14c   : > { %3352 = vmatpush1.bf16.msra.mxu1 %v16982_v37  ;;  %3379 = vmatprep.mubr.bf16.mxu1 %v19850_v38  ;;  %v17060_v37 = vld [vmem:[#allocation6 + $0x300] ss:$16 sps:$4 sm:$0xff]  }
 0x14d   : > { %3353 = vmatprep.subr.bf16.mxu1 %v16990_v39  ;;  %v17068_v39 = vld [vmem:[#allocation6 + $0xec] ss:$16 sps:$4 sm:$0xff]  }
 0x14e   : > { %3303 = vmatpush1.bf16.msra.mxu0 %v16985_v22  ;;  %v17063_v22 = vld [vmem:[#allocation6 + $0x4e0] ss:$16 sps:$4 sm:$0xff]  }
 0x14f   : > { %3304 = vmatprep.subr.bf16.mxu0 %v16993_v61  ;;  %v17071_v61 = vld [vmem:[#allocation6 + $0x4c4] ss:$16 sps:$4 sm:$0xff]  }
 0x150   : > { %3354 = vmatpush1.bf16.msra.mxu1 %v16988_v63  ;;  %v19329_v63 = vld [vmem:[#allocation2 + $0x8] sm:$0xff] }
 0x151   : > { %3355 = vmatprep.subr.bf16.mxu1 %v16996_v42 }
 0x152   : > { %3305 = vmatpush1.bf16.msra.mxu0 %v16991_v40  ;;  %v19955_v40 = vcombine.high %v19329_v63, %v19329_v63 }
 0x153   : > { %3306 = vmatprep.subr.bf16.mxu0 %v16999_v33  ;;  %v17066_v33 = vld [vmem:[#allocation6 + $0xe8] ss:$16 sps:$4 sm:$0xff]  }
 0x154   : > { %3356 = vmatpush1.bf16.msra.mxu1 %v16994_v45  ;;  %v19330_v45 = vld [vmem:[#allocation2 + $0x48] sm:$0xff] }
 0x155   : > { %3357 = vmatprep.subr.bf16.mxu1 %v17002_v48  ;;  %v17069_v48 = vld [vmem:[#allocation6 + $0x4c0] ss:$16 sps:$4 sm:$0xff]  }
 0x156   : > { %3307 = vmatpush1.bf16.msra.mxu0 %v16997_v46  ;;  %v19958_v46 = vcombine.high %v19330_v45, %v19330_v45 }
 0x157   : > { %3308 = vmatprep.subr.bf16.mxu0 %v17005_v49  ;;  %v17074_v49 = vld [vmem:[#allocation6 + $0xcc] ss:$16 sps:$4 sm:$0xff]  }
 0x158   : > { %3358 = vmatpush1.bf16.msra.mxu1 %v17000_v5 }
 0x159   : > { %3359 = vmatprep.subr.bf16.mxu1 %v17008_v58 }
 0x15a   : > { %3309 = vmatpush1.bf16.msra.mxu0 %v17003_v50  ;;  %v17079_v50 = vld [vmem:[#allocation6 + $0x4a4] ss:$16 sps:$4 sm:$0xff]  }
 0x15b   : > { %3310 = vmatprep.subr.bf16.mxu0 %v17011_v51 }
 0x15c   : > { %3360 = vmatpush1.bf16.msra.mxu1 %v17006_v52 }
 0x15d   : > { %3361 = vmatprep.subr.bf16.mxu1 %v17014_v54  ;;  %v19964_v54 = vcombine.low %v19329_v63, %v19329_v63  ;;  %v17114_v63 = vld [vmem:[#allocation6 + $0xc] ss:$16 sps:$4 sm:$0xff]  }
 0x15e   : > { %3311 = vmatpush1.bf16.msra.mxu0 %v17009_v53  ;;  %v17072_v53 = vld [vmem:[#allocation6 + $0xc8] ss:$16 sps:$4 sm:$0xff]  }
 0x15f   : > { %3312 = vmatprep.subr.bf16.mxu0 %v17017_v55 }
 0x160   : > { %3362 = vmatpush1.bf16.msra.mxu1 %v17012_v56  ;;  %v17077_v56 = vld [vmem:[#allocation6 + $0x4a0] ss:$16 sps:$4 sm:$0xff]  }
 0x161   : > { %3363 = vmatprep.subr.bf16.mxu1 %v17020_v27 }
 0x162   : > { %3313 = vmatpush2.bf16.msra.mxu0 %v17015_v60  ;;  %v17082_v60 = vld [vmem:[#allocation6 + $0xac] ss:$16 sps:$4 sm:$0xff]  }
 0x163   : > { %3314 = vmatprep.subr.bf16.mxu0 %v17023_v44 }
 0x164   : > { %3364 = vmatpush2.bf16.msra.mxu1 %v17018_v62  ;;  %v17087_v62 = vld [vmem:[#allocation6 + $0x484] ss:$16 sps:$4 sm:$0xff]  }
 0x165   : > { %3365 = vmatprep.subr.bf16.mxu1 %v17026_v0  ;;  %v19971_v0 = vcombine.low %v19330_v45, %v19330_v45  ;;  %v17115_v45 = vld [vmem:[#allocation6 + $0x5e0] ss:$16 sps:$4 sm:$0xff]  }
 0x166   : > { %3315 = vmatpush2.bf16.msra.mxu0 %v17021_v9 }
 0x167   : > { %3316 = vmatprep.subr.bf16.mxu0 %v17029_v2 }
 0x168   : > { %3366 = vmatpush2.bf16.msra.mxu1 %v17024_v1  ;;  %v17080_v1 = vld [vmem:[#allocation6 + $0xa8] ss:$16 sps:$4 sm:$0xff]  }
 0x169   : > { %3367 = vmatprep.subr.bf16.mxu1 %v17032_v4 }
 0x16a   : > { %3317 = vmatpush2.bf16.msra.mxu0 %v17027_v3 }
 0x16b   : > { %3318 = vmatprep.subr.bf16.mxu0 %v17035_v7  ;;  %v17085_v7 = vld [vmem:[#allocation6 + $0x480] ss:$16 sps:$4 sm:$0xff]  }
 0x16c   : > { %3368 = vmatpush2.bf16.msra.mxu1 %v17030_v10  ;;  %v17090_v10 = vld [vmem:[#allocation6 + $0x8c] ss:$16 sps:$4 sm:$0xff]  }
 0x16d   : > { %3369 = vmatprep.subr.bf16.mxu1 %v17038_v19 }
 0x16e   : > { %3319 = vmatpush2.bf16.msra.mxu0 %v17033_v11  ;;  %v17093_v11 = vld [vmem:[#allocation6 + $0x464] ss:$16 sps:$4 sm:$0xff]  }
 0x16f   : > { %3320 = vmatprep.subr.bf16.mxu0 %v17041_v13 }
 0x170   : > { %3370 = vmatpush2.bf16.msra.mxu1 %v17036_v6  ;;  %v17088_v6 = vld [vmem:[#allocation6 + $0x88] ss:$16 sps:$4 sm:$0xff]  }
 0x171   : > { %3371 = vmatprep.subr.bf16.mxu1 %v17044_v14 }
 0x172   : > { %3321 = vmatpush2.bf16.msra.mxu0 %v17039_v15 }
 0x173   : > { %3322 = vmatprep.subr.bf16.mxu0 %v17047_v16  ;;  %v17091_v16 = vld [vmem:[#allocation6 + $0x460] ss:$16 sps:$4 sm:$0xff]  }
 0x174   : > { %3372 = vmatpush2.bf16.msra.mxu1 %v17042_v20  ;;  %v17096_v20 = vld [vmem:[#allocation6 + $0x6c] ss:$16 sps:$4 sm:$0xff]  }
 0x175   : > { %3373 = vmatprep.subr.bf16.mxu1 %v17050_v24  ;;  %v17099_v24 = vld [vmem:[#allocation6 + $0x444] ss:$16 sps:$4 sm:$0xff]  }
 0x176   : > { %3323 = vmatpush2.bf16.msra.mxu0 %v17045_v23 }
 0x177   : > { %3324 = vmatprep.subr.bf16.mxu0 %v17053_v28 }
 0x178   : > { %3374 = vmatpush2.bf16.msra.mxu1 %v17048_v30 }
 0x179   : > { %3375 = vmatprep.subr.bf16.mxu1 %v17056_v17  ;;  %v17094_v17 = vld [vmem:[#allocation6 + $0x68] ss:$16 sps:$4 sm:$0xff]  }
 0x17a   : > { %3325 = vmatpush2.bf16.msra.mxu0 %v17051_v32 }
 0x17b   : > { %3326 = vmatprep.subr.bf16.mxu0 %v17059_v29  ;;  %v17097_v29 = vld [vmem:[#allocation6 + $0x440] ss:$16 sps:$4 sm:$0xff]  }
 0x17c   : > { %3376 = vmatpush2.bf16.msra.mxu1 %v17054_v34  ;;  %v17102_v34 = vld [vmem:[#allocation6 + $0x4c] ss:$16 sps:$4 sm:$0xff]  }
 0x17d   : > { %3377 = vmatprep.subr.bf16.mxu1 %v17062_v36  ;;  %v17100_v36 = vld [vmem:[#allocation6 + $0x48] ss:$16 sps:$4 sm:$0xff]  }
 0x17e   : > { %3327 = vmatpush2.bf16.msra.mxu0 %v17057_v35 }
 0x17f   : > { %3398 = vmatprep.subr.bf16.mxu0 %v17065_v18  ;;  %v17103_v18 = vld [vmem:[#allocation6 + $0x420] ss:$16 sps:$4 sm:$0xff]  }
 0x180   : > { %3378 = vmatpush2.bf16.msra.mxu1 %v17060_v37  ;;  %v17108_v37 = vld [vmem:[#allocation6 + $0x2c] ss:$16 sps:$4 sm:$0xff]  }
 0x181   : > { %v2046_v42 = vpop.f32.mrf.mxu0  ;;  %3329 = vmatmul.mubr.bf16.vlgmr.msra.gmra.mxu0 %v19843_v26  ;;  %3449 = vmatprep.subr.bf16.mxu1 %v17068_v39  ;;  %v17106_v39 = vld [vmem:[#allocation6 + $0x28] ss:$16 sps:$4 sm:$0xff]  }
 0x182   : > { %3399 = vmatpush1.bf16.msra.mxu0 %v17063_v22  ;;  %3338 = vmatprep.mubr.bf16.mxu0 %v19955_v40  ;;  %v2097_v58 = vpop.f32.mrf.mxu1  ;;  %v17111_v22 = vld [vmem:[#allocation6 + $0x404] ss:$16 sps:$4 sm:$0xff]  }
 0x183   : > { %v2048_v5 = vpop.f32.mrf.mxu0  ;;  %3400 = vmatprep.subr.bf16.mxu0 %v17071_v61  ;;  %3380 = vmatmul.mubr.bf16.vlgmr.msra.gmra.mxu1 %v19853_v41  ;;  %v19962_v51 = vadd.f32 %v2097_v58, %v2046_v42  ;;  %v17109_v61 = vld [vmem:[#allocation6 + $0x400] ss:$16 sps:$4 sm:$0xff]   ;;  %v17117_v42 = vld [vmem:[#allocation6 + $0x5e4] ss:$16 sps:$4 sm:$0xff]   ;;  %v17126_v58 = vld [vmem:[#allocation6 + $0x1cc] ss:$16 sps:$4 sm:$0xff]  }
 0x184   : > { %3450 = vmatpush1.bf16.msra.mxu1 %v17066_v33  ;;  %3389 = vmatprep.mubr.bf16.mxu1 %v19958_v46  ;;  %v2099_v55 = vpop.f32.mrf.mxu1  ;;  %v17112_v33 = vld [vmem:[#allocation6 + $0x8] ss:$16 sps:$4 sm:$0xff]  }
 0x185   : > { %v2050_v52 = vpop.f32.mrf.mxu0  ;;  %3451 = vmatprep.subr.bf16.mxu1 %v17074_v49  ;;  %v19967_v27 = vadd.f32 %v2099_v55, %v2048_v5  ;;  %v17123_v49 = vld [vmem:[#allocation6 + $0x5c4] ss:$16 sps:$4 sm:$0xff]   ;;  %v17118_v5 = vld [vmem:[#allocation6 + $0x1e8] ss:$16 sps:$4 sm:$0xff]   ;;  %v17127_v55 = vld [vmem:[#allocation6 + $0x5a0] ss:$16 sps:$4 sm:$0xff]  }
 0x186   : > { %3401 = vmatpush1.bf16.msra.mxu0 %v17069_v48  ;;  %v2101_v9 = vpop.f32.mrf.mxu1  ;;  %v17120_v48 = vld [vmem:[#allocation6 + $0x1ec] ss:$16 sps:$4 sm:$0xff]  }
 0x187   : > { %v19969_v44 = vpop.f32.mrf.mxu0  ;;  %3402 = vmatprep.subr.bf16.mxu0 %v17079_v50  ;;  %v19973_v2 = vadd.f32 %v2101_v9, %v2050_v52  ;;  %v17121_v50 = vld [vmem:[#allocation6 + $0x5c0] ss:$16 sps:$4 sm:$0xff]   ;;  %v17129_v52 = vld [vmem:[#allocation6 + $0x5a4] ss:$16 sps:$4 sm:$0xff]  }
 0x188   : > { %3452 = vmatpush1.bf16.msra.mxu1 %v17072_v53  ;;  %v19976_v4 = vpop.f32.mrf.mxu1  ;;  %v17124_v53 = vld [vmem:[#allocation6 + $0x1c8] ss:$16 sps:$4 sm:$0xff]   ;;  %v17133_v9 = vld [vmem:[#allocation6 + $0x580] ss:$16 sps:$4 sm:$0xff]  }
 0x189   : > { %3339 = vmatmul.mubr.bf16.gmra.mxu0 %v19964_v54  ;;  %v2056_v3 = vpop.f32.mrf.mxu0  ;;  %3453 = vmatprep.subr.bf16.mxu1 %v17082_v60  ;;  %v17135_v60 = vld [vmem:[#allocation6 + $0x584] ss:$16 sps:$4 sm:$0xff]  }
 0x18a   : > { %3403 = vmatpush1.bf16.msra.mxu0 %v17077_v56  ;;  %3430 = vmatprep.mubr.bf16.mxu0 %v19916_v8  ;;  %v2107_v13 = vpop.f32.mrf.mxu1  ;;  %v17132_v56 = vld [vmem:[#allocation6 + $0x1ac] ss:$16 sps:$4 sm:$0xff]  }
 0x18b   : > { %3404 = vmatprep.subr.bf16.mxu0 %v17087_v62  ;;  %v2058_v19 = vpop.f32.mrf.mxu0  ;;  %3390 = vmatmul.mubr.bf16.gmra.mxu1 %v19971_v0  ;;  %v19980_v15 = vadd.f32 %v2107_v13, %v2056_v3  ;;  %v17130_v62 = vld [vmem:[#allocation6 + $0x1a8] ss:$16 sps:$4 sm:$0xff]   ;;  %v17141_v3 = vld [vmem:[#allocation6 + $0x564] ss:$16 sps:$4 sm:$0xff]  }
 0x18c   : > { %3454 = vmatpush1.bf16.msra.mxu1 %v17080_v1  ;;  %3481 = vmatprep.mubr.bf16.mxu1 %v19841_v25  ;;  %v2109_v23 = vpop.f32.mrf.mxu1  ;;  %v17105_v25 = vld [vmem:[#allocation6 + $0x424] ss:$16 sps:$4 sm:$0xff]   ;;  %v17138_v1 = vld [vmem:[#allocation6 + $0x18c] ss:$16 sps:$4 sm:$0xff]   ;;  %v17142_v13 = vld [vmem:[#allocation6 + $0x168] ss:$16 sps:$4 sm:$0xff]  }
 0x18d   : > { %v2060_v14 = vpop.f32.mrf.mxu0  ;;  %3455 = vmatprep.subr.bf16.mxu1 %v17090_v10  ;;  %v19983_v28 = vadd.f32 %v2109_v23, %v2058_v19  ;;  %v17139_v10 = vld [vmem:[#allocation6 + $0x560] ss:$16 sps:$4 sm:$0xff]   ;;  %v17147_v19 = vld [vmem:[#allocation6 + $0x544] ss:$16 sps:$4 sm:$0xff]  }
 0x18e   : > { %3405 = vmatpush1.bf16.msra.mxu0 %v17085_v7  ;;  %v2111_v32 = vpop.f32.mrf.mxu1  ;;  %v17136_v7 = vld [vmem:[#allocation6 + $0x188] ss:$16 sps:$4 sm:$0xff]   ;;  %v17150_v14 = vld [vmem:[#allocation6 + $0x14c] ss:$16 sps:$4 sm:$0xff]   ;;  %v17151_v23 = vld [vmem:[#allocation6 + $0x520] ss:$16 sps:$4 sm:$0xff]  }
 0x18f   : > { %3406 = vmatprep.subr.bf16.mxu0 %v17093_v11  ;;  %v2061_v30 = vpop.f32.mrf.mxu0  ;;  %v17144_v11 = vld [vmem:[#allocation6 + $0x16c] ss:$16 sps:$4 sm:$0xff]   ;;  %v17154_v32 = vld [vmem:[#allocation6 + $0x128] ss:$16 sps:$4 sm:$0xff]  }
 0x190   : > { %3456 = vmatpush1.bf16.msra.mxu1 %v17088_v6  ;;  %v2112_v35 = vpop.f32.mrf.mxu1  ;;  %v17145_v6 = vld [vmem:[#allocation6 + $0x540] ss:$16 sps:$4 sm:$0xff]   ;;  %v17159_v30 = vld [vmem:[#allocation6 + $0x504] ss:$16 sps:$4 sm:$0xff]  }
 0x191   : > { %3457 = vmatprep.subr.bf16.mxu1 %v17096_v20  ;;  %v17148_v20 = vld [vmem:[#allocation6 + $0x148] ss:$16 sps:$4 sm:$0xff]  }
 0x192   : > { %3407 = vmatpush1.bf16.msra.mxu0 %v17091_v16  ;;  %v17153_v16 = vld [vmem:[#allocation6 + $0x524] ss:$16 sps:$4 sm:$0xff]   ;;  %v17160_v35 = vld [vmem:[#allocation6 + $0x108] ss:$16 sps:$4 sm:$0xff]  }
 0x193   : > { %3408 = vmatprep.subr.bf16.mxu0 %v17099_v24  ;;  %v17156_v24 = vld [vmem:[#allocation6 + $0x12c] ss:$16 sps:$4 sm:$0xff]  }
 0x194   : > { %3458 = vmatpush1.bf16.msra.mxu1 %v17094_v17  ;;  %v17157_v17 = vld [vmem:[#allocation6 + $0x500] ss:$16 sps:$4 sm:$0xff]  }
 0x195   : > { %3459 = vmatprep.subr.bf16.mxu1 %v17102_v34  ;;  %v17165_v34 = vld [vmem:[#allocation6 + $0x2ec] ss:$16 sps:$4 sm:$0xff]  }
 0x196   : > { %3409 = vmatpush1.bf16.msra.mxu0 %v17097_v29  ;;  %v17162_v29 = vld [vmem:[#allocation6 + $0x10c] ss:$16 sps:$4 sm:$0xff]  }
 0x197   : > { %3410 = vmatprep.subr.bf16.mxu0 %v17105_v25  ;;  %v17163_v25 = vld [vmem:[#allocation6 + $0x2e8] ss:$16 sps:$4 sm:$0xff]  }
 0x198   : > { %3460 = vmatpush1.bf16.msra.mxu1 %v17100_v36  ;;  %v17168_v36 = vld [vmem:[#allocation6 + $0x4ec] ss:$16 sps:$4 sm:$0xff]  }
 0x199   : > { %3461 = vmatprep.subr.bf16.mxu1 %v17108_v37  ;;  %v19331_v37 = vld [vmem:[#allocation2 + $0x40] sm:$0xff] }
 0x19a   : > { %3411 = vmatpush1.bf16.msra.mxu0 %v17103_v18  ;;  %v17171_v18 = vld [vmem:[#allocation6 + $0x2cc] ss:$16 sps:$4 sm:$0xff]  }
 0x19b   : > { %3412 = vmatprep.subr.bf16.mxu0 %v17111_v22  ;;  %v19985_v22 = vcombine.high %v19331_v37, %v19331_v37 }
 0x19c   : > { %3462 = vmatpush1.bf16.msra.mxu1 %v17106_v39 }
 0x19d   : > { %3463 = vmatprep.subr.bf16.mxu1 %v17114_v63 }
 0x19e   : > { %3413 = vmatpush1.bf16.msra.mxu0 %v17109_v61  ;;  %v17166_v61 = vld [vmem:[#allocation6 + $0x4e8] ss:$16 sps:$4 sm:$0xff]  }
 0x19f   : > { %3414 = vmatprep.subr.bf16.mxu0 %v17117_v42  ;;  %v17169_v42 = vld [vmem:[#allocation6 + $0x2c8] ss:$16 sps:$4 sm:$0xff]  }
 0x1a0   : > { %3464 = vmatpush1.bf16.msra.mxu1 %v17112_v33  ;;  %v17174_v33 = vld [vmem:[#allocation6 + $0x4cc] ss:$16 sps:$4 sm:$0xff]  }
 0x1a1   : > { %3465 = vmatprep.subr.bf16.mxu1 %v17120_v48  ;;  %v17172_v48 = vld [vmem:[#allocation6 + $0x4c8] ss:$16 sps:$4 sm:$0xff]  }
 0x1a2   : > { %3415 = vmatpush2.bf16.msra.mxu0 %v17115_v45 }
 0x1a3   : > { %3416 = vmatprep.subr.bf16.mxu0 %v17123_v49  ;;  %v17179_v49 = vld [vmem:[#allocation6 + $0x2ac] ss:$16 sps:$4 sm:$0xff]  }
 0x1a4   : > { %3466 = vmatpush2.bf16.msra.mxu1 %v17118_v5 }
 0x1a5   : > { %3467 = vmatprep.subr.bf16.mxu1 %v17126_v58  ;;  %v19999_v58 = vcombine.low %v19331_v37, %v19331_v37  ;;  %v17210_v37 = vld [vmem:[#allocation6 + $0x408] ss:$16 sps:$4 sm:$0xff]  }
 0x1a6   : > { %3417 = vmatpush2.bf16.msra.mxu0 %v17121_v50 }
 0x1a7   : > { %3418 = vmatprep.subr.bf16.mxu0 %v17129_v52 }
 0x1a8   : > { %3468 = vmatpush2.bf16.msra.mxu1 %v17124_v53 }
 0x1a9   : > { %3469 = vmatprep.subr.bf16.mxu1 %v17132_v56  ;;  %v17182_v56 = vld [vmem:[#allocation6 + $0x4ac] ss:$16 sps:$4 sm:$0xff]  }
 0x1aa   : > { %3419 = vmatpush2.bf16.msra.mxu0 %v17127_v55  ;;  %v17177_v55 = vld [vmem:[#allocation6 + $0x2a8] ss:$16 sps:$4 sm:$0xff]  }
 0x1ab   : > { %3420 = vmatprep.subr.bf16.mxu0 %v17135_v60 }
 0x1ac   : > { %3470 = vmatpush2.bf16.msra.mxu1 %v17130_v62 }
 0x1ad   : > { %3471 = vmatprep.subr.bf16.mxu1 %v17138_v1  ;;  %v17183_v1 = vld [vmem:[#allocation6 + $0x288] ss:$16 sps:$4 sm:$0xff]  }
 0x1ae   : > { %3421 = vmatpush2.bf16.msra.mxu0 %v17133_v9 }
 0x1af   : > { %3422 = vmatprep.subr.bf16.mxu0 %v17141_v3  ;;  %v17188_v3 = vld [vmem:[#allocation6 + $0x48c] ss:$16 sps:$4 sm:$0xff]  }
 0x1b0   : > { %3472 = vmatpush2.bf16.msra.mxu1 %v17136_v7 }
 0x1b1   : > { %3473 = vmatprep.subr.bf16.mxu1 %v17144_v11  ;;  %v17191_v11 = vld [vmem:[#allocation6 + $0x26c] ss:$16 sps:$4 sm:$0xff]  }
 0x1b2   : > { %3423 = vmatpush2.bf16.msra.mxu0 %v17139_v10  ;;  %v17186_v10 = vld [vmem:[#allocation6 + $0x488] ss:$16 sps:$4 sm:$0xff]  }
 0x1b3   : > { %3424 = vmatprep.subr.bf16.mxu0 %v17147_v19 }
 0x1b4   : > { %3474 = vmatpush2.bf16.msra.mxu1 %v17142_v13 }
 0x1b5   : > { %3475 = vmatprep.subr.bf16.mxu1 %v17150_v14  ;;  %v17194_v14 = vld [vmem:[#allocation6 + $0x46c] ss:$16 sps:$4 sm:$0xff]  }
 0x1b6   : > { %3425 = vmatpush2.bf16.msra.mxu0 %v17145_v6  ;;  %v17189_v6 = vld [vmem:[#allocation6 + $0x268] ss:$16 sps:$4 sm:$0xff]  }
 0x1b7   : > { %3426 = vmatprep.subr.bf16.mxu0 %v17153_v16 }
 0x1b8   : > { %3476 = vmatpush2.bf16.msra.mxu1 %v17148_v20  ;;  %v17197_v20 = vld [vmem:[#allocation6 + $0x24c] ss:$16 sps:$4 sm:$0xff]  }
 0x1b9   : > { %3477 = vmatprep.subr.bf16.mxu1 %v17156_v24  ;;  %v17200_v24 = vld [vmem:[#allocation6 + $0x44c] ss:$16 sps:$4 sm:$0xff]  }
 0x1ba   : > { %3427 = vmatpush2.bf16.msra.mxu0 %v17151_v23 }
 0x1bb   : > { %3428 = vmatprep.subr.bf16.mxu0 %v17159_v30  ;;  %v17203_v30 = vld [vmem:[#allocation6 + $0x22c] ss:$16 sps:$4 sm:$0xff]  }
 0x1bc   : > { %3478 = vmatpush2.bf16.msra.mxu1 %v17154_v32 }
 0x1bd   : > { %3479 = vmatprep.subr.bf16.mxu1 %v17162_v29  ;;  %v17206_v29 = vld [vmem:[#allocation6 + $0x42c] ss:$16 sps:$4 sm:$0xff]  }
 0x1be   : > { %3429 = vmatpush2.bf16.msra.mxu0 %v17157_v17  ;;  %v17201_v17 = vld [vmem:[#allocation6 + $0x228] ss:$16 sps:$4 sm:$0xff]  }
 0x1bf   : > { %3500 = vmatprep.subr.bf16.mxu0 %v17165_v34  ;;  %v17209_v34 = vld [vmem:[#allocation6 + $0x20c] ss:$16 sps:$4 sm:$0xff]  }
 0x1c0   : > { %3480 = vmatpush2.bf16.msra.mxu1 %v17160_v35  ;;  %v17204_v35 = vld [vmem:[#allocation6 + $0x428] ss:$16 sps:$4 sm:$0xff]  }
 0x1c1   : > { %v2148_v39 = vpop.f32.mrf.mxu0  ;;  %3431 = vmatmul.mubr.bf16.vlgmr.msra.gmra.mxu0 %v19918_v12  ;;  %3551 = vmatprep.subr.bf16.mxu1 %v17168_v36  ;;  %v17212_v36 = vld [vmem:[#allocation6 + $0x40c] ss:$16 sps:$4 sm:$0xff]  }
 0x1c2   : > { %v19989_v63 = vadd.f32 %v2148_v39, %v19962_v51  ;;  %3501 = vmatpush1.bf16.msra.mxu0 %v17163_v25  ;;  %3440 = vmatprep.mubr.bf16.mxu0 %v19985_v22  ;;  %v17207_v25 = vld [vmem:[#allocation6 + $0x208] ss:$16 sps:$4 sm:$0xff]  }
 0x1c3   : > { %v2150_v45 = vpop.f32.mrf.mxu0  ;;  %3502 = vmatprep.subr.bf16.mxu0 %v17171_v18  ;;  %v19992_v5 = vpop.f32.mrf.mxu1  ;;  %3482 = vmatmul.mubr.bf16.vlgmr.msra.gmra.mxu1 %v19843_v26  ;;  %v17180_v26 = vld [vmem:[#allocation6 + $0x4a8] ss:$16 sps:$4 sm:$0xff]   ;;  %v17215_v18 = vld [vmem:[#allocation6 + $0x3ec] ss:$16 sps:$4 sm:$0xff]  }
 0x1c4   : > { %v19996_v50 = vadd.f32 %v2150_v45, %v19967_v27  ;;  %3552 = vmatpush1.bf16.msra.mxu1 %v17166_v61  ;;  %3491 = vmatprep.mubr.bf16.mxu1 %v19955_v40  ;;  %v17185_v27 = vld [vmem:[#allocation6 + $0x28c] ss:$16 sps:$4 sm:$0xff]   ;;  %v17213_v39 = vld [vmem:[#allocation6 + $0x3e8] ss:$16 sps:$4 sm:$0xff]  }
 0x1c5   : > { %v2152_v51 = vpop.f32.mrf.mxu0  ;;  %v20001_v52 = vpop.f32.mrf.mxu1  ;;  %3553 = vmatprep.subr.bf16.mxu1 %v17174_v33  ;;  %v17218_v61 = vld [vmem:[#allocation6 + $0x5ec] ss:$16 sps:$4 sm:$0xff]   ;;  %v17216_v33 = vld [vmem:[#allocation6 + $0x5e8] ss:$16 sps:$4 sm:$0xff]  }
 0x1c6   : > { %v20004_v53 = vadd.f32 %v2152_v51, %v19973_v2  ;;  %3503 = vmatpush1.bf16.msra.mxu0 %v17169_v42  ;;  %v17221_v42 = vld [vmem:[#allocation6 + $0x3cc] ss:$16 sps:$4 sm:$0xff]   ;;  %v17219_v45 = vld [vmem:[#allocation6 + $0x3c8] ss:$16 sps:$4 sm:$0xff]  }
 0x1c7   : > { %v20006_v60 = vpop.f32.mrf.mxu0  ;;  %3504 = vmatprep.subr.bf16.mxu0 %v17179_v49  ;;  %v20008_v62 = vpop.f32.mrf.mxu1  ;;  %v17227_v49 = vld [vmem:[#allocation6 + $0x3ac] ss:$16 sps:$4 sm:$0xff]   ;;  %v17222_v51 = vld [vmem:[#allocation6 + $0x5c8] ss:$16 sps:$4 sm:$0xff]  }
 0x1c8   : > { %3554 = vmatpush1.bf16.msra.mxu1 %v17172_v48  ;;  %v17224_v48 = vld [vmem:[#allocation6 + $0x5cc] ss:$16 sps:$4 sm:$0xff]  }
 0x1c9   : > { %v2158_v40 = vpop.f32.mrf.mxu0  ;;  %3441 = vmatmul.mubr.bf16.gmra.mxu0 %v19999_v58  ;;  %v20011_v9 = vpop.f32.mrf.mxu1  ;;  %3555 = vmatprep.subr.bf16.mxu1 %v17182_v56  ;;  %v17230_v56 = vld [vmem:[#allocation6 + $0x5ac] ss:$16 sps:$4 sm:$0xff]  }
 0x1ca   : > { %21451 = vst [vmem:[#allocation16_spill] sm:$0xff] %v20011_v9  ;;  %v20014_v2 = vadd.f32 %v2158_v40, %v19980_v15  ;;  %3505 = vmatpush1.bf16.msra.mxu0 %v17177_v55  ;;  %3532 = vmatprep.mubr.bf16.mxu0 %v19850_v38  ;;  %v17225_v55 = vld [vmem:[#allocation6 + $0x3a8] ss:$16 sps:$4 sm:$0xff]  }
 0x1cb   : > { %v2160_v7 = vpop.f32.mrf.mxu0  ;;  %3506 = vmatprep.subr.bf16.mxu0 %v17185_v27  ;;  %3492 = vmatmul.mubr.bf16.gmra.mxu1 %v19964_v54  ;;  %v20021_v13 = vpop.f32.mrf.mxu1  ;;  %v17192_v54 = vld [vmem:[#allocation6 + $0x468] ss:$16 sps:$4 sm:$0xff]  }
 0x1cc   : > { %v20019_v19 = vadd.f32 %v2160_v7, %v19983_v28  ;;  %3556 = vmatpush1.bf16.msra.mxu1 %v17180_v26  ;;  %3583 = vmatprep.mubr.bf16.mxu1 %v19916_v8  ;;  %v17195_v28 = vld [vmem:[#allocation6 + $0x248] ss:$16 sps:$4 sm:$0xff]   ;;  %v17233_v26 = vld [vmem:[#allocation6 + $0x38c] ss:$16 sps:$4 sm:$0xff]  }
 0x1cd   : > { %v2162_v15 = vpop.f32.mrf.mxu0  ;;  %3557 = vmatprep.subr.bf16.mxu1 %v17188_v3  ;;  %v20024_v16 = vpop.f32.mrf.mxu1  ;;  %v17198_v8 = vld [vmem:[#allocation6 + $0x448] ss:$16 sps:$4 sm:$0xff]   ;;  %v17239_v3 = vld [vmem:[#allocation6 + $0x36c] ss:$16 sps:$4 sm:$0xff]  }
 0x1ce   : > { %3507 = vmatpush1.bf16.msra.mxu0 %v17183_v1  ;;  %v17228_v27 = vld [vmem:[#allocation6 + $0x5a8] ss:$16 sps:$4 sm:$0xff]   ;;  %v17236_v1 = vld [vmem:[#allocation6 + $0x58c] ss:$16 sps:$4 sm:$0xff]  }
 0x1cf   : > { %3508 = vmatprep.subr.bf16.mxu0 %v17191_v11  ;;  %v2163_v38 = vpop.f32.mrf.mxu0  ;;  %v2213_v23 = vpop.f32.mrf.mxu1  ;;  %v17231_v40 = vld [vmem:[#allocation6 + $0x388] ss:$16 sps:$4 sm:$0xff]   ;;  %v17242_v11 = vld [vmem:[#allocation6 + $0x56c] ss:$16 sps:$4 sm:$0xff]  }
 0x1d0   : > { %3558 = vmatpush1.bf16.msra.mxu1 %v17186_v10  ;;  %v17234_v7 = vld [vmem:[#allocation6 + $0x588] ss:$16 sps:$4 sm:$0xff]   ;;  %v17245_v15 = vld [vmem:[#allocation6 + $0x34c] ss:$16 sps:$4 sm:$0xff]  }
 0x1d1   : > { %3559 = vmatprep.subr.bf16.mxu1 %v17194_v14  ;;  %v2214_v32 = vpop.f32.mrf.mxu1  ;;  %v17237_v10 = vld [vmem:[#allocation6 + $0x368] ss:$16 sps:$4 sm:$0xff]   ;;  %v17251_v38 = vld [vmem:[#allocation6 + $0x32c] ss:$16 sps:$4 sm:$0xff]  }
 0x1d2   : > { %3509 = vmatpush1.bf16.msra.mxu0 %v17189_v6  ;;  %v17240_v6 = vld [vmem:[#allocation6 + $0x568] ss:$16 sps:$4 sm:$0xff]  }
 0x1d3   : > { %3510 = vmatprep.subr.bf16.mxu0 %v17197_v20  ;;  %v17243_v14 = vld [vmem:[#allocation6 + $0x348] ss:$16 sps:$4 sm:$0xff]   ;;  %v17248_v20 = vld [vmem:[#allocation6 + $0x54c] ss:$16 sps:$4 sm:$0xff]  }
 0x1d4   : > { %3560 = vmatpush1.bf16.msra.mxu1 %v17192_v54  ;;  %v17246_v23 = vld [vmem:[#allocation6 + $0x548] ss:$16 sps:$4 sm:$0xff]  }
 0x1d5   : > { %3561 = vmatprep.subr.bf16.mxu1 %v17200_v24  ;;  %v17249_v54 = vld [vmem:[#allocation6 + $0x328] ss:$16 sps:$4 sm:$0xff]   ;;  %v17257_v24 = vld [vmem:[#allocation6 + $0x30c] ss:$16 sps:$4 sm:$0xff]  }
 0x1d6   : > { %3511 = vmatpush1.bf16.msra.mxu0 %v17195_v28  ;;  %v17254_v28 = vld [vmem:[#allocation6 + $0x52c] ss:$16 sps:$4 sm:$0xff]   ;;  %v17255_v32 = vld [vmem:[#allocation6 + $0x308] ss:$16 sps:$4 sm:$0xff]  }
 0x1d7   : > { %3512 = vmatprep.subr.bf16.mxu0 %v17203_v30  ;;  %v17252_v30 = vld [vmem:[#allocation6 + $0x528] ss:$16 sps:$4 sm:$0xff]  }
 0x1d8   : > { %3562 = vmatpush1.bf16.msra.mxu1 %v17198_v8  ;;  %v17260_v8 = vld [vmem:[#allocation6 + $0x50c] ss:$16 sps:$4 sm:$0xff]  }
 0x1d9   : > { %3563 = vmatprep.subr.bf16.mxu1 %v17206_v29  ;;  %v17258_v29 = vld [vmem:[#allocation6 + $0x508] ss:$16 sps:$4 sm:$0xff]  }
 0x1da   : > { %3513 = vmatpush1.bf16.msra.mxu0 %v17201_v17  ;;  %v17263_v17 = vld [vmem:[#allocation6 + $0xce4] ss:$16 sps:$4 sm:$0xff]  }
 0x1db   : > { %3514 = vmatprep.subr.bf16.mxu0 %v17209_v34  ;;  %v17261_v34 = vld [vmem:[#allocation6 + $0xce0] ss:$16 sps:$4 sm:$0xff]  }
 0x1dc   : > { %3564 = vmatpush1.bf16.msra.mxu1 %v17204_v35  ;;  %v17266_v35 = vld [vmem:[#allocation6 + $0xee4] ss:$16 sps:$4 sm:$0xff]  }
 0x1dd   : > { %3565 = vmatprep.subr.bf16.mxu1 %v17212_v36  ;;  %v17269_v36 = vld [vmem:[#allocation6 + $0xcc4] ss:$16 sps:$4 sm:$0xff]  }
 0x1de   : > { %3515 = vmatpush1.bf16.msra.mxu0 %v17207_v25  ;;  %v20026_v25 = vld [vmem:[#allocation2 + $0x30] sm:$0xee] }
 0x1df   : > { %3516 = vmatprep.subr.bf16.mxu0 %v17215_v18  ;;  %v20028_v18 = vld [vmem:[#allocation2] sm:$0xee] }
 0x1e0   : > { %3566 = vmatpush1.bf16.msra.mxu1 %v17210_v37  ;;  %v17264_v37 = vld [vmem:[#allocation6 + $0xee0] ss:$16 sps:$4 sm:$0xff]  }
 0x1e1   : > { %3567 = vmatprep.subr.bf16.mxu1 %v17218_v61 }
 0x1e2   : > { %3517 = vmatpush2.bf16.msra.mxu0 %v17213_v39  ;;  %v20030_v39 = vld [vmem:[#allocation2 + $0x18] sm:$0xff] }
 0x1e3   : > { %3518 = vmatprep.subr.bf16.mxu0 %v17221_v42  ;;  %v15147_v61 = vcombine.high %v20026_v25, %v20030_v39 }
 0x1e4   : > { %3568 = vmatpush2.bf16.msra.mxu1 %v17216_v33 }
 0x1e5   : > { %3569 = vmatprep.subr.bf16.mxu1 %v17224_v48  ;;  %v17272_v48 = vld [vmem:[#allocation6 + $0xec4] ss:$16 sps:$4 sm:$0xff]  }
 0x1e6   : > { %3519 = vmatpush2.bf16.msra.mxu0 %v17219_v45  ;;  %v17267_v45 = vld [vmem:[#allocation6 + $0xcc0] ss:$16 sps:$4 sm:$0xff]  }
 0x1e7   : > { %3520 = vmatprep.subr.bf16.mxu0 %v17227_v49  ;;  %v20036_v49 = vld [vmem:[#allocation2 + $0x50] sm:$0xff] }
 0x1e8   : > { %3570 = vmatpush2.bf16.msra.mxu1 %v17222_v51  ;;  %v15149_v51 = vcombine.high %v20028_v18, %v20036_v49 }
 0x1e9   : > { %3571 = vmatprep.subr.bf16.mxu1 %v17230_v56  ;;  %v17270_v56 = vld [vmem:[#allocation6 + $0xec0] ss:$16 sps:$4 sm:$0xff]  }
 0x1ea   : > { %3521 = vmatpush2.bf16.msra.mxu0 %v17225_v55 }
 0x1eb   : > { %3522 = vmatprep.subr.bf16.mxu0 %v17233_v26  ;;  %v17275_v26 = vld [vmem:[#allocation6 + $0xca4] ss:$16 sps:$4 sm:$0xff]  }
 0x1ec   : > { %3572 = vmatpush2.bf16.msra.mxu1 %v17228_v27 }
 0x1ed   : > { %3573 = vmatprep.subr.bf16.mxu1 %v17236_v1  ;;  %v20044_v1 = vrot.slane %v19855_v43, 1 }
 0x1ee   : > { %3523 = vmatpush2.bf16.msra.mxu0 %v17231_v40  ;;  %v3817_v40 = vrot.slane %v15147_v61, 1  ;;  %v17293_v61 = vld [vmem:[#allocation6 + $0xc44] ss:$16 sps:$4 sm:$0xff]  }
 0x1ef   : > { %3524 = vmatprep.subr.bf16.mxu0 %v17239_v3 }
 0x1f0   : > { %3574 = vmatpush2.bf16.msra.mxu1 %v17234_v7 }
 0x1f1   : > { %3575 = vmatprep.subr.bf16.mxu1 %v17242_v11  ;;  %v3823_v11 = vrot.slane %v15149_v51, 1 }
 0x1f2   : > { %3525 = vmatpush2.bf16.msra.mxu0 %v17237_v10 }
 0x1f3   : > { %3526 = vmatprep.subr.bf16.mxu0 %v17245_v15 }
 0x1f4   : > { %3576 = vmatpush2.bf16.msra.mxu1 %v17240_v6  ;;  %v17276_v6 = vld [vmem:[#allocation6 + $0xea0] ss:$16 sps:$4 sm:$0xff]  }
 0x1f5   : > { %3577 = vmatprep.subr.bf16.mxu1 %v17248_v20 }
 0x1f6   : > { %3527 = vmatpush2.bf16.msra.mxu0 %v17243_v14  ;;  %v17281_v14 = vld [vmem:[#allocation6 + $0xc84] ss:$16 sps:$4 sm:$0xff]  }
 0x1f7   : > { %3528 = vmatprep.subr.bf16.mxu0 %v17251_v38 }
 0x1f8   : > { %3578 = vmatpush2.bf16.msra.mxu1 %v17246_v23 }
 0x1f9   : > { %3579 = vmatprep.subr.bf16.mxu1 %v17254_v28  ;;  %v17284_v28 = vld [vmem:[#allocation6 + $0xe84] ss:$16 sps:$4 sm:$0xff]  }
 0x1fa   : > { %3529 = vmatpush2.bf16.msra.mxu0 %v17249_v54  ;;  %v17279_v54 = vld [vmem:[#allocation6 + $0xc80] ss:$16 sps:$4 sm:$0xff]  }
 0x1fb   : > { %3530 = vmatprep.subr.bf16.mxu0 %v17257_v24 }
 0x1fc   : > { %3580 = vmatpush2.bf16.msra.mxu1 %v17252_v30 }
 0x1fd   : > { %3581 = vmatprep.subr.bf16.mxu1 %v17260_v8  ;;  %v17287_v8 = vld [vmem:[#allocation6 + $0xc64] ss:$16 sps:$4 sm:$0xff]  }
 0x1fe   : > { %3531 = vmatpush2.bf16.msra.mxu0 %v17255_v32  ;;  %v17282_v32 = vld [vmem:[#allocation6 + $0xe80] ss:$16 sps:$4 sm:$0xff]  }
 0x1ff   : > { %4804 = vmatprep.subr.bf16.mxu0 %v17263_v17 }
 0x200   : > { %3582 = vmatpush2.bf16.msra.mxu1 %v17258_v29 }
 0x201   : > { %v2250_v42 = vpop.f32.mrf.mxu0  ;;  %3533 = vmatmul.mubr.bf16.vlgmr.msra.gmra.mxu0 %v19853_v41  ;;  %4855 = vmatprep.subr.bf16.mxu1 %v17266_v35  ;;  %v17285_v35 = vld [vmem:[#allocation6 + $0xc60] ss:$16 sps:$4 sm:$0xff]  }
 0x202   : > { %v2251_v33 = vadd.f32 %v2250_v42, %v19992_v5  ;;  %4805 = vmatpush1.bf16.msra.mxu0 %v17261_v34  ;;  %3542 = vmatprep.mubr.bf16.mxu0 %v19958_v46  ;;  %v17273_v5 = vld [vmem:[#allocation6 + $0xca0] ss:$16 sps:$4 sm:$0xff]  }
 0x203   : > { %v2252_v55 = vpop.f32.mrf.mxu0  ;;  %4806 = vmatprep.subr.bf16.mxu0 %v17269_v36  ;;  %v2301_v27 = vpop.f32.mrf.mxu1  ;;  %3584 = vmatmul.mubr.bf16.vlgmr.msra.gmra.mxu1 %v19918_v12  ;;  %v17278_v12 = vld [vmem:[#allocation6 + $0xea4] ss:$16 sps:$4 sm:$0xff]  }
 0x204   : > { %v2253_v41 = vadd.f32 %v2252_v55, %v20001_v52  ;;  %v20046_v3 = vadd.f32 %v2301_v27, %v2251_v33  ;;  %4856 = vmatpush1.bf16.msra.mxu1 %v17264_v37  ;;  %3593 = vmatprep.mubr.bf16.mxu1 %v19985_v22  ;;  %v20051_v52 = vrot.slane %v19865_v57, 1  ;;  %v20059_v22 = vsel %vm3813_vm14, %v3817_v40, %v20044_v1  ;;  %v17290_v36 = vld [vmem:[#allocation6 + $0xe64] ss:$16 sps:$4 sm:$0xff]   ;;  %v17288_v33 = vld [vmem:[#allocation6 + $0xe60] ss:$16 sps:$4 sm:$0xff]  }
 0x205   : > { %v2254_v7 = vpop.f32.mrf.mxu0  ;;  %v2303_v10 = vpop.f32.mrf.mxu1  ;;  %4857 = vmatprep.subr.bf16.mxu1 %v17272_v48  ;;  %v17299_v48 = vld [vmem:[#allocation6 + $0xc24] ss:$16 sps:$4 sm:$0xff]   ;;  %v17294_v55 = vld [vmem:[#allocation6 + $0xe40] ss:$16 sps:$4 sm:$0xff]  }
 0x206   : > { %v2255_v46 = vadd.f32 %v2254_v7, %v20008_v62  ;;  %4807 = vmatpush1.bf16.msra.mxu0 %v17267_v45  ;;  %v20053_v15 = vadd.f32 %v2303_v10, %v2253_v41  ;;  %v20069_v24 = vsel %vm3813_vm14, %v3823_v11, %v20051_v52  ;;  %v17296_v45 = vld [vmem:[#allocation6 + $0xe44] ss:$16 sps:$4 sm:$0xff]   ;;  %v17300_v41 = vld [vmem:[#allocation6 + $0xe20] ss:$16 sps:$4 sm:$0xff]  }
 0x207   : > { %v20055_v43 = vpop.f32.mrf.mxu0  ;;  %4808 = vmatprep.subr.bf16.mxu0 %v17275_v26  ;;  %v2305_v20 = vpop.f32.mrf.mxu1  ;;  %v17302_v26 = vld [vmem:[#allocation6 + $0xe24] ss:$16 sps:$4 sm:$0xff]   ;;  %v17306_v10 = vld [vmem:[#allocation6 + $0xe00] ss:$16 sps:$4 sm:$0xff]  }
 0x208   : > { %21452 = vst [vmem:[#allocation17_spill] sm:$0xff] %v20055_v43  ;;  %v20061_v62 = vadd.f32 %v2305_v20, %v2255_v46  ;;  %4858 = vmatpush1.bf16.msra.mxu1 %v17270_v56  ;;  %v17297_v56 = vld [vmem:[#allocation6 + $0xc20] ss:$16 sps:$4 sm:$0xff]   ;;  %v17305_v27 = vld [vmem:[#allocation6 + $0xc04] ss:$16 sps:$4 sm:$0xff]  }
 0x209   : > { %v2260_v38 = vpop.f32.mrf.mxu0  ;;  %3543 = vmatmul.mubr.bf16.gmra.mxu0 %v19971_v0  ;;  %v20064_v57 = vpop.f32.mrf.mxu1  ;;  %4859 = vmatprep.subr.bf16.mxu1 %v17278_v12  ;;  %v17308_v40 = vld [vmem:[#allocation6 + $0xe04] ss:$16 sps:$4 sm:$0xff]   ;;  %v17309_v46 = vld [vmem:[#allocation6 + $0xde0] ss:$16 sps:$4 sm:$0xff]  }
 0x20a   : > { %21453 = vst [vmem:[#allocation18_spill] sm:$0xff] %v20064_v57  ;;  %v2261_v23 = vadd.f32 %v2260_v38, %v20021_v13  ;;  %4809 = vmatpush1.bf16.msra.mxu0 %v17273_v5  ;;  %4836 = vmatprep.mubr.bf16.mxu0 %v20059_v22  ;;  %v17303_v5 = vld [vmem:[#allocation6 + $0xc00] ss:$16 sps:$4 sm:$0xff]   ;;  %v17311_v7 = vld [vmem:[#allocation6 + $0xde4] ss:$16 sps:$4 sm:$0xff]  }
 0x20b   : > { %v2262_v30 = vpop.f32.mrf.mxu0  ;;  %4810 = vmatprep.subr.bf16.mxu0 %v17281_v14  ;;  %v2311_v17 = vpop.f32.mrf.mxu1  ;;  %3594 = vmatmul.mubr.bf16.gmra.mxu1 %v19999_v58  ;;  %v17291_v58 = vld [vmem:[#allocation6 + $0xc40] ss:$16 sps:$4 sm:$0xff]   ;;  %v17314_v12 = vld [vmem:[#allocation6 + $0xfe4] ss:$16 sps:$4 sm:$0xff]  }
 0x20c   : > { %v2263_v0 = vadd.f32 %v2262_v30, %v20024_v16  ;;  %4860 = vmatpush1.bf16.msra.mxu1 %v17276_v6  ;;  %v20074_v13 = vadd.f32 %v2311_v17, %v2261_v23  ;;  %4887 = vmatprep.mubr.bf16.mxu1 %v20069_v24  ;;  %v17317_v11 = vld [vmem:[#allocation6 + $0xdc4] ss:$16 sps:$4 sm:$0xff]   ;;  %v17312_v6 = vld [vmem:[#allocation6 + $0xfe0] ss:$16 sps:$4 sm:$0xff]  }
 0x20d   : > { %v2264_v29 = vpop.f32.mrf.mxu0  ;;  %v2313_v34 = vpop.f32.mrf.mxu1  ;;  %4861 = vmatprep.subr.bf16.mxu1 %v17284_v28  ;;  %v17315_v14 = vld [vmem:[#allocation6 + $0xdc0] ss:$16 sps:$4 sm:$0xff]   ;;  %v17320_v20 = vld [vmem:[#allocation6 + $0xfc4] ss:$16 sps:$4 sm:$0xff]  }
 0x20e   : > { %4811 = vmatpush1.bf16.msra.mxu0 %v17279_v54  ;;  %v20077_v37 = vadd.f32 %v2313_v34, %v2263_v0  ;;  %v17323_v38 = vld [vmem:[#allocation6 + $0xda4] ss:$16 sps:$4 sm:$0xff]   ;;  %v17318_v23 = vld [vmem:[#allocation6 + $0xfc0] ss:$16 sps:$4 sm:$0xff]  }
 0x20f   : > { %4812 = vmatprep.subr.bf16.mxu0 %v17287_v8  ;;  %v2265_v42 = vpop.f32.mrf.mxu0  ;;  %v2315_v16 = vpop.f32.mrf.mxu1  ;;  %v17321_v54 = vld [vmem:[#allocation6 + $0xda0] ss:$16 sps:$4 sm:$0xff]   ;;  %v17326_v28 = vld [vmem:[#allocation6 + $0xfa4] ss:$16 sps:$4 sm:$0xff]  }
 0x210   : > { %4862 = vmatpush1.bf16.msra.mxu1 %v17282_v32  ;;  %v17329_v30 = vld [vmem:[#allocation6 + $0xd84] ss:$16 sps:$4 sm:$0xff]   ;;  %v17324_v32 = vld [vmem:[#allocation6 + $0xfa0] ss:$16 sps:$4 sm:$0xff]  }
 0x211   : > { %4863 = vmatprep.subr.bf16.mxu1 %v17290_v36  ;;  %v2316_v51 = vpop.f32.mrf.mxu1  ;;  %v17327_v8 = vld [vmem:[#allocation6 + $0xd80] ss:$16 sps:$4 sm:$0xff]   ;;  %v17332_v0 = vld [vmem:[#allocation6 + $0xf84] ss:$16 sps:$4 sm:$0xff]  }
 0x212   : > { %4813 = vmatpush1.bf16.msra.mxu0 %v17285_v35  ;;  %v17335_v17 = vld [vmem:[#allocation6 + $0xd64] ss:$16 sps:$4 sm:$0xff]   ;;  %v17330_v29 = vld [vmem:[#allocation6 + $0xf80] ss:$16 sps:$4 sm:$0xff]  }
 0x213   : > { %4814 = vmatprep.subr.bf16.mxu0 %v17293_v61  ;;  %v17333_v34 = vld [vmem:[#allocation6 + $0xd60] ss:$16 sps:$4 sm:$0xff]   ;;  %v17338_v35 = vld [vmem:[#allocation6 + $0xf64] ss:$16 sps:$4 sm:$0xff]  }
 0x214   : > { %4864 = vmatpush1.bf16.msra.mxu1 %v17288_v33  ;;  %v17341_v36 = vld [vmem:[#allocation6 + $0xd44] ss:$16 sps:$4 sm:$0xff]   ;;  %v17336_v61 = vld [vmem:[#allocation6 + $0xf60] ss:$16 sps:$4 sm:$0xff]  }
 0x215   : > { %4865 = vmatprep.subr.bf16.mxu1 %v17296_v45  ;;  %v17339_v42 = vld [vmem:[#allocation6 + $0xd40] ss:$16 sps:$4 sm:$0xff]   ;;  %v17344_v16 = vld [vmem:[#allocation6 + $0xf44] ss:$16 sps:$4 sm:$0xff]  }
 0x216   : > { %4815 = vmatpush1.bf16.msra.mxu0 %v17291_v58  ;;  %v17347_v33 = vld [vmem:[#allocation6 + $0xd24] ss:$16 sps:$4 sm:$0xff]   ;;  %v17342_v58 = vld [vmem:[#allocation6 + $0xf40] ss:$16 sps:$4 sm:$0xff]  }
 0x217   : > { %4816 = vmatprep.subr.bf16.mxu0 %v17299_v48  ;;  %v17345_v45 = vld [vmem:[#allocation6 + $0xd20] ss:$16 sps:$4 sm:$0xff]   ;;  %v17350_v48 = vld [vmem:[#allocation6 + $0xf24] ss:$16 sps:$4 sm:$0xff]  }
 0x218   : > { %4866 = vmatpush1.bf16.msra.mxu1 %v17294_v55  ;;  %v17353_v51 = vld [vmem:[#allocation6 + $0xd04] ss:$16 sps:$4 sm:$0xff]   ;;  %v15146_v55 = vcombine.low %v20026_v25, %v20030_v39  ;;  %v20087_v25 = vrot.slane %v19867_v59, 1  ;;  %v17361_v39 = vld [vmem:[#allocation6 + $0x10e0] ss:$16 sps:$4 sm:$0xff]  }
 0x219   : > { %4867 = vmatprep.subr.bf16.mxu1 %v17302_v26  ;;  %v17348_v26 = vld [vmem:[#allocation6 + $0xf20] ss:$16 sps:$4 sm:$0xff]  }
 0x21a   : > { %4817 = vmatpush1.bf16.msra.mxu0 %v17297_v56  ;;  %v15148_v56 = vcombine.low %v20028_v18, %v20036_v49  ;;  %v17366_v18 = vld [vmem:[#allocation6 + $0xcec] ss:$16 sps:$4 sm:$0xff]   ;;  %v20089_v49 = vld [vmem:[#allocation2 + $0x58] sm:$0xee] }
 0x21b   : > { %4818 = vmatprep.subr.bf16.mxu0 %v17305_v27  ;;  %v17351_v27 = vld [vmem:[#allocation6 + $0xd00] ss:$16 sps:$4 sm:$0xff]  }
 0x21c   : > { %4868 = vmatpush1.bf16.msra.mxu1 %v17300_v41  ;;  %v17356_v41 = vld [vmem:[#allocation6 + $0xf04] ss:$16 sps:$4 sm:$0xff]  }
 0x21d   : > { %4869 = vmatprep.subr.bf16.mxu1 %v17308_v40  ;;  %v20084_v40 = vrot.slane %v19858_v47, 1  ;;  %v17369_v47 = vld [vmem:[#allocation6 + $0x10c4] ss:$16 sps:$4 sm:$0xff]  }
 0x21e   : > { %4819 = vmatpush1.bf16.msra.mxu0 %v17303_v5  ;;  %v3814_v5 = vrot.slane %v15146_v55, 1 }
 0x21f   : > { %4820 = vmatprep.subr.bf16.mxu0 %v17311_v7  ;;  %v17363_v7 = vld [vmem:[#allocation6 + $0x10e4] ss:$16 sps:$4 sm:$0xff]  }
 0x220   : > { %4870 = vmatpush1.bf16.msra.mxu1 %v17306_v10  ;;  %v17354_v10 = vld [vmem:[#allocation6 + $0xf00] ss:$16 sps:$4 sm:$0xff]  }
 0x221   : > { %4871 = vmatprep.subr.bf16.mxu1 %v17314_v12  ;;  %v20093_v12 = vsel %vm3813_vm14, %v3814_v5, %v20084_v40  ;;  %v17387_v5 = vld [vmem:[#allocation6 + $0x1064] ss:$16 sps:$4 sm:$0xff]  }
 0x222   : > { %4821 = vmatpush2.bf16.msra.mxu0 %v17309_v46  ;;  %v3820_v46 = vrot.slane %v15148_v56, 1  ;;  %v17379_v56 = vld [vmem:[#allocation6 + $0x1080] ss:$16 sps:$4 sm:$0xff]  }
 0x223   : > { %4822 = vmatprep.subr.bf16.mxu0 %v17317_v11  ;;  %v17364_v11 = vld [vmem:[#allocation6 + $0xce8] ss:$16 sps:$4 sm:$0xff]  }
 0x224   : > { %4872 = vmatpush2.bf16.msra.mxu1 %v17312_v6  ;;  %v20095_v6 = vld [vmem:[#allocation2 + $0x68] sm:$0xff] }
 0x225   : > { %4873 = vmatprep.subr.bf16.mxu1 %v17320_v20  ;;  %v15151_v59 = vcombine.high %v20089_v49, %v20095_v6  ;;  %v20102_v20 = vsel %vm3813_vm14, %v3820_v46, %v20087_v25 }
 0x226   : > { %4823 = vmatpush2.bf16.msra.mxu0 %v17315_v14 }
 0x227   : > { %4824 = vmatprep.subr.bf16.mxu0 %v17323_v38 }
 0x228   : > { %4874 = vmatpush2.bf16.msra.mxu1 %v17318_v23  ;;  %v17367_v23 = vld [vmem:[#allocation6 + $0x10c0] ss:$16 sps:$4 sm:$0xff]  }
 0x229   : > { %4875 = vmatprep.subr.bf16.mxu1 %v17326_v28 }
 0x22a   : > { %4825 = vmatpush2.bf16.msra.mxu0 %v17321_v54  ;;  %v17372_v54 = vld [vmem:[#allocation6 + $0xccc] ss:$16 sps:$4 sm:$0xff]  }
 0x22b   : > { %4826 = vmatprep.subr.bf16.mxu0 %v17329_v30  ;;  %v17370_v30 = vld [vmem:[#allocation6 + $0xcc8] ss:$16 sps:$4 sm:$0xff]  }
 0x22c   : > { %4876 = vmatpush2.bf16.msra.mxu1 %v17324_v32  ;;  %v17375_v32 = vld [vmem:[#allocation6 + $0x10a4] ss:$16 sps:$4 sm:$0xff]  }
 0x22d   : > { %4877 = vmatprep.subr.bf16.mxu1 %v17332_v0 }
 0x22e   : > { %4827 = vmatpush2.bf16.msra.mxu0 %v17327_v8 }
 0x22f   : > { %4828 = vmatprep.subr.bf16.mxu0 %v17335_v17  ;;  %v3829_v17 = vrot.slane %v15151_v59, 1  ;;  %v17393_v59 = vld [vmem:[#allocation6 + $0x1044] ss:$16 sps:$4 sm:$0xff]  }
 0x230   : > { %4878 = vmatpush2.bf16.msra.mxu1 %v17330_v29  ;;  %v20109_v29 = vrot.slane %v19922_v21, 1  ;;  %v17376_v21 = vld [vmem:[#allocation6 + $0xca8] ss:$16 sps:$4 sm:$0xff]  }
 0x231   : > { %4879 = vmatprep.subr.bf16.mxu1 %v17338_v35 }
 0x232   : > { %4829 = vmatpush2.bf16.msra.mxu0 %v17333_v34 }
 0x233   : > { %4830 = vmatprep.subr.bf16.mxu0 %v17341_v36 }
 0x234   : > { %4880 = vmatpush2.bf16.msra.mxu1 %v17336_v61  ;;  %v17373_v61 = vld [vmem:[#allocation6 + $0x10a0] ss:$16 sps:$4 sm:$0xff]  }
 0x235   : > { %4881 = vmatprep.subr.bf16.mxu1 %v17344_v16 }
 0x236   : > { %4831 = vmatpush2.bf16.msra.mxu0 %v17339_v42  ;;  %v17378_v42 = vld [vmem:[#allocation6 + $0xcac] ss:$16 sps:$4 sm:$0xff]  }
 0x237   : > { %4832 = vmatprep.subr.bf16.mxu0 %v17347_v33  ;;  %v17381_v33 = vld [vmem:[#allocation6 + $0x1084] ss:$16 sps:$4 sm:$0xff]  }
 0x238   : > { %4882 = vmatpush2.bf16.msra.mxu1 %v17342_v58 }
 0x239   : > { %4883 = vmatprep.subr.bf16.mxu1 %v17350_v48 }
 0x23a   : > { %4833 = vmatpush2.bf16.msra.mxu0 %v17345_v45  ;;  %v20121_v45 = vsel %vm3813_vm14, %v3829_v17, %v20109_v29  ;;  %v17400_v17 = vld [vmem:[#allocation6 + $0xc28] ss:$16 sps:$4 sm:$0xff]  }
 0x23b   : > { %4834 = vmatprep.subr.bf16.mxu0 %v17353_v51 }
 0x23c   : > { %4884 = vmatpush2.bf16.msra.mxu1 %v17348_v26  ;;  %v17384_v26 = vld [vmem:[#allocation6 + $0xc8c] ss:$16 sps:$4 sm:$0xff]  }
 0x23d   : > { %4885 = vmatprep.subr.bf16.mxu1 %v17356_v41  ;;  %v17382_v41 = vld [vmem:[#allocation6 + $0xc88] ss:$16 sps:$4 sm:$0xff]  }
 0x23e   : > { %4835 = vmatpush2.bf16.msra.mxu0 %v17351_v27 }
 0x23f   : > { %4906 = vmatprep.subr.bf16.mxu0 %v17363_v7 }
 0x240   : > { %4886 = vmatpush2.bf16.msra.mxu1 %v17354_v10 }
 0x241   : > { %v3330_v14 = vpop.f32.mrf.mxu0  ;;  %4837 = vmatmul.mubr.bf16.vlgmr.msra.gmra.mxu0 %v20093_v12  ;;  %4957 = vmatprep.subr.bf16.mxu1 %v17366_v18  ;;  %v17385_v18 = vld [vmem:[#allocation6 + $0x1060] ss:$16 sps:$4 sm:$0xff]  }
 0x242   : > { %v3331_v38 = vadd.f32 %v3330_v14, %v19989_v63  ;;  %4907 = vmatpush1.bf16.msra.mxu0 %v17361_v39  ;;  %4846 = vmatprep.mubr.bf16.mxu0 %v20044_v1 }
 0x243   : > { %v3332_v28 = vpop.f32.mrf.mxu0  ;;  %4908 = vmatprep.subr.bf16.mxu0 %v17369_v47  ;;  %v3381_v8 = vpop.f32.mrf.mxu1  ;;  %4888 = vmatmul.mubr.bf16.vlgmr.msra.gmra.mxu1 %v20102_v20  ;;  %v17390_v47 = vld [vmem:[#allocation6 + $0xc6c] ss:$16 sps:$4 sm:$0xff]  }
 0x244   : > { %v3333_v0 = vadd.f32 %v3332_v28, %v19996_v50  ;;  %v20111_v63 = vadd.f32 %v3381_v8, %v3331_v38  ;;  %4958 = vmatpush1.bf16.msra.mxu1 %v17364_v11  ;;  %4897 = vmatprep.mubr.bf16.mxu1 %v20051_v52  ;;  %v17388_v38 = vld [vmem:[#allocation6 + $0xc68] ss:$16 sps:$4 sm:$0xff]   ;;  %v17399_v28 = vld [vmem:[#allocation6 + $0x1024] ss:$16 sps:$4 sm:$0xff]   ;;  %v17402_v8 = vld [vmem:[#allocation6 + $0xc2c] ss:$16 sps:$4 sm:$0xff]  }
 0x245   : > { %v3334_v34 = vpop.f32.mrf.mxu0  ;;  %v3383_v35 = vpop.f32.mrf.mxu1  ;;  %4959 = vmatprep.subr.bf16.mxu1 %v17372_v54  ;;  %v17396_v54 = vld [vmem:[#allocation6 + $0xc4c] ss:$16 sps:$4 sm:$0xff]  }
 0x246   : > { %v3335_v36 = vadd.f32 %v3334_v34, %v20004_v53  ;;  %4909 = vmatpush1.bf16.msra.mxu0 %v17367_v23  ;;  %v20115_v16 = vadd.f32 %v3383_v35, %v3333_v0  ;;  %v17391_v23 = vld [vmem:[#allocation6 + $0x1040] ss:$16 sps:$4 sm:$0xff]   ;;  %v17405_v0 = vld [vmem:[#allocation6 + $0x1004] ss:$16 sps:$4 sm:$0xff]   ;;  %v17408_v35 = vld [vmem:[#allocation6 + $0xc0c] ss:$16 sps:$4 sm:$0xff]  }
 0x247   : > { %v20117_v50 = vpop.f32.mrf.mxu0  ;;  %4910 = vmatprep.subr.bf16.mxu0 %v17375_v32  ;;  %v3385_v58 = vpop.f32.mrf.mxu1  ;;  %v17397_v32 = vld [vmem:[#allocation6 + $0x1020] ss:$16 sps:$4 sm:$0xff]  }
 0x248   : > { %v20123_v48 = vadd.f32 %v3385_v58, %v3335_v36  ;;  %4960 = vmatpush1.bf16.msra.mxu1 %v17370_v30  ;;  %v17403_v34 = vld [vmem:[#allocation6 + $0x1000] ss:$16 sps:$4 sm:$0xff]   ;;  %v17411_v36 = vld [vmem:[#allocation6 + $0x11e4] ss:$16 sps:$4 sm:$0xff]   ;;  %v17412_v58 = vld [vmem:[#allocation6 + $0xde8] ss:$16 sps:$4 sm:$0xff]  }
 0x249   : > { %v3340_v53 = vpop.f32.mrf.mxu0  ;;  %4847 = vmatmul.mubr.bf16.gmra.mxu0 %v20084_v40  ;;  %v20126_v51 = vpop.f32.mrf.mxu1  ;;  %4961 = vmatprep.subr.bf16.mxu1 %v17378_v42  ;;  %v17409_v42 = vld [vmem:[#allocation6 + $0x11e0] ss:$16 sps:$4 sm:$0xff]  }
 0x24a   : > { %v3341_v55 = vadd.f32 %v3340_v53, %v20014_v2  ;;  %4911 = vmatpush1.bf16.msra.mxu0 %v17373_v61  ;;  %4938 = vmatprep.mubr.bf16.mxu0 %v20121_v45  ;;  %v17406_v61 = vld [vmem:[#allocation6 + $0xc08] ss:$16 sps:$4 sm:$0xff]   ;;  %v17415_v53 = vld [vmem:[#allocation6 + $0x11c0] ss:$16 sps:$4 sm:$0xff]  }
 0x24b   : > { %v3342_v27 = vpop.f32.mrf.mxu0  ;;  %4912 = vmatprep.subr.bf16.mxu0 %v17381_v33  ;;  %v3391_v10 = vpop.f32.mrf.mxu1  ;;  %4898 = vmatmul.mubr.bf16.gmra.mxu1 %v20087_v25  ;;  %v17417_v33 = vld [vmem:[#allocation6 + $0x11c4] ss:$16 sps:$4 sm:$0xff]  }
 0x24c   : > { %v3343_v7 = vadd.f32 %v3342_v27, %v20019_v19  ;;  %4962 = vmatpush1.bf16.msra.mxu1 %v17376_v21  ;;  %v20132_v46 = vadd.f32 %v3391_v10, %v3341_v55  ;;  %4989 = vmatprep.mubr.bf16.mxu1 %v20059_v22  ;;  %v17394_v22 = vld [vmem:[#allocation6 + $0xc48] ss:$16 sps:$4 sm:$0xff]   ;;  %v17414_v21 = vld [vmem:[#allocation6 + $0xdec] ss:$16 sps:$4 sm:$0xff]   ;;  %v17421_v27 = vld [vmem:[#allocation6 + $0x11a0] ss:$16 sps:$4 sm:$0xff]  }
 0x24d   : > { %v3344_v39 = vpop.f32.mrf.mxu0  ;;  %v3393_v2 = vpop.f32.mrf.mxu1  ;;  %4963 = vmatprep.subr.bf16.mxu1 %v17384_v26  ;;  %v17420_v55 = vld [vmem:[#allocation6 + $0xdcc] ss:$16 sps:$4 sm:$0xff]   ;;  %v17418_v26 = vld [vmem:[#allocation6 + $0xdc8] ss:$16 sps:$4 sm:$0xff]   ;;  %v17427_v10 = vld [vmem:[#allocation6 + $0x1180] ss:$16 sps:$4 sm:$0xff]  }
 0x24e   : > { %4913 = vmatpush1.bf16.msra.mxu0 %v17379_v56  ;;  %v20135_v11 = vadd.f32 %v3393_v2, %v3343_v7  ;;  %v17423_v56 = vld [vmem:[#allocation6 + $0x11a4] ss:$16 sps:$4 sm:$0xff]   ;;  %v17424_v7 = vld [vmem:[#allocation6 + $0xda8] ss:$16 sps:$4 sm:$0xff]   ;;  %v17432_v39 = vld [vmem:[#allocation6 + $0xd8c] ss:$16 sps:$4 sm:$0xff]  }
 0x24f   : > { %4914 = vmatprep.subr.bf16.mxu0 %v17387_v5  ;;  %v3345_v14 = vpop.f32.mrf.mxu0  ;;  %v3395_v19 = vpop.f32.mrf.mxu1  ;;  %v17429_v5 = vld [vmem:[#allocation6 + $0x1184] ss:$16 sps:$4 sm:$0xff]  }
 0x250   : > { %4964 = vmatpush1.bf16.msra.mxu1 %v17382_v41  ;;  %v17426_v41 = vld [vmem:[#allocation6 + $0xdac] ss:$16 sps:$4 sm:$0xff]   ;;  %v17435_v2 = vld [vmem:[#allocation6 + $0x1164] ss:$16 sps:$4 sm:$0xff]   ;;  %v17436_v19 = vld [vmem:[#allocation6 + $0xd68] ss:$16 sps:$4 sm:$0xff]  }
 0x251   : > { %4965 = vmatprep.subr.bf16.mxu1 %v17390_v47  ;;  %v3396_v30 = vpop.f32.mrf.mxu1  ;;  %v17433_v47 = vld [vmem:[#allocation6 + $0x1160] ss:$16 sps:$4 sm:$0xff]   ;;  %v17441_v14 = vld [vmem:[#allocation6 + $0x1144] ss:$16 sps:$4 sm:$0xff]  }
 0x252   : > { %4915 = vmatpush1.bf16.msra.mxu0 %v17385_v18  ;;  %v17430_v18 = vld [vmem:[#allocation6 + $0xd88] ss:$16 sps:$4 sm:$0xff]   ;;  %v17445_v30 = vld [vmem:[#allocation6 + $0x1120] ss:$16 sps:$4 sm:$0xff]  }
 0x253   : > { %4916 = vmatprep.subr.bf16.mxu0 %v17393_v59  ;;  %v17438_v59 = vld [vmem:[#allocation6 + $0xd6c] ss:$16 sps:$4 sm:$0xff]  }
 0x254   : > { %4966 = vmatpush1.bf16.msra.mxu1 %v17388_v38  ;;  %v17439_v38 = vld [vmem:[#allocation6 + $0x1140] ss:$16 sps:$4 sm:$0xff]  }
 0x255   : > { %4967 = vmatprep.subr.bf16.mxu1 %v17396_v54  ;;  %v17447_v54 = vld [vmem:[#allocation6 + $0x1124] ss:$16 sps:$4 sm:$0xff]  }
 0x256   : > { %4917 = vmatpush1.bf16.msra.mxu0 %v17391_v23  ;;  %v17444_v23 = vld [vmem:[#allocation6 + $0xd4c] ss:$16 sps:$4 sm:$0xff]  }
 0x257   : > { %4918 = vmatprep.subr.bf16.mxu0 %v17399_v28  ;;  %v17442_v28 = vld [vmem:[#allocation6 + $0xd48] ss:$16 sps:$4 sm:$0xff]  }
 0x258   : > { %4968 = vmatpush1.bf16.msra.mxu1 %v17394_v22  ;;  %v17450_v22 = vld [vmem:[#allocation6 + $0xd2c] ss:$16 sps:$4 sm:$0xff]  }
 0x259   : > { %4969 = vmatprep.subr.bf16.mxu1 %v17402_v8  ;;  %v15150_v8 = vcombine.low %v20089_v49, %v20095_v6  ;;  %v17459_v6 = vld [vmem:[#allocation6 + $0xee8] ss:$16 sps:$4 sm:$0xff]  }
 0x25a   : > { %4919 = vmatpush1.bf16.msra.mxu0 %v17397_v32  ;;  %v17453_v32 = vld [vmem:[#allocation6 + $0x1104] ss:$16 sps:$4 sm:$0xff]  }
 0x25b   : > { %4920 = vmatprep.subr.bf16.mxu0 %v17405_v0  ;;  %v17448_v0 = vld [vmem:[#allocation6 + $0xd28] ss:$16 sps:$4 sm:$0xff]  }
 0x25c   : > { %4970 = vmatpush1.bf16.msra.mxu1 %v17400_v17  ;;  %v17451_v17 = vld [vmem:[#allocation6 + $0x1100] ss:$16 sps:$4 sm:$0xff]  }
 0x25d   : > { %4971 = vmatprep.subr.bf16.mxu1 %v17408_v35  ;;  %v3826_v35 = vrot.slane %v15150_v8, 1  ;;  %v17488_v8 = vld [vmem:[#allocation6 + $0x106c] ss:$16 sps:$4 sm:$0xff]  }
 0x25e   : > { %4921 = vmatpush1.bf16.msra.mxu0 %v17403_v34  ;;  %v17456_v34 = vld [vmem:[#allocation6 + $0xd0c] ss:$16 sps:$4 sm:$0xff]  }
 0x25f   : > { %4922 = vmatprep.subr.bf16.mxu0 %v17411_v36  ;;  %v20140_v36 = vrot.slane %v19924_v31, 1  ;;  %v17462_v31 = vld [vmem:[#allocation6 + $0x10e8] ss:$16 sps:$4 sm:$0xff]  }
 0x260   : > { %4972 = vmatpush1.bf16.msra.mxu1 %v17406_v61  ;;  %v17461_v61 = vld [vmem:[#allocation6 + $0xeec] ss:$16 sps:$4 sm:$0xff]  }
 0x261   : > { %4973 = vmatprep.subr.bf16.mxu1 %v17414_v21  ;;  %v20144_v49 = vsel %vm3813_vm14, %v3826_v35, %v20140_v36  ;;  %v17464_v21 = vld [vmem:[#allocation6 + $0x10ec] ss:$16 sps:$4 sm:$0xff]   ;;  %v17489_v35 = vld [vmem:[#allocation6 + $0xe48] ss:$16 sps:$4 sm:$0xff]  }
 0x262   : > { %4923 = vmatpush2.bf16.msra.mxu0 %v17409_v42  ;;  %v17454_v42 = vld [vmem:[#allocation6 + $0xd08] ss:$16 sps:$4 sm:$0xff]  }
 0x263   : > { %4924 = vmatprep.subr.bf16.mxu0 %v17417_v33  ;;  %v17467_v33 = vld [vmem:[#allocation6 + $0xecc] ss:$16 sps:$4 sm:$0xff]  }
 0x264   : > { %4974 = vmatpush2.bf16.msra.mxu1 %v17412_v58 }
 0x265   : > { %4975 = vmatprep.subr.bf16.mxu1 %v17420_v55  ;;  %v17465_v55 = vld [vmem:[#allocation6 + $0xec8] ss:$16 sps:$4 sm:$0xff]  }
 0x266   : > { %4925 = vmatpush2.bf16.msra.mxu0 %v17415_v53 }
 0x267   : > { %4926 = vmatprep.subr.bf16.mxu0 %v17423_v56  ;;  %v17470_v56 = vld [vmem:[#allocation6 + $0x10cc] ss:$16 sps:$4 sm:$0xff]  }
 0x268   : > { %4976 = vmatpush2.bf16.msra.mxu1 %v17418_v26 }
 0x269   : > { %4977 = vmatprep.subr.bf16.mxu1 %v17426_v41 }
 0x26a   : > { %4927 = vmatpush2.bf16.msra.mxu0 %v17421_v27  ;;  %v17473_v27 = vld [vmem:[#allocation6 + $0xeac] ss:$16 sps:$4 sm:$0xff]  }
 0x26b   : > { %4928 = vmatprep.subr.bf16.mxu0 %v17429_v5 }
 0x26c   : > { %4978 = vmatpush2.bf16.msra.mxu1 %v17424_v7  ;;  %v17468_v7 = vld [vmem:[#allocation6 + $0x10c8] ss:$16 sps:$4 sm:$0xff]  }
 0x26d   : > { %4979 = vmatprep.subr.bf16.mxu1 %v17432_v39 }
 0x26e   : > { %4929 = vmatpush2.bf16.msra.mxu0 %v17427_v10 }
 0x26f   : > { %4930 = vmatprep.subr.bf16.mxu0 %v17435_v2 }
 0x270   : > { %4980 = vmatpush2.bf16.msra.mxu1 %v17430_v18  ;;  %v17471_v18 = vld [vmem:[#allocation6 + $0xea8] ss:$16 sps:$4 sm:$0xff]  }
 0x271   : > { %4981 = vmatprep.subr.bf16.mxu1 %v17438_v59  ;;  %v17479_v59 = vld [vmem:[#allocation6 + $0xe8c] ss:$16 sps:$4 sm:$0xff]  }
 0x272   : > { %4931 = vmatpush2.bf16.msra.mxu0 %v17433_v47  ;;  %v17476_v47 = vld [vmem:[#allocation6 + $0x10ac] ss:$16 sps:$4 sm:$0xff]  }
 0x273   : > { %4932 = vmatprep.subr.bf16.mxu0 %v17441_v14 }
 0x274   : > { %4982 = vmatpush2.bf16.msra.mxu1 %v17436_v19 }
 0x275   : > { %4983 = vmatprep.subr.bf16.mxu1 %v17444_v23  ;;  %v17482_v23 = vld [vmem:[#allocation6 + $0x108c] ss:$16 sps:$4 sm:$0xff]  }
 0x276   : > { %4933 = vmatpush2.bf16.msra.mxu0 %v17439_v38 }
 0x277   : > { %4934 = vmatprep.subr.bf16.mxu0 %v17447_v54 }
 0x278   : > { %4984 = vmatpush2.bf16.msra.mxu1 %v17442_v28  ;;  %v17485_v28 = vld [vmem:[#allocation6 + $0xe6c] ss:$16 sps:$4 sm:$0xff]  }
 0x279   : > { %4985 = vmatprep.subr.bf16.mxu1 %v17450_v22 }
 0x27a   : > { %4935 = vmatpush2.bf16.msra.mxu0 %v17445_v30 }
 0x27b   : > { %4936 = vmatprep.subr.bf16.mxu0 %v17453_v32  ;;  %v17483_v32 = vld [vmem:[#allocation6 + $0xe68] ss:$16 sps:$4 sm:$0xff]  }
 0x27c   : > { %4986 = vmatpush2.bf16.msra.mxu1 %v17448_v0 }
 0x27d   : > { %4987 = vmatprep.subr.bf16.mxu1 %v17456_v34 }
 0x27e   : > { %4937 = vmatpush2.bf16.msra.mxu0 %v17451_v17 }
 0x27f   : > { %5008 = vmatprep.subr.bf16.mxu0 %v17461_v61  ;;  %v17494_v61 = vld [vmem:[#allocation6 + $0x104c] ss:$16 sps:$4 sm:$0xff]  }
 0x280   : > { %4988 = vmatpush2.bf16.msra.mxu1 %v17454_v42  ;;  %v17497_v42 = vld [vmem:[#allocation6 + $0xe2c] ss:$16 sps:$4 sm:$0xff]  }
 0x281   : > { %v3432_v58 = vpop.f32.mrf.mxu0  ;;  %4939 = vmatmul.mubr.bf16.vlgmr.msra.gmra.mxu0 %v20144_v49  ;;  %5059 = vmatprep.subr.bf16.mxu1 %v17464_v21  ;;  %v17495_v21 = vld [vmem:[#allocation6 + $0xe28] ss:$16 sps:$4 sm:$0xff]  }
 0x282   : > { %v20148_v53 = vadd.f32 %v3432_v58, %v20111_v63  ;;  %5009 = vmatpush1.bf16.msra.mxu0 %v17459_v6  ;;  %4948 = vmatprep.mubr.bf16.mxu0 %v20109_v29  ;;  %v17498_v58 = vld [vmem:[#allocation6 + $0x1028] ss:$16 sps:$4 sm:$0xff]  }
 0x283   : > { %v3434_v26 = vpop.f32.mrf.mxu0  ;;  %5010 = vmatprep.subr.bf16.mxu0 %v17467_v33  ;;  %v3483_v41 = vpop.f32.mrf.mxu1  ;;  %4990 = vmatmul.mubr.bf16.vlgmr.msra.gmra.mxu1 %v20093_v12  ;;  %v17500_v33 = vld [vmem:[#allocation6 + $0x102c] ss:$16 sps:$4 sm:$0xff]  }
 0x284   : > { %v20153_v5 = vadd.f32 %v3434_v26, %v20115_v16  ;;  %v20156_v10 = vadd.f32 %v3483_v41, %v20046_v3  ;;  %5060 = vmatpush1.bf16.msra.mxu1 %v17462_v31  ;;  %4999 = vmatprep.mubr.bf16.mxu1 %v20044_v1  ;;  %v17474_v3 = vld [vmem:[#allocation6 + $0x10a8] ss:$16 sps:$4 sm:$0xff]   ;;  %v17512_v41 = vld [vmem:[#allocation6 + $0x11ec] ss:$16 sps:$4 sm:$0xff]  }
 0x285   : > { %v3436_v63 = vpop.f32.mrf.mxu0  ;;  %v3485_v39 = vpop.f32.mrf.mxu1  ;;  %5061 = vmatprep.subr.bf16.mxu1 %v17470_v56  ;;  %v17501_v31 = vld [vmem:[#allocation6 + $0xe08] ss:$16 sps:$4 sm:$0xff]   ;;  %v17509_v56 = vld [vmem:[#allocation6 + $0xfec] ss:$16 sps:$4 sm:$0xff]  }
 0x286   : > { %v20160_v2 = vadd.f32 %v3436_v63, %v20123_v48  ;;  %5011 = vmatpush1.bf16.msra.mxu0 %v17465_v55  ;;  %v20163_v12 = vadd.f32 %v3485_v39, %v20053_v15  ;;  %v17477_v15 = vld [vmem:[#allocation6 + $0xe88] ss:$16 sps:$4 sm:$0xff]   ;;  %v17506_v55 = vld [vmem:[#allocation6 + $0x100c] ss:$16 sps:$4 sm:$0xff]  }
 0x287   : > { %v20165_v16 = vpop.f32.mrf.mxu0  ;;  %5012 = vmatprep.subr.bf16.mxu0 %v17473_v27  ;;  %v3487_v14 = vpop.f32.mrf.mxu1  ;;  %v17504_v26 = vld [vmem:[#allocation6 + $0x1008] ss:$16 sps:$4 sm:$0xff]  }
 0x288   : > { %v20168_v19 = vadd.f32 %v3487_v14, %v20061_v62  ;;  %5062 = vmatpush1.bf16.msra.mxu1 %v17468_v7  ;;  %v17507_v27 = vld [vmem:[#allocation6 + $0xfe8] ss:$16 sps:$4 sm:$0xff]   ;;  %v17515_v7 = vld [vmem:[#allocation6 + $0xfcc] ss:$16 sps:$4 sm:$0xff]  }
 0x289   : > { %v3442_v1 = vpop.f32.mrf.mxu0  ;;  %4949 = vmatmul.mubr.bf16.gmra.mxu0 %v20140_v36  ;;  %v20171_v48 = vpop.f32.mrf.mxu1  ;;  %5063 = vmatprep.subr.bf16.mxu1 %v17476_v47  ;;  %v17510_v63 = vld [vmem:[#allocation6 + $0x11e8] ss:$16 sps:$4 sm:$0xff]   ;;  %v17521_v47 = vld [vmem:[#allocation6 + $0xfac] ss:$16 sps:$4 sm:$0xff]  }
 0x28a   : > { %21454 = vst [vmem:[#allocation19_spill] sm:$0xff] %v20171_v48  ;;  %v20174_v38 = vadd.f32 %v3442_v1, %v20132_v46  ;;  %5013 = vmatpush1.bf16.msra.mxu0 %v17471_v18  ;;  %5040 = vmatprep.mubr.bf16.mxu0 %v20069_v24  ;;  %v17480_v46 = vld [vmem:[#allocation6 + $0x1088] ss:$16 sps:$4 sm:$0xff]   ;;  %v17491_v24 = vld [vmem:[#allocation6 + $0xe4c] ss:$16 sps:$4 sm:$0xff]  }
 0x28b   : > { %v3444_v54 = vpop.f32.mrf.mxu0  ;;  %5014 = vmatprep.subr.bf16.mxu0 %v17479_v59  ;;  %v3493_v62 = vpop.f32.mrf.mxu1  ;;  %5000 = vmatmul.mubr.bf16.gmra.mxu1 %v20084_v40  ;;  %v17513_v39 = vld [vmem:[#allocation6 + $0xfc8] ss:$16 sps:$4 sm:$0xff]   ;;  %v17518_v18 = vld [vmem:[#allocation6 + $0x11cc] ss:$16 sps:$4 sm:$0xff]  }
 0x28c   : > { %v20178_v30 = vadd.f32 %v3444_v54, %v20135_v11  ;;  %v20182_v22 = vadd.f32 %v3493_v62, %v20074_v13  ;;  %5064 = vmatpush1.bf16.msra.mxu1 %v17474_v3  ;;  %5091 = vmatprep.mubr.bf16.mxu1 %v20121_v45  ;;  %v17486_v13 = vld [vmem:[#allocation6 + $0x1068] ss:$16 sps:$4 sm:$0xff]   ;;  %v17524_v14 = vld [vmem:[#allocation6 + $0x11ac] ss:$16 sps:$4 sm:$0xff]  }
 0x28d   : > { %v3446_v0 = vpop.f32.mrf.mxu0  ;;  %v3495_v17 = vpop.f32.mrf.mxu1  ;;  %5065 = vmatprep.subr.bf16.mxu1 %v17482_v23  ;;  %v17492_v45 = vld [vmem:[#allocation6 + $0x1048] ss:$16 sps:$4 sm:$0xff]   ;;  %v17527_v1 = vld [vmem:[#allocation6 + $0xf8c] ss:$16 sps:$4 sm:$0xff]  }
 0x28e   : > { %5015 = vmatpush1.bf16.msra.mxu0 %v17477_v15  ;;  %v20186_v34 = vadd.f32 %v3495_v17, %v20077_v37  ;;  %v17503_v37 = vld [vmem:[#allocation6 + $0xe0c] ss:$16 sps:$4 sm:$0xff]   ;;  %v17516_v3 = vld [vmem:[#allocation6 + $0x11c8] ss:$16 sps:$4 sm:$0xff]  }
 0x28f   : > { %5016 = vmatprep.subr.bf16.mxu0 %v17485_v28  ;;  %v3447_v11 = vpop.f32.mrf.mxu0  ;;  %v3497_v40 = vpop.f32.mrf.mxu1  ;;  %v17519_v59 = vld [vmem:[#allocation6 + $0xfa8] ss:$16 sps:$4 sm:$0xff]   ;;  %v17530_v54 = vld [vmem:[#allocation6 + $0x118c] ss:$16 sps:$4 sm:$0xff]  }
 0x290   : > { %5066 = vmatpush1.bf16.msra.mxu1 %v17480_v46  ;;  %v17522_v15 = vld [vmem:[#allocation6 + $0x11a8] ss:$16 sps:$4 sm:$0xff]   ;;  %v17533_v28 = vld [vmem:[#allocation6 + $0xf6c] ss:$16 sps:$4 sm:$0xff]  }
 0x291   : > { %5067 = vmatprep.subr.bf16.mxu1 %v17488_v8  ;;  %v3498_v6 = vpop.f32.mrf.mxu1  ;;  %v17525_v23 = vld [vmem:[#allocation6 + $0xf88] ss:$16 sps:$4 sm:$0xff]   ;;  %v17539_v8 = vld [vmem:[#allocation6 + $0xf4c] ss:$16 sps:$4 sm:$0xff]  }
 0x292   : > { %5017 = vmatpush1.bf16.msra.mxu0 %v17483_v32  ;;  %v17528_v62 = vld [vmem:[#allocation6 + $0x1188] ss:$16 sps:$4 sm:$0xff]   ;;  %v17536_v32 = vld [vmem:[#allocation6 + $0x116c] ss:$16 sps:$4 sm:$0xff]  }
 0x293   : > { %5018 = vmatprep.subr.bf16.mxu0 %v17491_v24  ;;  %v17531_v46 = vld [vmem:[#allocation6 + $0xf68] ss:$16 sps:$4 sm:$0xff]   ;;  %v17542_v24 = vld [vmem:[#allocation6 + $0x114c] ss:$16 sps:$4 sm:$0xff]  }
 0x294   : > { %5068 = vmatpush1.bf16.msra.mxu1 %v17486_v13  ;;  %v17534_v0 = vld [vmem:[#allocation6 + $0x1168] ss:$16 sps:$4 sm:$0xff]   ;;  %v17545_v11 = vld [vmem:[#allocation6 + $0xf2c] ss:$16 sps:$4 sm:$0xff]  }
 0x295   : > { %5069 = vmatprep.subr.bf16.mxu1 %v17494_v61  ;;  %v17537_v17 = vld [vmem:[#allocation6 + $0xf48] ss:$16 sps:$4 sm:$0xff]   ;;  %v17551_v61 = vld [vmem:[#allocation6 + $0xf0c] ss:$16 sps:$4 sm:$0xff]  }
 0x296   : > { %5019 = vmatpush1.bf16.msra.mxu0 %v17489_v35  ;;  %v17540_v40 = vld [vmem:[#allocation6 + $0x1148] ss:$16 sps:$4 sm:$0xff]   ;;  %v17548_v35 = vld [vmem:[#allocation6 + $0x112c] ss:$16 sps:$4 sm:$0xff]  }
 0x297   : > { %5020 = vmatprep.subr.bf16.mxu0 %v17497_v42  ;;  %v17543_v13 = vld [vmem:[#allocation6 + $0xf28] ss:$16 sps:$4 sm:$0xff]  }
 0x298   : > { %5070 = vmatpush1.bf16.msra.mxu1 %v17492_v45  ;;  %v17546_v42 = vld [vmem:[#allocation6 + $0x1128] ss:$16 sps:$4 sm:$0xff]   ;;  %v17554_v45 = vld [vmem:[#allocation6 + $0x110c] ss:$16 sps:$4 sm:$0xff]  }
 0x299   : > { %5071 = vmatprep.subr.bf16.mxu1 %v17500_v33  ;;  %v17549_v6 = vld [vmem:[#allocation6 + $0xf08] ss:$16 sps:$4 sm:$0xff]  }
 0x29a   : > { %5021 = vmatpush1.bf16.msra.mxu0 %v17495_v21  ;;  %v17557_v21 = vld [vmem:[#allocation6 + $0x12e4] ss:$16 sps:$4 sm:$0xff]   ;;  %v17552_v33 = vld [vmem:[#allocation6 + $0x1108] ss:$16 sps:$4 sm:$0xff]  }
 0x29b   : > { %5022 = vmatprep.subr.bf16.mxu0 %v17503_v37  ;;  %v17560_v37 = vld [vmem:[#allocation6 + $0x14e4] ss:$16 sps:$4 sm:$0xff]  }
 0x29c   : > { %5072 = vmatpush1.bf16.msra.mxu1 %v17498_v58  ;;  %v17555_v58 = vld [vmem:[#allocation6 + $0x12e0] ss:$16 sps:$4 sm:$0xff]  }
 0x29d   : > { %5073 = vmatprep.subr.bf16.mxu1 %v17506_v55  ;;  %v20190_v55 = vld [vmem:[#allocation2 + $0x20] sm:$0x77] }
 0x29e   : > { %5023 = vmatpush1.bf16.msra.mxu0 %v17501_v31  ;;  %v20188_v31 = vld [vmem:[#allocation2 + $0x30] sm:$0x88] }
 0x29f   : > { %5024 = vmatprep.subr.bf16.mxu0 %v17509_v56  ;;  %v17563_v56 = vld [vmem:[#allocation6 + $0x12c4] ss:$16 sps:$4 sm:$0xff]  }
 0x2a0   : > { %5074 = vmatpush1.bf16.msra.mxu1 %v17504_v26  ;;  %v20192_v26 = vld [vmem:[#allocation2] sm:$0x88] }
 0x2a1   : > { %5075 = vmatprep.subr.bf16.mxu1 %v17512_v41  ;;  %v20196_v41 = vld [vmem:[#allocation2 + $0x18] sm:$0xff] }
 0x2a2   : > { %5025 = vmatpush2.bf16.msra.mxu0 %v17507_v27  ;;  %v20194_v27 = vld [vmem:[#allocation2 + $0x10] sm:$0x77] }
 0x2a3   : > { %5026 = vmatprep.subr.bf16.mxu0 %v17515_v7  ;;  %v20200_v7 = vcombine.high %v20188_v31, %v20196_v41 }
 0x2a4   : > { %5076 = vmatpush2.bf16.msra.mxu1 %v17510_v63  ;;  %v20202_v63 = vld [vmem:[#allocation2 + $0x8] sm:$0xff] }
 0x2a5   : > { %5077 = vmatprep.subr.bf16.mxu1 %v17518_v18 }
 0x2a6   : > { %5027 = vmatpush2.bf16.msra.mxu0 %v17513_v39  ;;  %v15351_v39 = vcombine.high %v20202_v63, %v20190_v55 }
 0x2a7   : > { %5028 = vmatprep.subr.bf16.mxu0 %v17521_v47  ;;  %v17558_v47 = vld [vmem:[#allocation6 + $0x14e0] ss:$16 sps:$4 sm:$0xff]  }
 0x2a8   : > { %5078 = vmatpush2.bf16.msra.mxu1 %v17516_v3 }
 0x2a9   : > { %5079 = vmatprep.subr.bf16.mxu1 %v17524_v14  ;;  %v17566_v14 = vld [vmem:[#allocation6 + $0x14c4] ss:$16 sps:$4 sm:$0xff]  }
 0x2aa   : > { %5029 = vmatpush2.bf16.msra.mxu0 %v17519_v59  ;;  %v17561_v59 = vld [vmem:[#allocation6 + $0x12c0] ss:$16 sps:$4 sm:$0xff]  }
 0x2ab   : > { %5030 = vmatprep.subr.bf16.mxu0 %v17527_v1  ;;  %v20208_v1 = vld [vmem:[#allocation2 + $0x50] sm:$0xff] }
 0x2ac   : > { %5080 = vmatpush2.bf16.msra.mxu1 %v17522_v15  ;;  %v20212_v15 = vcombine.high %v20192_v26, %v20208_v1 }
 0x2ad   : > { %5081 = vmatprep.subr.bf16.mxu1 %v17530_v54 }
 0x2ae   : > { %5031 = vmatpush2.bf16.msra.mxu0 %v17525_v23  ;;  %v20214_v23 = vld [vmem:[#allocation2 + $0x48] sm:$0xff] }
 0x2af   : > { %5032 = vmatprep.subr.bf16.mxu0 %v17533_v28  ;;  %v15353_v54 = vcombine.high %v20214_v23, %v20194_v27 }
 0x2b0   : > { %5082 = vmatpush2.bf16.msra.mxu1 %v17528_v62 }
 0x2b1   : > { %5083 = vmatprep.subr.bf16.mxu1 %v17536_v32  ;;  %v17572_v32 = vld [vmem:[#allocation6 + $0x14a4] ss:$16 sps:$4 sm:$0xff]  }
 0x2b2   : > { %5033 = vmatpush2.bf16.msra.mxu0 %v17531_v46 }
 0x2b3   : > { %5034 = vmatprep.subr.bf16.mxu0 %v17539_v8  ;;  %v5355_v8 = vrot.slane %v20200_v7, 3 }
 0x2b4   : > { %5084 = vmatpush2.bf16.msra.mxu1 %v17534_v0  ;;  %v20222_v0 = vrot.slane %v15351_v39, 3 }
 0x2b5   : > { %5085 = vmatprep.subr.bf16.mxu1 %v17542_v24 }
 0x2b6   : > { %5035 = vmatpush2.bf16.msra.mxu0 %v17537_v17 }
 0x2b7   : > { %5036 = vmatprep.subr.bf16.mxu0 %v17545_v11 }
 0x2b8   : > { %5086 = vmatpush2.bf16.msra.mxu1 %v17540_v40  ;;  %v20229_v40 = vrot.slane %v15353_v54, 3  ;;  %v17579_v54 = vld [vmem:[#allocation6 + $0x1260] ss:$16 sps:$4 sm:$0xff]  }
 0x2b9   : > { %5087 = vmatprep.subr.bf16.mxu1 %v17548_v35 }
 0x2ba   : > { %5037 = vmatpush2.bf16.msra.mxu0 %v17543_v13 }
 0x2bb   : > { %5038 = vmatprep.subr.bf16.mxu0 %v17551_v61  ;;  %v17570_v61 = vld [vmem:[#allocation6 + $0x14a0] ss:$16 sps:$4 sm:$0xff]  }
 0x2bc   : > { %5088 = vmatpush2.bf16.msra.mxu1 %v17546_v42  ;;  %v17575_v42 = vld [vmem:[#allocation6 + $0x1284] ss:$16 sps:$4 sm:$0xff]  }
 0x2bd   : > { %5089 = vmatprep.subr.bf16.mxu1 %v17554_v45 }
 0x2be   : > { %5039 = vmatpush2.bf16.msra.mxu0 %v17549_v6 }
 0x2bf   : > { %6342 = vmatprep.subr.bf16.mxu0 %v17557_v21 }
 0x2c0   : > { %5090 = vmatpush2.bf16.msra.mxu1 %v17552_v33 }
 0x2c1   : > { %v3534_v18 = vpop.f32.mrf.mxu0  ;;  %5041 = vmatmul.mubr.bf16.vlgmr.msra.gmra.mxu0 %v20102_v20  ;;  %6393 = vmatprep.subr.bf16.mxu1 %v17560_v37  ;;  %v17564_v20 = vld [vmem:[#allocation6 + $0x14c0] ss:$16 sps:$4 sm:$0xff]  }
 0x2c2   : > { %v3535_v3 = vadd.f32 %v3534_v18, %v20156_v10  ;;  %6343 = vmatpush1.bf16.msra.mxu0 %v17555_v58  ;;  %5050 = vmatprep.mubr.bf16.mxu0 %v20051_v52  ;;  %v17569_v10 = vld [vmem:[#allocation6 + $0x12a4] ss:$16 sps:$4 sm:$0xff]   ;;  %v17573_v37 = vld [vmem:[#allocation6 + $0x1280] ss:$16 sps:$4 sm:$0xff]  }
 0x2c3   : > { %v3536_v28 = vpop.f32.mrf.mxu0  ;;  %6344 = vmatprep.subr.bf16.mxu0 %v17563_v56  ;;  %v3585_v62 = vpop.f32.mrf.mxu1  ;;  %5092 = vmatmul.mubr.bf16.vlgmr.msra.gmra.mxu1 %v20144_v49  ;;  %v17567_v49 = vld [vmem:[#allocation6 + $0x12a0] ss:$16 sps:$4 sm:$0xff]   ;;  %v17578_v58 = vld [vmem:[#allocation6 + $0x1484] ss:$16 sps:$4 sm:$0xff]  }
 0x2c4   : > { %v3537_v46 = vadd.f32 %v3536_v28, %v20163_v12  ;;  %v20224_v17 = vadd.f32 %v3585_v62, %v3535_v3  ;;  %6394 = vmatpush1.bf16.msra.mxu1 %v17558_v47  ;;  %5101 = vmatprep.mubr.bf16.mxu1 %v20109_v29  ;;  %v5361_v12 = vrot.slane %v20212_v15, 3  ;;  %v20237_v29 = vsel %vm5351_vm4, %v5355_v8, %v20222_v0  ;;  %v17576_v18 = vld [vmem:[#allocation6 + $0x1480] ss:$16 sps:$4 sm:$0xff]   ;;  %v17581_v47 = vld [vmem:[#allocation6 + $0x1264] ss:$16 sps:$4 sm:$0xff]  }
 0x2c5   : > { %v3538_v24 = vpop.f32.mrf.mxu0  ;;  %v3587_v11 = vpop.f32.mrf.mxu1  ;;  %6395 = vmatprep.subr.bf16.mxu1 %v17566_v14  ;;  %v17584_v28 = vld [vmem:[#allocation6 + $0x1464] ss:$16 sps:$4 sm:$0xff]  }
 0x2c6   : > { %v3539_v52 = vadd.f32 %v3538_v24, %v20168_v19  ;;  %6345 = vmatpush1.bf16.msra.mxu0 %v17561_v59  ;;  %v20231_v13 = vadd.f32 %v3587_v11, %v3537_v46  ;;  %v20247_v56 = vsel %vm5351_vm4, %v5361_v12, %v20229_v40  ;;  %v17582_v46 = vld [vmem:[#allocation6 + $0x1460] ss:$16 sps:$4 sm:$0xff]   ;;  %v17593_v8 = vld [vmem:[#allocation6 + $0x1224] ss:$16 sps:$4 sm:$0xff]  }
 0x2c7   : > { %v20233_v35 = vpop.f32.mrf.mxu0  ;;  %6346 = vmatprep.subr.bf16.mxu0 %v17569_v10  ;;  %v3589_v6 = vpop.f32.mrf.mxu1  ;;  %v17587_v10 = vld [vmem:[#allocation6 + $0x1244] ss:$16 sps:$4 sm:$0xff]   ;;  %v17588_v11 = vld [vmem:[#allocation6 + $0x1440] ss:$16 sps:$4 sm:$0xff]  }
 0x2c8   : > { %21455 = vst [vmem:[#allocation20_spill] sm:$0xff] %v20233_v35  ;;  %v20239_v19 = vadd.f32 %v3589_v6, %v3539_v52  ;;  %6396 = vmatpush1.bf16.msra.mxu1 %v17564_v20  ;;  %v17591_v52 = vld [vmem:[#allocation6 + $0x1220] ss:$16 sps:$4 sm:$0xff]   ;;  %v17599_v12 = vld [vmem:[#allocation6 + $0x1204] ss:$16 sps:$4 sm:$0xff]  }
 0x2c9   : > { %v3544_v45 = vpop.f32.mrf.mxu0  ;;  %5051 = vmatmul.mubr.bf16.gmra.mxu0 %v20087_v25  ;;  %v20242_v21 = vpop.f32.mrf.mxu1  ;;  %6397 = vmatprep.subr.bf16.mxu1 %v17572_v32  ;;  %v17590_v32 = vld [vmem:[#allocation6 + $0x1444] ss:$16 sps:$4 sm:$0xff]  }
 0x2ca   : > { %21456 = vst [vmem:[#allocation21_spill] sm:$0xff] %v20242_v21  ;;  %v3545_v33 = vadd.f32 %v3544_v45, %v20182_v22  ;;  %6347 = vmatpush1.bf16.msra.mxu0 %v17567_v49  ;;  %6374 = vmatprep.mubr.bf16.mxu0 %v20237_v29  ;;  %v17596_v49 = vld [vmem:[#allocation6 + $0x1424] ss:$16 sps:$4 sm:$0xff]   ;;  %v17689_v21 = vld [vmem:[#allocation6 + $0x1640] ss:$16 sps:$4 sm:$0xff]  }
 0x2cb   : > { %v3546_v39 = vpop.f32.mrf.mxu0  ;;  %6348 = vmatprep.subr.bf16.mxu0 %v17575_v42  ;;  %v3595_v3 = vpop.f32.mrf.mxu1  ;;  %5102 = vmatmul.mubr.bf16.gmra.mxu1 %v20140_v36  ;;  %v17585_v36 = vld [vmem:[#allocation6 + $0x1240] ss:$16 sps:$4 sm:$0xff]   ;;  %v17602_v6 = vld [vmem:[#allocation6 + $0x1404] ss:$16 sps:$4 sm:$0xff]  }
 0x2cc   : > { %v3547_v25 = vadd.f32 %v3546_v39, %v20186_v34  ;;  %6398 = vmatpush1.bf16.msra.mxu1 %v17570_v61  ;;  %v20252_v22 = vadd.f32 %v3595_v3, %v3545_v33  ;;  %6425 = vmatprep.mubr.bf16.mxu1 %v20247_v56  ;;  %v17594_v61 = vld [vmem:[#allocation6 + $0x1420] ss:$16 sps:$4 sm:$0xff]   ;;  %v17605_v45 = vld [vmem:[#allocation6 + $0x13e4] ss:$16 sps:$4 sm:$0xff]  }
 0x2cd   : > { %v3548_v59 = vpop.f32.mrf.mxu0  ;;  %v3597_v14 = vpop.f32.mrf.mxu1  ;;  %6399 = vmatprep.subr.bf16.mxu1 %v17578_v58  ;;  %v17597_v42 = vld [vmem:[#allocation6 + $0x1200] ss:$16 sps:$4 sm:$0xff]   ;;  %v17608_v58 = vld [vmem:[#allocation6 + $0x15e4] ss:$16 sps:$4 sm:$0xff]  }
 0x2ce   : > { %6349 = vmatpush1.bf16.msra.mxu0 %v17573_v37  ;;  %v20255_v20 = vadd.f32 %v3597_v14, %v3547_v25  ;;  %v17600_v33 = vld [vmem:[#allocation6 + $0x1400] ss:$16 sps:$4 sm:$0xff]   ;;  %v17611_v39 = vld [vmem:[#allocation6 + $0x13c4] ss:$16 sps:$4 sm:$0xff]  }
 0x2cf   : > { %6350 = vmatprep.subr.bf16.mxu0 %v17581_v47  ;;  %v3549_v62 = vpop.f32.mrf.mxu0  ;;  %v3599_v34 = vpop.f32.mrf.mxu1  ;;  %v17603_v37 = vld [vmem:[#allocation6 + $0x13e0] ss:$16 sps:$4 sm:$0xff]   ;;  %v17614_v25 = vld [vmem:[#allocation6 + $0x15c4] ss:$16 sps:$4 sm:$0xff]  }
 0x2d0   : > { %6400 = vmatpush1.bf16.msra.mxu1 %v17576_v18  ;;  %v17606_v18 = vld [vmem:[#allocation6 + $0x15e0] ss:$16 sps:$4 sm:$0xff]   ;;  %v17617_v3 = vld [vmem:[#allocation6 + $0x13a4] ss:$16 sps:$4 sm:$0xff]  }
 0x2d1   : > { %6401 = vmatprep.subr.bf16.mxu1 %v17584_v28  ;;  %v3600_v24 = vpop.f32.mrf.mxu1  ;;  %v17609_v47 = vld [vmem:[#allocation6 + $0x13c0] ss:$16 sps:$4 sm:$0xff]   ;;  %v17623_v28 = vld [vmem:[#allocation6 + $0x1384] ss:$16 sps:$4 sm:$0xff]  }
 0x2d2   : > { %6351 = vmatpush1.bf16.msra.mxu0 %v17579_v54  ;;  %v17612_v59 = vld [vmem:[#allocation6 + $0x15c0] ss:$16 sps:$4 sm:$0xff]   ;;  %v17620_v54 = vld [vmem:[#allocation6 + $0x15a4] ss:$16 sps:$4 sm:$0xff]  }
 0x2d3   : > { %6352 = vmatprep.subr.bf16.mxu0 %v17587_v10  ;;  %v17615_v14 = vld [vmem:[#allocation6 + $0x13a0] ss:$16 sps:$4 sm:$0xff]   ;;  %v17626_v34 = vld [vmem:[#allocation6 + $0x1584] ss:$16 sps:$4 sm:$0xff]  }
 0x2d4   : > { %6402 = vmatpush1.bf16.msra.mxu1 %v17582_v46  ;;  %v17618_v10 = vld [vmem:[#allocation6 + $0x15a0] ss:$16 sps:$4 sm:$0xff]   ;;  %v17629_v46 = vld [vmem:[#allocation6 + $0x1364] ss:$16 sps:$4 sm:$0xff]  }
 0x2d5   : > { %6403 = vmatprep.subr.bf16.mxu1 %v17590_v32  ;;  %v17621_v62 = vld [vmem:[#allocation6 + $0x1380] ss:$16 sps:$4 sm:$0xff]   ;;  %v17635_v24 = vld [vmem:[#allocation6 + $0x1344] ss:$16 sps:$4 sm:$0xff]  }
 0x2d6   : > { %6353 = vmatpush1.bf16.msra.mxu0 %v17585_v36  ;;  %v17624_v36 = vld [vmem:[#allocation6 + $0x1580] ss:$16 sps:$4 sm:$0xff]   ;;  %v17863_v35 = vld [vmem:[#allocation6 + $0x18c4] ss:$16 sps:$4 sm:$0xff]  }
 0x2d7   : > { %6354 = vmatprep.subr.bf16.mxu0 %v17593_v8  ;;  %v17627_v32 = vld [vmem:[#allocation6 + $0x1360] ss:$16 sps:$4 sm:$0xff]   ;;  %v17632_v8 = vld [vmem:[#allocation6 + $0x1564] ss:$16 sps:$4 sm:$0xff]  }
 0x2d8   : > { %6404 = vmatpush1.bf16.msra.mxu1 %v17588_v11  ;;  %v17630_v11 = vld [vmem:[#allocation6 + $0x1560] ss:$16 sps:$4 sm:$0xff]  }
 0x2d9   : > { %6405 = vmatprep.subr.bf16.mxu1 %v17596_v49  ;;  %v17638_v49 = vld [vmem:[#allocation6 + $0x1544] ss:$16 sps:$4 sm:$0xff]  }
 0x2da   : > { %6355 = vmatpush1.bf16.msra.mxu0 %v17591_v52  ;;  %v17633_v52 = vld [vmem:[#allocation6 + $0x1340] ss:$16 sps:$4 sm:$0xff]  }
 0x2db   : > { %6356 = vmatprep.subr.bf16.mxu0 %v17599_v12  ;;  %v17641_v12 = vld [vmem:[#allocation6 + $0x1324] ss:$16 sps:$4 sm:$0xff]  }
 0x2dc   : > { %6406 = vmatpush1.bf16.msra.mxu1 %v17594_v61  ;;  %v17636_v61 = vld [vmem:[#allocation6 + $0x1540] ss:$16 sps:$4 sm:$0xff]  }
 0x2dd   : > { %6407 = vmatprep.subr.bf16.mxu1 %v17602_v6  ;;  %v17644_v6 = vld [vmem:[#allocation6 + $0x1524] ss:$16 sps:$4 sm:$0xff]  }
 0x2de   : > { %6357 = vmatpush1.bf16.msra.mxu0 %v17597_v42  ;;  %v17639_v42 = vld [vmem:[#allocation6 + $0x1320] ss:$16 sps:$4 sm:$0xff]  }
 0x2df   : > { %6358 = vmatprep.subr.bf16.mxu0 %v17605_v45  ;;  %v17647_v45 = vld [vmem:[#allocation6 + $0x1304] ss:$16 sps:$4 sm:$0xff]  }
 0x2e0   : > { %6408 = vmatpush1.bf16.msra.mxu1 %v17600_v33  ;;  %v20259_v33 = vcombine.low %v20188_v31, %v20196_v41  ;;  %v17661_v41 = vld [vmem:[#allocation6 + $0x16e4] ss:$16 sps:$4 sm:$0xff]  }
 0x2e1   : > { %6409 = vmatprep.subr.bf16.mxu1 %v17608_v58  ;;  %v20265_v58 = vcombine.low %v20192_v26, %v20208_v1  ;;  %v17659_v1 = vld [vmem:[#allocation6 + $0x16e0] ss:$16 sps:$4 sm:$0xff]  }
 0x2e2   : > { %6359 = vmatpush2.bf16.msra.mxu0 %v17603_v37  ;;  %v15350_v37 = vcombine.low %v20202_v63, %v20190_v55  ;;  %v5352_v31 = vrot.slane %v20259_v33, 3  ;;  %v17648_v55 = vld [vmem:[#allocation6 + $0x1500] ss:$16 sps:$4 sm:$0xff]  }
 0x2e3   : > { %6360 = vmatprep.subr.bf16.mxu0 %v17611_v39  ;;  %v15352_v39 = vcombine.low %v20214_v23, %v20194_v27  ;;  %v5358_v26 = vrot.slane %v20265_v58, 3  ;;  %v17664_v27 = vld [vmem:[#allocation6 + $0x12ec] ss:$16 sps:$4 sm:$0xff]   ;;  %v20275_v23 = vld [vmem:[#allocation2 + $0x58] sm:$0x88] }
 0x2e4   : > { %6410 = vmatpush2.bf16.msra.mxu1 %v17606_v18  ;;  %v17642_v18 = vld [vmem:[#allocation6 + $0x1520] ss:$16 sps:$4 sm:$0xff]  }
 0x2e5   : > { %6411 = vmatprep.subr.bf16.mxu1 %v17614_v25  ;;  %v17650_v25 = vld [vmem:[#allocation6 + $0x1504] ss:$16 sps:$4 sm:$0xff]   ;;  %v20272_v63 = vrot.slane %v15352_v39, 3  ;;  %v17671_v39 = vld [vmem:[#allocation6 + $0x16a0] ss:$16 sps:$4 sm:$0xff]  }
 0x2e6   : > { %6361 = vmatpush2.bf16.msra.mxu0 %v17609_v47  ;;  %v17645_v47 = vld [vmem:[#allocation6 + $0x1300] ss:$16 sps:$4 sm:$0xff]  }
 0x2e7   : > { %6362 = vmatprep.subr.bf16.mxu0 %v17617_v3  ;;  %v20269_v3 = vrot.slane %v15350_v37, 3 }
 0x2e8   : > { %6412 = vmatpush2.bf16.msra.mxu1 %v17612_v59  ;;  %v20277_v59 = vld [vmem:[#allocation2 + $0x38] sm:$0x77] }
 0x2e9   : > { %6413 = vmatprep.subr.bf16.mxu1 %v17620_v54  ;;  %v17667_v54 = vld [vmem:[#allocation6 + $0x16c4] ss:$16 sps:$4 sm:$0xff]  }
 0x2ea   : > { %6363 = vmatpush2.bf16.msra.mxu0 %v17615_v14  ;;  %v20281_v14 = vsel %vm5351_vm4, %v5352_v31, %v20269_v3  ;;  %v17674_v31 = vld [vmem:[#allocation6 + $0x12a8] ss:$16 sps:$4 sm:$0xff]  }
 0x2eb   : > { %6364 = vmatprep.subr.bf16.mxu0 %v17623_v28  ;;  %v17662_v28 = vld [vmem:[#allocation6 + $0x12e8] ss:$16 sps:$4 sm:$0xff]  }
 0x2ec   : > { %6414 = vmatpush2.bf16.msra.mxu1 %v17618_v10  ;;  %v20283_v10 = vld [vmem:[#allocation2 + $0x68] sm:$0xff] }
 0x2ed   : > { %6415 = vmatprep.subr.bf16.mxu1 %v17626_v34  ;;  %v20289_v34 = vld [vmem:[#allocation2 + $0x40] sm:$0xff] }
 0x2ee   : > { %6365 = vmatpush2.bf16.msra.mxu0 %v17621_v62  ;;  %v20287_v62 = vcombine.high %v20275_v23, %v20283_v10 }
 0x2ef   : > { %6366 = vmatprep.subr.bf16.mxu0 %v17629_v46  ;;  %v15355_v46 = vcombine.high %v20289_v34, %v20277_v59 }
 0x2f0   : > { %6416 = vmatpush2.bf16.msra.mxu1 %v17624_v36 }
 0x2f1   : > { %6417 = vmatprep.subr.bf16.mxu1 %v17632_v8  ;;  %v17665_v8 = vld [vmem:[#allocation6 + $0x16c0] ss:$16 sps:$4 sm:$0xff]  }
 0x2f2   : > { %6367 = vmatpush2.bf16.msra.mxu0 %v17627_v32  ;;  %v20296_v32 = vsel %vm5351_vm4, %v5358_v26, %v20272_v63 }
 0x2f3   : > { %6368 = vmatprep.subr.bf16.mxu0 %v17635_v24  ;;  %v17670_v24 = vld [vmem:[#allocation6 + $0x12cc] ss:$16 sps:$4 sm:$0xff]  }
 0x2f4   : > { %6418 = vmatpush2.bf16.msra.mxu1 %v17630_v11 }
 0x2f5   : > { %6419 = vmatprep.subr.bf16.mxu1 %v17638_v49  ;;  %v17673_v49 = vld [vmem:[#allocation6 + $0x16a4] ss:$16 sps:$4 sm:$0xff]  }
 0x2f6   : > { %6369 = vmatpush2.bf16.msra.mxu0 %v17633_v52  ;;  %v17668_v52 = vld [vmem:[#allocation6 + $0x12c8] ss:$16 sps:$4 sm:$0xff]  }
 0x2f7   : > { %6370 = vmatprep.subr.bf16.mxu0 %v17641_v12 }
 0x2f8   : > { %6420 = vmatpush2.bf16.msra.mxu1 %v17636_v61  ;;  %v5367_v61 = vrot.slane %v20287_v62, 3 }
 0x2f9   : > { %6421 = vmatprep.subr.bf16.mxu1 %v17644_v6 }
 0x2fa   : > { %6371 = vmatpush2.bf16.msra.mxu0 %v17639_v42  ;;  %v20301_v42 = vrot.slane %v15355_v46, 3  ;;  %v17682_v46 = vld [vmem:[#allocation6 + $0x128c] ss:$16 sps:$4 sm:$0xff]  }
 0x2fb   : > { %6372 = vmatprep.subr.bf16.mxu0 %v17647_v45 }
 0x2fc   : > { %6422 = vmatpush2.bf16.msra.mxu1 %v17642_v18  ;;  %v17676_v18 = vld [vmem:[#allocation6 + $0x12ac] ss:$16 sps:$4 sm:$0xff]   ;;  %v20312_v26 = vsel %vm5351_vm4, %v5367_v61, %v20301_v42 }
 0x2fd   : > { %6423 = vmatprep.subr.bf16.mxu1 %v17650_v25  ;;  %v17688_v61 = vld [vmem:[#allocation6 + $0x126c] ss:$16 sps:$4 sm:$0xff]  }
 0x2fe   : > { %6373 = vmatpush2.bf16.msra.mxu0 %v17645_v47 }
 0x2ff   : > { %6444 = vmatprep.subr.bf16.mxu0 %v17661_v41  ;;  %v17679_v41 = vld [vmem:[#allocation6 + $0x1684] ss:$16 sps:$4 sm:$0xff]  }
 0x300   : > { %6424 = vmatpush2.bf16.msra.mxu1 %v17648_v55 }
 0x301   : > { %v4838_v36 = vpop.f32.mrf.mxu0  ;;  %6375 = vmatmul.mubr.bf16.vlgmr.msra.gmra.mxu0 %v20281_v14  ;;  %6495 = vmatprep.subr.bf16.mxu1 %v17664_v27 }
 0x302   : > { %6445 = vmatpush1.bf16.msra.mxu0 %v17659_v1  ;;  %6384 = vmatprep.mubr.bf16.mxu0 %v20222_v0 }
 0x303   : > { %v4840_v11 = vpop.f32.mrf.mxu0  ;;  %6446 = vmatprep.subr.bf16.mxu0 %v17667_v54  ;;  %v4889_v12 = vpop.f32.mrf.mxu1  ;;  %6426 = vmatmul.mubr.bf16.vlgmr.msra.gmra.mxu1 %v20296_v32 }
 0x304   : > { %v20303_v6 = vadd.f32 %v4889_v12, %v4838_v36  ;;  %6496 = vmatpush1.bf16.msra.mxu1 %v17662_v28  ;;  %6435 = vmatprep.mubr.bf16.mxu1 %v20229_v40  ;;  %v17677_v28 = vld [vmem:[#allocation6 + $0x1680] ss:$16 sps:$4 sm:$0xff]   ;;  %v17680_v36 = vld [vmem:[#allocation6 + $0x1288] ss:$16 sps:$4 sm:$0xff]  }
 0x305   : > { %v4842_v45 = vpop.f32.mrf.mxu0  ;;  %v4891_v37 = vpop.f32.mrf.mxu1  ;;  %6497 = vmatprep.subr.bf16.mxu1 %v17670_v24  ;;  %v17683_v12 = vld [vmem:[#allocation6 + $0x1660] ss:$16 sps:$4 sm:$0xff]  }
 0x306   : > { %6447 = vmatpush1.bf16.msra.mxu0 %v17665_v8  ;;  %v20306_v47 = vadd.f32 %v4891_v37, %v4840_v11  ;;  %v17685_v8 = vld [vmem:[#allocation6 + $0x1664] ss:$16 sps:$4 sm:$0xff]  }
 0x307   : > { %v20308_v25 = vpop.f32.mrf.mxu0  ;;  %6448 = vmatprep.subr.bf16.mxu0 %v17673_v49  ;;  %v4893_v55 = vpop.f32.mrf.mxu1  ;;  %v17691_v37 = vld [vmem:[#allocation6 + $0x1644] ss:$16 sps:$4 sm:$0xff]  }
 0x308   : > { %v20314_v1 = vadd.f32 %v4893_v55, %v4842_v45  ;;  %6498 = vmatpush1.bf16.msra.mxu1 %v17668_v52  ;;  %v17686_v55 = vld [vmem:[#allocation6 + $0x1268] ss:$16 sps:$4 sm:$0xff]  }
 0x309   : > { %v4848_v27 = vpop.f32.mrf.mxu0  ;;  %6385 = vmatmul.mubr.bf16.gmra.mxu0 %v20269_v3  ;;  %v20317_v54 = vpop.f32.mrf.mxu1  ;;  %6499 = vmatprep.subr.bf16.mxu1 %v17676_v18 }
 0x30a   : > { %6449 = vmatpush1.bf16.msra.mxu0 %v17671_v39  ;;  %6476 = vmatprep.mubr.bf16.mxu0 %v20312_v26 }
 0x30b   : > { %6450 = vmatprep.subr.bf16.mxu0 %v17679_v41  ;;  %v4850_v24 = vpop.f32.mrf.mxu0  ;;  %v4899_v11 = vpop.f32.mrf.mxu1  ;;  %6436 = vmatmul.mubr.bf16.gmra.mxu1 %v20272_v63 }
 0x30c   : > { %6500 = vmatpush1.bf16.msra.mxu1 %v17674_v31  ;;  %v20321_v52 = vadd.f32 %v4899_v11, %v4848_v27  ;;  %6527 = vmatprep.mubr.bf16.mxu1 %v20237_v29  ;;  %v17694_v31 = vld [vmem:[#allocation6 + $0x124c] ss:$16 sps:$4 sm:$0xff]   ;;  %v17697_v27 = vld [vmem:[#allocation6 + $0x1624] ss:$16 sps:$4 sm:$0xff]   ;;  %v17692_v29 = vld [vmem:[#allocation6 + $0x1248] ss:$16 sps:$4 sm:$0xff]  }
 0x30d   : > { %v4852_v49 = vpop.f32.mrf.mxu0  ;;  %6501 = vmatprep.subr.bf16.mxu1 %v17682_v46  ;;  %v4901_v45 = vpop.f32.mrf.mxu1  ;;  %v17700_v46 = vld [vmem:[#allocation6 + $0x122c] ss:$16 sps:$4 sm:$0xff]  }
 0x30e   : > { %6451 = vmatpush1.bf16.msra.mxu0 %v17677_v28  ;;  %v20324_v39 = vadd.f32 %v4901_v45, %v4850_v24  ;;  %v17695_v28 = vld [vmem:[#allocation6 + $0x1620] ss:$16 sps:$4 sm:$0xff]   ;;  %v17698_v24 = vld [vmem:[#allocation6 + $0x1228] ss:$16 sps:$4 sm:$0xff]   ;;  %v17709_v45 = vld [vmem:[#allocation6 + $0x17e4] ss:$16 sps:$4 sm:$0xff]  }
 0x30f   : > { %6452 = vmatprep.subr.bf16.mxu0 %v17685_v8  ;;  %v4853_v18 = vpop.f32.mrf.mxu0  ;;  %v4903_v41 = vpop.f32.mrf.mxu1  ;;  %v17703_v8 = vld [vmem:[#allocation6 + $0x1604] ss:$16 sps:$4 sm:$0xff]   ;;  %v17701_v49 = vld [vmem:[#allocation6 + $0x1600] ss:$16 sps:$4 sm:$0xff]  }
 0x310   : > { %6502 = vmatpush1.bf16.msra.mxu1 %v17680_v36  ;;  %v17706_v36 = vld [vmem:[#allocation6 + $0x120c] ss:$16 sps:$4 sm:$0xff]   ;;  %v17715_v18 = vld [vmem:[#allocation6 + $0x17c4] ss:$16 sps:$4 sm:$0xff]   ;;  %v17713_v41 = vld [vmem:[#allocation6 + $0x17c0] ss:$16 sps:$4 sm:$0xff]  }
 0x311   : > { %6503 = vmatprep.subr.bf16.mxu1 %v17688_v61  ;;  %v4904_v11 = vpop.f32.mrf.mxu1  ;;  %v17707_v61 = vld [vmem:[#allocation6 + $0x17e0] ss:$16 sps:$4 sm:$0xff]  }
 0x312   : > { %6453 = vmatpush1.bf16.msra.mxu0 %v17683_v12  ;;  %v17704_v12 = vld [vmem:[#allocation6 + $0x1208] ss:$16 sps:$4 sm:$0xff]   ;;  %v17719_v11 = vld [vmem:[#allocation6 + $0x17a0] ss:$16 sps:$4 sm:$0xff]  }
 0x313   : > { %6454 = vmatprep.subr.bf16.mxu0 %v17691_v37  ;;  %v17712_v37 = vld [vmem:[#allocation6 + $0x13ec] ss:$16 sps:$4 sm:$0xff]  }
 0x314   : > { %6504 = vmatpush1.bf16.msra.mxu1 %v17686_v55  ;;  %v17718_v55 = vld [vmem:[#allocation6 + $0x13cc] ss:$16 sps:$4 sm:$0xff]  }
 0x315   : > { %6505 = vmatprep.subr.bf16.mxu1 %v17694_v31  ;;  %v17721_v31 = vld [vmem:[#allocation6 + $0x17a4] ss:$16 sps:$4 sm:$0xff]  }
 0x316   : > { %6455 = vmatpush1.bf16.msra.mxu0 %v17689_v21  ;;  %v17710_v21 = vld [vmem:[#allocation6 + $0x13e8] ss:$16 sps:$4 sm:$0xff]  }
 0x317   : > { %6456 = vmatprep.subr.bf16.mxu0 %v17697_v27  ;;  %v17716_v27 = vld [vmem:[#allocation6 + $0x13c8] ss:$16 sps:$4 sm:$0xff]  }
 0x318   : > { %6506 = vmatpush1.bf16.msra.mxu1 %v17692_v29  ;;  %v17724_v29 = vld [vmem:[#allocation6 + $0x13ac] ss:$16 sps:$4 sm:$0xff]  }
 0x319   : > { %6507 = vmatprep.subr.bf16.mxu1 %v17700_v46  ;;  %v17722_v46 = vld [vmem:[#allocation6 + $0x13a8] ss:$16 sps:$4 sm:$0xff]  }
 0x31a   : > { %6457 = vmatpush1.bf16.msra.mxu0 %v17695_v28  ;;  %v17727_v28 = vld [vmem:[#allocation6 + $0x1784] ss:$16 sps:$4 sm:$0xff]  }
 0x31b   : > { %6458 = vmatprep.subr.bf16.mxu0 %v17703_v8  ;;  %v17725_v8 = vld [vmem:[#allocation6 + $0x1780] ss:$16 sps:$4 sm:$0xff]  }
 0x31c   : > { %6508 = vmatpush1.bf16.msra.mxu1 %v17698_v24  ;;  %v17730_v24 = vld [vmem:[#allocation6 + $0x138c] ss:$16 sps:$4 sm:$0xff]  }
 0x31d   : > { %6509 = vmatprep.subr.bf16.mxu1 %v17706_v36  ;;  %v17728_v36 = vld [vmem:[#allocation6 + $0x1388] ss:$16 sps:$4 sm:$0xff]  }
 0x31e   : > { %6459 = vmatpush1.bf16.msra.mxu0 %v17701_v49  ;;  %v17733_v49 = vld [vmem:[#allocation6 + $0x1764] ss:$16 sps:$4 sm:$0xff]  }
 0x31f   : > { %6460 = vmatprep.subr.bf16.mxu0 %v17709_v45  ;;  %v17731_v45 = vld [vmem:[#allocation6 + $0x1760] ss:$16 sps:$4 sm:$0xff]  }
 0x320   : > { %6510 = vmatpush1.bf16.msra.mxu1 %v17704_v12  ;;  %v17736_v12 = vld [vmem:[#allocation6 + $0x136c] ss:$16 sps:$4 sm:$0xff]  }
 0x321   : > { %6511 = vmatprep.subr.bf16.mxu1 %v17712_v37  ;;  %v17734_v37 = vld [vmem:[#allocation6 + $0x1368] ss:$16 sps:$4 sm:$0xff]  }
 0x322   : > { %6461 = vmatpush2.bf16.msra.mxu0 %v17707_v61  ;;  %v17739_v61 = vld [vmem:[#allocation6 + $0x1744] ss:$16 sps:$4 sm:$0xff]  }
 0x323   : > { %6462 = vmatprep.subr.bf16.mxu0 %v17715_v18  ;;  %v17737_v18 = vld [vmem:[#allocation6 + $0x1740] ss:$16 sps:$4 sm:$0xff]  }
 0x324   : > { %6512 = vmatpush2.bf16.msra.mxu1 %v17710_v21  ;;  %v17742_v21 = vld [vmem:[#allocation6 + $0x134c] ss:$16 sps:$4 sm:$0xff]  }
 0x325   : > { %6513 = vmatprep.subr.bf16.mxu1 %v17718_v55  ;;  %v17740_v55 = vld [vmem:[#allocation6 + $0x1348] ss:$16 sps:$4 sm:$0xff]  }
 0x326   : > { %6463 = vmatpush2.bf16.msra.mxu0 %v17713_v41  ;;  %v17745_v41 = vld [vmem:[#allocation6 + $0x1724] ss:$16 sps:$4 sm:$0xff]  }
 0x327   : > { %6464 = vmatprep.subr.bf16.mxu0 %v17721_v31  ;;  %v17743_v31 = vld [vmem:[#allocation6 + $0x1720] ss:$16 sps:$4 sm:$0xff]  }
 0x328   : > { %6514 = vmatpush2.bf16.msra.mxu1 %v17716_v27  ;;  %v17748_v27 = vld [vmem:[#allocation6 + $0x132c] ss:$16 sps:$4 sm:$0xff]  }
 0x329   : > { %6515 = vmatprep.subr.bf16.mxu1 %v17724_v29  ;;  %v20328_v29 = vcombine.low %v20275_v23, %v20283_v10  ;;  %v17764_v10 = vld [vmem:[#allocation6 + $0x16ec] ss:$16 sps:$4 sm:$0xff]  }
 0x32a   : > { %6465 = vmatpush2.bf16.msra.mxu0 %v17719_v11  ;;  %v17751_v11 = vld [vmem:[#allocation6 + $0x1704] ss:$16 sps:$4 sm:$0xff]  }
 0x32b   : > { %6466 = vmatprep.subr.bf16.mxu0 %v17727_v28  ;;  %v15354_v28 = vcombine.low %v20289_v34, %v20277_v59  ;;  %v17759_v59 = vld [vmem:[#allocation6 + $0x14e8] ss:$16 sps:$4 sm:$0xff]  }
 0x32c   : > { %6516 = vmatpush2.bf16.msra.mxu1 %v17722_v46  ;;  %v17746_v46 = vld [vmem:[#allocation6 + $0x1328] ss:$16 sps:$4 sm:$0xff]  }
 0x32d   : > { %6517 = vmatprep.subr.bf16.mxu1 %v17730_v24  ;;  %v17754_v24 = vld [vmem:[#allocation6 + $0x130c] ss:$16 sps:$4 sm:$0xff]   ;;  %v17762_v34 = vld [vmem:[#allocation6 + $0x16e8] ss:$16 sps:$4 sm:$0xff]  }
 0x32e   : > { %6467 = vmatpush2.bf16.msra.mxu0 %v17725_v8  ;;  %v17749_v8 = vld [vmem:[#allocation6 + $0x1700] ss:$16 sps:$4 sm:$0xff]  }
 0x32f   : > { %6468 = vmatprep.subr.bf16.mxu0 %v17733_v49  ;;  %v20332_v49 = vrot.slane %v15354_v28, 3 }
 0x330   : > { %6518 = vmatpush2.bf16.msra.mxu1 %v17728_v36  ;;  %v5364_v36 = vrot.slane %v20328_v29, 3 }
 0x331   : > { %6519 = vmatprep.subr.bf16.mxu1 %v17736_v12  ;;  %v17752_v12 = vld [vmem:[#allocation6 + $0x1308] ss:$16 sps:$4 sm:$0xff]  }
 0x332   : > { %6469 = vmatpush2.bf16.msra.mxu0 %v17731_v45  ;;  %v17761_v45 = vld [vmem:[#allocation6 + $0x14ec] ss:$16 sps:$4 sm:$0xff]   ;;  %v20337_v23 = vsel %vm5351_vm4, %v5364_v36, %v20332_v49 }
 0x333   : > { %6470 = vmatprep.subr.bf16.mxu0 %v17739_v61  ;;  %v17767_v61 = vld [vmem:[#allocation6 + $0x14cc] ss:$16 sps:$4 sm:$0xff]  }
 0x334   : > { %6520 = vmatpush2.bf16.msra.mxu1 %v17734_v37 }
 0x335   : > { %6521 = vmatprep.subr.bf16.mxu1 %v17742_v21  ;;  %v17765_v21 = vld [vmem:[#allocation6 + $0x14c8] ss:$16 sps:$4 sm:$0xff]  }
 0x336   : > { %6471 = vmatpush2.bf16.msra.mxu0 %v17737_v18 }
 0x337   : > { %6472 = vmatprep.subr.bf16.mxu0 %v17745_v41  ;;  %v17770_v41 = vld [vmem:[#allocation6 + $0x16cc] ss:$16 sps:$4 sm:$0xff]  }
 0x338   : > { %6522 = vmatpush2.bf16.msra.mxu1 %v17740_v55 }
 0x339   : > { %6523 = vmatprep.subr.bf16.mxu1 %v17748_v27 }
 0x33a   : > { %6473 = vmatpush2.bf16.msra.mxu0 %v17743_v31  ;;  %v17773_v31 = vld [vmem:[#allocation6 + $0x14ac] ss:$16 sps:$4 sm:$0xff]  }
 0x33b   : > { %6474 = vmatprep.subr.bf16.mxu0 %v17751_v11 }
 0x33c   : > { %6524 = vmatpush2.bf16.msra.mxu1 %v17746_v46  ;;  %v17768_v46 = vld [vmem:[#allocation6 + $0x16c8] ss:$16 sps:$4 sm:$0xff]  }
 0x33d   : > { %6525 = vmatprep.subr.bf16.mxu1 %v17754_v24 }
 0x33e   : > { %6475 = vmatpush2.bf16.msra.mxu0 %v17749_v8 }
 0x33f   : > { %6546 = vmatprep.subr.bf16.mxu0 %v17761_v45  ;;  %v17776_v45 = vld [vmem:[#allocation6 + $0x16ac] ss:$16 sps:$4 sm:$0xff]  }
 0x340   : > { %6526 = vmatpush2.bf16.msra.mxu1 %v17752_v12 }
 0x341   : > { %v4940_v37 = vpop.f32.mrf.mxu0  ;;  %6477 = vmatmul.mubr.bf16.vlgmr.msra.gmra.mxu0 %v20337_v23  ;;  %6597 = vmatprep.subr.bf16.mxu1 %v17764_v10 }
 0x342   : > { %v4941_v18 = vadd.f32 %v4940_v37, %v20303_v6  ;;  %6547 = vmatpush1.bf16.msra.mxu0 %v17759_v59  ;;  %6486 = vmatprep.mubr.bf16.mxu0 %v20301_v42 }
 0x343   : > { %v4942_v55 = vpop.f32.mrf.mxu0  ;;  %6548 = vmatprep.subr.bf16.mxu0 %v17767_v61  ;;  %v20345_v11 = vpop.f32.mrf.mxu1  ;;  %6528 = vmatmul.mubr.bf16.vlgmr.msra.gmra.mxu1 %v20281_v14  ;;  %v17774_v14 = vld [vmem:[#allocation6 + $0x16a8] ss:$16 sps:$4 sm:$0xff]   ;;  %v17782_v61 = vld [vmem:[#allocation6 + $0x168c] ss:$16 sps:$4 sm:$0xff]  }
 0x344   : > { %v20343_v27 = vadd.f32 %v4941_v18, %v20148_v53  ;;  %v4943_v28 = vadd.f32 %v4942_v55, %v20306_v47  ;;  %6598 = vmatpush1.bf16.msra.mxu1 %v17762_v34  ;;  %6537 = vmatprep.mubr.bf16.mxu1 %v20222_v0  ;;  %v17771_v53 = vld [vmem:[#allocation6 + $0x14a8] ss:$16 sps:$4 sm:$0xff]   ;;  %v17779_v47 = vld [vmem:[#allocation6 + $0x148c] ss:$16 sps:$4 sm:$0xff]  }
 0x345   : > { %v4944_v6 = vpop.f32.mrf.mxu0  ;;  %v20353_v24 = vpop.f32.mrf.mxu1  ;;  %6599 = vmatprep.subr.bf16.mxu1 %v17770_v41  ;;  %v17777_v34 = vld [vmem:[#allocation6 + $0x1488] ss:$16 sps:$4 sm:$0xff]   ;;  %v17785_v18 = vld [vmem:[#allocation6 + $0x146c] ss:$16 sps:$4 sm:$0xff]  }
 0x346   : > { %v20351_v8 = vadd.f32 %v4943_v28, %v20153_v5  ;;  %v4945_v36 = vadd.f32 %v4944_v6, %v20314_v1  ;;  %6549 = vmatpush1.bf16.msra.mxu0 %v17765_v21  ;;  %v17783_v55 = vld [vmem:[#allocation6 + $0x1468] ss:$16 sps:$4 sm:$0xff]  }
 0x347   : > { %v20356_v12 = vpop.f32.mrf.mxu0  ;;  %6550 = vmatprep.subr.bf16.mxu0 %v17773_v31  ;;  %v20361_v0 = vpop.f32.mrf.mxu1  ;;  %v17788_v31 = vld [vmem:[#allocation6 + $0x166c] ss:$16 sps:$4 sm:$0xff]  }
 0x348   : > { %v20359_v59 = vadd.f32 %v4945_v36, %v20160_v2  ;;  %6600 = vmatpush1.bf16.msra.mxu1 %v17768_v46  ;;  %v17789_v36 = vld [vmem:[#allocation6 + $0x1448] ss:$16 sps:$4 sm:$0xff]  }
 0x349   : > { %v4950_v5 = vpop.f32.mrf.mxu0  ;;  %6487 = vmatmul.mubr.bf16.gmra.mxu0 %v20332_v49  ;;  %v20364_v10 = vpop.f32.mrf.mxu1  ;;  %6601 = vmatprep.subr.bf16.mxu1 %v17776_v45  ;;  %v17797_v45 = vld [vmem:[#allocation6 + $0x142c] ss:$16 sps:$4 sm:$0xff]  }
 0x34a   : > { %21457 = vst [vmem:[#allocation22_spill] sm:$0xff] %v20364_v10  ;;  %v4951_v1 = vadd.f32 %v4950_v5, %v20321_v52  ;;  %6551 = vmatpush1.bf16.msra.mxu0 %v17771_v53  ;;  %6578 = vmatprep.mubr.bf16.mxu0 %v20247_v56  ;;  %v17780_v52 = vld [vmem:[#allocation6 + $0x1688] ss:$16 sps:$4 sm:$0xff]   ;;  %v17794_v53 = vld [vmem:[#allocation6 + $0x164c] ss:$16 sps:$4 sm:$0xff]  }
 0x34b   : > { %v4952_v37 = vpop.f32.mrf.mxu0  ;;  %6552 = vmatprep.subr.bf16.mxu0 %v17779_v47  ;;  %v20372_v41 = vpop.f32.mrf.mxu1  ;;  %6538 = vmatmul.mubr.bf16.gmra.mxu1 %v20269_v3  ;;  %v17786_v3 = vld [vmem:[#allocation6 + $0x1668] ss:$16 sps:$4 sm:$0xff]   ;;  %v17800_v47 = vld [vmem:[#allocation6 + $0x162c] ss:$16 sps:$4 sm:$0xff]  }
 0x34c   : > { %v20369_v2 = vadd.f32 %v4951_v1, %v20174_v38  ;;  %v4953_v21 = vadd.f32 %v4952_v37, %v20324_v39  ;;  %6602 = vmatpush1.bf16.msra.mxu1 %v17774_v14  ;;  %6629 = vmatprep.mubr.bf16.mxu1 %v20312_v26  ;;  %v17791_v38 = vld [vmem:[#allocation6 + $0x144c] ss:$16 sps:$4 sm:$0xff]   ;;  %v17795_v26 = vld [vmem:[#allocation6 + $0x1428] ss:$16 sps:$4 sm:$0xff]  }
 0x34d   : > { %v4954_v28 = vpop.f32.mrf.mxu0  ;;  %6603 = vmatprep.subr.bf16.mxu1 %v17782_v61  ;;  %v20379_v56 = vpop.f32.mrf.mxu1  ;;  %v17803_v5 = vld [vmem:[#allocation6 + $0x140c] ss:$16 sps:$4 sm:$0xff]   ;;  %v17798_v1 = vld [vmem:[#allocation6 + $0x1628] ss:$16 sps:$4 sm:$0xff]  }
 0x34e   : > { %v20377_v46 = vadd.f32 %v4953_v21, %v20178_v30  ;;  %6553 = vmatpush1.bf16.msra.mxu0 %v17777_v34  ;;  %v17792_v30 = vld [vmem:[#allocation6 + $0x1648] ss:$16 sps:$4 sm:$0xff]   ;;  %v17806_v61 = vld [vmem:[#allocation6 + $0x160c] ss:$16 sps:$4 sm:$0xff]  }
 0x34f   : > { %6554 = vmatprep.subr.bf16.mxu0 %v17785_v18  ;;  %v4955_v39 = vpop.f32.mrf.mxu0  ;;  %v5005_v6 = vpop.f32.mrf.mxu1  ;;  %v17801_v34 = vld [vmem:[#allocation6 + $0x1408] ss:$16 sps:$4 sm:$0xff]   ;;  %v17809_v37 = vld [vmem:[#allocation6 + $0x15ec] ss:$16 sps:$4 sm:$0xff]  }
 0x350   : > { %6604 = vmatpush1.bf16.msra.mxu1 %v17780_v52  ;;  %v17804_v18 = vld [vmem:[#allocation6 + $0x1608] ss:$16 sps:$4 sm:$0xff]   ;;  %v17812_v52 = vld [vmem:[#allocation6 + $0x17ec] ss:$16 sps:$4 sm:$0xff]  }
 0x351   : > { %6605 = vmatprep.subr.bf16.mxu1 %v17788_v31  ;;  %v5006_v14 = vpop.f32.mrf.mxu1  ;;  %v17807_v21 = vld [vmem:[#allocation6 + $0x15e8] ss:$16 sps:$4 sm:$0xff]   ;;  %v17821_v39 = vld [vmem:[#allocation6 + $0x15ac] ss:$16 sps:$4 sm:$0xff]  }
 0x352   : > { %6555 = vmatpush1.bf16.msra.mxu0 %v17783_v55  ;;  %v17815_v55 = vld [vmem:[#allocation6 + $0x15cc] ss:$16 sps:$4 sm:$0xff]   ;;  %v17810_v31 = vld [vmem:[#allocation6 + $0x17e8] ss:$16 sps:$4 sm:$0xff]  }
 0x353   : > { %6556 = vmatprep.subr.bf16.mxu0 %v17791_v38  ;;  %v17813_v28 = vld [vmem:[#allocation6 + $0x15c8] ss:$16 sps:$4 sm:$0xff]   ;;  %v17818_v38 = vld [vmem:[#allocation6 + $0x17cc] ss:$16 sps:$4 sm:$0xff]  }
 0x354   : > { %6606 = vmatpush1.bf16.msra.mxu1 %v17786_v3  ;;  %v17816_v6 = vld [vmem:[#allocation6 + $0x17c8] ss:$16 sps:$4 sm:$0xff]  }
 0x355   : > { %6607 = vmatprep.subr.bf16.mxu1 %v17794_v53  ;;  %v17819_v3 = vld [vmem:[#allocation6 + $0x15a8] ss:$16 sps:$4 sm:$0xff]   ;;  %v17827_v53 = vld [vmem:[#allocation6 + $0x158c] ss:$16 sps:$4 sm:$0xff]  }
 0x356   : > { %6557 = vmatpush1.bf16.msra.mxu0 %v17789_v36  ;;  %v17824_v36 = vld [vmem:[#allocation6 + $0x17ac] ss:$16 sps:$4 sm:$0xff]   ;;  %v17825_v14 = vld [vmem:[#allocation6 + $0x1588] ss:$16 sps:$4 sm:$0xff]  }
 0x357   : > { %6558 = vmatprep.subr.bf16.mxu0 %v17797_v45  ;;  %v17822_v45 = vld [vmem:[#allocation6 + $0x17a8] ss:$16 sps:$4 sm:$0xff]  }
 0x358   : > { %6608 = vmatpush1.bf16.msra.mxu1 %v17792_v30  ;;  %v17830_v30 = vld [vmem:[#allocation6 + $0x178c] ss:$16 sps:$4 sm:$0xff]  }
 0x359   : > { %6609 = vmatprep.subr.bf16.mxu1 %v17800_v47  ;;  %v17828_v47 = vld [vmem:[#allocation6 + $0x1788] ss:$16 sps:$4 sm:$0xff]  }
 0x35a   : > { %6559 = vmatpush1.bf16.msra.mxu0 %v17795_v26  ;;  %v17833_v26 = vld [vmem:[#allocation6 + $0x156c] ss:$16 sps:$4 sm:$0xff]  }
 0x35b   : > { %6560 = vmatprep.subr.bf16.mxu0 %v17803_v5  ;;  %v17831_v5 = vld [vmem:[#allocation6 + $0x1568] ss:$16 sps:$4 sm:$0xff]  }
 0x35c   : > { %6610 = vmatpush1.bf16.msra.mxu1 %v17798_v1  ;;  %v17836_v1 = vld [vmem:[#allocation6 + $0x176c] ss:$16 sps:$4 sm:$0xff]  }
 0x35d   : > { %6611 = vmatprep.subr.bf16.mxu1 %v17806_v61  ;;  %v17834_v61 = vld [vmem:[#allocation6 + $0x1768] ss:$16 sps:$4 sm:$0xff]  }
 0x35e   : > { %6561 = vmatpush1.bf16.msra.mxu0 %v17801_v34  ;;  %v17839_v34 = vld [vmem:[#allocation6 + $0x154c] ss:$16 sps:$4 sm:$0xff]  }
 0x35f   : > { %6562 = vmatprep.subr.bf16.mxu0 %v17809_v37  ;;  %v17837_v37 = vld [vmem:[#allocation6 + $0x1548] ss:$16 sps:$4 sm:$0xff]  }
 0x360   : > { %6612 = vmatpush1.bf16.msra.mxu1 %v17804_v18  ;;  %v17842_v18 = vld [vmem:[#allocation6 + $0x174c] ss:$16 sps:$4 sm:$0xff]  }
 0x361   : > { %6613 = vmatprep.subr.bf16.mxu1 %v17812_v52  ;;  %v17840_v52 = vld [vmem:[#allocation6 + $0x1748] ss:$16 sps:$4 sm:$0xff]  }
 0x362   : > { %6563 = vmatpush2.bf16.msra.mxu0 %v17807_v21  ;;  %v17845_v21 = vld [vmem:[#allocation6 + $0x152c] ss:$16 sps:$4 sm:$0xff]  }
 0x363   : > { %6564 = vmatprep.subr.bf16.mxu0 %v17815_v55  ;;  %v17843_v55 = vld [vmem:[#allocation6 + $0x1528] ss:$16 sps:$4 sm:$0xff]  }
 0x364   : > { %6614 = vmatpush2.bf16.msra.mxu1 %v17810_v31  ;;  %v17848_v31 = vld [vmem:[#allocation6 + $0x172c] ss:$16 sps:$4 sm:$0xff]  }
 0x365   : > { %6615 = vmatprep.subr.bf16.mxu1 %v17818_v38  ;;  %v20381_v38 = vld [vmem:[#allocation2 + $0x20] sm:$0xff] }
 0x366   : > { %6565 = vmatpush2.bf16.msra.mxu0 %v17813_v28  ;;  %v17851_v28 = vld [vmem:[#allocation6 + $0x150c] ss:$16 sps:$4 sm:$0xff]  }
 0x367   : > { %6566 = vmatprep.subr.bf16.mxu0 %v17821_v39  ;;  %v20383_v39 = vld [vmem:[#allocation2 + $0x10] sm:$0xff] }
 0x368   : > { %6616 = vmatpush2.bf16.msra.mxu1 %v17816_v6  ;;  %v20385_v6 = vld [vmem:[#allocation2 + $0x8] sm:$0xff] }
 0x369   : > { %6617 = vmatprep.subr.bf16.mxu1 %v17824_v36  ;;  %v17846_v36 = vld [vmem:[#allocation6 + $0x1728] ss:$16 sps:$4 sm:$0xff]  }
 0x36a   : > { %6567 = vmatpush2.bf16.msra.mxu0 %v17819_v3  ;;  %v15549_v3 = vcombine.high %v20385_v6, %v20381_v38 }
 0x36b   : > { %6568 = vmatprep.subr.bf16.mxu0 %v17827_v53  ;;  %v17849_v53 = vld [vmem:[#allocation6 + $0x1508] ss:$16 sps:$4 sm:$0xff]  }
 0x36c   : > { %6618 = vmatpush2.bf16.msra.mxu1 %v17822_v45  ;;  %v17854_v45 = vld [vmem:[#allocation6 + $0x170c] ss:$16 sps:$4 sm:$0xff]  }
 0x36d   : > { %6619 = vmatprep.subr.bf16.mxu1 %v17830_v30  ;;  %v20389_v30 = vld [vmem:[#allocation2 + $0x48] sm:$0xff] }
 0x36e   : > { %6569 = vmatpush2.bf16.msra.mxu0 %v17825_v14  ;;  %v17857_v14 = vld [vmem:[#allocation6 + $0x18e4] ss:$16 sps:$4 sm:$0xff]  }
 0x36f   : > { %6570 = vmatprep.subr.bf16.mxu0 %v17833_v26  ;;  %v15551_v26 = vcombine.high %v20389_v30, %v20383_v39 }
 0x370   : > { %6620 = vmatpush2.bf16.msra.mxu1 %v17828_v47  ;;  %v6889_v47 = vshrl.u32 %v20200_v7, 16 }
 0x371   : > { %6621 = vmatprep.subr.bf16.mxu1 %v17836_v1  ;;  %v6897_v1 = vshrl.u32 %v15549_v3, 16 }
 0x372   : > { %6571 = vmatpush2.bf16.msra.mxu0 %v17831_v5  ;;  %v6892_v5 = vshll.u32 %v20200_v7, 16  ;;  %v6891_v10 = vrot.slane %v6889_v47, 3  ;;  %v17864_v47 = vld [vmem:[#allocation6 + $0x1ac0] ss:$16 sps:$4 sm:$0xff]  }
 0x373   : > { %6572 = vmatprep.subr.bf16.mxu0 %v17839_v34  ;;  %v6900_v34 = vshll.u32 %v15549_v3, 16  ;;  %v6899_v7 = vrot.slane %v6897_v1, 3 }
 0x374   : > { %6622 = vmatpush2.bf16.msra.mxu1 %v17834_v61  ;;  %v17852_v61 = vld [vmem:[#allocation6 + $0x1708] ss:$16 sps:$4 sm:$0xff]   ;;  %v6894_v48 = vrot.slane %v6892_v5, 4  ;;  %v17869_v5 = vld [vmem:[#allocation6 + $0x18a4] ss:$16 sps:$4 sm:$0xff]  }
 0x375   : > { %6623 = vmatprep.subr.bf16.mxu1 %v17842_v18  ;;  %v6923_v18 = vshrl.u32 %v20212_v15, 16  ;;  %v6902_v57 = vrot.slane %v6900_v34, 4 }
 0x376   : > { %6573 = vmatpush2.bf16.msra.mxu0 %v17837_v37  ;;  %v17860_v37 = vld [vmem:[#allocation6 + $0x1ae4] ss:$16 sps:$4 sm:$0xff]   ;;  %v6895_v34 = vor.u32 %v6894_v48, %v6891_v10 }
 0x377   : > { %6574 = vmatprep.subr.bf16.mxu0 %v17845_v21  ;;  %v17855_v21 = vld [vmem:[#allocation6 + $0x18e0] ss:$16 sps:$4 sm:$0xff]   ;;  %v6925_v43 = vrot.slane %v6923_v18, 3 }
 0x378   : > { %6624 = vmatpush2.bf16.msra.mxu1 %v17840_v52  ;;  %v6926_v52 = vshll.u32 %v20212_v15, 16  ;;  %v17861_v15 = vld [vmem:[#allocation6 + $0x18c0] ss:$16 sps:$4 sm:$0xff]  }
 0x379   : > { %6625 = vmatprep.subr.bf16.mxu1 %v17848_v31  ;;  %v6934_v31 = vshll.u32 %v15551_v26, 16 }
 0x37a   : > { %6575 = vmatpush2.bf16.msra.mxu0 %v17843_v55  ;;  %v6931_v55 = vshrl.u32 %v15551_v26, 16 }
 0x37b   : > { %6576 = vmatprep.subr.bf16.mxu0 %v17851_v28  ;;  %v17858_v28 = vld [vmem:[#allocation6 + $0x1ae0] ss:$16 sps:$4 sm:$0xff]  }
 0x37c   : > { %6626 = vmatpush2.bf16.msra.mxu1 %v17846_v36  ;;  %v17866_v36 = vld [vmem:[#allocation6 + $0x1ac4] ss:$16 sps:$4 sm:$0xff]   ;;  %v6933_v26 = vrot.slane %v6931_v55, 3 }
 0x37d   : > { %6627 = vmatprep.subr.bf16.mxu1 %v17854_v45  ;;  %v6928_v45 = vrot.slane %v6926_v52, 4 }
 0x37e   : > { %6577 = vmatpush2.bf16.msra.mxu0 %v17849_v53 }
 0x37f   : > { %7945 = vmatprep.subr.bf16.mxu0 %v17857_v14  ;;  %v6936_v14 = vrot.slane %v6934_v31, 4  ;;  %v6929_v52 = vor.u32 %v6928_v45, %v6925_v43  ;;  %v17881_v45 = vld [vmem:[#allocation6 + $0x1864] ss:$16 sps:$4 sm:$0xff]  }
 0x380   : > { %6628 = vmatpush2.bf16.msra.mxu1 %v17852_v61  ;;  %v20402_v61 = vor.u32 %v6902_v57, %v6899_v7  ;;  %v17873_v7 = vld [vmem:[#allocation6 + $0x1880] ss:$16 sps:$4 sm:$0xff]  }
 0x381   : > { %v5042_v3 = vpop.f32.mrf.mxu0  ;;  %6579 = vmatmul.mubr.bf16.vlgmr.msra.gmra.mxu0 %v20296_v32  ;;  %7996 = vmatprep.subr.bf16.mxu1 %v17860_v37  ;;  %v20406_v55 = vor.u32 %v6936_v14, %v6933_v26 }
 0x382   : > { %v5043_v53 = vadd.f32 %v5042_v3, %v20345_v11  ;;  %7946 = vmatpush1.bf16.msra.mxu0 %v17855_v21  ;;  %6588 = vmatprep.mubr.bf16.mxu0 %v20229_v40  ;;  %v17867_v40 = vld [vmem:[#allocation6 + $0x18a0] ss:$16 sps:$4 sm:$0xff]   ;;  %v17872_v21 = vld [vmem:[#allocation6 + $0x1aa4] ss:$16 sps:$4 sm:$0xff]  }
 0x383   : > { %v5044_v9 = vpop.f32.mrf.mxu0  ;;  %7947 = vmatprep.subr.bf16.mxu0 %v17863_v35  ;;  %v5093_v1 = vpop.f32.mrf.mxu1  ;;  %6630 = vmatmul.mubr.bf16.vlgmr.msra.gmra.mxu1 %v20337_v23  ;;  %v17870_v23 = vld [vmem:[#allocation6 + $0x1aa0] ss:$16 sps:$4 sm:$0xff]   ;;  %v17878_v3 = vld [vmem:[#allocation6 + $0x1a84] ss:$16 sps:$4 sm:$0xff]  }
 0x384   : > { %v5045_v32 = vadd.f32 %v5044_v9, %v20353_v24  ;;  %v5094_v11 = vadd.f32 %v5093_v1, %v5043_v53  ;;  %7997 = vmatpush1.bf16.msra.mxu1 %v17858_v28  ;;  %6639 = vmatprep.mubr.bf16.mxu1 %v20301_v42  ;;  %v17875_v24 = vld [vmem:[#allocation6 + $0x1884] ss:$16 sps:$4 sm:$0xff]  }
 0x385   : > { %v5046_v37 = vpop.f32.mrf.mxu0  ;;  %v5095_v18 = vpop.f32.mrf.mxu1  ;;  %7998 = vmatprep.subr.bf16.mxu1 %v17866_v36  ;;  %v20426_v36 = vsel %vm397_vm15, %v6929_v52, %v20406_v55  ;;  %v17891_v52 = vld [vmem:[#allocation6 + $0x1820] ss:$16 sps:$4 sm:$0xff]  }
 0x386   : > { %v5047_v35 = vadd.f32 %v5046_v37, %v20361_v0  ;;  %7948 = vmatpush1.bf16.msra.mxu0 %v17861_v15  ;;  %v20409_v9 = vadd.f32 %v5094_v11, %v20224_v17  ;;  %v5096_v57 = vadd.f32 %v5095_v18, %v5045_v32  ;;  %v20415_v0 = vsel %vm397_vm15, %v6895_v34, %v20402_v61  ;;  %v17876_v15 = vld [vmem:[#allocation6 + $0x1a80] ss:$16 sps:$4 sm:$0xff]   ;;  %v17887_v34 = vld [vmem:[#allocation6 + $0x1844] ss:$16 sps:$4 sm:$0xff]  }
 0x387   : > { %v20411_v48 = vpop.f32.mrf.mxu0  ;;  %7949 = vmatprep.subr.bf16.mxu0 %v17869_v5  ;;  %v5097_v42 = vpop.f32.mrf.mxu1  ;;  %v17884_v5 = vld [vmem:[#allocation6 + $0x1a64] ss:$16 sps:$4 sm:$0xff]   ;;  %v17882_v37 = vld [vmem:[#allocation6 + $0x1a60] ss:$16 sps:$4 sm:$0xff]  }
 0x388   : > { %v20418_v10 = vadd.f32 %v5096_v57, %v20231_v13  ;;  %v5098_v43 = vadd.f32 %v5097_v42, %v5047_v35  ;;  %7999 = vmatpush1.bf16.msra.mxu1 %v17864_v47  ;;  %v17885_v18 = vld [vmem:[#allocation6 + $0x1840] ss:$16 sps:$4 sm:$0xff]   ;;  %v17890_v35 = vld [vmem:[#allocation6 + $0x1a44] ss:$16 sps:$4 sm:$0xff]  }
 0x389   : > { %v5052_v31 = vpop.f32.mrf.mxu0  ;;  %6589 = vmatmul.mubr.bf16.gmra.mxu0 %v20272_v63  ;;  %v20421_v17 = vpop.f32.mrf.mxu1  ;;  %8000 = vmatprep.subr.bf16.mxu1 %v17872_v21  ;;  %v17896_v57 = vld [vmem:[#allocation6 + $0x1a24] ss:$16 sps:$4 sm:$0xff]  }
 0x38a   : > { %21458 = vst [vmem:[#allocation23_spill] sm:$0xff] %v20421_v17  ;;  %v5053_v28 = vadd.f32 %v5052_v31, %v20372_v41  ;;  %7950 = vmatpush1.bf16.msra.mxu0 %v17867_v40  ;;  %v20429_v13 = vadd.f32 %v5098_v43, %v20239_v19  ;;  %7977 = vmatprep.mubr.bf16.mxu0 %v20415_v0  ;;  %v17879_v19 = vld [vmem:[#allocation6 + $0x1860] ss:$16 sps:$4 sm:$0xff]   ;;  %v17893_v40 = vld [vmem:[#allocation6 + $0x1824] ss:$16 sps:$4 sm:$0xff]  }
 0x38b   : > { %v5054_v53 = vpop.f32.mrf.mxu0  ;;  %7951 = vmatprep.subr.bf16.mxu0 %v17875_v24  ;;  %v5103_v41 = vpop.f32.mrf.mxu1  ;;  %6640 = vmatmul.mubr.bf16.gmra.mxu1 %v20332_v49  ;;  %v17897_v24 = vld [vmem:[#allocation6 + $0x1800] ss:$16 sps:$4 sm:$0xff]   ;;  %v17902_v42 = vld [vmem:[#allocation6 + $0x1a04] ss:$16 sps:$4 sm:$0xff]  }
 0x38c   : > { %v5055_v63 = vadd.f32 %v5054_v53, %v20379_v56  ;;  %8001 = vmatpush1.bf16.msra.mxu1 %v17870_v23  ;;  %v5104_v26 = vadd.f32 %v5103_v41, %v5053_v28  ;;  %8028 = vmatprep.mubr.bf16.mxu1 %v20426_v36  ;;  %v17899_v23 = vld [vmem:[#allocation6 + $0x1804] ss:$16 sps:$4 sm:$0xff]   ;;  %v17900_v31 = vld [vmem:[#allocation6 + $0x1a00] ss:$16 sps:$4 sm:$0xff]  }
 0x38d   : > { %v5056_v14 = vpop.f32.mrf.mxu0  ;;  %v5105_v47 = vpop.f32.mrf.mxu1  ;;  %8002 = vmatprep.subr.bf16.mxu1 %v17878_v3  ;;  %v17905_v43 = vld [vmem:[#allocation6 + $0x19e4] ss:$16 sps:$4 sm:$0xff]   ;;  %v17903_v28 = vld [vmem:[#allocation6 + $0x19e0] ss:$16 sps:$4 sm:$0xff]  }
 0x38e   : > { %7952 = vmatpush1.bf16.msra.mxu0 %v17873_v7  ;;  %v20436_v1 = vadd.f32 %v5104_v26, %v20252_v22  ;;  %v5106_v32 = vadd.f32 %v5105_v47, %v5055_v63  ;;  %v17888_v22 = vld [vmem:[#allocation6 + $0x1a40] ss:$16 sps:$4 sm:$0xff]   ;;  %v17908_v7 = vld [vmem:[#allocation6 + $0x1be4] ss:$16 sps:$4 sm:$0xff]  }
 0x38f   : > { %7953 = vmatprep.subr.bf16.mxu0 %v17881_v45  ;;  %v5057_v56 = vpop.f32.mrf.mxu0  ;;  %v5107_v11 = vpop.f32.mrf.mxu1  ;;  %v17911_v3 = vld [vmem:[#allocation6 + $0x19c4] ss:$16 sps:$4 sm:$0xff]   ;;  %v17906_v53 = vld [vmem:[#allocation6 + $0x1be0] ss:$16 sps:$4 sm:$0xff]  }
 0x390   : > { %v20439_v49 = vadd.f32 %v5106_v32, %v20255_v20  ;;  %8003 = vmatpush1.bf16.msra.mxu1 %v17876_v15  ;;  %v17894_v20 = vld [vmem:[#allocation6 + $0x1a20] ss:$16 sps:$4 sm:$0xff]   ;;  %v17914_v45 = vld [vmem:[#allocation6 + $0x1bc4] ss:$16 sps:$4 sm:$0xff]  }
 0x391   : > { %8004 = vmatprep.subr.bf16.mxu1 %v17884_v5  ;;  %v5108_v21 = vpop.f32.mrf.mxu1  ;;  %v17909_v15 = vld [vmem:[#allocation6 + $0x19c0] ss:$16 sps:$4 sm:$0xff]   ;;  %v17917_v63 = vld [vmem:[#allocation6 + $0x19a4] ss:$16 sps:$4 sm:$0xff]  }
 0x392   : > { %7954 = vmatpush1.bf16.msra.mxu0 %v17879_v19  ;;  %v17912_v41 = vld [vmem:[#allocation6 + $0x1bc0] ss:$16 sps:$4 sm:$0xff]   ;;  %v17920_v14 = vld [vmem:[#allocation6 + $0x1ba4] ss:$16 sps:$4 sm:$0xff]  }
 0x393   : > { %7955 = vmatprep.subr.bf16.mxu0 %v17887_v34  ;;  %v17915_v26 = vld [vmem:[#allocation6 + $0x19a0] ss:$16 sps:$4 sm:$0xff]   ;;  %v17923_v47 = vld [vmem:[#allocation6 + $0x1984] ss:$16 sps:$4 sm:$0xff]  }
 0x394   : > { %8005 = vmatpush1.bf16.msra.mxu1 %v17882_v37  ;;  %v17918_v19 = vld [vmem:[#allocation6 + $0x1ba0] ss:$16 sps:$4 sm:$0xff]   ;;  %v17926_v32 = vld [vmem:[#allocation6 + $0x1b84] ss:$16 sps:$4 sm:$0xff]  }
 0x395   : > { %8006 = vmatprep.subr.bf16.mxu1 %v17890_v35  ;;  %v17921_v5 = vld [vmem:[#allocation6 + $0x1980] ss:$16 sps:$4 sm:$0xff]   ;;  %v17929_v34 = vld [vmem:[#allocation6 + $0x1964] ss:$16 sps:$4 sm:$0xff]   ;;  %v15548_v35 = vcombine.low %v20385_v6, %v20381_v38 }
 0x396   : > { %7956 = vmatpush1.bf16.msra.mxu0 %v17885_v18  ;;  %v17924_v56 = vld [vmem:[#allocation6 + $0x1b80] ss:$16 sps:$4 sm:$0xff]   ;;  %v17932_v37 = vld [vmem:[#allocation6 + $0x1b64] ss:$16 sps:$4 sm:$0xff]  }
 0x397   : > { %7957 = vmatprep.subr.bf16.mxu0 %v17893_v40  ;;  %v17927_v11 = vld [vmem:[#allocation6 + $0x1960] ss:$16 sps:$4 sm:$0xff]   ;;  %v17935_v18 = vld [vmem:[#allocation6 + $0x1944] ss:$16 sps:$4 sm:$0xff]  }
 0x398   : > { %8007 = vmatpush1.bf16.msra.mxu1 %v17888_v22  ;;  %v17930_v40 = vld [vmem:[#allocation6 + $0x1b60] ss:$16 sps:$4 sm:$0xff]   ;;  %v17938_v22 = vld [vmem:[#allocation6 + $0x1b44] ss:$16 sps:$4 sm:$0xff]  }
 0x399   : > { %8008 = vmatprep.subr.bf16.mxu1 %v17896_v57  ;;  %v17933_v21 = vld [vmem:[#allocation6 + $0x1940] ss:$16 sps:$4 sm:$0xff]   ;;  %v15550_v57 = vcombine.low %v20389_v30, %v20383_v39  ;;  %v17944_v6 = vld [vmem:[#allocation6 + $0x1b24] ss:$16 sps:$4 sm:$0xff]  }
 0x39a   : > { %7958 = vmatpush1.bf16.msra.mxu0 %v17891_v52  ;;  %v17941_v52 = vld [vmem:[#allocation6 + $0x1924] ss:$16 sps:$4 sm:$0xff]   ;;  %v17939_v38 = vld [vmem:[#allocation6 + $0x1920] ss:$16 sps:$4 sm:$0xff]  }
 0x39b   : > { %7959 = vmatprep.subr.bf16.mxu0 %v17899_v23  ;;  %v6872_v23 = vshrl.u32 %v20259_v33, 16  ;;  %v6917_v39 = vshll.u32 %v15550_v57, 16  ;;  %v20449_v30 = vld [vmem:[#allocation2 + $0x38] sm:$0xff] }
 0x39c   : > { %8009 = vmatpush1.bf16.msra.mxu1 %v17894_v20  ;;  %v6875_v20 = vshll.u32 %v20259_v33, 16  ;;  %v18458_v17 = vld [vmem:[#allocation6 + $0x26c0] ss:$16 sps:$4 sm:$0xff]  }
 0x39d   : > { %8010 = vmatprep.subr.bf16.mxu1 %v17902_v42  ;;  %v6883_v42 = vshll.u32 %v15548_v35, 16 }
 0x39e   : > { %7960 = vmatpush1.bf16.msra.mxu0 %v17897_v24  ;;  %v6880_v24 = vshrl.u32 %v15548_v35, 16  ;;  %v6877_v33 = vrot.slane %v6875_v20, 4 }
 0x39f   : > { %7961 = vmatprep.subr.bf16.mxu0 %v17905_v43  ;;  %v17936_v43 = vld [vmem:[#allocation6 + $0x1b40] ss:$16 sps:$4 sm:$0xff]  }
 0x3a0   : > { %8011 = vmatpush1.bf16.msra.mxu1 %v17900_v31  ;;  %v17947_v31 = vld [vmem:[#allocation6 + $0x1904] ss:$16 sps:$4 sm:$0xff]  }
 0x3a1   : > { %8012 = vmatprep.subr.bf16.mxu1 %v17908_v7  ;;  %v6909_v7 = vshll.u32 %v20265_v58, 16 }
 0x3a2   : > { %7962 = vmatpush2.bf16.msra.mxu0 %v17903_v28  ;;  %v6906_v28 = vshrl.u32 %v20265_v58, 16  ;;  %v17950_v58 = vld [vmem:[#allocation6 + $0x1b04] ss:$16 sps:$4 sm:$0xff]  }
 0x3a3   : > { %7963 = vmatprep.subr.bf16.mxu0 %v17911_v3  ;;  %v6914_v3 = vshrl.u32 %v15550_v57, 16  ;;  %v17955_v57 = vld [vmem:[#allocation6 + $0x1ce0] ss:$16 sps:$4 sm:$0xff]  }
 0x3a4   : > { %8013 = vmatpush2.bf16.msra.mxu1 %v17906_v53  ;;  %v6874_v53 = vrot.slane %v6872_v23, 3  ;;  %v17960_v23 = vld [vmem:[#allocation6 + $0x18ec] ss:$16 sps:$4 sm:$0xff]  }
 0x3a5   : > { %8014 = vmatprep.subr.bf16.mxu1 %v17914_v45  ;;  %v6885_v45 = vrot.slane %v6883_v42, 4  ;;  %v17958_v42 = vld [vmem:[#allocation6 + $0x18e8] ss:$16 sps:$4 sm:$0xff]  }
 0x3a6   : > { %7964 = vmatpush2.bf16.msra.mxu0 %v17909_v15  ;;  %v6882_v15 = vrot.slane %v6880_v24, 3  ;;  %v17963_v24 = vld [vmem:[#allocation6 + $0x1cc4] ss:$16 sps:$4 sm:$0xff]  }
 0x3a7   : > { %7965 = vmatprep.subr.bf16.mxu0 %v17917_v63  ;;  %v17942_v63 = vld [vmem:[#allocation6 + $0x1b20] ss:$16 sps:$4 sm:$0xff]  }
 0x3a8   : > { %8015 = vmatpush2.bf16.msra.mxu1 %v17912_v41  ;;  %v17945_v41 = vld [vmem:[#allocation6 + $0x1900] ss:$16 sps:$4 sm:$0xff]  }
 0x3a9   : > { %8016 = vmatprep.subr.bf16.mxu1 %v17920_v14 }
 0x3aa   : > { %7966 = vmatpush2.bf16.msra.mxu0 %v17915_v26  ;;  %v20451_v26 = vld [vmem:[#allocation2 + $0x40] sm:$0xff] }
 0x3ab   : > { %7967 = vmatprep.subr.bf16.mxu0 %v17923_v47  ;;  %v15553_v14 = vcombine.high %v20451_v26, %v20449_v30  ;;  %v6908_v47 = vrot.slane %v6906_v28, 3 }
 0x3ac   : > { %8017 = vmatpush2.bf16.msra.mxu1 %v17918_v19  ;;  %v6911_v19 = vrot.slane %v6909_v7, 4  ;;  %v17961_v7 = vld [vmem:[#allocation6 + $0x1cc0] ss:$16 sps:$4 sm:$0xff]  }
 0x3ad   : > { %8018 = vmatprep.subr.bf16.mxu1 %v17926_v32  ;;  %v6919_v32 = vrot.slane %v6917_v39, 4  ;;  %v6965_v35 = vshrl.u32 %v15553_v14, 16 }
 0x3ae   : > { %7968 = vmatpush2.bf16.msra.mxu0 %v17921_v5  ;;  %v6916_v5 = vrot.slane %v6914_v3, 3  ;;  %v17966_v3 = vld [vmem:[#allocation6 + $0x18cc] ss:$16 sps:$4 sm:$0xff]  }
 0x3af   : > { %7969 = vmatprep.subr.bf16.mxu0 %v17929_v34  ;;  %v6878_v34 = vor.u32 %v6877_v33, %v6874_v53  ;;  %v17964_v53 = vld [vmem:[#allocation6 + $0x18c8] ss:$16 sps:$4 sm:$0xff]   ;;  %v17969_v33 = vld [vmem:[#allocation6 + $0x1ca4] ss:$16 sps:$4 sm:$0xff]  }
 0x3b0   : > { %8019 = vmatpush2.bf16.msra.mxu1 %v17924_v56  ;;  %v20455_v56 = vor.u32 %v6885_v45, %v6882_v15 }
 0x3b1   : > { %8020 = vmatprep.subr.bf16.mxu1 %v17932_v37  ;;  %v6957_v37 = vshrl.u32 %v20287_v62, 16 }
 0x3b2   : > { %7970 = vmatpush2.bf16.msra.mxu0 %v17927_v11  ;;  %v17957_v11 = vld [vmem:[#allocation6 + $0x1ce4] ss:$16 sps:$4 sm:$0xff]   ;;  %v20463_v20 = vsel %vm397_vm15, %v6878_v34, %v20455_v56  ;;  %v17970_v34 = vld [vmem:[#allocation6 + $0x18a8] ss:$16 sps:$4 sm:$0xff]  }
 0x3b3   : > { %7971 = vmatprep.subr.bf16.mxu0 %v17935_v18  ;;  %v6960_v18 = vshll.u32 %v20287_v62, 16 }
 0x3b4   : > { %8021 = vmatpush2.bf16.msra.mxu1 %v17930_v40  ;;  %v6968_v40 = vshll.u32 %v15553_v14, 16 }
 0x3b5   : > { %8022 = vmatprep.subr.bf16.mxu1 %v17938_v22  ;;  %v6912_v22 = vor.u32 %v6911_v19, %v6908_v47  ;;  %v6962_v62 = vrot.slane %v6960_v18, 4  ;;  %v17967_v47 = vld [vmem:[#allocation6 + $0x1ca0] ss:$16 sps:$4 sm:$0xff]   ;;  %v17972_v19 = vld [vmem:[#allocation6 + $0x18ac] ss:$16 sps:$4 sm:$0xff]  }
 0x3b6   : > { %7972 = vmatpush2.bf16.msra.mxu0 %v17933_v21  ;;  %v17948_v21 = vld [vmem:[#allocation6 + $0x1b00] ss:$16 sps:$4 sm:$0xff]  }
 0x3b7   : > { %7973 = vmatprep.subr.bf16.mxu0 %v17941_v52  ;;  %v20459_v52 = vor.u32 %v6919_v32, %v6916_v5 }
 0x3b8   : > { %8023 = vmatpush2.bf16.msra.mxu1 %v17936_v43  ;;  %v6959_v43 = vrot.slane %v6957_v37, 3 }
 0x3b9   : > { %8024 = vmatprep.subr.bf16.mxu1 %v17944_v6  ;;  %v6970_v6 = vrot.slane %v6968_v40, 4  ;;  %v20468_v28 = vsel %vm397_vm15, %v6912_v22, %v20459_v52  ;;  %v17973_v22 = vld [vmem:[#allocation6 + $0x1c80] ss:$16 sps:$4 sm:$0xff]  }
 0x3ba   : > { %7974 = vmatpush2.bf16.msra.mxu0 %v17939_v38  ;;  %v6967_v38 = vrot.slane %v6965_v35, 3  ;;  %v6963_v45 = vor.u32 %v6962_v62, %v6959_v43 }
 0x3bb   : > { %7975 = vmatprep.subr.bf16.mxu0 %v17947_v31 }
 0x3bc   : > { %8025 = vmatpush2.bf16.msra.mxu1 %v17942_v63  ;;  %v20472_v63 = vor.u32 %v6970_v6, %v6967_v38  ;;  %v17979_v6 = vld [vmem:[#allocation6 + $0x1c60] ss:$16 sps:$4 sm:$0xff]  }
 0x3bd   : > { %8026 = vmatprep.subr.bf16.mxu1 %v17950_v58 }
 0x3be   : > { %7976 = vmatpush2.bf16.msra.mxu0 %v17945_v41  ;;  %v20483_v18 = vsel %vm397_vm15, %v6963_v45, %v20472_v63  ;;  %v17985_v45 = vld [vmem:[#allocation6 + $0x1c40] ss:$16 sps:$4 sm:$0xff]  }
 0x3bf   : > { %8047 = vmatprep.subr.bf16.mxu0 %v17957_v11  ;;  %v17975_v11 = vld [vmem:[#allocation6 + $0x1c84] ss:$16 sps:$4 sm:$0xff]  }
 0x3c0   : > { %8027 = vmatpush2.bf16.msra.mxu1 %v17948_v21 }
 0x3c1   : > { %v6376_v31 = vpop.f32.mrf.mxu0  ;;  %7978 = vmatmul.mubr.bf16.vlgmr.msra.gmra.mxu0 %v20463_v20  ;;  %8098 = vmatprep.subr.bf16.mxu1 %v17960_v23  ;;  %v17976_v23 = vld [vmem:[#allocation6 + $0x1888] ss:$16 sps:$4 sm:$0xff]  }
 0x3c2   : > { %8048 = vmatpush1.bf16.msra.mxu0 %v17955_v57  ;;  %7987 = vmatprep.mubr.bf16.mxu0 %v20402_v61  ;;  %v17978_v57 = vld [vmem:[#allocation6 + $0x188c] ss:$16 sps:$4 sm:$0xff]  }
 0x3c3   : > { %v6378_v39 = vpop.f32.mrf.mxu0  ;;  %8049 = vmatprep.subr.bf16.mxu0 %v17963_v24  ;;  %v6427_v15 = vpop.f32.mrf.mxu1  ;;  %8029 = vmatmul.mubr.bf16.vlgmr.msra.gmra.mxu1 %v20468_v28  ;;  %v17981_v24 = vld [vmem:[#allocation6 + $0x1c64] ss:$16 sps:$4 sm:$0xff]  }
 0x3c4   : > { %v20474_v41 = vadd.f32 %v6427_v15, %v6376_v31  ;;  %8099 = vmatpush1.bf16.msra.mxu1 %v17958_v42  ;;  %8038 = vmatprep.mubr.bf16.mxu1 %v20406_v55  ;;  %v17984_v31 = vld [vmem:[#allocation6 + $0x186c] ss:$16 sps:$4 sm:$0xff]   ;;  %v17982_v15 = vld [vmem:[#allocation6 + $0x1868] ss:$16 sps:$4 sm:$0xff]  }
 0x3c5   : > { %v6380_v14 = vpop.f32.mrf.mxu0  ;;  %v6429_v58 = vpop.f32.mrf.mxu1  ;;  %8100 = vmatprep.subr.bf16.mxu1 %v17966_v3  ;;  %v17987_v3 = vld [vmem:[#allocation6 + $0x1c44] ss:$16 sps:$4 sm:$0xff]  }
 0x3c6   : > { %8050 = vmatpush1.bf16.msra.mxu0 %v17961_v7  ;;  %v20477_v5 = vadd.f32 %v6429_v58, %v6378_v39  ;;  %v17993_v58 = vld [vmem:[#allocation6 + $0x1c24] ss:$16 sps:$4 sm:$0xff]  }
 0x3c7   : > { %v20479_v32 = vpop.f32.mrf.mxu0  ;;  %8051 = vmatprep.subr.bf16.mxu0 %v17969_v33  ;;  %v6431_v37 = vpop.f32.mrf.mxu1 }
 0x3c8   : > { %v20485_v35 = vadd.f32 %v6431_v37, %v6380_v14  ;;  %8101 = vmatpush1.bf16.msra.mxu1 %v17964_v53  ;;  %v17990_v14 = vld [vmem:[#allocation6 + $0x184c] ss:$16 sps:$4 sm:$0xff]   ;;  %v17994_v37 = vld [vmem:[#allocation6 + $0x1828] ss:$16 sps:$4 sm:$0xff]  }
 0x3c9   : > { %v6386_v40 = vpop.f32.mrf.mxu0  ;;  %7988 = vmatmul.mubr.bf16.gmra.mxu0 %v20455_v56  ;;  %v20488_v21 = vpop.f32.mrf.mxu1  ;;  %8102 = vmatprep.subr.bf16.mxu1 %v17972_v19  ;;  %v17991_v19 = vld [vmem:[#allocation6 + $0x1c20] ss:$16 sps:$4 sm:$0xff]  }
 0x3ca   : > { %8052 = vmatpush1.bf16.msra.mxu0 %v17967_v47  ;;  %8079 = vmatprep.mubr.bf16.mxu0 %v20483_v18 }
 0x3cb   : > { %8053 = vmatprep.subr.bf16.mxu0 %v17975_v11  ;;  %v6388_v42 = vpop.f32.mrf.mxu0  ;;  %v6437_v43 = vpop.f32.mrf.mxu1  ;;  %8039 = vmatmul.mubr.bf16.gmra.mxu1 %v20459_v52  ;;  %v17999_v11 = vld [vmem:[#allocation6 + $0x1c04] ss:$16 sps:$4 sm:$0xff]  }
 0x3cc   : > { %8103 = vmatpush1.bf16.msra.mxu1 %v17970_v34  ;;  %v20492_v62 = vadd.f32 %v6437_v43, %v6386_v40  ;;  %8130 = vmatprep.mubr.bf16.mxu1 %v20415_v0  ;;  %v17988_v0 = vld [vmem:[#allocation6 + $0x1848] ss:$16 sps:$4 sm:$0xff]   ;;  %v17996_v34 = vld [vmem:[#allocation6 + $0x182c] ss:$16 sps:$4 sm:$0xff]   ;;  %v17997_v40 = vld [vmem:[#allocation6 + $0x1c00] ss:$16 sps:$4 sm:$0xff]  }
 0x3cd   : > { %v6390_v38 = vpop.f32.mrf.mxu0  ;;  %8104 = vmatprep.subr.bf16.mxu1 %v17978_v57  ;;  %v6439_v7 = vpop.f32.mrf.mxu1  ;;  %v18005_v57 = vld [vmem:[#allocation6 + $0x1de4] ss:$16 sps:$4 sm:$0xff]  }
 0x3ce   : > { %8054 = vmatpush1.bf16.msra.mxu0 %v17973_v22  ;;  %v20495_v39 = vadd.f32 %v6439_v7, %v6388_v42  ;;  %v18002_v22 = vld [vmem:[#allocation6 + $0x180c] ss:$16 sps:$4 sm:$0xff]   ;;  %v18011_v43 = vld [vmem:[#allocation6 + $0x1dc4] ss:$16 sps:$4 sm:$0xff]   ;;  %v18006_v38 = vld [vmem:[#allocation6 + $0x19e8] ss:$16 sps:$4 sm:$0xff]  }
 0x3cf   : > { %8055 = vmatprep.subr.bf16.mxu0 %v17981_v24  ;;  %v6391_v53 = vpop.f32.mrf.mxu0  ;;  %v6441_v33 = vpop.f32.mrf.mxu1  ;;  %v18003_v24 = vld [vmem:[#allocation6 + $0x1de0] ss:$16 sps:$4 sm:$0xff]   ;;  %v18008_v42 = vld [vmem:[#allocation6 + $0x19ec] ss:$16 sps:$4 sm:$0xff]   ;;  %v18017_v7 = vld [vmem:[#allocation6 + $0x1da4] ss:$16 sps:$4 sm:$0xff]  }
 0x3d0   : > { %8105 = vmatpush1.bf16.msra.mxu1 %v17976_v23  ;;  %v18000_v23 = vld [vmem:[#allocation6 + $0x1808] ss:$16 sps:$4 sm:$0xff]   ;;  %v18015_v53 = vld [vmem:[#allocation6 + $0x1da0] ss:$16 sps:$4 sm:$0xff]   ;;  %v18020_v33 = vld [vmem:[#allocation6 + $0x19ac] ss:$16 sps:$4 sm:$0xff]  }
 0x3d1   : > { %8106 = vmatprep.subr.bf16.mxu1 %v17984_v31  ;;  %v6442_v47 = vpop.f32.mrf.mxu1  ;;  %v18014_v31 = vld [vmem:[#allocation6 + $0x19cc] ss:$16 sps:$4 sm:$0xff]  }
 0x3d2   : > { %8056 = vmatpush1.bf16.msra.mxu0 %v17979_v6  ;;  %v18009_v6 = vld [vmem:[#allocation6 + $0x1dc0] ss:$16 sps:$4 sm:$0xff]   ;;  %v18029_v47 = vld [vmem:[#allocation6 + $0x1d64] ss:$16 sps:$4 sm:$0xff]  }
 0x3d3   : > { %8057 = vmatprep.subr.bf16.mxu0 %v17987_v3  ;;  %v18012_v3 = vld [vmem:[#allocation6 + $0x19c8] ss:$16 sps:$4 sm:$0xff]  }
 0x3d4   : > { %8107 = vmatpush1.bf16.msra.mxu1 %v17982_v15  ;;  %v18023_v15 = vld [vmem:[#allocation6 + $0x1d84] ss:$16 sps:$4 sm:$0xff]  }
 0x3d5   : > { %8108 = vmatprep.subr.bf16.mxu1 %v17990_v14  ;;  %v18021_v14 = vld [vmem:[#allocation6 + $0x1d80] ss:$16 sps:$4 sm:$0xff]  }
 0x3d6   : > { %8058 = vmatpush1.bf16.msra.mxu0 %v17985_v45  ;;  %v18018_v45 = vld [vmem:[#allocation6 + $0x19a8] ss:$16 sps:$4 sm:$0xff]  }
 0x3d7   : > { %8059 = vmatprep.subr.bf16.mxu0 %v17993_v58  ;;  %v18026_v58 = vld [vmem:[#allocation6 + $0x198c] ss:$16 sps:$4 sm:$0xff]  }
 0x3d8   : > { %8109 = vmatpush1.bf16.msra.mxu1 %v17988_v0  ;;  %v18024_v0 = vld [vmem:[#allocation6 + $0x1988] ss:$16 sps:$4 sm:$0xff]  }
 0x3d9   : > { %8110 = vmatprep.subr.bf16.mxu1 %v17996_v34  ;;  %v18032_v34 = vld [vmem:[#allocation6 + $0x196c] ss:$16 sps:$4 sm:$0xff]  }
 0x3da   : > { %8060 = vmatpush1.bf16.msra.mxu0 %v17991_v19  ;;  %v18027_v19 = vld [vmem:[#allocation6 + $0x1d60] ss:$16 sps:$4 sm:$0xff]  }
 0x3db   : > { %8061 = vmatprep.subr.bf16.mxu0 %v17999_v11  ;;  %v18035_v11 = vld [vmem:[#allocation6 + $0x1d44] ss:$16 sps:$4 sm:$0xff]  }
 0x3dc   : > { %8111 = vmatpush1.bf16.msra.mxu1 %v17994_v37  ;;  %v15552_v37 = vcombine.low %v20451_v26, %v20449_v30  ;;  %v18047_v30 = vld [vmem:[#allocation6 + $0x1d04] ss:$16 sps:$4 sm:$0xff]  }
 0x3dd   : > { %8112 = vmatprep.subr.bf16.mxu1 %v18002_v22  ;;  %v18033_v22 = vld [vmem:[#allocation6 + $0x1d40] ss:$16 sps:$4 sm:$0xff]  }
 0x3de   : > { %8062 = vmatpush1.bf16.msra.mxu0 %v17997_v40  ;;  %v18030_v40 = vld [vmem:[#allocation6 + $0x1968] ss:$16 sps:$4 sm:$0xff]  }
 0x3df   : > { %8063 = vmatprep.subr.bf16.mxu0 %v18005_v57  ;;  %v18038_v57 = vld [vmem:[#allocation6 + $0x194c] ss:$16 sps:$4 sm:$0xff]  }
 0x3e0   : > { %8113 = vmatpush1.bf16.msra.mxu1 %v18000_v23  ;;  %v18041_v23 = vld [vmem:[#allocation6 + $0x1d24] ss:$16 sps:$4 sm:$0xff]  }
 0x3e1   : > { %8114 = vmatprep.subr.bf16.mxu1 %v18008_v42  ;;  %v6943_v42 = vshll.u32 %v20328_v29, 16 }
 0x3e2   : > { %8064 = vmatpush2.bf16.msra.mxu0 %v18003_v24  ;;  %v6940_v24 = vshrl.u32 %v20328_v29, 16 }
 0x3e3   : > { %8065 = vmatprep.subr.bf16.mxu0 %v18011_v43  ;;  %v6948_v43 = vshrl.u32 %v15552_v37, 16 }
 0x3e4   : > { %8115 = vmatpush2.bf16.msra.mxu1 %v18006_v38  ;;  %v6951_v38 = vshll.u32 %v15552_v37, 16  ;;  %v6942_v26 = vrot.slane %v6940_v24, 3  ;;  %v18061_v37 = vld [vmem:[#allocation6 + $0x1acc] ss:$16 sps:$4 sm:$0xff]  }
 0x3e5   : > { %8116 = vmatprep.subr.bf16.mxu1 %v18014_v31  ;;  %v18039_v31 = vld [vmem:[#allocation6 + $0x1d20] ss:$16 sps:$4 sm:$0xff]   ;;  %v18064_v24 = vld [vmem:[#allocation6 + $0x1ccc] ss:$16 sps:$4 sm:$0xff]  }
 0x3e6   : > { %8066 = vmatpush2.bf16.msra.mxu0 %v18009_v6  ;;  %v18036_v6 = vld [vmem:[#allocation6 + $0x1948] ss:$16 sps:$4 sm:$0xff]  }
 0x3e7   : > { %8067 = vmatprep.subr.bf16.mxu0 %v18017_v7  ;;  %v18044_v7 = vld [vmem:[#allocation6 + $0x192c] ss:$16 sps:$4 sm:$0xff]  }
 0x3e8   : > { %8117 = vmatpush2.bf16.msra.mxu1 %v18012_v3  ;;  %v6945_v3 = vrot.slane %v6943_v42, 4 }
 0x3e9   : > { %8118 = vmatprep.subr.bf16.mxu1 %v18020_v33  ;;  %v6953_v33 = vrot.slane %v6951_v38, 4  ;;  %v18067_v38 = vld [vmem:[#allocation6 + $0x1aac] ss:$16 sps:$4 sm:$0xff]  }
 0x3ea   : > { %8068 = vmatpush2.bf16.msra.mxu0 %v18015_v53  ;;  %v6950_v53 = vrot.slane %v6948_v43, 3  ;;  %v6946_v29 = vor.u32 %v6945_v3, %v6942_v26  ;;  %v18062_v43 = vld [vmem:[#allocation6 + $0x1cc8] ss:$16 sps:$4 sm:$0xff]  }
 0x3eb   : > { %8069 = vmatprep.subr.bf16.mxu0 %v18023_v15  ;;  %v18042_v15 = vld [vmem:[#allocation6 + $0x1928] ss:$16 sps:$4 sm:$0xff]  }
 0x3ec   : > { %8119 = vmatpush2.bf16.msra.mxu1 %v18018_v45  ;;  %v18045_v45 = vld [vmem:[#allocation6 + $0x1d00] ss:$16 sps:$4 sm:$0xff]  }
 0x3ed   : > { %8120 = vmatprep.subr.bf16.mxu1 %v18026_v58  ;;  %v20501_v58 = vor.u32 %v6953_v33, %v6950_v53  ;;  %v18070_v53 = vld [vmem:[#allocation6 + $0x1cac] ss:$16 sps:$4 sm:$0xff]  }
 0x3ee   : > { %8070 = vmatpush2.bf16.msra.mxu0 %v18021_v14  ;;  %v18050_v14 = vld [vmem:[#allocation6 + $0x190c] ss:$16 sps:$4 sm:$0xff]  }
 0x3ef   : > { %8071 = vmatprep.subr.bf16.mxu0 %v18029_v47  ;;  %v18055_v47 = vld [vmem:[#allocation6 + $0x1aec] ss:$16 sps:$4 sm:$0xff]  }
 0x3f0   : > { %8121 = vmatpush2.bf16.msra.mxu1 %v18024_v0  ;;  %v18048_v0 = vld [vmem:[#allocation6 + $0x1908] ss:$16 sps:$4 sm:$0xff]  }
 0x3f1   : > { %8122 = vmatprep.subr.bf16.mxu1 %v18032_v34  ;;  %v18058_v34 = vld [vmem:[#allocation6 + $0x1cec] ss:$16 sps:$4 sm:$0xff]  }
 0x3f2   : > { %8072 = vmatpush2.bf16.msra.mxu0 %v18027_v19  ;;  %v18053_v19 = vld [vmem:[#allocation6 + $0x1ae8] ss:$16 sps:$4 sm:$0xff]  }
 0x3f3   : > { %8073 = vmatprep.subr.bf16.mxu0 %v18035_v11  ;;  %v20505_v11 = vsel %vm397_vm15, %v6946_v29, %v20501_v58  ;;  %v18076_v29 = vld [vmem:[#allocation6 + $0x1c8c] ss:$16 sps:$4 sm:$0xff]   ;;  %vm10011_vm15 = vcmask 1045504  }
 0x3f4   : > { %8123 = vmatpush2.bf16.msra.mxu1 %v18030_v40  ;;  %v18056_v40 = vld [vmem:[#allocation6 + $0x1ce8] ss:$16 sps:$4 sm:$0xff]  }
 0x3f5   : > { %8124 = vmatprep.subr.bf16.mxu1 %v18038_v57 }
 0x3f6   : > { %8074 = vmatpush2.bf16.msra.mxu0 %v18033_v22 }
 0x3f7   : > { %8075 = vmatprep.subr.bf16.mxu0 %v18041_v23  ;;  %v18059_v23 = vld [vmem:[#allocation6 + $0x1ac8] ss:$16 sps:$4 sm:$0xff]  }
 0x3f8   : > { %8125 = vmatpush2.bf16.msra.mxu1 %v18036_v6 }
 0x3f9   : > { %8126 = vmatprep.subr.bf16.mxu1 %v18044_v7 }
 0x3fa   : > { %8076 = vmatpush2.bf16.msra.mxu0 %v18039_v31 }
 0x3fb   : > { %8077 = vmatprep.subr.bf16.mxu0 %v18047_v30 }
 0x3fc   : > { %8127 = vmatpush2.bf16.msra.mxu1 %v18042_v15 }
 0x3fd   : > { %8128 = vmatprep.subr.bf16.mxu1 %v18050_v14  ;;  %v18071_v14 = vld [vmem:[#allocation6 + $0x1a88] ss:$16 sps:$4 sm:$0xff]  }
 0x3fe   : > { %8078 = vmatpush2.bf16.msra.mxu0 %v18045_v45 }
 0x3ff   : > { %8149 = vmatprep.subr.bf16.mxu0 %v18055_v47 }
 0x400   : > { %8129 = vmatpush2.bf16.msra.mxu1 %v18048_v0  ;;  %v18079_v0 = vld [vmem:[#allocation6 + $0x1a6c] ss:$16 sps:$4 sm:$0xff]  }
 0x401   : > { %v6478_v22 = vpop.f32.mrf.mxu0  ;;  %8080 = vmatmul.mubr.bf16.vlgmr.msra.gmra.mxu0 %v20505_v11  ;;  %8200 = vmatprep.subr.bf16.mxu1 %v18058_v34 }
 0x402   : > { %v6479_v57 = vadd.f32 %v6478_v22, %v20474_v41  ;;  %8150 = vmatpush1.bf16.msra.mxu0 %v18053_v19  ;;  %8089 = vmatprep.mubr.bf16.mxu0 %v20472_v63 }
 0x403   : > { %v6480_v42 = vpop.f32.mrf.mxu0  ;;  %8151 = vmatprep.subr.bf16.mxu0 %v18061_v37  ;;  %v20513_v31 = vpop.f32.mrf.mxu1  ;;  %8131 = vmatmul.mubr.bf16.vlgmr.msra.gmra.mxu1 %v20463_v20  ;;  %v18068_v20 = vld [vmem:[#allocation6 + $0x1ca8] ss:$16 sps:$4 sm:$0xff]  }
 0x404   : > { %v20511_v6 = vadd.f32 %v6479_v57, %v20343_v27  ;;  %v6481_v7 = vadd.f32 %v6480_v42, %v20477_v5  ;;  %8201 = vmatpush1.bf16.msra.mxu1 %v18056_v40  ;;  %8140 = vmatprep.mubr.bf16.mxu1 %v20402_v61  ;;  %v18065_v27 = vld [vmem:[#allocation6 + $0x1aa8] ss:$16 sps:$4 sm:$0xff]   ;;  %v18073_v5 = vld [vmem:[#allocation6 + $0x1a8c] ss:$16 sps:$4 sm:$0xff]  }
 0x405   : > { %v6482_v41 = vpop.f32.mrf.mxu0  ;;  %v20521_v26 = vpop.f32.mrf.mxu1  ;;  %8202 = vmatprep.subr.bf16.mxu1 %v18064_v24  ;;  %v18077_v37 = vld [vmem:[#allocation6 + $0x1a68] ss:$16 sps:$4 sm:$0xff]   ;;  %v18082_v40 = vld [vmem:[#allocation6 + $0x1c6c] ss:$16 sps:$4 sm:$0xff]  }
 0x406   : > { %v20519_v30 = vadd.f32 %v6481_v7, %v20351_v8  ;;  %v6483_v3 = vadd.f32 %v6482_v41, %v20485_v35  ;;  %8152 = vmatpush1.bf16.msra.mxu0 %v18059_v23  ;;  %v18083_v24 = vld [vmem:[#allocation6 + $0x1a48] ss:$16 sps:$4 sm:$0xff]   ;;  %v18088_v42 = vld [vmem:[#allocation6 + $0x1c4c] ss:$16 sps:$4 sm:$0xff]  }
 0x407   : > { %v20524_v33 = vpop.f32.mrf.mxu0  ;;  %8153 = vmatprep.subr.bf16.mxu0 %v18067_v38  ;;  %v20529_v61 = vpop.f32.mrf.mxu1  ;;  %v18094_v7 = vld [vmem:[#allocation6 + $0x1c2c] ss:$16 sps:$4 sm:$0xff]  }
 0x408   : > { %v20527_v15 = vadd.f32 %v6483_v3, %v20359_v59  ;;  %8203 = vmatpush1.bf16.msra.mxu1 %v18062_v43  ;;  %v18091_v43 = vld [vmem:[#allocation6 + $0x1a2c] ss:$16 sps:$4 sm:$0xff]   ;;  %v18092_v3 = vld [vmem:[#allocation6 + $0x1c28] ss:$16 sps:$4 sm:$0xff]  }
 0x409   : > { %v6488_v8 = vpop.f32.mrf.mxu0  ;;  %8090 = vmatmul.mubr.bf16.gmra.mxu0 %v20501_v58  ;;  %v20532_v45 = vpop.f32.mrf.mxu1  ;;  %8204 = vmatprep.subr.bf16.mxu1 %v18070_v53  ;;  %v18097_v41 = vld [vmem:[#allocation6 + $0x1a0c] ss:$16 sps:$4 sm:$0xff]  }
 0x40a   : > { %21459 = vst [vmem:[#allocation24_spill] sm:$0xff] %v20532_v45  ;;  %v6489_v35 = vadd.f32 %v6488_v8, %v20492_v62  ;;  %8154 = vmatpush1.bf16.msra.mxu0 %v18065_v27  ;;  %8181 = vmatprep.mubr.bf16.mxu0 %v20426_v36  ;;  %v18074_v62 = vld [vmem:[#allocation6 + $0x1c88] ss:$16 sps:$4 sm:$0xff]   ;;  %v18100_v53 = vld [vmem:[#allocation6 + $0x1c0c] ss:$16 sps:$4 sm:$0xff]  }
 0x40b   : > { %v6490_v47 = vpop.f32.mrf.mxu0  ;;  %8155 = vmatprep.subr.bf16.mxu0 %v18073_v5  ;;  %v20540_v34 = vpop.f32.mrf.mxu1  ;;  %8141 = vmatmul.mubr.bf16.gmra.mxu1 %v20455_v56  ;;  %v18080_v56 = vld [vmem:[#allocation6 + $0x1c68] ss:$16 sps:$4 sm:$0xff]  }
 0x40c   : > { %v20537_v59 = vadd.f32 %v6489_v35, %v20369_v2  ;;  %v6491_v19 = vadd.f32 %v6490_v47, %v20495_v39  ;;  %8205 = vmatpush1.bf16.msra.mxu1 %v18068_v20  ;;  %8232 = vmatprep.mubr.bf16.mxu1 %v20483_v18  ;;  %v18085_v2 = vld [vmem:[#allocation6 + $0x1a4c] ss:$16 sps:$4 sm:$0xff]   ;;  %v18089_v18 = vld [vmem:[#allocation6 + $0x1a28] ss:$16 sps:$4 sm:$0xff]  }
 0x40d   : > { %v6492_v22 = vpop.f32.mrf.mxu0  ;;  %8206 = vmatprep.subr.bf16.mxu1 %v18076_v29  ;;  %v20547_v36 = vpop.f32.mrf.mxu1  ;;  %v18095_v27 = vld [vmem:[#allocation6 + $0x1a08] ss:$16 sps:$4 sm:$0xff]   ;;  %v18103_v20 = vld [vmem:[#allocation6 + $0x1bec] ss:$16 sps:$4 sm:$0xff]  }
 0x40e   : > { %v20545_v57 = vadd.f32 %v6491_v19, %v20377_v46  ;;  %8156 = vmatpush1.bf16.msra.mxu0 %v18071_v14  ;;  %v18086_v46 = vld [vmem:[#allocation6 + $0x1c48] ss:$16 sps:$4 sm:$0xff]   ;;  %v18106_v35 = vld [vmem:[#allocation6 + $0x1dec] ss:$16 sps:$4 sm:$0xff]  }
 0x40f   : > { %8157 = vmatprep.subr.bf16.mxu0 %v18079_v0  ;;  %v6493_v39 = vpop.f32.mrf.mxu0  ;;  %v6543_v23 = vpop.f32.mrf.mxu1  ;;  %v18098_v5 = vld [vmem:[#allocation6 + $0x1c08] ss:$16 sps:$4 sm:$0xff]   ;;  %v18109_v14 = vld [vmem:[#allocation6 + $0x1bcc] ss:$16 sps:$4 sm:$0xff]  }
 0x410   : > { %8207 = vmatpush1.bf16.msra.mxu1 %v18074_v62  ;;  %v18101_v8 = vld [vmem:[#allocation6 + $0x1be8] ss:$16 sps:$4 sm:$0xff]   ;;  %v18112_v0 = vld [vmem:[#allocation6 + $0x1dcc] ss:$16 sps:$4 sm:$0xff]  }
 0x411   : > { %8208 = vmatprep.subr.bf16.mxu1 %v18082_v40  ;;  %v6544_v38 = vpop.f32.mrf.mxu1  ;;  %v18104_v29 = vld [vmem:[#allocation6 + $0x1de8] ss:$16 sps:$4 sm:$0xff]   ;;  %v18115_v19 = vld [vmem:[#allocation6 + $0x1bac] ss:$16 sps:$4 sm:$0xff]  }
 0x412   : > { %8158 = vmatpush1.bf16.msra.mxu0 %v18077_v37  ;;  %v18107_v47 = vld [vmem:[#allocation6 + $0x1bc8] ss:$16 sps:$4 sm:$0xff]   ;;  %v18118_v40 = vld [vmem:[#allocation6 + $0x1dac] ss:$16 sps:$4 sm:$0xff]  }
 0x413   : > { %8159 = vmatprep.subr.bf16.mxu0 %v18085_v2  ;;  %v18110_v62 = vld [vmem:[#allocation6 + $0x1dc8] ss:$16 sps:$4 sm:$0xff]   ;;  %v18121_v22 = vld [vmem:[#allocation6 + $0x1b8c] ss:$16 sps:$4 sm:$0xff]  }
 0x414   : > { %8209 = vmatpush1.bf16.msra.mxu1 %v18080_v56  ;;  %v18113_v37 = vld [vmem:[#allocation6 + $0x1ba8] ss:$16 sps:$4 sm:$0xff]   ;;  %v18124_v23 = vld [vmem:[#allocation6 + $0x1d8c] ss:$16 sps:$4 sm:$0xff]  }
 0x415   : > { %8210 = vmatprep.subr.bf16.mxu1 %v18088_v42  ;;  %v18116_v2 = vld [vmem:[#allocation6 + $0x1da8] ss:$16 sps:$4 sm:$0xff]   ;;  %v18127_v56 = vld [vmem:[#allocation6 + $0x1b6c] ss:$16 sps:$4 sm:$0xff]  }
 0x416   : > { %8160 = vmatpush1.bf16.msra.mxu0 %v18083_v24  ;;  %v18119_v39 = vld [vmem:[#allocation6 + $0x1b88] ss:$16 sps:$4 sm:$0xff]   ;;  %v18133_v38 = vld [vmem:[#allocation6 + $0x1b4c] ss:$16 sps:$4 sm:$0xff]  }
 0x417   : > { %8161 = vmatprep.subr.bf16.mxu0 %v18091_v43  ;;  %v18122_v24 = vld [vmem:[#allocation6 + $0x1d88] ss:$16 sps:$4 sm:$0xff]   ;;  %v18130_v43 = vld [vmem:[#allocation6 + $0x1d6c] ss:$16 sps:$4 sm:$0xff]  }
 0x418   : > { %8211 = vmatpush1.bf16.msra.mxu1 %v18086_v46  ;;  %v18125_v42 = vld [vmem:[#allocation6 + $0x1b68] ss:$16 sps:$4 sm:$0xff]  }
 0x419   : > { %8212 = vmatprep.subr.bf16.mxu1 %v18094_v7  ;;  %v18128_v46 = vld [vmem:[#allocation6 + $0x1d68] ss:$16 sps:$4 sm:$0xff]   ;;  %v18136_v7 = vld [vmem:[#allocation6 + $0x1d4c] ss:$16 sps:$4 sm:$0xff]  }
 0x41a   : > { %8162 = vmatpush1.bf16.msra.mxu0 %v18089_v18  ;;  %v18131_v18 = vld [vmem:[#allocation6 + $0x1b48] ss:$16 sps:$4 sm:$0xff]  }
 0x41b   : > { %8163 = vmatprep.subr.bf16.mxu0 %v18097_v41  ;;  %v18139_v41 = vld [vmem:[#allocation6 + $0x1b2c] ss:$16 sps:$4 sm:$0xff]  }
 0x41c   : > { %8213 = vmatpush1.bf16.msra.mxu1 %v18092_v3  ;;  %v18134_v3 = vld [vmem:[#allocation6 + $0x1d48] ss:$16 sps:$4 sm:$0xff]  }
 0x41d   : > { %8214 = vmatprep.subr.bf16.mxu1 %v18100_v53  ;;  %v18142_v53 = vld [vmem:[#allocation6 + $0x1d2c] ss:$16 sps:$4 sm:$0xff]  }
 0x41e   : > { %8164 = vmatpush1.bf16.msra.mxu0 %v18095_v27  ;;  %v18137_v27 = vld [vmem:[#allocation6 + $0x1b28] ss:$16 sps:$4 sm:$0xff]  }
 0x41f   : > { %8165 = vmatprep.subr.bf16.mxu0 %v18103_v20  ;;  %v18145_v20 = vld [vmem:[#allocation6 + $0x1b0c] ss:$16 sps:$4 sm:$0xff]  }
 0x420   : > { %8215 = vmatpush1.bf16.msra.mxu1 %v18098_v5  ;;  %v18140_v5 = vld [vmem:[#allocation6 + $0x1d28] ss:$16 sps:$4 sm:$0xff]  }
 0x421   : > { %8216 = vmatprep.subr.bf16.mxu1 %v18106_v35  ;;  %v18148_v35 = vld [vmem:[#allocation6 + $0x1d0c] ss:$16 sps:$4 sm:$0xff]  }
 0x422   : > { %8166 = vmatpush2.bf16.msra.mxu0 %v18101_v8  ;;  %v18143_v8 = vld [vmem:[#allocation6 + $0x1b08] ss:$16 sps:$4 sm:$0xff]  }
 0x423   : > { %8167 = vmatprep.subr.bf16.mxu0 %v18109_v14  ;;  %v18151_v14 = vld [vmem:[#allocation6 + $0x1ee4] ss:$16 sps:$4 sm:$0xff]  }
 0x424   : > { %8217 = vmatpush2.bf16.msra.mxu1 %v18104_v29  ;;  %v18146_v29 = vld [vmem:[#allocation6 + $0x1d08] ss:$16 sps:$4 sm:$0xff]  }
 0x425   : > { %8218 = vmatprep.subr.bf16.mxu1 %v18112_v0  ;;  %v18154_v0 = vld [vmem:[#allocation6 + $0x20e4] ss:$16 sps:$4 sm:$0xff]  }
 0x426   : > { %8168 = vmatpush2.bf16.msra.mxu0 %v18107_v47  ;;  %v18149_v47 = vld [vmem:[#allocation6 + $0x1ee0] ss:$16 sps:$4 sm:$0xff]  }
 0x427   : > { %8169 = vmatprep.subr.bf16.mxu0 %v18115_v19  ;;  %v18157_v19 = vld [vmem:[#allocation6 + $0x1ec4] ss:$16 sps:$4 sm:$0xff]  }
 0x428   : > { %8219 = vmatpush2.bf16.msra.mxu1 %v18110_v62 }
 0x429   : > { %8220 = vmatprep.subr.bf16.mxu1 %v18118_v40 }
 0x42a   : > { %8170 = vmatpush2.bf16.msra.mxu0 %v18113_v37  ;;  %v18152_v37 = vld [vmem:[#allocation6 + $0x20e0] ss:$16 sps:$4 sm:$0xff]  }
 0x42b   : > { %8171 = vmatprep.subr.bf16.mxu0 %v18121_v22  ;;  %v18155_v22 = vld [vmem:[#allocation6 + $0x1ec0] ss:$16 sps:$4 sm:$0xff]  }
 0x42c   : > { %8221 = vmatpush2.bf16.msra.mxu1 %v18116_v2  ;;  %v18160_v2 = vld [vmem:[#allocation6 + $0x20c4] ss:$16 sps:$4 sm:$0xff]  }
 0x42d   : > { %8222 = vmatprep.subr.bf16.mxu1 %v18124_v23  ;;  %v18163_v23 = vld [vmem:[#allocation6 + $0x1ea4] ss:$16 sps:$4 sm:$0xff]  }
 0x42e   : > { %8172 = vmatpush2.bf16.msra.mxu0 %v18119_v39 }
 0x42f   : > { %8173 = vmatprep.subr.bf16.mxu0 %v18127_v56 }
 0x430   : > { %8223 = vmatpush2.bf16.msra.mxu1 %v18122_v24 }
 0x431   : > { %8224 = vmatprep.subr.bf16.mxu1 %v18130_v43  ;;  %v18158_v43 = vld [vmem:[#allocation6 + $0x20c0] ss:$16 sps:$4 sm:$0xff]  }
 0x432   : > { %8174 = vmatpush2.bf16.msra.mxu0 %v18125_v42 }
 0x433   : > { %8175 = vmatprep.subr.bf16.mxu0 %v18133_v38 }
 0x434   : > { %8225 = vmatpush2.bf16.msra.mxu1 %v18128_v46  ;;  %v18161_v46 = vld [vmem:[#allocation6 + $0x1ea0] ss:$16 sps:$4 sm:$0xff]  }
 0x435   : > { %8226 = vmatprep.subr.bf16.mxu1 %v18136_v7 }
 0x436   : > { %8176 = vmatpush2.bf16.msra.mxu0 %v18131_v18  ;;  %v18166_v18 = vld [vmem:[#allocation6 + $0x20a4] ss:$16 sps:$4 sm:$0xff]  }
 0x437   : > { %8177 = vmatprep.subr.bf16.mxu0 %v18139_v41  ;;  %v20561_v41 = vld [vmem:[#allocation2 + $0x18] sm:$0xff] }
 0x438   : > { %8227 = vmatpush2.bf16.msra.mxu1 %v18134_v3  ;;  %v20563_v3 = vld [vmem:[#allocation2 + $0x8] sm:$0xff] }
 0x439   : > { %8228 = vmatprep.subr.bf16.mxu1 %v18142_v53 }
 0x43a   : > { %8178 = vmatpush2.bf16.msra.mxu0 %v18137_v27 }
 0x43b   : > { %8179 = vmatprep.subr.bf16.mxu0 %v18145_v20  ;;  %v18164_v20 = vld [vmem:[#allocation6 + $0x20a0] ss:$16 sps:$4 sm:$0xff]  }
 0x43c   : > { %8229 = vmatpush2.bf16.msra.mxu1 %v18140_v5  ;;  %v20573_v5 = vld [vmem:[#allocation2 + $0x50] sm:$0xff] }
 0x43d   : > { %8230 = vmatprep.subr.bf16.mxu1 %v18148_v35 }
 0x43e   : > { %8180 = vmatpush2.bf16.msra.mxu0 %v18143_v8  ;;  %v20575_v8 = vld [vmem:[#allocation2 + $0x48] sm:$0xff] }
 0x43f   : > { %9440 = vmatprep.subr.bf16.mxu0 %v18151_v14  ;;  %v20579_v35 = vcombine.high %v20573_v5, %v20575_v8 }
 0x440   : > { %8231 = vmatpush2.bf16.msra.mxu1 %v18146_v29 }
 0x441   : > { %v6580_v62 = vpop.f32.mrf.mxu0  ;;  %8182 = vmatmul.mubr.bf16.vlgmr.msra.gmra.mxu0 %v20468_v28  ;;  %9491 = vmatprep.subr.bf16.mxu1 %v18154_v0 }
 0x442   : > { %v6581_v40 = vadd.f32 %v6580_v62, %v20513_v31  ;;  %9441 = vmatpush1.bf16.msra.mxu0 %v18149_v47  ;;  %8191 = vmatprep.mubr.bf16.mxu0 %v20406_v55  ;;  %v18172_v47 = vld [vmem:[#allocation6 + $0x2084] ss:$16 sps:$4 sm:$0xff]  }
 0x443   : > { %v6582_v39 = vpop.f32.mrf.mxu0  ;;  %9442 = vmatprep.subr.bf16.mxu0 %v18157_v19  ;;  %v6631_v56 = vpop.f32.mrf.mxu1  ;;  %8233 = vmatmul.mubr.bf16.vlgmr.msra.gmra.mxu1 %v20505_v11  ;;  %v18175_v19 = vld [vmem:[#allocation6 + $0x1e64] ss:$16 sps:$4 sm:$0xff]  }
 0x444   : > { %v6583_v24 = vadd.f32 %v6582_v39, %v20521_v26  ;;  %v6632_v42 = vadd.f32 %v6631_v56, %v6581_v40  ;;  %9492 = vmatpush1.bf16.msra.mxu1 %v18152_v37  ;;  %8242 = vmatprep.mubr.bf16.mxu1 %v20472_v63  ;;  %v18169_v26 = vld [vmem:[#allocation6 + $0x1e84] ss:$16 sps:$4 sm:$0xff]   ;;  %v20567_v63 = vcombine.high %v20561_v41, %v20563_v3 }
 0x445   : > { %v6584_v28 = vpop.f32.mrf.mxu0  ;;  %v6633_v31 = vpop.f32.mrf.mxu1  ;;  %9493 = vmatprep.subr.bf16.mxu1 %v18160_v2  ;;  %v18178_v39 = vld [vmem:[#allocation6 + $0x2064] ss:$16 sps:$4 sm:$0xff]  }
 0x446   : > { %v6585_v38 = vadd.f32 %v6584_v28, %v20529_v61  ;;  %9443 = vmatpush1.bf16.msra.mxu0 %v18155_v22  ;;  %v20557_v55 = vadd.f32 %v6632_v42, %v20409_v9  ;;  %v6634_v7 = vadd.f32 %v6633_v31, %v6583_v24  ;;  %v18176_v28 = vld [vmem:[#allocation6 + $0x2060] ss:$16 sps:$4 sm:$0xff]   ;;  %v18184_v31 = vld [vmem:[#allocation6 + $0x2044] ss:$16 sps:$4 sm:$0xff]  }
 0x447   : > { %v20559_v11 = vpop.f32.mrf.mxu0  ;;  %9444 = vmatprep.subr.bf16.mxu0 %v18163_v23  ;;  %v6635_v61 = vpop.f32.mrf.mxu1 }
 0x448   : > { %21460 = vst [vmem:[#allocation25_spill] sm:$0xff] %v20559_v11  ;;  %v20570_v27 = vadd.f32 %v6634_v7, %v20418_v10  ;;  %v6636_v53 = vadd.f32 %v6635_v61, %v6585_v38  ;;  %9494 = vmatpush1.bf16.msra.mxu1 %v18158_v43  ;;  %v18167_v10 = vld [vmem:[#allocation6 + $0x1e80] ss:$16 sps:$4 sm:$0xff]   ;;  %v18190_v7 = vld [vmem:[#allocation6 + $0x2024] ss:$16 sps:$4 sm:$0xff]  }
 0x449   : > { %v6590_v9 = vpop.f32.mrf.mxu0  ;;  %8192 = vmatmul.mubr.bf16.gmra.mxu0 %v20459_v52  ;;  %v20581_v14 = vpop.f32.mrf.mxu1  ;;  %9495 = vmatprep.subr.bf16.mxu1 %v18166_v18  ;;  %v18179_v43 = vld [vmem:[#allocation6 + $0x1e40] ss:$16 sps:$4 sm:$0xff]  }
 0x44a   : > { %21461 = vst [vmem:[#allocation26_spill] sm:$0xff] %v20581_v14  ;;  %v6591_v29 = vadd.f32 %v6590_v9, %v20540_v34  ;;  %9445 = vmatpush1.bf16.msra.mxu0 %v18161_v46  ;;  %v20585_v0 = vadd.f32 %v6636_v53, %v20429_v13  ;;  %9472 = vmatprep.mubr.bf16.mxu0 %v20567_v63  ;;  %v18170_v34 = vld [vmem:[#allocation6 + $0x2080] ss:$16 sps:$4 sm:$0xff]   ;;  %v18187_v46 = vld [vmem:[#allocation6 + $0x1e24] ss:$16 sps:$4 sm:$0xff]  }
 0x44b   : > { %v6592_v52 = vpop.f32.mrf.mxu0  ;;  %9446 = vmatprep.subr.bf16.mxu0 %v18169_v26  ;;  %v6641_v37 = vpop.f32.mrf.mxu1  ;;  %8243 = vmatmul.mubr.bf16.gmra.mxu1 %v20501_v58  ;;  %v18173_v13 = vld [vmem:[#allocation6 + $0x1e60] ss:$16 sps:$4 sm:$0xff]   ;;  %v18193_v26 = vld [vmem:[#allocation6 + $0x1e04] ss:$16 sps:$4 sm:$0xff]  }
 0x44c   : > { %v6593_v62 = vadd.f32 %v6592_v52, %v20547_v36  ;;  %9496 = vmatpush1.bf16.msra.mxu1 %v18164_v20  ;;  %v6642_v40 = vadd.f32 %v6641_v37, %v6591_v29  ;;  %9523 = vmatprep.mubr.bf16.mxu1 %v20579_v35  ;;  %v18181_v36 = vld [vmem:[#allocation6 + $0x1e44] ss:$16 sps:$4 sm:$0xff]   ;;  %v18185_v18 = vld [vmem:[#allocation6 + $0x1e20] ss:$16 sps:$4 sm:$0xff]  }
 0x44d   : > { %v6594_v22 = vpop.f32.mrf.mxu0  ;;  %v6643_v2 = vpop.f32.mrf.mxu1  ;;  %9497 = vmatprep.subr.bf16.mxu1 %v18172_v47  ;;  %v18191_v61 = vld [vmem:[#allocation6 + $0x1e00] ss:$16 sps:$4 sm:$0xff]   ;;  %v18196_v53 = vld [vmem:[#allocation6 + $0x2004] ss:$16 sps:$4 sm:$0xff]  }
 0x44e   : > { %9447 = vmatpush1.bf16.msra.mxu0 %v18167_v10  ;;  %v20592_v23 = vadd.f32 %v6642_v40, %v20436_v1  ;;  %v6644_v56 = vadd.f32 %v6643_v2, %v6593_v62  ;;  %v18182_v1 = vld [vmem:[#allocation6 + $0x2040] ss:$16 sps:$4 sm:$0xff]   ;;  %v18199_v9 = vld [vmem:[#allocation6 + $0x1fe4] ss:$16 sps:$4 sm:$0xff]  }
 0x44f   : > { %9448 = vmatprep.subr.bf16.mxu0 %v18175_v19  ;;  %v6595_v24 = vpop.f32.mrf.mxu0  ;;  %v6645_v42 = vpop.f32.mrf.mxu1  ;;  %v18194_v20 = vld [vmem:[#allocation6 + $0x2000] ss:$16 sps:$4 sm:$0xff]   ;;  %v18202_v10 = vld [vmem:[#allocation6 + $0x21e4] ss:$16 sps:$4 sm:$0xff]  }
 0x450   : > { %v20595_v58 = vadd.f32 %v6644_v56, %v20439_v49  ;;  %9498 = vmatpush1.bf16.msra.mxu1 %v18170_v34  ;;  %v18188_v49 = vld [vmem:[#allocation6 + $0x2020] ss:$16 sps:$4 sm:$0xff]   ;;  %v18205_v47 = vld [vmem:[#allocation6 + $0x1fc4] ss:$16 sps:$4 sm:$0xff]  }
 0x451   : > { %9499 = vmatprep.subr.bf16.mxu1 %v18178_v39  ;;  %v6646_v38 = vpop.f32.mrf.mxu1  ;;  %v18197_v29 = vld [vmem:[#allocation6 + $0x1fe0] ss:$16 sps:$4 sm:$0xff]   ;;  %v18208_v62 = vld [vmem:[#allocation6 + $0x21c4] ss:$16 sps:$4 sm:$0xff]  }
 0x452   : > { %9449 = vmatpush1.bf16.msra.mxu0 %v18173_v13  ;;  %v18200_v52 = vld [vmem:[#allocation6 + $0x21e0] ss:$16 sps:$4 sm:$0xff]   ;;  %v18211_v37 = vld [vmem:[#allocation6 + $0x1fa4] ss:$16 sps:$4 sm:$0xff]  }
 0x453   : > { %9450 = vmatprep.subr.bf16.mxu0 %v18181_v36  ;;  %v18203_v19 = vld [vmem:[#allocation6 + $0x1fc0] ss:$16 sps:$4 sm:$0xff]   ;;  %v18214_v22 = vld [vmem:[#allocation6 + $0x21a4] ss:$16 sps:$4 sm:$0xff]  }
 0x454   : > { %9500 = vmatpush1.bf16.msra.mxu1 %v18176_v28  ;;  %v18206_v40 = vld [vmem:[#allocation6 + $0x21c0] ss:$16 sps:$4 sm:$0xff]   ;;  %v18217_v2 = vld [vmem:[#allocation6 + $0x1f84] ss:$16 sps:$4 sm:$0xff]  }
 0x455   : > { %9501 = vmatprep.subr.bf16.mxu1 %v18184_v31  ;;  %v18209_v34 = vld [vmem:[#allocation6 + $0x1fa0] ss:$16 sps:$4 sm:$0xff]   ;;  %v18220_v56 = vld [vmem:[#allocation6 + $0x2184] ss:$16 sps:$4 sm:$0xff]  }
 0x456   : > { %9451 = vmatpush1.bf16.msra.mxu0 %v18179_v43  ;;  %v18212_v13 = vld [vmem:[#allocation6 + $0x21a0] ss:$16 sps:$4 sm:$0xff]   ;;  %v18223_v36 = vld [vmem:[#allocation6 + $0x1f64] ss:$16 sps:$4 sm:$0xff]  }
 0x457   : > { %9452 = vmatprep.subr.bf16.mxu0 %v18187_v46  ;;  %v18215_v39 = vld [vmem:[#allocation6 + $0x1f80] ss:$16 sps:$4 sm:$0xff]   ;;  %v18226_v28 = vld [vmem:[#allocation6 + $0x2164] ss:$16 sps:$4 sm:$0xff]  }
 0x458   : > { %9502 = vmatpush1.bf16.msra.mxu1 %v18182_v1  ;;  %v18218_v24 = vld [vmem:[#allocation6 + $0x2180] ss:$16 sps:$4 sm:$0xff]   ;;  %v18229_v43 = vld [vmem:[#allocation6 + $0x1f44] ss:$16 sps:$4 sm:$0xff]  }
 0x459   : > { %9503 = vmatprep.subr.bf16.mxu1 %v18190_v7  ;;  %v18221_v42 = vld [vmem:[#allocation6 + $0x1f60] ss:$16 sps:$4 sm:$0xff]   ;;  %v18232_v46 = vld [vmem:[#allocation6 + $0x2144] ss:$16 sps:$4 sm:$0xff]  }
 0x45a   : > { %9453 = vmatpush1.bf16.msra.mxu0 %v18185_v18  ;;  %v18224_v31 = vld [vmem:[#allocation6 + $0x2160] ss:$16 sps:$4 sm:$0xff]   ;;  %v18235_v1 = vld [vmem:[#allocation6 + $0x1f24] ss:$16 sps:$4 sm:$0xff]  }
 0x45b   : > { %9454 = vmatprep.subr.bf16.mxu0 %v18193_v26  ;;  %v18227_v38 = vld [vmem:[#allocation6 + $0x1f40] ss:$16 sps:$4 sm:$0xff]   ;;  %v18238_v26 = vld [vmem:[#allocation6 + $0x2124] ss:$16 sps:$4 sm:$0xff]  }
 0x45c   : > { %9504 = vmatpush1.bf16.msra.mxu1 %v18188_v49  ;;  %v18230_v18 = vld [vmem:[#allocation6 + $0x2140] ss:$16 sps:$4 sm:$0xff]   ;;  %v18241_v49 = vld [vmem:[#allocation6 + $0x1f04] ss:$16 sps:$4 sm:$0xff]  }
 0x45d   : > { %9505 = vmatprep.subr.bf16.mxu1 %v18196_v53  ;;  %v18233_v7 = vld [vmem:[#allocation6 + $0x1f20] ss:$16 sps:$4 sm:$0xff]  }
 0x45e   : > { %9455 = vmatpush1.bf16.msra.mxu0 %v18191_v61  ;;  %v18236_v61 = vld [vmem:[#allocation6 + $0x2120] ss:$16 sps:$4 sm:$0xff]  }
 0x45f   : > { %9456 = vmatprep.subr.bf16.mxu0 %v18199_v9  ;;  %v18239_v53 = vld [vmem:[#allocation6 + $0x1f00] ss:$16 sps:$4 sm:$0xff]   ;;  %v18244_v9 = vld [vmem:[#allocation6 + $0x2104] ss:$16 sps:$4 sm:$0xff]  }
 0x460   : > { %9506 = vmatpush1.bf16.msra.mxu1 %v18194_v20  ;;  %v18251_v20 = vld [vmem:[#allocation6 + $0x22e4] ss:$16 sps:$4 sm:$0xff]   ;;  %v18461_v11 = vld [vmem:[#allocation6 + $0x24a0] ss:$16 sps:$4 sm:$0xff]  }
 0x461   : > { %9507 = vmatprep.subr.bf16.mxu1 %v18202_v10  ;;  %v20599_v10 = vcombine.low %v20561_v41, %v20563_v3  ;;  %v19349_v41 = vld [vmem:[#allocation2 + $0x10] sm:$0xff] }
 0x462   : > { %9457 = vmatpush2.bf16.msra.mxu0 %v18197_v29  ;;  %v18242_v29 = vld [vmem:[#allocation6 + $0x2100] ss:$16 sps:$4 sm:$0xff]   ;;  %v20608_v3 = vcombine.high %v19349_v41, %v19349_v41 }
 0x463   : > { %9458 = vmatprep.subr.bf16.mxu0 %v18205_v47  ;;  %v18249_v47 = vld [vmem:[#allocation6 + $0x22e0] ss:$16 sps:$4 sm:$0xff]  }
 0x464   : > { %9508 = vmatpush2.bf16.msra.mxu1 %v18200_v52  ;;  %v18254_v52 = vld [vmem:[#allocation6 + $0x1eec] ss:$16 sps:$4 sm:$0xff]  }
 0x465   : > { %9509 = vmatprep.subr.bf16.mxu1 %v18208_v62  ;;  %v19348_v62 = vld [vmem:[#allocation2 + $0x20] sm:$0xff] }
 0x466   : > { %9459 = vmatpush2.bf16.msra.mxu0 %v18203_v19  ;;  %v18257_v19 = vld [vmem:[#allocation6 + $0x22c4] ss:$16 sps:$4 sm:$0xff]  }
 0x467   : > { %9460 = vmatprep.subr.bf16.mxu0 %v18211_v37  ;;  %v20601_v37 = vcombine.high %v19348_v62, %v19348_v62 }
 0x468   : > { %9510 = vmatpush2.bf16.msra.mxu1 %v18206_v40  ;;  %v20605_v40 = vcombine.low %v20573_v5, %v20575_v8 }
 0x469   : > { %9511 = vmatprep.subr.bf16.mxu1 %v18214_v22  ;;  %v18252_v22 = vld [vmem:[#allocation6 + $0x1ee8] ss:$16 sps:$4 sm:$0xff]  }
 0x46a   : > { %9461 = vmatpush2.bf16.msra.mxu0 %v18209_v34 }
 0x46b   : > { %9462 = vmatprep.subr.bf16.mxu0 %v18217_v2  ;;  %v18255_v2 = vld [vmem:[#allocation6 + $0x22c0] ss:$16 sps:$4 sm:$0xff]  }
 0x46c   : > { %9512 = vmatpush2.bf16.msra.mxu1 %v18212_v13  ;;  %v18260_v13 = vld [vmem:[#allocation6 + $0x1ecc] ss:$16 sps:$4 sm:$0xff]  }
 0x46d   : > { %9513 = vmatprep.subr.bf16.mxu1 %v18220_v56  ;;  %v18263_v56 = vld [vmem:[#allocation6 + $0x22a4] ss:$16 sps:$4 sm:$0xff]  }
 0x46e   : > { %9463 = vmatpush2.bf16.msra.mxu0 %v18215_v39 }
 0x46f   : > { %9464 = vmatprep.subr.bf16.mxu0 %v18223_v36 }
 0x470   : > { %9514 = vmatpush2.bf16.msra.mxu1 %v18218_v24  ;;  %v18258_v24 = vld [vmem:[#allocation6 + $0x1ec8] ss:$16 sps:$4 sm:$0xff]  }
 0x471   : > { %9515 = vmatprep.subr.bf16.mxu1 %v18226_v28 }
 0x472   : > { %9465 = vmatpush2.bf16.msra.mxu0 %v18221_v42  ;;  %v20614_v42 = vcombine.low %v19348_v62, %v19348_v62 }
 0x473   : > { %9466 = vmatprep.subr.bf16.mxu0 %v18229_v43  ;;  %v18261_v43 = vld [vmem:[#allocation6 + $0x22a0] ss:$16 sps:$4 sm:$0xff]  }
 0x474   : > { %9516 = vmatpush2.bf16.msra.mxu1 %v18224_v31  ;;  %v18266_v31 = vld [vmem:[#allocation6 + $0x1eac] ss:$16 sps:$4 sm:$0xff]  }
 0x475   : > { %9517 = vmatprep.subr.bf16.mxu1 %v18232_v46 }
 0x476   : > { %9467 = vmatpush2.bf16.msra.mxu0 %v18227_v38 }
 0x477   : > { %9468 = vmatprep.subr.bf16.mxu0 %v18235_v1  ;;  %v18269_v1 = vld [vmem:[#allocation6 + $0x2284] ss:$16 sps:$4 sm:$0xff]  }
 0x478   : > { %9518 = vmatpush2.bf16.msra.mxu1 %v18230_v18  ;;  %v20621_v18 = vld [vmem:[#allocation2 + $0x68] sm:$0xff] }
 0x479   : > { %9519 = vmatprep.subr.bf16.mxu1 %v18238_v26 }
 0x47a   : > { %9469 = vmatpush2.bf16.msra.mxu0 %v18233_v7  ;;  %v20623_v7 = vld [vmem:[#allocation2 + $0x40] sm:$0xff] }
 0x47b   : > { %9470 = vmatprep.subr.bf16.mxu0 %v18241_v49  ;;  %v20627_v26 = vcombine.high %v20621_v18, %v20623_v7 }
 0x47c   : > { %9520 = vmatpush2.bf16.msra.mxu1 %v18236_v61  ;;  %v20629_v61 = vcombine.low %v19349_v41, %v19349_v41 }
 0x47d   : > { %9521 = vmatprep.subr.bf16.mxu1 %v18244_v9  ;;  %v18264_v9 = vld [vmem:[#allocation6 + $0x1ea8] ss:$16 sps:$4 sm:$0xff]  }
 0x47e   : > { %9471 = vmatpush2.bf16.msra.mxu0 %v18239_v53 }
 0x47f   : > { %9542 = vmatprep.subr.bf16.mxu0 %v18251_v20 }
 0x480   : > { %9522 = vmatpush2.bf16.msra.mxu1 %v18242_v29 }
 0x481   : > { %v7979_v34 = vpop.f32.mrf.mxu0  ;;  %9473 = vmatmul.mubr.bf16.vlgmr.msra.gmra.mxu0 %v20599_v10  ;;  %9593 = vmatprep.subr.bf16.mxu1 %v18254_v52  ;;  %v18272_v52 = vld [vmem:[#allocation6 + $0x1e8c] ss:$16 sps:$4 sm:$0xff]  }
 0x482   : > { %9543 = vmatpush1.bf16.msra.mxu0 %v18249_v47  ;;  %9482 = vmatprep.mubr.bf16.mxu0 %v20601_v37  ;;  %v18267_v47 = vld [vmem:[#allocation6 + $0x2280] ss:$16 sps:$4 sm:$0xff]  }
 0x483   : > { %v7981_v39 = vpop.f32.mrf.mxu0  ;;  %9544 = vmatprep.subr.bf16.mxu0 %v18257_v19  ;;  %v8030_v36 = vpop.f32.mrf.mxu1  ;;  %9524 = vmatmul.mubr.bf16.vlgmr.msra.gmra.mxu1 %v20605_v40  ;;  %v18275_v19 = vld [vmem:[#allocation6 + $0x2264] ss:$16 sps:$4 sm:$0xff]  }
 0x484   : > { %v20612_v5 = vadd.f32 %v8030_v36, %v7979_v34  ;;  %9594 = vmatpush1.bf16.msra.mxu1 %v18252_v22  ;;  %9533 = vmatprep.mubr.bf16.mxu1 %v20608_v3  ;;  %v18270_v22 = vld [vmem:[#allocation6 + $0x1e88] ss:$16 sps:$4 sm:$0xff]   ;;  %v18281_v36 = vld [vmem:[#allocation6 + $0x2244] ss:$16 sps:$4 sm:$0xff]  }
 0x485   : > { %v7983_v8 = vpop.f32.mrf.mxu0  ;;  %v8032_v28 = vpop.f32.mrf.mxu1  ;;  %9595 = vmatprep.subr.bf16.mxu1 %v18260_v13  ;;  %v18273_v13 = vld [vmem:[#allocation6 + $0x2260] ss:$16 sps:$4 sm:$0xff]  }
 0x486   : > { %9545 = vmatpush1.bf16.msra.mxu0 %v18255_v2  ;;  %v20617_v38 = vadd.f32 %v8032_v28, %v7981_v39  ;;  %v18278_v39 = vld [vmem:[#allocation6 + $0x1e6c] ss:$16 sps:$4 sm:$0xff]  }
 0x487   : > { %v20619_v46 = vpop.f32.mrf.mxu0  ;;  %9546 = vmatprep.subr.bf16.mxu0 %v18263_v56  ;;  %v8034_v49 = vpop.f32.mrf.mxu1 }
 0x488   : > { %v20631_v53 = vadd.f32 %v8034_v49, %v7983_v8  ;;  %9596 = vmatpush1.bf16.msra.mxu1 %v18258_v24 }
 0x489   : > { %v7989_v20 = vpop.f32.mrf.mxu0  ;;  %9483 = vmatmul.mubr.bf16.gmra.mxu0 %v20614_v42  ;;  %v20634_v29 = vpop.f32.mrf.mxu1  ;;  %9597 = vmatprep.subr.bf16.mxu1 %v18266_v31  ;;  %v18279_v31 = vld [vmem:[#allocation6 + $0x2240] ss:$16 sps:$4 sm:$0xff]  }
 0x48a   : > { %9547 = vmatpush1.bf16.msra.mxu0 %v18261_v43  ;;  %9574 = vmatprep.mubr.bf16.mxu0 %v20627_v26  ;;  %v18276_v43 = vld [vmem:[#allocation6 + $0x1e68] ss:$16 sps:$4 sm:$0xff]  }
 0x48b   : > { %9548 = vmatprep.subr.bf16.mxu0 %v18269_v1  ;;  %v7991_v62 = vpop.f32.mrf.mxu0  ;;  %v8040_v34 = vpop.f32.mrf.mxu1  ;;  %9534 = vmatmul.mubr.bf16.gmra.mxu1 %v20629_v61  ;;  %v18284_v1 = vld [vmem:[#allocation6 + $0x1e4c] ss:$16 sps:$4 sm:$0xff]  }
 0x48c   : > { %9598 = vmatpush1.bf16.msra.mxu1 %v18264_v9  ;;  %v20638_v41 = vadd.f32 %v8040_v34, %v7989_v20  ;;  %9625 = vmatprep.mubr.bf16.mxu1 %v20567_v63  ;;  %v18287_v63 = vld [vmem:[#allocation6 + $0x2224] ss:$16 sps:$4 sm:$0xff]   ;;  %v18282_v9 = vld [vmem:[#allocation6 + $0x1e48] ss:$16 sps:$4 sm:$0xff]   ;;  %v18285_v20 = vld [vmem:[#allocation6 + $0x2220] ss:$16 sps:$4 sm:$0xff]  }
 0x48d   : > { %v7993_v2 = vpop.f32.mrf.mxu0  ;;  %9599 = vmatprep.subr.bf16.mxu1 %v18272_v52  ;;  %v8042_v56 = vpop.f32.mrf.mxu1  ;;  %v18293_v52 = vld [vmem:[#allocation6 + $0x2204] ss:$16 sps:$4 sm:$0xff]   ;;  %v18296_v34 = vld [vmem:[#allocation6 + $0x1e0c] ss:$16 sps:$4 sm:$0xff]  }
 0x48e   : > { %9549 = vmatpush1.bf16.msra.mxu0 %v18267_v47  ;;  %v20641_v8 = vadd.f32 %v8042_v56, %v7991_v62  ;;  %v18290_v47 = vld [vmem:[#allocation6 + $0x1e2c] ss:$16 sps:$4 sm:$0xff]   ;;  %v18291_v62 = vld [vmem:[#allocation6 + $0x2200] ss:$16 sps:$4 sm:$0xff]   ;;  %v18294_v2 = vld [vmem:[#allocation6 + $0x1e08] ss:$16 sps:$4 sm:$0xff]  }
 0x48f   : > { %9550 = vmatprep.subr.bf16.mxu0 %v18275_v19  ;;  %v7994_v24 = vpop.f32.mrf.mxu0  ;;  %v8044_v28 = vpop.f32.mrf.mxu1  ;;  %v18288_v19 = vld [vmem:[#allocation6 + $0x1e28] ss:$16 sps:$4 sm:$0xff]   ;;  %v18305_v56 = vld [vmem:[#allocation6 + $0x23c4] ss:$16 sps:$4 sm:$0xff]  }
 0x490   : > { %9600 = vmatpush1.bf16.msra.mxu1 %v18270_v22  ;;  %v18299_v22 = vld [vmem:[#allocation6 + $0x23e4] ss:$16 sps:$4 sm:$0xff]   ;;  %v18303_v24 = vld [vmem:[#allocation6 + $0x23c0] ss:$16 sps:$4 sm:$0xff]   ;;  %v18308_v28 = vld [vmem:[#allocation6 + $0x1fcc] ss:$16 sps:$4 sm:$0xff]  }
 0x491   : > { %9601 = vmatprep.subr.bf16.mxu1 %v18278_v39  ;;  %v8045_v49 = vpop.f32.mrf.mxu1  ;;  %v18302_v39 = vld [vmem:[#allocation6 + $0x1fec] ss:$16 sps:$4 sm:$0xff]  }
 0x492   : > { %9551 = vmatpush1.bf16.msra.mxu0 %v18273_v13  ;;  %v18297_v13 = vld [vmem:[#allocation6 + $0x23e0] ss:$16 sps:$4 sm:$0xff]   ;;  %v18314_v49 = vld [vmem:[#allocation6 + $0x1fac] ss:$16 sps:$4 sm:$0xff]  }
 0x493   : > { %9552 = vmatprep.subr.bf16.mxu0 %v18281_v36  ;;  %v18300_v36 = vld [vmem:[#allocation6 + $0x1fe8] ss:$16 sps:$4 sm:$0xff]  }
 0x494   : > { %9602 = vmatpush1.bf16.msra.mxu1 %v18276_v43  ;;  %v18311_v43 = vld [vmem:[#allocation6 + $0x23a4] ss:$16 sps:$4 sm:$0xff]  }
 0x495   : > { %9603 = vmatprep.subr.bf16.mxu1 %v18284_v1  ;;  %v18309_v1 = vld [vmem:[#allocation6 + $0x23a0] ss:$16 sps:$4 sm:$0xff]  }
 0x496   : > { %9553 = vmatpush1.bf16.msra.mxu0 %v18279_v31  ;;  %v18306_v31 = vld [vmem:[#allocation6 + $0x1fc8] ss:$16 sps:$4 sm:$0xff]  }
 0x497   : > { %9554 = vmatprep.subr.bf16.mxu0 %v18287_v63  ;;  %v18317_v63 = vld [vmem:[#allocation6 + $0x2384] ss:$16 sps:$4 sm:$0xff]  }
 0x498   : > { %9604 = vmatpush1.bf16.msra.mxu1 %v18282_v9  ;;  %v18312_v9 = vld [vmem:[#allocation6 + $0x1fa8] ss:$16 sps:$4 sm:$0xff]  }
 0x499   : > { %9605 = vmatprep.subr.bf16.mxu1 %v18290_v47  ;;  %v18320_v47 = vld [vmem:[#allocation6 + $0x1f8c] ss:$16 sps:$4 sm:$0xff]  }
 0x49a   : > { %9555 = vmatpush1.bf16.msra.mxu0 %v18285_v20  ;;  %v18315_v20 = vld [vmem:[#allocation6 + $0x2380] ss:$16 sps:$4 sm:$0xff]  }
 0x49b   : > { %9556 = vmatprep.subr.bf16.mxu0 %v18293_v52  ;;  %v18323_v52 = vld [vmem:[#allocation6 + $0x2364] ss:$16 sps:$4 sm:$0xff]  }
 0x49c   : > { %9606 = vmatpush1.bf16.msra.mxu1 %v18288_v19  ;;  %v18318_v19 = vld [vmem:[#allocation6 + $0x1f88] ss:$16 sps:$4 sm:$0xff]  }
 0x49d   : > { %9607 = vmatprep.subr.bf16.mxu1 %v18296_v34  ;;  %v18326_v34 = vld [vmem:[#allocation6 + $0x1f6c] ss:$16 sps:$4 sm:$0xff]  }
 0x49e   : > { %9557 = vmatpush1.bf16.msra.mxu0 %v18291_v62  ;;  %v18321_v62 = vld [vmem:[#allocation6 + $0x2360] ss:$16 sps:$4 sm:$0xff]  }
 0x49f   : > { %9558 = vmatprep.subr.bf16.mxu0 %v18299_v22  ;;  %v18332_v22 = vld [vmem:[#allocation6 + $0x2344] ss:$16 sps:$4 sm:$0xff]  }
 0x4a0   : > { %9608 = vmatpush1.bf16.msra.mxu1 %v18294_v2  ;;  %v18324_v2 = vld [vmem:[#allocation6 + $0x1f68] ss:$16 sps:$4 sm:$0xff]  }
 0x4a1   : > { %9609 = vmatprep.subr.bf16.mxu1 %v18302_v39  ;;  %v18335_v39 = vld [vmem:[#allocation6 + $0x1f4c] ss:$16 sps:$4 sm:$0xff]  }
 0x4a2   : > { %9559 = vmatpush2.bf16.msra.mxu0 %v18297_v13  ;;  %v18330_v13 = vld [vmem:[#allocation6 + $0x2340] ss:$16 sps:$4 sm:$0xff]  }
 0x4a3   : > { %9560 = vmatprep.subr.bf16.mxu0 %v18305_v56  ;;  %v18339_v56 = vld [vmem:[#allocation6 + $0x2324] ss:$16 sps:$4 sm:$0xff]  }
 0x4a4   : > { %9610 = vmatpush2.bf16.msra.mxu1 %v18300_v36  ;;  %v18333_v36 = vld [vmem:[#allocation6 + $0x1f48] ss:$16 sps:$4 sm:$0xff]  }
 0x4a5   : > { %9611 = vmatprep.subr.bf16.mxu1 %v18308_v28  ;;  %v18342_v28 = vld [vmem:[#allocation6 + $0x1f2c] ss:$16 sps:$4 sm:$0xff]  }
 0x4a6   : > { %9561 = vmatpush2.bf16.msra.mxu0 %v18303_v24  ;;  %v18337_v24 = vld [vmem:[#allocation6 + $0x2320] ss:$16 sps:$4 sm:$0xff]  }
 0x4a7   : > { %9562 = vmatprep.subr.bf16.mxu0 %v18311_v43  ;;  %v18345_v43 = vld [vmem:[#allocation6 + $0x2304] ss:$16 sps:$4 sm:$0xff]  }
 0x4a8   : > { %9612 = vmatpush2.bf16.msra.mxu1 %v18306_v31  ;;  %v18340_v31 = vld [vmem:[#allocation6 + $0x1f28] ss:$16 sps:$4 sm:$0xff]  }
 0x4a9   : > { %9613 = vmatprep.subr.bf16.mxu1 %v18314_v49  ;;  %v18348_v49 = vld [vmem:[#allocation6 + $0x1f0c] ss:$16 sps:$4 sm:$0xff]  }
 0x4aa   : > { %9563 = vmatpush2.bf16.msra.mxu0 %v18309_v1  ;;  %v18343_v1 = vld [vmem:[#allocation6 + $0x2300] ss:$16 sps:$4 sm:$0xff]  }
 0x4ab   : > { %9564 = vmatprep.subr.bf16.mxu0 %v18317_v63  ;;  %v18353_v63 = vld [vmem:[#allocation6 + $0x20ec] ss:$16 sps:$4 sm:$0xff]  }
 0x4ac   : > { %9614 = vmatpush2.bf16.msra.mxu1 %v18312_v9  ;;  %v18346_v9 = vld [vmem:[#allocation6 + $0x1f08] ss:$16 sps:$4 sm:$0xff]  }
 0x4ad   : > { %9615 = vmatprep.subr.bf16.mxu1 %v18320_v47  ;;  %v18351_v47 = vld [vmem:[#allocation6 + $0x20e8] ss:$16 sps:$4 sm:$0xff]  }
 0x4ae   : > { %9565 = vmatpush2.bf16.msra.mxu0 %v18315_v20  ;;  %v20645_v20 = vcombine.low %v20621_v18, %v20623_v7  ;;  %v18357_v18 = vld [vmem:[#allocation6 + $0x20c8] ss:$16 sps:$4 sm:$0xff]   ;;  %v18362_v7 = vld [vmem:[#allocation6 + $0x22cc] ss:$16 sps:$4 sm:$0xff]  }
 0x4af   : > { %9566 = vmatprep.subr.bf16.mxu0 %v18323_v52  ;;  %v18356_v52 = vld [vmem:[#allocation6 + $0x22ec] ss:$16 sps:$4 sm:$0xff]  }
 0x4b0   : > { %9616 = vmatpush2.bf16.msra.mxu1 %v18318_v19  ;;  %v18359_v19 = vld [vmem:[#allocation6 + $0x20cc] ss:$16 sps:$4 sm:$0xff]  }
 0x4b1   : > { %9617 = vmatprep.subr.bf16.mxu1 %v18326_v34 }
 0x4b2   : > { %9567 = vmatpush2.bf16.msra.mxu0 %v18321_v62  ;;  %v19352_v62 = vld [vmem:[#allocation2 + $0x38] sm:$0xff] }
 0x4b3   : > { %9568 = vmatprep.subr.bf16.mxu0 %v18332_v22  ;;  %v20647_v34 = vcombine.high %v19352_v62, %v19352_v62 }
 0x4b4   : > { %9618 = vmatpush2.bf16.msra.mxu1 %v18324_v2  ;;  %v18354_v2 = vld [vmem:[#allocation6 + $0x22e8] ss:$16 sps:$4 sm:$0xff]  }
 0x4b5   : > { %9619 = vmatprep.subr.bf16.mxu1 %v18335_v39 }
 0x4b6   : > { %9569 = vmatpush2.bf16.msra.mxu0 %v18330_v13 }
 0x4b7   : > { %9570 = vmatprep.subr.bf16.mxu0 %v18339_v56  ;;  %v18367_v56 = vld [vmem:[#allocation6 + $0x20ac] ss:$16 sps:$4 sm:$0xff]  }
 0x4b8   : > { %9620 = vmatpush2.bf16.msra.mxu1 %v18333_v36 }
 0x4b9   : > { %9621 = vmatprep.subr.bf16.mxu1 %v18342_v28 }
 0x4ba   : > { %9571 = vmatpush2.bf16.msra.mxu0 %v18337_v24 }
 0x4bb   : > { %9572 = vmatprep.subr.bf16.mxu0 %v18345_v43  ;;  %v18360_v43 = vld [vmem:[#allocation6 + $0x22c8] ss:$16 sps:$4 sm:$0xff]  }
 0x4bc   : > { %9622 = vmatpush2.bf16.msra.mxu1 %v18340_v31  ;;  %v20659_v31 = vcombine.low %v19352_v62, %v19352_v62  ;;  %v18371_v62 = vld [vmem:[#allocation6 + $0x2088] ss:$16 sps:$4 sm:$0xff]  }
 0x4bd   : > { %9623 = vmatprep.subr.bf16.mxu1 %v18348_v49 }
 0x4be   : > { %9573 = vmatpush2.bf16.msra.mxu0 %v18343_v1 }
 0x4bf   : > { %9644 = vmatprep.subr.bf16.mxu0 %v18353_v63  ;;  %v18365_v63 = vld [vmem:[#allocation6 + $0x20a8] ss:$16 sps:$4 sm:$0xff]  }
 0x4c0   : > { %9624 = vmatpush2.bf16.msra.mxu1 %v18346_v9 }
 0x4c1   : > { %v8081_v22 = vpop.f32.mrf.mxu0  ;;  %9575 = vmatmul.mubr.bf16.vlgmr.msra.gmra.mxu0 %v20645_v20  ;;  %9695 = vmatprep.subr.bf16.mxu1 %v18356_v52 }
 0x4c2   : > { %v8082_v13 = vadd.f32 %v8081_v22, %v20612_v5  ;;  %9645 = vmatpush1.bf16.msra.mxu0 %v18351_v47  ;;  %9584 = vmatprep.mubr.bf16.mxu0 %v20647_v34  ;;  %v18376_v22 = vld [vmem:[#allocation6 + $0x228c] ss:$16 sps:$4 sm:$0xff]  }
 0x4c3   : > { %v8083_v39 = vpop.f32.mrf.mxu0  ;;  %9646 = vmatprep.subr.bf16.mxu0 %v18359_v19  ;;  %v20655_v24 = vpop.f32.mrf.mxu1  ;;  %9626 = vmatmul.mubr.bf16.vlgmr.msra.gmra.mxu1 %v20599_v10  ;;  %v18370_v10 = vld [vmem:[#allocation6 + $0x22ac] ss:$16 sps:$4 sm:$0xff]  }
 0x4c4   : > { %v20653_v36 = vadd.f32 %v8082_v13, %v20511_v6  ;;  %v8084_v28 = vadd.f32 %v8083_v39, %v20617_v38  ;;  %9696 = vmatpush1.bf16.msra.mxu1 %v18354_v2  ;;  %9635 = vmatprep.mubr.bf16.mxu1 %v20601_v37  ;;  %v18373_v38 = vld [vmem:[#allocation6 + $0x208c] ss:$16 sps:$4 sm:$0xff]   ;;  %v18368_v37 = vld [vmem:[#allocation6 + $0x22a8] ss:$16 sps:$4 sm:$0xff]  }
 0x4c5   : > { %v8085_v5 = vpop.f32.mrf.mxu0  ;;  %v20665_v49 = vpop.f32.mrf.mxu1  ;;  %9697 = vmatprep.subr.bf16.mxu1 %v18362_v7  ;;  %v18379_v13 = vld [vmem:[#allocation6 + $0x206c] ss:$16 sps:$4 sm:$0xff]  }
 0x4c6   : > { %v20663_v1 = vadd.f32 %v8084_v28, %v20519_v30  ;;  %v8086_v6 = vadd.f32 %v8085_v5, %v20631_v53  ;;  %9647 = vmatpush1.bf16.msra.mxu0 %v18357_v18  ;;  %v18382_v28 = vld [vmem:[#allocation6 + $0x226c] ss:$16 sps:$4 sm:$0xff]  }
 0x4c7   : > { %v20668_v9 = vpop.f32.mrf.mxu0  ;;  %9648 = vmatprep.subr.bf16.mxu0 %v18367_v56  ;;  %v20673_v52 = vpop.f32.mrf.mxu1 }
 0x4c8   : > { %v20671_v47 = vadd.f32 %v8086_v6, %v20527_v15  ;;  %9698 = vmatpush1.bf16.msra.mxu1 %v18360_v43  ;;  %v18383_v6 = vld [vmem:[#allocation6 + $0x2048] ss:$16 sps:$4 sm:$0xff]  }
 0x4c9   : > { %v8091_v30 = vpop.f32.mrf.mxu0  ;;  %9585 = vmatmul.mubr.bf16.gmra.mxu0 %v20659_v31  ;;  %v20676_v19 = vpop.f32.mrf.mxu1  ;;  %9699 = vmatprep.subr.bf16.mxu1 %v18370_v10  ;;  %v18386_v10 = vld [vmem:[#allocation6 + $0x2248] ss:$16 sps:$4 sm:$0xff]  }
 0x4ca   : > { %v8092_v53 = vadd.f32 %v8091_v30, %v20638_v41  ;;  %9649 = vmatpush1.bf16.msra.mxu0 %v18365_v63  ;;  %9676 = vmatprep.mubr.bf16.mxu0 %v20579_v35  ;;  %v18374_v41 = vld [vmem:[#allocation6 + $0x2288] ss:$16 sps:$4 sm:$0xff]   ;;  %v18388_v63 = vld [vmem:[#allocation6 + $0x224c] ss:$16 sps:$4 sm:$0xff]  }
 0x4cb   : > { %v8093_v2 = vpop.f32.mrf.mxu0  ;;  %9650 = vmatprep.subr.bf16.mxu0 %v18373_v38  ;;  %v20684_v7 = vpop.f32.mrf.mxu1  ;;  %9636 = vmatmul.mubr.bf16.gmra.mxu1 %v20614_v42  ;;  %v18377_v35 = vld [vmem:[#allocation6 + $0x2068] ss:$16 sps:$4 sm:$0xff]   ;;  %v18394_v30 = vld [vmem:[#allocation6 + $0x222c] ss:$16 sps:$4 sm:$0xff]  }
 0x4cc   : > { %v20681_v15 = vadd.f32 %v8092_v53, %v20537_v59  ;;  %v8094_v18 = vadd.f32 %v8093_v2, %v20641_v8  ;;  %9700 = vmatpush1.bf16.msra.mxu1 %v18368_v37  ;;  %9727 = vmatprep.mubr.bf16.mxu1 %v20627_v26  ;;  %v18385_v8 = vld [vmem:[#allocation6 + $0x204c] ss:$16 sps:$4 sm:$0xff]   ;;  %v18380_v42 = vld [vmem:[#allocation6 + $0x2268] ss:$16 sps:$4 sm:$0xff]  }
 0x4cd   : > { %v8095_v39 = vpop.f32.mrf.mxu0  ;;  %9701 = vmatprep.subr.bf16.mxu1 %v18376_v22  ;;  %v20691_v59 = vpop.f32.mrf.mxu1  ;;  %v18389_v38 = vld [vmem:[#allocation6 + $0x2028] ss:$16 sps:$4 sm:$0xff]   ;;  %v18397_v37 = vld [vmem:[#allocation6 + $0x200c] ss:$16 sps:$4 sm:$0xff]  }
 0x4ce   : > { %v20689_v56 = vadd.f32 %v8094_v18, %v20545_v57  ;;  %9651 = vmatpush1.bf16.msra.mxu0 %v18371_v62  ;;  %v18391_v57 = vld [vmem:[#allocation6 + $0x202c] ss:$16 sps:$4 sm:$0xff]   ;;  %v18392_v53 = vld [vmem:[#allocation6 + $0x2228] ss:$16 sps:$4 sm:$0xff]  }
 0x4cf   : > { %9652 = vmatprep.subr.bf16.mxu0 %v18379_v13  ;;  %v8096_v5 = vpop.f32.mrf.mxu0  ;;  %v8146_v43 = vpop.f32.mrf.mxu1  ;;  %v18395_v62 = vld [vmem:[#allocation6 + $0x2008] ss:$16 sps:$4 sm:$0xff]   ;;  %v18400_v22 = vld [vmem:[#allocation6 + $0x220c] ss:$16 sps:$4 sm:$0xff]  }
 0x4d0   : > { %9702 = vmatpush1.bf16.msra.mxu1 %v18374_v41  ;;  %v18403_v2 = vld [vmem:[#allocation6 + $0x21ec] ss:$16 sps:$4 sm:$0xff]   ;;  %v18398_v13 = vld [vmem:[#allocation6 + $0x2208] ss:$16 sps:$4 sm:$0xff]  }
 0x4d1   : > { %9703 = vmatprep.subr.bf16.mxu1 %v18382_v28  ;;  %v8147_v26 = vpop.f32.mrf.mxu1  ;;  %v18401_v18 = vld [vmem:[#allocation6 + $0x21e8] ss:$16 sps:$4 sm:$0xff]   ;;  %v18406_v41 = vld [vmem:[#allocation6 + $0x23ec] ss:$16 sps:$4 sm:$0xff]  }
 0x4d2   : > { %9653 = vmatpush1.bf16.msra.mxu0 %v18377_v35  ;;  %v18409_v39 = vld [vmem:[#allocation6 + $0x21cc] ss:$16 sps:$4 sm:$0xff]   ;;  %v18404_v35 = vld [vmem:[#allocation6 + $0x23e8] ss:$16 sps:$4 sm:$0xff]  }
 0x4d3   : > { %9654 = vmatprep.subr.bf16.mxu0 %v18385_v8  ;;  %v18407_v28 = vld [vmem:[#allocation6 + $0x21c8] ss:$16 sps:$4 sm:$0xff]   ;;  %v18412_v8 = vld [vmem:[#allocation6 + $0x23cc] ss:$16 sps:$4 sm:$0xff]  }
 0x4d4   : > { %9704 = vmatpush1.bf16.msra.mxu1 %v18380_v42  ;;  %v18415_v5 = vld [vmem:[#allocation6 + $0x21ac] ss:$16 sps:$4 sm:$0xff]   ;;  %v18410_v43 = vld [vmem:[#allocation6 + $0x23c8] ss:$16 sps:$4 sm:$0xff]  }
 0x4d5   : > { %9705 = vmatprep.subr.bf16.mxu1 %v18388_v63  ;;  %v18413_v42 = vld [vmem:[#allocation6 + $0x21a8] ss:$16 sps:$4 sm:$0xff]   ;;  %v18421_v63 = vld [vmem:[#allocation6 + $0x218c] ss:$16 sps:$4 sm:$0xff]  }
 0x4d6   : > { %9655 = vmatpush1.bf16.msra.mxu0 %v18383_v6  ;;  %v18418_v6 = vld [vmem:[#allocation6 + $0x23ac] ss:$16 sps:$4 sm:$0xff]   ;;  %v18416_v26 = vld [vmem:[#allocation6 + $0x23a8] ss:$16 sps:$4 sm:$0xff]  }
 0x4d7   : > { %9656 = vmatprep.subr.bf16.mxu0 %v18391_v57  ;;  %v18419_v57 = vld [vmem:[#allocation6 + $0x2188] ss:$16 sps:$4 sm:$0xff]  }
 0x4d8   : > { %9706 = vmatpush1.bf16.msra.mxu1 %v18386_v10  ;;  %v18424_v10 = vld [vmem:[#allocation6 + $0x238c] ss:$16 sps:$4 sm:$0xff]  }
 0x4d9   : > { %9707 = vmatprep.subr.bf16.mxu1 %v18394_v30  ;;  %v18422_v30 = vld [vmem:[#allocation6 + $0x2388] ss:$16 sps:$4 sm:$0xff]  }
 0x4da   : > { %9657 = vmatpush1.bf16.msra.mxu0 %v18389_v38  ;;  %v18427_v38 = vld [vmem:[#allocation6 + $0x216c] ss:$16 sps:$4 sm:$0xff]  }
 0x4db   : > { %9658 = vmatprep.subr.bf16.mxu0 %v18397_v37  ;;  %v18425_v37 = vld [vmem:[#allocation6 + $0x2168] ss:$16 sps:$4 sm:$0xff]  }
 0x4dc   : > { %9708 = vmatpush1.bf16.msra.mxu1 %v18392_v53  ;;  %v18430_v53 = vld [vmem:[#allocation6 + $0x236c] ss:$16 sps:$4 sm:$0xff]  }
 0x4dd   : > { %9709 = vmatprep.subr.bf16.mxu1 %v18400_v22  ;;  %v18428_v22 = vld [vmem:[#allocation6 + $0x2368] ss:$16 sps:$4 sm:$0xff]  }
 0x4de   : > { %9659 = vmatpush1.bf16.msra.mxu0 %v18395_v62  ;;  %v18433_v62 = vld [vmem:[#allocation6 + $0x214c] ss:$16 sps:$4 sm:$0xff]  }
 0x4df   : > { %9660 = vmatprep.subr.bf16.mxu0 %v18403_v2  ;;  %v18431_v2 = vld [vmem:[#allocation6 + $0x2148] ss:$16 sps:$4 sm:$0xff]  }
 0x4e0   : > { %9710 = vmatpush1.bf16.msra.mxu1 %v18398_v13  ;;  %v18436_v13 = vld [vmem:[#allocation6 + $0x234c] ss:$16 sps:$4 sm:$0xff]  }
 0x4e1   : > { %9711 = vmatprep.subr.bf16.mxu1 %v18406_v41  ;;  %v18434_v41 = vld [vmem:[#allocation6 + $0x2348] ss:$16 sps:$4 sm:$0xff]  }
 0x4e2   : > { %9661 = vmatpush2.bf16.msra.mxu0 %v18401_v18  ;;  %v18439_v18 = vld [vmem:[#allocation6 + $0x212c] ss:$16 sps:$4 sm:$0xff]  }
 0x4e3   : > { %9662 = vmatprep.subr.bf16.mxu0 %v18409_v39  ;;  %v18437_v39 = vld [vmem:[#allocation6 + $0x2128] ss:$16 sps:$4 sm:$0xff]  }
 0x4e4   : > { %9712 = vmatpush2.bf16.msra.mxu1 %v18404_v35  ;;  %v18442_v35 = vld [vmem:[#allocation6 + $0x232c] ss:$16 sps:$4 sm:$0xff]  }
 0x4e5   : > { %9713 = vmatprep.subr.bf16.mxu1 %v18412_v8  ;;  %v18440_v8 = vld [vmem:[#allocation6 + $0x2328] ss:$16 sps:$4 sm:$0xff]  }
 0x4e6   : > { %9663 = vmatpush2.bf16.msra.mxu0 %v18407_v28  ;;  %v18445_v28 = vld [vmem:[#allocation6 + $0x210c] ss:$16 sps:$4 sm:$0xff]  }
 0x4e7   : > { %9664 = vmatprep.subr.bf16.mxu0 %v18415_v5  ;;  %v18443_v5 = vld [vmem:[#allocation6 + $0x2108] ss:$16 sps:$4 sm:$0xff]  }
 0x4e8   : > { %9714 = vmatpush2.bf16.msra.mxu1 %v18410_v43  ;;  %v18448_v43 = vld [vmem:[#allocation6 + $0x230c] ss:$16 sps:$4 sm:$0xff]  }
 0x4e9   : > { %9715 = vmatprep.subr.bf16.mxu1 %v18418_v6  ;;  %v18446_v6 = vld [vmem:[#allocation6 + $0x2308] ss:$16 sps:$4 sm:$0xff]  }
 0x4ea   : > { %9665 = vmatpush2.bf16.msra.mxu0 %v18413_v42  ;;  %v18451_v42 = vld [vmem:[#allocation6 + $0x24e4] ss:$16 sps:$4 sm:$0xff]  }
 0x4eb   : > { %9666 = vmatprep.subr.bf16.mxu0 %v18421_v63  ;;  %v18454_v63 = vld [vmem:[#allocation6 + $0x26e4] ss:$16 sps:$4 sm:$0xff]  }
 0x4ec   : > { %9716 = vmatpush2.bf16.msra.mxu1 %v18416_v26  ;;  %v20693_v26 = vld [vmem:[#allocation2 + $0x18] sm:$0xcc] }
 0x4ed   : > { %9717 = vmatprep.subr.bf16.mxu1 %v18424_v10  ;;  %v20697_v10 = vld [vmem:[#allocation2 + $0x20] sm:$0xff] }
 0x4ee   : > { %9667 = vmatpush2.bf16.msra.mxu0 %v18419_v57  ;;  %v20695_v57 = vld [vmem:[#allocation2 + $0x8] sm:$0xff] }
 0x4ef   : > { %9668 = vmatprep.subr.bf16.mxu0 %v18427_v38  ;;  %v20699_v38 = vld [vmem:[#allocation2 + $0x60] sm:$0x33] }
 0x4f0   : > { %9718 = vmatpush2.bf16.msra.mxu1 %v18422_v30  ;;  %v18449_v30 = vld [vmem:[#allocation6 + $0x24e0] ss:$16 sps:$4 sm:$0xff]  }
 0x4f1   : > { %9719 = vmatprep.subr.bf16.mxu1 %v18430_v53  ;;  %v20701_v53 = vld [vmem:[#allocation2 + $0x50] sm:$0xcc] }
 0x4f2   : > { %9669 = vmatpush2.bf16.msra.mxu0 %v18425_v37  ;;  %v18457_v37 = vld [vmem:[#allocation6 + $0x24c4] ss:$16 sps:$4 sm:$0xff]  }
 0x4f3   : > { %9670 = vmatprep.subr.bf16.mxu0 %v18433_v62  ;;  %v20703_v62 = vld [vmem:[#allocation2 + $0x48] sm:$0xff] }
 0x4f4   : > { %9720 = vmatpush2.bf16.msra.mxu1 %v18428_v22  ;;  %v20705_v22 = vld [vmem:[#allocation2 + $0x10] sm:$0xff] }
 0x4f5   : > { %9721 = vmatprep.subr.bf16.mxu1 %v18436_v13  ;;  %v20711_v13 = vcombine.high %v20693_v26, %v20695_v57 }
 0x4f6   : > { %9671 = vmatpush2.bf16.msra.mxu0 %v18431_v2  ;;  %v20707_v2 = vld [vmem:[#allocation2 + $0x70] sm:$0x33] }
 0x4f7   : > { %9672 = vmatprep.subr.bf16.mxu0 %v18439_v18  ;;  %v15957_v18 = vcombine.high %v20697_v10, %v20699_v38 }
 0x4f8   : > { %9722 = vmatpush2.bf16.msra.mxu1 %v18434_v41 }
 0x4f9   : > { %9723 = vmatprep.subr.bf16.mxu1 %v18442_v35 }
 0x4fa   : > { %9673 = vmatpush2.bf16.msra.mxu0 %v18437_v39  ;;  %v18452_v39 = vld [vmem:[#allocation6 + $0x26e0] ss:$16 sps:$4 sm:$0xff]  }
 0x4fb   : > { %9674 = vmatprep.subr.bf16.mxu0 %v18445_v28  ;;  %v18455_v28 = vld [vmem:[#allocation6 + $0x24c0] ss:$16 sps:$4 sm:$0xff]  }
 0x4fc   : > { %9724 = vmatpush2.bf16.msra.mxu1 %v18440_v8  ;;  %v18460_v8 = vld [vmem:[#allocation6 + $0x26c4] ss:$16 sps:$4 sm:$0xff]  }
 0x4fd   : > { %9725 = vmatprep.subr.bf16.mxu1 %v18448_v43  ;;  %v15959_v43 = vcombine.high %v20705_v22, %v20707_v2 }
 0x4fe   : > { %9675 = vmatpush2.bf16.msra.mxu0 %v18443_v5  ;;  %v20719_v5 = vcombine.high %v20701_v53, %v20703_v62 }
 0x4ff   : > { %11002 = vmatprep.subr.bf16.mxu0 %v18451_v42 }
 0x500   : > { %9726 = vmatpush2.bf16.msra.mxu1 %v18446_v6  ;;  %v18463_v6 = vld [vmem:[#allocation6 + $0x24a4] ss:$16 sps:$4 sm:$0xff]  }
 0x501   : > { %v8183_v41 = vpop.f32.mrf.mxu0  ;;  %9677 = vmatmul.mubr.bf16.vlgmr.msra.gmra.mxu0 %v20605_v40  ;;  %11053 = vmatprep.subr.bf16.mxu1 %v18454_v63  ;;  %v10015_v63 = vrot.slane %v20711_v13, 2 }
 0x502   : > { %v8184_v35 = vadd.f32 %v8183_v41, %v20655_v24  ;;  %11003 = vmatpush1.bf16.msra.mxu0 %v18449_v30  ;;  %9686 = vmatprep.mubr.bf16.mxu0 %v20608_v3  ;;  %v20727_v30 = vrot.slane %v15957_v18, 2 }
 0x503   : > { %v8185_v42 = vpop.f32.mrf.mxu0  ;;  %11004 = vmatprep.subr.bf16.mxu0 %v18457_v37  ;;  %v8234_v40 = vpop.f32.mrf.mxu1  ;;  %9728 = vmatmul.mubr.bf16.vlgmr.msra.gmra.mxu1 %v20645_v20  ;;  %v18466_v20 = vld [vmem:[#allocation6 + $0x26a4] ss:$16 sps:$4 sm:$0xff]  }
 0x504   : > { %v8186_v24 = vadd.f32 %v8185_v42, %v20665_v49  ;;  %v8235_v41 = vadd.f32 %v8234_v40, %v8184_v35  ;;  %11054 = vmatpush1.bf16.msra.mxu1 %v18452_v39  ;;  %9737 = vmatprep.mubr.bf16.mxu1 %v20647_v34  ;;  %v10021_v49 = vrot.slane %v20719_v5, 2  ;;  %v20732_v42 = vrot.slane %v15959_v43, 2  ;;  %v18469_v40 = vld [vmem:[#allocation6 + $0x2484] ss:$16 sps:$4 sm:$0xff]  }
 0x505   : > { %v8187_v14 = vpop.f32.mrf.mxu0  ;;  %v8236_v37 = vpop.f32.mrf.mxu1  ;;  %11055 = vmatprep.subr.bf16.mxu1 %v18460_v8 }
 0x506   : > { %v8188_v3 = vadd.f32 %v8187_v14, %v20673_v52  ;;  %11005 = vmatpush1.bf16.msra.mxu0 %v18455_v28  ;;  %v20735_v18 = vadd.f32 %v8235_v41, %v20557_v55  ;;  %v8237_v39 = vadd.f32 %v8236_v37, %v8186_v24  ;;  %v20740_v14 = vsel %vm10011_vm15, %v10015_v63, %v20727_v30  ;;  %v18464_v55 = vld [vmem:[#allocation6 + $0x26a0] ss:$16 sps:$4 sm:$0xff]  }
 0x507   : > { %v8189_v35 = vpop.f32.mrf.mxu0  ;;  %11006 = vmatprep.subr.bf16.mxu0 %v18463_v6  ;;  %v8238_v34 = vpop.f32.mrf.mxu1  ;;  %v18467_v24 = vld [vmem:[#allocation6 + $0x2480] ss:$16 sps:$4 sm:$0xff]   ;;  %v20749_v63 = vsel %vm10011_vm15, %v10021_v49, %v20732_v42  ;;  %v18478_v49 = vld [vmem:[#allocation6 + $0x2664] ss:$16 sps:$4 sm:$0xff]  }
 0x508   : > { %v8190_v45 = vadd.f32 %v8189_v35, %v20676_v19  ;;  %v20743_v52 = vadd.f32 %v8237_v39, %v20570_v27  ;;  %v8239_v28 = vadd.f32 %v8238_v34, %v8188_v3  ;;  %11056 = vmatpush1.bf16.msra.mxu1 %v18458_v17  ;;  %v18472_v19 = vld [vmem:[#allocation6 + $0x2684] ss:$16 sps:$4 sm:$0xff]   ;;  %v18470_v3 = vld [vmem:[#allocation6 + $0x2680] ss:$16 sps:$4 sm:$0xff]  }
 0x509   : > { %v8193_v8 = vpop.f32.mrf.mxu0  ;;  %9687 = vmatmul.mubr.bf16.gmra.mxu0 %v20629_v61  ;;  %v8240_v43 = vpop.f32.mrf.mxu1  ;;  %11057 = vmatprep.subr.bf16.mxu1 %v18466_v20  ;;  %v18475_v61 = vld [vmem:[#allocation6 + $0x2464] ss:$16 sps:$4 sm:$0xff]  }
 0x50a   : > { %v8194_v6 = vadd.f32 %v8193_v8, %v20684_v7  ;;  %11007 = vmatpush1.bf16.msra.mxu0 %v18461_v11  ;;  %v20752_v27 = vadd.f32 %v8239_v28, %v20585_v0  ;;  %v20754_v41 = vadd.f32 %v8240_v43, %v8190_v45  ;;  %11034 = vmatprep.mubr.bf16.mxu0 %v20740_v14  ;;  %v18473_v45 = vld [vmem:[#allocation6 + $0x2460] ss:$16 sps:$4 sm:$0xff]  }
 0x50b   : > { %v8195_v17 = vpop.f32.mrf.mxu0  ;;  %11008 = vmatprep.subr.bf16.mxu0 %v18469_v40  ;;  %v8244_v37 = vpop.f32.mrf.mxu1  ;;  %9738 = vmatmul.mubr.bf16.gmra.mxu1 %v20659_v31  ;;  %v18476_v28 = vld [vmem:[#allocation6 + $0x2660] ss:$16 sps:$4 sm:$0xff]  }
 0x50c   : > { %v8196_v7 = vadd.f32 %v8195_v17, %v20691_v59  ;;  %11058 = vmatpush1.bf16.msra.mxu1 %v18464_v55  ;;  %v8245_v11 = vadd.f32 %v8244_v37, %v8194_v6  ;;  %11085 = vmatprep.mubr.bf16.mxu1 %v20749_v63  ;;  %v18481_v59 = vld [vmem:[#allocation6 + $0x2444] ss:$16 sps:$4 sm:$0xff]   ;;  %v18479_v8 = vld [vmem:[#allocation6 + $0x2440] ss:$16 sps:$4 sm:$0xff]  }
 0x50d   : > { %v8197_v20 = vpop.f32.mrf.mxu0  ;;  %v8246_v0 = vpop.f32.mrf.mxu1  ;;  %11059 = vmatprep.subr.bf16.mxu1 %v18472_v19  ;;  %v18484_v55 = vld [vmem:[#allocation6 + $0x2644] ss:$16 sps:$4 sm:$0xff]  }
 0x50e   : > { %11009 = vmatpush1.bf16.msra.mxu0 %v18467_v24  ;;  %v20761_v39 = vadd.f32 %v8245_v11, %v20592_v23  ;;  %v8247_v35 = vadd.f32 %v8246_v0, %v8196_v7  ;;  %v18487_v6 = vld [vmem:[#allocation6 + $0x2424] ss:$16 sps:$4 sm:$0xff]   ;;  %v18482_v23 = vld [vmem:[#allocation6 + $0x2640] ss:$16 sps:$4 sm:$0xff]  }
 0x50f   : > { %11010 = vmatprep.subr.bf16.mxu0 %v18475_v61  ;;  %v8198_v40 = vpop.f32.mrf.mxu0  ;;  %v8248_v34 = vpop.f32.mrf.mxu1  ;;  %v18485_v24 = vld [vmem:[#allocation6 + $0x2420] ss:$16 sps:$4 sm:$0xff]   ;;  %v18490_v19 = vld [vmem:[#allocation6 + $0x2624] ss:$16 sps:$4 sm:$0xff]  }
 0x510   : > { %v20764_v31 = vadd.f32 %v8247_v35, %v20595_v58  ;;  %11060 = vmatpush1.bf16.msra.mxu1 %v18470_v3  ;;  %v18493_v17 = vld [vmem:[#allocation6 + $0x2404] ss:$16 sps:$4 sm:$0xff]   ;;  %v18488_v58 = vld [vmem:[#allocation6 + $0x2620] ss:$16 sps:$4 sm:$0xff]  }
 0x511   : > { %11061 = vmatprep.subr.bf16.mxu1 %v18478_v49  ;;  %v8249_v43 = vpop.f32.mrf.mxu1  ;;  %v18491_v61 = vld [vmem:[#allocation6 + $0x2400] ss:$16 sps:$4 sm:$0xff]   ;;  %v18496_v7 = vld [vmem:[#allocation6 + $0x2604] ss:$16 sps:$4 sm:$0xff]  }
 0x512   : > { %21462 = vst [vmem:[#allocation27_spill] sm:$0xff] %v20764_v31  ;;  %11011 = vmatpush1.bf16.msra.mxu0 %v18473_v45  ;;  %v18499_v37 = vld [vmem:[#allocation6 + $0x25e4] ss:$16 sps:$4 sm:$0xff]   ;;  %v18494_v11 = vld [vmem:[#allocation6 + $0x2600] ss:$16 sps:$4 sm:$0xff]  }
 0x513   : > { %11012 = vmatprep.subr.bf16.mxu0 %v18481_v59  ;;  %v18497_v3 = vld [vmem:[#allocation6 + $0x25e0] ss:$16 sps:$4 sm:$0xff]   ;;  %v18502_v20 = vld [vmem:[#allocation6 + $0x27e4] ss:$16 sps:$4 sm:$0xff]   ;;  %v18576_v31 = vld [vmem:[#allocation6 + $0x2468] ss:$16 sps:$4 sm:$0xff]  }
 0x514   : > { %11062 = vmatpush1.bf16.msra.mxu1 %v18476_v28  ;;  %v18505_v0 = vld [vmem:[#allocation6 + $0x25c4] ss:$16 sps:$4 sm:$0xff]   ;;  %v18500_v45 = vld [vmem:[#allocation6 + $0x27e0] ss:$16 sps:$4 sm:$0xff]  }
 0x515   : > { %11063 = vmatprep.subr.bf16.mxu1 %v18484_v55  ;;  %v18503_v49 = vld [vmem:[#allocation6 + $0x25c0] ss:$16 sps:$4 sm:$0xff]   ;;  %v18508_v35 = vld [vmem:[#allocation6 + $0x27c4] ss:$16 sps:$4 sm:$0xff]  }
 0x516   : > { %11013 = vmatpush1.bf16.msra.mxu0 %v18479_v8  ;;  %v18511_v59 = vld [vmem:[#allocation6 + $0x25a4] ss:$16 sps:$4 sm:$0xff]   ;;  %v18506_v40 = vld [vmem:[#allocation6 + $0x27c0] ss:$16 sps:$4 sm:$0xff]  }
 0x517   : > { %11014 = vmatprep.subr.bf16.mxu0 %v18487_v6  ;;  %v18509_v34 = vld [vmem:[#allocation6 + $0x25a0] ss:$16 sps:$4 sm:$0xff]   ;;  %v18514_v28 = vld [vmem:[#allocation6 + $0x27a4] ss:$16 sps:$4 sm:$0xff]  }
 0x518   : > { %11064 = vmatpush1.bf16.msra.mxu1 %v18482_v23  ;;  %v18517_v8 = vld [vmem:[#allocation6 + $0x2584] ss:$16 sps:$4 sm:$0xff]   ;;  %v18512_v55 = vld [vmem:[#allocation6 + $0x27a0] ss:$16 sps:$4 sm:$0xff]  }
 0x519   : > { %11065 = vmatprep.subr.bf16.mxu1 %v18490_v19  ;;  %v18515_v43 = vld [vmem:[#allocation6 + $0x2580] ss:$16 sps:$4 sm:$0xff]   ;;  %v18520_v6 = vld [vmem:[#allocation6 + $0x2784] ss:$16 sps:$4 sm:$0xff]  }
 0x51a   : > { %11015 = vmatpush1.bf16.msra.mxu0 %v18485_v24  ;;  %v18523_v23 = vld [vmem:[#allocation6 + $0x2564] ss:$16 sps:$4 sm:$0xff]   ;;  %v18518_v24 = vld [vmem:[#allocation6 + $0x2780] ss:$16 sps:$4 sm:$0xff]  }
 0x51b   : > { %11016 = vmatprep.subr.bf16.mxu0 %v18493_v17  ;;  %v18521_v19 = vld [vmem:[#allocation6 + $0x2560] ss:$16 sps:$4 sm:$0xff]   ;;  %v18526_v17 = vld [vmem:[#allocation6 + $0x2764] ss:$16 sps:$4 sm:$0xff]  }
 0x51c   : > { %11066 = vmatpush1.bf16.msra.mxu1 %v18488_v58  ;;  %v18529_v58 = vld [vmem:[#allocation6 + $0x2544] ss:$16 sps:$4 sm:$0xff]  }
 0x51d   : > { %11067 = vmatprep.subr.bf16.mxu1 %v18496_v7  ;;  %v18527_v7 = vld [vmem:[#allocation6 + $0x2540] ss:$16 sps:$4 sm:$0xff]  }
 0x51e   : > { %11017 = vmatpush1.bf16.msra.mxu0 %v18491_v61  ;;  %v18524_v61 = vld [vmem:[#allocation6 + $0x2760] ss:$16 sps:$4 sm:$0xff]  }
 0x51f   : > { %11018 = vmatprep.subr.bf16.mxu0 %v18499_v37  ;;  %v18532_v37 = vld [vmem:[#allocation6 + $0x2744] ss:$16 sps:$4 sm:$0xff]  }
 0x520   : > { %11068 = vmatpush1.bf16.msra.mxu1 %v18494_v11  ;;  %v18535_v11 = vld [vmem:[#allocation6 + $0x2524] ss:$16 sps:$4 sm:$0xff]  }
 0x521   : > { %11069 = vmatprep.subr.bf16.mxu1 %v18502_v20  ;;  %v18533_v20 = vld [vmem:[#allocation6 + $0x2520] ss:$16 sps:$4 sm:$0xff]  }
 0x522   : > { %11019 = vmatpush2.bf16.msra.mxu0 %v18497_v3  ;;  %v18530_v3 = vld [vmem:[#allocation6 + $0x2740] ss:$16 sps:$4 sm:$0xff]  }
 0x523   : > { %11020 = vmatprep.subr.bf16.mxu0 %v18505_v0  ;;  %v18538_v0 = vld [vmem:[#allocation6 + $0x2724] ss:$16 sps:$4 sm:$0xff]  }
 0x524   : > { %11070 = vmatpush2.bf16.msra.mxu1 %v18500_v45  ;;  %v20768_v45 = vcombine.low %v20693_v26, %v20695_v57 }
 0x525   : > { %11071 = vmatprep.subr.bf16.mxu1 %v18508_v35  ;;  %v18541_v35 = vld [vmem:[#allocation6 + $0x2504] ss:$16 sps:$4 sm:$0xff]  }
 0x526   : > { %11021 = vmatpush2.bf16.msra.mxu0 %v18503_v49  ;;  %21463 = vst [vmem:[#allocation28_spill] sm:$0xff] %v20768_v45  ;;  %v15956_v49 = vcombine.low %v20697_v10, %v20699_v38  ;;  %v10012_v57 = vrot.slane %v20768_v45, 2  ;;  %v18551_v10 = vld [vmem:[#allocation6 + $0x28e4] ss:$16 sps:$4 sm:$0xff]   ;;  %v18542_v38 = vld [vmem:[#allocation6 + $0x2700] ss:$16 sps:$4 sm:$0xff]  }
 0x527   : > { %11022 = vmatprep.subr.bf16.mxu0 %v18511_v59  ;;  %v18536_v59 = vld [vmem:[#allocation6 + $0x2720] ss:$16 sps:$4 sm:$0xff]  }
 0x528   : > { %11072 = vmatpush2.bf16.msra.mxu1 %v18506_v40  ;;  %v20774_v40 = vcombine.low %v20701_v53, %v20703_v62  ;;  %v20778_v26 = vrot.slane %v15956_v49, 2  ;;  %v20786_v62 = vld [vmem:[#allocation2 + $0x40] sm:$0xff] }
 0x529   : > { %11073 = vmatprep.subr.bf16.mxu1 %v18514_v28  ;;  %v18539_v28 = vld [vmem:[#allocation6 + $0x2500] ss:$16 sps:$4 sm:$0xff]  }
 0x52a   : > { %11023 = vmatpush2.bf16.msra.mxu0 %v18509_v34  ;;  %21464 = vst [vmem:[#allocation29_spill] sm:$0xff] %v20774_v40  ;;  %v15958_v34 = vcombine.low %v20705_v22, %v20707_v2  ;;  %v10018_v53 = vrot.slane %v20774_v40, 2  ;;  %v20788_v22 = vld [vmem:[#allocation2 + $0x38] sm:$0xff]  ;;  %v20790_v2 = vld [vmem:[#allocation2 + $0x28] sm:$0x33] }
 0x52b   : > { %11024 = vmatprep.subr.bf16.mxu0 %v18517_v8  ;;  %v18544_v8 = vld [vmem:[#allocation6 + $0x2704] ss:$16 sps:$4 sm:$0xff]  }
 0x52c   : > { %11074 = vmatpush2.bf16.msra.mxu1 %v18512_v55  ;;  %v20781_v55 = vld [vmem:[#allocation2 + $0x68] sm:$0xcc] }
 0x52d   : > { %11075 = vmatprep.subr.bf16.mxu1 %v18520_v6  ;;  %v20794_v6 = vsel %vm10011_vm15, %v10012_v57, %v20778_v26 }
 0x52e   : > { %11025 = vmatpush2.bf16.msra.mxu0 %v18515_v43  ;;  %v20783_v43 = vrot.slane %v15958_v34, 2 }
 0x52f   : > { %11026 = vmatprep.subr.bf16.mxu0 %v18523_v23  ;;  %v18549_v23 = vld [vmem:[#allocation6 + $0x28e0] ss:$16 sps:$4 sm:$0xff]  }
 0x530   : > { %11076 = vmatpush2.bf16.msra.mxu1 %v18518_v24  ;;  %v18554_v24 = vld [vmem:[#allocation6 + $0x24ec] ss:$16 sps:$4 sm:$0xff]  }
 0x531   : > { %11077 = vmatprep.subr.bf16.mxu1 %v18526_v17  ;;  %v20798_v17 = vcombine.high %v20781_v55, %v20786_v62 }
 0x532   : > { %11027 = vmatpush2.bf16.msra.mxu0 %v18521_v19  ;;  %v18557_v19 = vld [vmem:[#allocation6 + $0x28c4] ss:$16 sps:$4 sm:$0xff]  }
 0x533   : > { %11028 = vmatprep.subr.bf16.mxu0 %v18529_v58  ;;  %21465 = vst [vmem:[#allocation30_spill] sm:$0xff] %v20798_v17  ;;  %v15961_v58 = vcombine.high %v20788_v22, %v20790_v2 }
 0x534   : > { %11078 = vmatpush2.bf16.msra.mxu1 %v18524_v61 }
 0x535   : > { %11079 = vmatprep.subr.bf16.mxu1 %v18532_v37  ;;  %v18552_v37 = vld [vmem:[#allocation6 + $0x24e8] ss:$16 sps:$4 sm:$0xff]  }
 0x536   : > { %11029 = vmatpush2.bf16.msra.mxu0 %v18527_v7  ;;  %v20805_v7 = vsel %vm10011_vm15, %v10018_v53, %v20783_v43 }
 0x537   : > { %11030 = vmatprep.subr.bf16.mxu0 %v18535_v11  ;;  %v18555_v11 = vld [vmem:[#allocation6 + $0x28c0] ss:$16 sps:$4 sm:$0xff]  }
 0x538   : > { %11080 = vmatpush2.bf16.msra.mxu1 %v18530_v3  ;;  %v18560_v3 = vld [vmem:[#allocation6 + $0x24cc] ss:$16 sps:$4 sm:$0xff]  }
 0x539   : > { %11081 = vmatprep.subr.bf16.mxu1 %v18538_v0  ;;  %v18563_v0 = vld [vmem:[#allocation6 + $0x28a4] ss:$16 sps:$4 sm:$0xff]  }
 0x53a   : > { %11031 = vmatpush2.bf16.msra.mxu0 %v18533_v20 }
 0x53b   : > { %11032 = vmatprep.subr.bf16.mxu0 %v18541_v35  ;;  %v10027_v35 = vrot.slane %v20798_v17, 2 }
 0x53c   : > { %11082 = vmatpush2.bf16.msra.mxu1 %v18536_v59  ;;  %v20810_v59 = vrot.slane %v15961_v58, 2 }
 0x53d   : > { %11083 = vmatprep.subr.bf16.mxu1 %v18544_v8  ;;  %v18558_v8 = vld [vmem:[#allocation6 + $0x24c8] ss:$16 sps:$4 sm:$0xff]  }
 0x53e   : > { %11033 = vmatpush2.bf16.msra.mxu0 %v18539_v28  ;;  %v20819_v58 = vsel %vm10011_vm15, %v10027_v35, %v20810_v59 }
 0x53f   : > { %11104 = vmatprep.subr.bf16.mxu0 %v18551_v10  ;;  %v18561_v10 = vld [vmem:[#allocation6 + $0x28a0] ss:$16 sps:$4 sm:$0xff]  }
 0x540   : > { %11084 = vmatpush2.bf16.msra.mxu1 %v18542_v38  ;;  %v18566_v38 = vld [vmem:[#allocation6 + $0x24ac] ss:$16 sps:$4 sm:$0xff]  }
 0x541   : > { %v9474_v61 = vpop.f32.mrf.mxu0  ;;  %11035 = vmatmul.mubr.bf16.vlgmr.msra.gmra.mxu0 %v20794_v6  ;;  %11155 = vmatprep.subr.bf16.mxu1 %v18554_v24  ;;  %v18569_v24 = vld [vmem:[#allocation6 + $0x2884] ss:$16 sps:$4 sm:$0xff]  }
 0x542   : > { %11105 = vmatpush1.bf16.msra.mxu0 %v18549_v23  ;;  %11044 = vmatprep.mubr.bf16.mxu0 %v20727_v30 }
 0x543   : > { %v9476_v20 = vpop.f32.mrf.mxu0  ;;  %11106 = vmatprep.subr.bf16.mxu0 %v18557_v19  ;;  %v9525_v49 = vpop.f32.mrf.mxu1  ;;  %11086 = vmatmul.mubr.bf16.vlgmr.msra.gmra.mxu1 %v20805_v7 }
 0x544   : > { %v20812_v34 = vadd.f32 %v9525_v49, %v9474_v61  ;;  %11156 = vmatpush1.bf16.msra.mxu1 %v18552_v37  ;;  %11095 = vmatprep.mubr.bf16.mxu1 %v20732_v42  ;;  %v18564_v37 = vld [vmem:[#allocation6 + $0x24a8] ss:$16 sps:$4 sm:$0xff]  }
 0x545   : > { %v9478_v28 = vpop.f32.mrf.mxu0  ;;  %v9527_v57 = vpop.f32.mrf.mxu1  ;;  %11157 = vmatprep.subr.bf16.mxu1 %v18560_v3  ;;  %v18567_v3 = vld [vmem:[#allocation6 + $0x2880] ss:$16 sps:$4 sm:$0xff]  }
 0x546   : > { %11107 = vmatpush1.bf16.msra.mxu0 %v18555_v11  ;;  %v20815_v53 = vadd.f32 %v9527_v57, %v9476_v20  ;;  %v18572_v20 = vld [vmem:[#allocation6 + $0x248c] ss:$16 sps:$4 sm:$0xff]  }
 0x547   : > { %v9480_v23 = vpop.f32.mrf.mxu0  ;;  %11108 = vmatprep.subr.bf16.mxu0 %v18563_v0  ;;  %v9529_v19 = vpop.f32.mrf.mxu1  ;;  %v18575_v0 = vld [vmem:[#allocation6 + $0x2864] ss:$16 sps:$4 sm:$0xff]  }
 0x548   : > { %v20821_v61 = vadd.f32 %v9529_v19, %v9478_v28  ;;  %11158 = vmatpush1.bf16.msra.mxu1 %v18558_v8  ;;  %v18570_v28 = vld [vmem:[#allocation6 + $0x2488] ss:$16 sps:$4 sm:$0xff]  }
 0x549   : > { %v9484_v49 = vpop.f32.mrf.mxu0  ;;  %11045 = vmatmul.mubr.bf16.gmra.mxu0 %v20778_v26  ;;  %v9531_v11 = vpop.f32.mrf.mxu1  ;;  %11159 = vmatprep.subr.bf16.mxu1 %v18566_v38  ;;  %v18578_v38 = vld [vmem:[#allocation6 + $0x246c] ss:$16 sps:$4 sm:$0xff]  }
 0x54a   : > { %11109 = vmatpush1.bf16.msra.mxu0 %v18561_v10  ;;  %v20824_v57 = vadd.f32 %v9531_v11, %v9480_v23  ;;  %11136 = vmatprep.mubr.bf16.mxu0 %v20819_v58  ;;  %v18573_v10 = vld [vmem:[#allocation6 + $0x2860] ss:$16 sps:$4 sm:$0xff]  }
 0x54b   : > { %11110 = vmatprep.subr.bf16.mxu0 %v18569_v24  ;;  %v9486_v17 = vpop.f32.mrf.mxu0  ;;  %v9535_v35 = vpop.f32.mrf.mxu1  ;;  %11096 = vmatmul.mubr.bf16.gmra.mxu1 %v20783_v43  ;;  %v18581_v24 = vld [vmem:[#allocation6 + $0x2844] ss:$16 sps:$4 sm:$0xff]  }
 0x54c   : > { %11160 = vmatpush1.bf16.msra.mxu1 %v18564_v37  ;;  %v20828_v8 = vadd.f32 %v9535_v35, %v9484_v49  ;;  %11187 = vmatprep.mubr.bf16.mxu1 %v20740_v14  ;;  %v18579_v37 = vld [vmem:[#allocation6 + $0x2840] ss:$16 sps:$4 sm:$0xff]   ;;  %v18584_v49 = vld [vmem:[#allocation6 + $0x244c] ss:$16 sps:$4 sm:$0xff]   ;;  %v18587_v14 = vld [vmem:[#allocation6 + $0x2824] ss:$16 sps:$4 sm:$0xff]  }
 0x54d   : > { %v9488_v19 = vpop.f32.mrf.mxu0  ;;  %11161 = vmatprep.subr.bf16.mxu1 %v18572_v20  ;;  %v9537_v23 = vpop.f32.mrf.mxu1  ;;  %v18585_v20 = vld [vmem:[#allocation6 + $0x2820] ss:$16 sps:$4 sm:$0xff]  }
 0x54e   : > { %11111 = vmatpush1.bf16.msra.mxu0 %v18567_v3  ;;  %v20831_v11 = vadd.f32 %v9537_v23, %v9486_v17  ;;  %v18582_v3 = vld [vmem:[#allocation6 + $0x2448] ss:$16 sps:$4 sm:$0xff]   ;;  %v18593_v17 = vld [vmem:[#allocation6 + $0x2804] ss:$16 sps:$4 sm:$0xff]  }
 0x54f   : > { %11112 = vmatprep.subr.bf16.mxu0 %v18575_v0  ;;  %v9489_v40 = vpop.f32.mrf.mxu0  ;;  %v9539_v45 = vpop.f32.mrf.mxu1  ;;  %v18590_v0 = vld [vmem:[#allocation6 + $0x242c] ss:$16 sps:$4 sm:$0xff]   ;;  %v18599_v19 = vld [vmem:[#allocation6 + $0x29e4] ss:$16 sps:$4 sm:$0xff]  }
 0x550   : > { %11162 = vmatpush1.bf16.msra.mxu1 %v18570_v28  ;;  %v18588_v40 = vld [vmem:[#allocation6 + $0x2428] ss:$16 sps:$4 sm:$0xff]   ;;  %v18591_v45 = vld [vmem:[#allocation6 + $0x2800] ss:$16 sps:$4 sm:$0xff]   ;;  %v18596_v28 = vld [vmem:[#allocation6 + $0x240c] ss:$16 sps:$4 sm:$0xff]  }
 0x551   : > { %11163 = vmatprep.subr.bf16.mxu1 %v18578_v38  ;;  %v9540_v35 = vpop.f32.mrf.mxu1  ;;  %v18602_v38 = vld [vmem:[#allocation6 + $0x25ec] ss:$16 sps:$4 sm:$0xff]   ;;  %v18605_v23 = vld [vmem:[#allocation6 + $0x29c4] ss:$16 sps:$4 sm:$0xff]  }
 0x552   : > { %11113 = vmatpush1.bf16.msra.mxu0 %v18573_v10  ;;  %v18594_v10 = vld [vmem:[#allocation6 + $0x2408] ss:$16 sps:$4 sm:$0xff]   ;;  %v18611_v35 = vld [vmem:[#allocation6 + $0x29a4] ss:$16 sps:$4 sm:$0xff]  }
 0x553   : > { %11114 = vmatprep.subr.bf16.mxu0 %v18581_v24  ;;  %v18600_v24 = vld [vmem:[#allocation6 + $0x25e8] ss:$16 sps:$4 sm:$0xff]  }
 0x554   : > { %11164 = vmatpush1.bf16.msra.mxu1 %v18576_v31  ;;  %v18597_v31 = vld [vmem:[#allocation6 + $0x29e0] ss:$16 sps:$4 sm:$0xff]  }
 0x555   : > { %11165 = vmatprep.subr.bf16.mxu1 %v18584_v49  ;;  %v18608_v49 = vld [vmem:[#allocation6 + $0x25cc] ss:$16 sps:$4 sm:$0xff]  }
 0x556   : > { %11115 = vmatpush1.bf16.msra.mxu0 %v18579_v37  ;;  %v18603_v37 = vld [vmem:[#allocation6 + $0x29c0] ss:$16 sps:$4 sm:$0xff]  }
 0x557   : > { %11116 = vmatprep.subr.bf16.mxu0 %v18587_v14  ;;  %v18606_v14 = vld [vmem:[#allocation6 + $0x25c8] ss:$16 sps:$4 sm:$0xff]  }
 0x558   : > { %11166 = vmatpush1.bf16.msra.mxu1 %v18582_v3  ;;  %v18609_v3 = vld [vmem:[#allocation6 + $0x29a0] ss:$16 sps:$4 sm:$0xff]  }
 0x559   : > { %11167 = vmatprep.subr.bf16.mxu1 %v18590_v0  ;;  %v18617_v0 = vld [vmem:[#allocation6 + $0x2984] ss:$16 sps:$4 sm:$0xff]  }
 0x55a   : > { %11117 = vmatpush1.bf16.msra.mxu0 %v18585_v20  ;;  %v18614_v20 = vld [vmem:[#allocation6 + $0x25ac] ss:$16 sps:$4 sm:$0xff]  }
 0x55b   : > { %11118 = vmatprep.subr.bf16.mxu0 %v18593_v17  ;;  %v18612_v17 = vld [vmem:[#allocation6 + $0x25a8] ss:$16 sps:$4 sm:$0xff]  }
 0x55c   : > { %11168 = vmatpush1.bf16.msra.mxu1 %v18588_v40  ;;  %v18615_v40 = vld [vmem:[#allocation6 + $0x2980] ss:$16 sps:$4 sm:$0xff]  }
 0x55d   : > { %11169 = vmatprep.subr.bf16.mxu1 %v18596_v28  ;;  %v18623_v28 = vld [vmem:[#allocation6 + $0x2964] ss:$16 sps:$4 sm:$0xff]  }
 0x55e   : > { %11119 = vmatpush1.bf16.msra.mxu0 %v18591_v45  ;;  %v18620_v45 = vld [vmem:[#allocation6 + $0x258c] ss:$16 sps:$4 sm:$0xff]  }
 0x55f   : > { %11120 = vmatprep.subr.bf16.mxu0 %v18599_v19  ;;  %v18618_v19 = vld [vmem:[#allocation6 + $0x2588] ss:$16 sps:$4 sm:$0xff]  }
 0x560   : > { %11170 = vmatpush1.bf16.msra.mxu1 %v18594_v10  ;;  %v18621_v10 = vld [vmem:[#allocation6 + $0x2960] ss:$16 sps:$4 sm:$0xff]  }
 0x561   : > { %11171 = vmatprep.subr.bf16.mxu1 %v18602_v38  ;;  %v18629_v38 = vld [vmem:[#allocation6 + $0x2944] ss:$16 sps:$4 sm:$0xff]  }
 0x562   : > { %11121 = vmatpush2.bf16.msra.mxu0 %v18597_v31  ;;  %v18626_v31 = vld [vmem:[#allocation6 + $0x256c] ss:$16 sps:$4 sm:$0xff]  }
 0x563   : > { %11122 = vmatprep.subr.bf16.mxu0 %v18605_v23  ;;  %v18624_v23 = vld [vmem:[#allocation6 + $0x2568] ss:$16 sps:$4 sm:$0xff]  }
 0x564   : > { %11172 = vmatpush2.bf16.msra.mxu1 %v18600_v24  ;;  %v18627_v24 = vld [vmem:[#allocation6 + $0x2940] ss:$16 sps:$4 sm:$0xff]  }
 0x565   : > { %11173 = vmatprep.subr.bf16.mxu1 %v18608_v49  ;;  %v18635_v49 = vld [vmem:[#allocation6 + $0x2924] ss:$16 sps:$4 sm:$0xff]  }
 0x566   : > { %11123 = vmatpush2.bf16.msra.mxu0 %v18603_v37  ;;  %v18632_v37 = vld [vmem:[#allocation6 + $0x254c] ss:$16 sps:$4 sm:$0xff]  }
 0x567   : > { %11124 = vmatprep.subr.bf16.mxu0 %v18611_v35  ;;  %v18630_v35 = vld [vmem:[#allocation6 + $0x2548] ss:$16 sps:$4 sm:$0xff]  }
 0x568   : > { %11174 = vmatpush2.bf16.msra.mxu1 %v18606_v14  ;;  %v18633_v14 = vld [vmem:[#allocation6 + $0x2920] ss:$16 sps:$4 sm:$0xff]  }
 0x569   : > { %11175 = vmatprep.subr.bf16.mxu1 %v18614_v20  ;;  %v20835_v20 = vcombine.low %v20781_v55, %v20786_v62 }
 0x56a   : > { %11125 = vmatpush2.bf16.msra.mxu0 %v18609_v3  ;;  %v18638_v3 = vld [vmem:[#allocation6 + $0x252c] ss:$16 sps:$4 sm:$0xff]  }
 0x56b   : > { %11126 = vmatprep.subr.bf16.mxu0 %v18617_v0  ;;  %v15960_v0 = vcombine.low %v20788_v22, %v20790_v2  ;;  %v10024_v55 = vrot.slane %v20835_v20, 2  ;;  %v18651_v22 = vld [vmem:[#allocation6 + $0x26ec] ss:$16 sps:$4 sm:$0xff]   ;;  %v18649_v2 = vld [vmem:[#allocation6 + $0x26e8] ss:$16 sps:$4 sm:$0xff]  }
 0x56c   : > { %11176 = vmatpush2.bf16.msra.mxu1 %v18612_v17  ;;  %v2104_v17 = vadd.f32 %v19976_v4, %v19969_v44  ;;  %v18642_v44 = vld [vmem:[#allocation6 + $0x2508] ss:$16 sps:$4 sm:$0xff]   ;;  %v4896_v4 = vadd.f32 %v20317_v54, %v20308_v25 }
 0x56d   : > { %11177 = vmatprep.subr.bf16.mxu1 %v18620_v45  ;;  %v18652_v54 = vld [vmem:[#allocation6 + $0x28e8] ss:$16 sps:$4 sm:$0xff]  }
 0x56e   : > { %11127 = vmatpush2.bf16.msra.mxu0 %v18615_v40  ;;  %v18641_v40 = vld [vmem:[#allocation6 + $0x2904] ss:$16 sps:$4 sm:$0xff]   ;;  %v2155_v45 = vadd.f32 %v20006_v60, %v2104_v17 }
 0x56f   : > { %11128 = vmatprep.subr.bf16.mxu0 %v18623_v28  ;;  %v18636_v28 = vld [vmem:[#allocation6 + $0x2528] ss:$16 sps:$4 sm:$0xff]  }
 0x570   : > { %11178 = vmatpush2.bf16.msra.mxu1 %v18618_v19  ;;  %v18639_v19 = vld [vmem:[#allocation6 + $0x2900] ss:$16 sps:$4 sm:$0xff]   ;;  %v3337_v62 = vadd.f32 %v20117_v50, %v2155_v45  ;;  %v4947_v50 = vadd.f32 %v20356_v12, %v4896_v4  ;;  %v18655_v12 = vld [vmem:[#allocation6 + $0x26c8] ss:$16 sps:$4 sm:$0xff]  }
 0x571   : > { %11179 = vmatprep.subr.bf16.mxu1 %v18626_v31  ;;  %v20842_v31 = vrot.slane %v15960_v0, 2 }
 0x572   : > { %11129 = vmatpush2.bf16.msra.mxu0 %v18621_v10  ;;  %v18644_v10 = vld [vmem:[#allocation6 + $0x250c] ss:$16 sps:$4 sm:$0xff]  }
 0x573   : > { %11130 = vmatprep.subr.bf16.mxu0 %v18629_v38  ;;  %v20850_v60 = vsel %vm10011_vm15, %v10024_v55, %v20842_v31  ;;  %v18654_v38 = vld [vmem:[#allocation6 + $0x28ec] ss:$16 sps:$4 sm:$0xff]  }
 0x574   : > { %11180 = vmatpush2.bf16.msra.mxu1 %v18624_v23  ;;  %v3388_v23 = vadd.f32 %v20126_v51, %v3337_v62 }
 0x575   : > { %11181 = vmatprep.subr.bf16.mxu1 %v18632_v37  ;;  %v6434_v37 = vadd.f32 %v20488_v21, %v20479_v32 }
 0x576   : > { %11131 = vmatpush2.bf16.msra.mxu0 %v18627_v24  ;;  %v18657_v24 = vld [vmem:[#allocation6 + $0x26cc] ss:$16 sps:$4 sm:$0xff]  }
 0x577   : > { %11132 = vmatprep.subr.bf16.mxu0 %v18635_v49  ;;  %v3439_v49 = vadd.f32 %v20165_v16, %v3388_v23  ;;  %v18663_v16 = vld [vmem:[#allocation6 + $0x26ac] ss:$16 sps:$4 sm:$0xff]  }
 0x578   : > { %11182 = vmatpush2.bf16.msra.mxu1 %v18630_v35  ;;  %v6485_v35 = vadd.f32 %v20524_v33, %v6434_v37  ;;  %v18675_v23 = vld [vmem:[#allocation6 + $0x266c] ss:$16 sps:$4 sm:$0xff]  }
 0x579   : > { %11183 = vmatprep.subr.bf16.mxu1 %v18638_v3  ;;  %v18660_v3 = vld [vmem:[#allocation6 + $0x28cc] ss:$16 sps:$4 sm:$0xff]   ;;  %v5115_v32 = vadd.f32 %v4947_v50, %v3439_v49 }
 0x57a   : > { %11133 = vmatpush2.bf16.msra.mxu0 %v18633_v14  ;;  %v8037_v14 = vadd.f32 %v20634_v29, %v20619_v46 }
 0x57b   : > { %11134 = vmatprep.subr.bf16.mxu0 %v18641_v40  ;;  %v6653_v40 = vadd.f32 %v6485_v35, %v5115_v32  ;;  %v18688_v32 = vld [vmem:[#allocation6 + $0x2828] ss:$16 sps:$4 sm:$0xff]  }
 0x57c   : > { %11184 = vmatpush2.bf16.msra.mxu1 %v18636_v28  ;;  %v8088_v21 = vadd.f32 %v20668_v9, %v8037_v14  ;;  %v18661_v9 = vld [vmem:[#allocation6 + $0x26a8] ss:$16 sps:$4 sm:$0xff]  }
 0x57d   : > { %11185 = vmatprep.subr.bf16.mxu1 %v18644_v10  ;;  %v18679_v14 = vld [vmem:[#allocation6 + $0x2648] ss:$16 sps:$4 sm:$0xff]  }
 0x57e   : > { %11135 = vmatpush2.bf16.msra.mxu0 %v18639_v19  ;;  %v18666_v19 = vld [vmem:[#allocation6 + $0x28ac] ss:$16 sps:$4 sm:$0xff]   ;;  %v8256_v10 = vadd.f32 %v8088_v21, %v6653_v40  ;;  %v18691_v21 = vld [vmem:[#allocation6 + $0x2608] ss:$16 sps:$4 sm:$0xff]  }
 0x57f   : > { %11206 = vmatprep.subr.bf16.mxu0 %v18651_v22  ;;  %v18697_v40 = vld [vmem:[#allocation6 + $0x27e8] ss:$16 sps:$4 sm:$0xff]  }
 0x580   : > { %11186 = vmatpush2.bf16.msra.mxu1 %v18642_v44 }
 0x581   : > { %v9576_v25 = vpop.f32.mrf.mxu0  ;;  %11137 = vmatmul.mubr.bf16.vlgmr.msra.gmra.mxu0 %v20850_v60  ;;  %11257 = vmatprep.subr.bf16.mxu1 %v18654_v38 }
 0x582   : > { %v9577_v51 = vadd.f32 %v9576_v25, %v20812_v34  ;;  %11207 = vmatpush1.bf16.msra.mxu0 %v18649_v2  ;;  %11146 = vmatprep.mubr.bf16.mxu0 %v20810_v59  ;;  %v18658_v34 = vld [vmem:[#allocation6 + $0x28c8] ss:$16 sps:$4 sm:$0xff]   ;;  %v18678_v25 = vld [vmem:[#allocation6 + $0x286c] ss:$16 sps:$4 sm:$0xff]  }
 0x583   : > { %v9578_v0 = vpop.f32.mrf.mxu0  ;;  %11208 = vmatprep.subr.bf16.mxu0 %v18657_v24  ;;  %v20867_v33 = vpop.f32.mrf.mxu1  ;;  %11188 = vmatmul.mubr.bf16.vlgmr.msra.gmra.mxu1 %v20794_v6  ;;  %v18667_v2 = vld [vmem:[#allocation6 + $0x2688] ss:$16 sps:$4 sm:$0xff]  }
 0x584   : > { %v20865_v17 = vadd.f32 %v9577_v51, %v20653_v36  ;;  %v9579_v46 = vadd.f32 %v9578_v0, %v20815_v53  ;;  %11258 = vmatpush1.bf16.msra.mxu1 %v18652_v54  ;;  %11197 = vmatprep.mubr.bf16.mxu1 %v20727_v30  ;;  %v18669_v53 = vld [vmem:[#allocation6 + $0x268c] ss:$16 sps:$4 sm:$0xff]  }
 0x585   : > { %v9580_v29 = vpop.f32.mrf.mxu0  ;;  %v20875_v28 = vpop.f32.mrf.mxu1  ;;  %11259 = vmatprep.subr.bf16.mxu1 %v18660_v3  ;;  %v18684_v51 = vld [vmem:[#allocation6 + $0x284c] ss:$16 sps:$4 sm:$0xff]   ;;  %v18685_v3 = vld [vmem:[#allocation6 + $0x2628] ss:$16 sps:$4 sm:$0xff]  }
 0x586   : > { %v20873_v45 = vadd.f32 %v9579_v46, %v20663_v1  ;;  %v9581_v36 = vadd.f32 %v9580_v29, %v20821_v61  ;;  %11209 = vmatpush1.bf16.msra.mxu0 %v18655_v12  ;;  %v18664_v61 = vld [vmem:[#allocation6 + $0x28a8] ss:$16 sps:$4 sm:$0xff]   ;;  %v18690_v0 = vld [vmem:[#allocation6 + $0x282c] ss:$16 sps:$4 sm:$0xff]  }
 0x587   : > { %v9582_v6 = vpop.f32.mrf.mxu0  ;;  %11210 = vmatprep.subr.bf16.mxu0 %v18663_v16  ;;  %v20881_v30 = vpop.f32.mrf.mxu1  ;;  %v18682_v12 = vld [vmem:[#allocation6 + $0x2848] ss:$16 sps:$4 sm:$0xff]   ;;  %v18693_v16 = vld [vmem:[#allocation6 + $0x260c] ss:$16 sps:$4 sm:$0xff]  }
 0x588   : > { %v20879_v55 = vadd.f32 %v9581_v36, %v20671_v47  ;;  %v9583_v1 = vadd.f32 %v9582_v6, %v20824_v57  ;;  %11260 = vmatpush1.bf16.msra.mxu1 %v18658_v34  ;;  %v18672_v47 = vld [vmem:[#allocation6 + $0x288c] ss:$16 sps:$4 sm:$0xff]   ;;  %v18694_v34 = vld [vmem:[#allocation6 + $0x2808] ss:$16 sps:$4 sm:$0xff]  }
 0x589   : > { %v9586_v62 = vpop.f32.mrf.mxu0  ;;  %11147 = vmatmul.mubr.bf16.gmra.mxu0 %v20842_v31  ;;  %v20887_v44 = vpop.f32.mrf.mxu1  ;;  %11261 = vmatprep.subr.bf16.mxu1 %v18666_v19  ;;  %v18696_v46 = vld [vmem:[#allocation6 + $0x280c] ss:$16 sps:$4 sm:$0xff]   ;;  %v18700_v19 = vld [vmem:[#allocation6 + $0x29e8] ss:$16 sps:$4 sm:$0xff]  }
 0x58a   : > { %v20885_v22 = vadd.f32 %v9583_v1, %v8256_v10  ;;  %v9587_v4 = vadd.f32 %v9586_v62, %v20828_v8  ;;  %11211 = vmatpush1.bf16.msra.mxu0 %v18661_v9  ;;  %11238 = vmatprep.mubr.bf16.mxu0 %v20749_v63  ;;  %v18670_v8 = vld [vmem:[#allocation6 + $0x2888] ss:$16 sps:$4 sm:$0xff]   ;;  %v18699_v29 = vld [vmem:[#allocation6 + $0x27ec] ss:$16 sps:$4 sm:$0xff]  }
 0x58b   : > { %v9588_v38 = vpop.f32.mrf.mxu0  ;;  %11212 = vmatprep.subr.bf16.mxu0 %v18669_v53  ;;  %v20895_v50 = vpop.f32.mrf.mxu1  ;;  %11198 = vmatmul.mubr.bf16.gmra.mxu1 %v20778_v26  ;;  %v18673_v63 = vld [vmem:[#allocation6 + $0x2668] ss:$16 sps:$4 sm:$0xff]   ;;  %v18702_v36 = vld [vmem:[#allocation6 + $0x29ec] ss:$16 sps:$4 sm:$0xff]  }
 0x58c   : > { %v20892_v57 = vadd.f32 %v9587_v4, %v20681_v15  ;;  %v9589_v24 = vadd.f32 %v9588_v38, %v20831_v11  ;;  %11262 = vmatpush1.bf16.msra.mxu1 %v18664_v61  ;;  %11289 = vmatprep.mubr.bf16.mxu1 %v20819_v58  ;;  %v18681_v11 = vld [vmem:[#allocation6 + $0x264c] ss:$16 sps:$4 sm:$0xff]   ;;  %v18676_v26 = vld [vmem:[#allocation6 + $0x2868] ss:$16 sps:$4 sm:$0xff]  }
 0x58d   : > { %v9590_v37 = vpop.f32.mrf.mxu0  ;;  %11263 = vmatprep.subr.bf16.mxu1 %v18672_v47  ;;  %v20902_v15 = vpop.f32.mrf.mxu1  ;;  %v18705_v9 = vld [vmem:[#allocation6 + $0x27cc] ss:$16 sps:$4 sm:$0xff]   ;;  %v18703_v6 = vld [vmem:[#allocation6 + $0x27c8] ss:$16 sps:$4 sm:$0xff]  }
 0x58e   : > { %v20900_v49 = vadd.f32 %v9589_v24, %v20689_v56  ;;  %11213 = vmatpush1.bf16.msra.mxu0 %v18667_v2  ;;  %v18687_v56 = vld [vmem:[#allocation6 + $0x262c] ss:$16 sps:$4 sm:$0xff]   ;;  %v18706_v1 = vld [vmem:[#allocation6 + $0x29c8] ss:$16 sps:$4 sm:$0xff]  }
 0x58f   : > { %11214 = vmatprep.subr.bf16.mxu0 %v18675_v23  ;;  %v9591_v54 = vpop.f32.mrf.mxu0  ;;  %v9641_v35 = vpop.f32.mrf.mxu1  ;;  %v18708_v53 = vld [vmem:[#allocation6 + $0x29cc] ss:$16 sps:$4 sm:$0xff]   ;;  %v18709_v62 = vld [vmem:[#allocation6 + $0x27a8] ss:$16 sps:$4 sm:$0xff]  }
 0x590   : > { %11264 = vmatpush1.bf16.msra.mxu1 %v18670_v8  ;;  %v18711_v10 = vld [vmem:[#allocation6 + $0x27ac] ss:$16 sps:$4 sm:$0xff]   ;;  %v18712_v2 = vld [vmem:[#allocation6 + $0x29a8] ss:$16 sps:$4 sm:$0xff]  }
 0x591   : > { %11265 = vmatprep.subr.bf16.mxu1 %v18678_v25  ;;  %v9642_v58 = vpop.f32.mrf.mxu1  ;;  %v18714_v61 = vld [vmem:[#allocation6 + $0x29ac] ss:$16 sps:$4 sm:$0xff]   ;;  %v18715_v47 = vld [vmem:[#allocation6 + $0x2788] ss:$16 sps:$4 sm:$0xff]  }
 0x592   : > { %11215 = vmatpush1.bf16.msra.mxu0 %v18673_v63  ;;  %v18717_v4 = vld [vmem:[#allocation6 + $0x278c] ss:$16 sps:$4 sm:$0xff]   ;;  %v18718_v24 = vld [vmem:[#allocation6 + $0x2988] ss:$16 sps:$4 sm:$0xff]  }
 0x593   : > { %11216 = vmatprep.subr.bf16.mxu0 %v18681_v11  ;;  %v18720_v38 = vld [vmem:[#allocation6 + $0x298c] ss:$16 sps:$4 sm:$0xff]   ;;  %v18721_v8 = vld [vmem:[#allocation6 + $0x2768] ss:$16 sps:$4 sm:$0xff]  }
 0x594   : > { %11266 = vmatpush1.bf16.msra.mxu1 %v18676_v26  ;;  %v18723_v23 = vld [vmem:[#allocation6 + $0x276c] ss:$16 sps:$4 sm:$0xff]   ;;  %v18724_v25 = vld [vmem:[#allocation6 + $0x2968] ss:$16 sps:$4 sm:$0xff]  }
 0x595   : > { %11267 = vmatprep.subr.bf16.mxu1 %v18684_v51  ;;  %v18726_v37 = vld [vmem:[#allocation6 + $0x296c] ss:$16 sps:$4 sm:$0xff]   ;;  %v18727_v11 = vld [vmem:[#allocation6 + $0x2748] ss:$16 sps:$4 sm:$0xff]  }
 0x596   : > { %11217 = vmatpush1.bf16.msra.mxu0 %v18679_v14  ;;  %v18729_v63 = vld [vmem:[#allocation6 + $0x274c] ss:$16 sps:$4 sm:$0xff]   ;;  %v18730_v26 = vld [vmem:[#allocation6 + $0x2948] ss:$16 sps:$4 sm:$0xff]  }
 0x597   : > { %11218 = vmatprep.subr.bf16.mxu0 %v18687_v56  ;;  %v18732_v54 = vld [vmem:[#allocation6 + $0x294c] ss:$16 sps:$4 sm:$0xff]   ;;  %v18733_v51 = vld [vmem:[#allocation6 + $0x2728] ss:$16 sps:$4 sm:$0xff]  }
 0x598   : > { %11268 = vmatpush1.bf16.msra.mxu1 %v18682_v12  ;;  %v18735_v35 = vld [vmem:[#allocation6 + $0x272c] ss:$16 sps:$4 sm:$0xff]  }
 0x599   : > { %11269 = vmatprep.subr.bf16.mxu1 %v18690_v0  ;;  %v20904_v14 = vld [vmem:[#allocation2 + $0x60] sm:$0x77]  ;;  %v20906_v12 = vld [vmem:[#allocation2 + $0x70] sm:$0x77] }
 0x59a   : > { %11219 = vmatpush1.bf16.msra.mxu0 %v18685_v3  ;;  %v18738_v58 = vld [vmem:[#allocation6 + $0x292c] ss:$16 sps:$4 sm:$0xff]  }
 0x59b   : > { %11220 = vmatprep.subr.bf16.mxu0 %v18693_v16  ;;  %v18741_v56 = vld [vmem:[#allocation6 + $0x270c] ss:$16 sps:$4 sm:$0xff]  }
 0x59c   : > { %11270 = vmatpush1.bf16.msra.mxu1 %v18688_v32  ;;  %v20908_v3 = vld [vmem:[#allocation2 + $0x20] sm:$0xff]  ;;  %v21467_v32 = vld [vmem:[#allocation17_spill] sm:$0xff] }
 0x59d   : > { %11271 = vmatprep.subr.bf16.mxu1 %v18696_v46  ;;  %v20912_v0 = vcombine.high %v20908_v3, %v20904_v14  ;;  %v21466_v16 = vld [vmem:[#allocation16_spill] sm:$0xff] }
 0x59e   : > { %11221 = vmatpush1.bf16.msra.mxu0 %v18691_v21  ;;  %v2257_v21 = vadd.f32 %v21467_v32, %v21466_v16  ;;  %v18736_v46 = vld [vmem:[#allocation6 + $0x2928] ss:$16 sps:$4 sm:$0xff]   ;;  %v21473_v16 = vld [vmem:[#allocation25_spill] sm:$0xff] }
 0x59f   : > { %11222 = vmatprep.subr.bf16.mxu0 %v18699_v29  ;;  %v18739_v29 = vld [vmem:[#allocation6 + $0x2708] ss:$16 sps:$4 sm:$0xff]  }
 0x5a0   : > { %11272 = vmatpush1.bf16.msra.mxu1 %v18694_v34  ;;  %v18744_v34 = vld [vmem:[#allocation6 + $0x290c] ss:$16 sps:$4 sm:$0xff]  }
 0x5a1   : > { %11273 = vmatprep.subr.bf16.mxu1 %v18702_v36 }
 0x5a2   : > { %11223 = vmatpush2.bf16.msra.mxu0 %v18697_v40  ;;  %v20916_v40 = vld [vmem:[#allocation2 + $0x10] sm:$0xff] }
 0x5a3   : > { %11224 = vmatprep.subr.bf16.mxu0 %v18705_v9  ;;  %v20920_v36 = vcombine.high %v20916_v40, %v20906_v12  ;;  %v18747_v9 = vld [vmem:[#allocation6 + $0x2ae4] ss:$16 sps:$4 sm:$0xff]  }
 0x5a4   : > { %11274 = vmatpush2.bf16.msra.mxu1 %v18700_v19  ;;  %v11549_v19 = vshrl.u32 %v20711_v13, 16 }
 0x5a5   : > { %11275 = vmatprep.subr.bf16.mxu1 %v18708_v53  ;;  %v11557_v53 = vshrl.u32 %v20912_v0, 16 }
 0x5a6   : > { %11225 = vmatpush2.bf16.msra.mxu0 %v18703_v6  ;;  %v11552_v6 = vshll.u32 %v20711_v13, 16  ;;  %v11594_v13 = vshll.u32 %v20920_v36, 16 }
 0x5a7   : > { %11226 = vmatprep.subr.bf16.mxu0 %v18711_v10  ;;  %v11560_v10 = vshll.u32 %v20912_v0, 16 }
 0x5a8   : > { %11276 = vmatpush2.bf16.msra.mxu1 %v18706_v1  ;;  %v21468_v1 = vld [vmem:[#allocation18_spill] sm:$0xff] }
 0x5a9   : > { %11277 = vmatprep.subr.bf16.mxu1 %v18714_v61  ;;  %v18742_v61 = vld [vmem:[#allocation6 + $0x2908] ss:$16 sps:$4 sm:$0xff]  }
 0x5aa   : > { %11227 = vmatpush2.bf16.msra.mxu0 %v18709_v62  ;;  %v2308_v62 = vadd.f32 %v21468_v1, %v2257_v21  ;;  %v18748_v21 = vld [vmem:[#allocation6 + $0x2ce0] ss:$16 sps:$4 sm:$0xff]  }
 0x5ab   : > { %11228 = vmatprep.subr.bf16.mxu0 %v18717_v4  ;;  %v18750_v4 = vld [vmem:[#allocation6 + $0x2ce4] ss:$16 sps:$4 sm:$0xff]  }
 0x5ac   : > { %11278 = vmatpush2.bf16.msra.mxu1 %v18712_v2  ;;  %v11583_v2 = vshrl.u32 %v20719_v5, 16 }
 0x5ad   : > { %11279 = vmatprep.subr.bf16.mxu1 %v18720_v38  ;;  %v11586_v38 = vshll.u32 %v20719_v5, 16 }
 0x5ae   : > { %11229 = vmatpush2.bf16.msra.mxu0 %v18715_v47  ;;  %v18745_v47 = vld [vmem:[#allocation6 + $0x2ae0] ss:$16 sps:$4 sm:$0xff]  }
 0x5af   : > { %11230 = vmatprep.subr.bf16.mxu0 %v18723_v23  ;;  %v11591_v23 = vshrl.u32 %v20920_v36, 16 }
 0x5b0   : > { %11280 = vmatpush2.bf16.msra.mxu1 %v18718_v24  ;;  %v21469_v24 = vld [vmem:[#allocation19_spill] sm:$0xff] }
 0x5b1   : > { %11281 = vmatprep.subr.bf16.mxu1 %v18726_v37  ;;  %v21470_v37 = vld [vmem:[#allocation22_spill] sm:$0xff] }
 0x5b2   : > { %11231 = vmatpush2.bf16.msra.mxu0 %v18721_v8  ;;  %v3490_v8 = vadd.f32 %v21469_v24, %v2308_v62  ;;  %v18759_v62 = vld [vmem:[#allocation6 + $0x2aa4] ss:$16 sps:$4 sm:$0xff]  }
 0x5b3   : > { %11232 = vmatprep.subr.bf16.mxu0 %v18729_v63  ;;  %v5049_v63 = vadd.f32 %v20411_v48, %v21470_v37 }
 0x5b4   : > { %11282 = vmatpush2.bf16.msra.mxu1 %v18724_v25  ;;  %v18753_v25 = vld [vmem:[#allocation6 + $0x2ac4] ss:$16 sps:$4 sm:$0xff]  }
 0x5b5   : > { %11283 = vmatprep.subr.bf16.mxu1 %v18732_v54  ;;  %v11554_v54 = vrot.slane %v11552_v6, 3  ;;  %v11596_v6 = vrot.slane %v11594_v13, 3 }
 0x5b6   : > { %11233 = vmatpush2.bf16.msra.mxu0 %v18727_v11  ;;  %v11551_v11 = vrot.slane %v11549_v19, 2  ;;  %v11593_v19 = vrot.slane %v11591_v23, 2 }
 0x5b7   : > { %11234 = vmatprep.subr.bf16.mxu0 %v18735_v35  ;;  %v11559_v35 = vrot.slane %v11557_v53, 2  ;;  %v21474_v53 = vld [vmem:[#allocation23_spill] sm:$0xff] }
 0x5b8   : > { %11284 = vmatpush2.bf16.msra.mxu1 %v18730_v26  ;;  %v11562_v26 = vrot.slane %v11560_v10, 3  ;;  %v5100_v10 = vadd.f32 %v21474_v53, %v5049_v63 }
 0x5b9   : > { %11285 = vmatprep.subr.bf16.mxu1 %v18738_v58 }
 0x5ba   : > { %11235 = vmatpush2.bf16.msra.mxu0 %v18733_v51  ;;  %v21471_v51 = vld [vmem:[#allocation20_spill] sm:$0xff] }
 0x5bb   : > { %11236 = vmatprep.subr.bf16.mxu0 %v18741_v56  ;;  %v3541_v58 = vadd.f32 %v21471_v51, %v3490_v8  ;;  %v21472_v56 = vld [vmem:[#allocation24_spill] sm:$0xff]  ;;  %v18754_v8 = vld [vmem:[#allocation6 + $0x2cc0] ss:$16 sps:$4 sm:$0xff]   ;;  %v18765_v51 = vld [vmem:[#allocation6 + $0x2a84] ss:$16 sps:$4 sm:$0xff]  }
 0x5bc   : > { %11286 = vmatpush2.bf16.msra.mxu1 %v18736_v46  ;;  %v6587_v5 = vadd.f32 %v21473_v16, %v21472_v56  ;;  %v18756_v46 = vld [vmem:[#allocation6 + $0x2cc4] ss:$16 sps:$4 sm:$0xff]  }
 0x5bd   : > { %11287 = vmatprep.subr.bf16.mxu1 %v18744_v34  ;;  %v18751_v34 = vld [vmem:[#allocation6 + $0x2ac0] ss:$16 sps:$4 sm:$0xff]  }
 0x5be   : > { %11237 = vmatpush2.bf16.msra.mxu0 %v18739_v29  ;;  %v11585_v29 = vrot.slane %v11583_v2, 2  ;;  %v11555_v2 = vor.u32 %v11554_v54, %v11551_v11 }
 0x5bf   : > { %12605 = vmatprep.subr.bf16.mxu0 %v18747_v9  ;;  %v11588_v9 = vrot.slane %v11586_v38, 3  ;;  %v21476_v38 = vld [vmem:[#allocation26_spill] sm:$0xff] }
 0x5c0   : > { %11288 = vmatpush2.bf16.msra.mxu1 %v18742_v61  ;;  %v6638_v23 = vadd.f32 %v21476_v38, %v6587_v5 }
 0x5c1   : > { %v9678_v32 = vpop.f32.mrf.mxu0  ;;  %11239 = vmatmul.mubr.bf16.vlgmr.msra.gmra.mxu0 %v20805_v7  ;;  %12656 = vmatprep.subr.bf16.mxu1 %v18750_v4  ;;  %v21475_v4 = vld [vmem:[#allocation21_spill] sm:$0xff]  ;;  %v11589_v63 = vor.u32 %v11588_v9, %v11585_v29 }
 0x5c2   : > { %v9679_v48 = vadd.f32 %v9678_v32, %v20867_v33  ;;  %12606 = vmatpush1.bf16.msra.mxu0 %v18745_v47  ;;  %11248 = vmatprep.mubr.bf16.mxu0 %v20732_v42  ;;  %v20943_v33 = vor.u32 %v11562_v26, %v11559_v35  ;;  %v3592_v47 = vadd.f32 %v21475_v4, %v3541_v58  ;;  %v18768_v29 = vld [vmem:[#allocation6 + $0x2c84] ss:$16 sps:$4 sm:$0xff]  }
 0x5c3   : > { %v9680_v1 = vpop.f32.mrf.mxu0  ;;  %12607 = vmatprep.subr.bf16.mxu0 %v18753_v25  ;;  %v9729_v61 = vpop.f32.mrf.mxu1  ;;  %11290 = vmatmul.mubr.bf16.vlgmr.msra.gmra.mxu1 %v20850_v60  ;;  %v18757_v60 = vld [vmem:[#allocation6 + $0x2aa0] ss:$16 sps:$4 sm:$0xff]   ;;  %v20949_v25 = vor.u32 %v11596_v6, %v11593_v19 }
 0x5c4   : > { %v9681_v7 = vadd.f32 %v9680_v1, %v20875_v28  ;;  %v9730_v13 = vadd.f32 %v9729_v61, %v9679_v48  ;;  %12657 = vmatpush1.bf16.msra.mxu1 %v18748_v21  ;;  %11299 = vmatprep.mubr.bf16.mxu1 %v20810_v59  ;;  %v18762_v28 = vld [vmem:[#allocation6 + $0x2ca4] ss:$16 sps:$4 sm:$0xff]   ;;  %v5117_v11 = vadd.f32 %v5100_v10, %v3592_v47  ;;  %v18766_v1 = vld [vmem:[#allocation6 + $0x2c80] ss:$16 sps:$4 sm:$0xff]  }
 0x5c5   : > { %v9682_v24 = vpop.f32.mrf.mxu0  ;;  %v9731_v42 = vpop.f32.mrf.mxu1  ;;  %12658 = vmatprep.subr.bf16.mxu1 %v18756_v46  ;;  %v20966_v48 = vsel %vm21478_vm8, %v11589_v63, %v20949_v25  ;;  %v18774_v61 = vld [vmem:[#allocation6 + $0x2c64] ss:$16 sps:$4 sm:$0xff]   ;;  %v18784_v63 = vld [vmem:[#allocation6 + $0x2c20] ss:$16 sps:$4 sm:$0xff]  }
 0x5c6   : > { %v9683_v37 = vadd.f32 %v9682_v24, %v20881_v30  ;;  %12608 = vmatpush1.bf16.msra.mxu0 %v18751_v34  ;;  %v20952_v54 = vadd.f32 %v9730_v13, %v20735_v18  ;;  %v9732_v35 = vadd.f32 %v9731_v42, %v9681_v7  ;;  %v20957_v30 = vsel %vm21477_vm10, %v11555_v2, %v20943_v33  ;;  %v18760_v18 = vld [vmem:[#allocation6 + $0x2ca0] ss:$16 sps:$4 sm:$0xff]   ;;  %v18777_v2 = vld [vmem:[#allocation6 + $0x2a44] ss:$16 sps:$4 sm:$0xff]  }
 0x5c7   : > { %v9684_v26 = vpop.f32.mrf.mxu0  ;;  %12609 = vmatprep.subr.bf16.mxu0 %v18759_v62  ;;  %v9733_v58 = vpop.f32.mrf.mxu1  ;;  %v6655_v56 = vadd.f32 %v6638_v23, %v5117_v11  ;;  %v18769_v62 = vld [vmem:[#allocation6 + $0x2a60] ss:$16 sps:$4 sm:$0xff]   ;;  %v18780_v24 = vld [vmem:[#allocation6 + $0x2c44] ss:$16 sps:$4 sm:$0xff]  }
 0x5c8   : > { %v9685_v59 = vadd.f32 %v9684_v26, %v20887_v44  ;;  %v20960_v16 = vadd.f32 %v9732_v35, %v20743_v52  ;;  %v9734_v5 = vadd.f32 %v9733_v58, %v9683_v37  ;;  %12659 = vmatpush1.bf16.msra.mxu1 %v18754_v8  ;;  %v18763_v44 = vld [vmem:[#allocation6 + $0x2a80] ss:$16 sps:$4 sm:$0xff]   ;;  %v18783_v42 = vld [vmem:[#allocation6 + $0x2a24] ss:$16 sps:$4 sm:$0xff]  }
 0x5c9   : > { %v9688_v32 = vpop.f32.mrf.mxu0  ;;  %11249 = vmatmul.mubr.bf16.gmra.mxu0 %v20783_v43  ;;  %v9735_v21 = vpop.f32.mrf.mxu1  ;;  %12660 = vmatprep.subr.bf16.mxu1 %v18762_v28  ;;  %v8258_v52 = vadd.f32 %v20754_v41, %v6655_v56  ;;  %v18771_v43 = vld [vmem:[#allocation6 + $0x2a64] ss:$16 sps:$4 sm:$0xff]   ;;  %v18772_v23 = vld [vmem:[#allocation6 + $0x2c60] ss:$16 sps:$4 sm:$0xff]  }
 0x5ca   : > { %v9689_v46 = vadd.f32 %v9688_v32, %v20895_v50  ;;  %12610 = vmatpush1.bf16.msra.mxu0 %v18757_v60  ;;  %v20970_v34 = vadd.f32 %v9734_v5, %v20752_v27  ;;  %v9736_v9 = vadd.f32 %v9735_v21, %v9685_v59  ;;  %12637 = vmatprep.mubr.bf16.mxu0 %v20957_v30  ;;  %v21479_v47 = vld [vmem:[#allocation27_spill] sm:$0xff] }
 0x5cb   : > { %v9690_v19 = vpop.f32.mrf.mxu0  ;;  %12611 = vmatprep.subr.bf16.mxu0 %v18765_v51  ;;  %v9739_v6 = vpop.f32.mrf.mxu1  ;;  %11300 = vmatmul.mubr.bf16.gmra.mxu1 %v20842_v31  ;;  %v18775_v13 = vld [vmem:[#allocation6 + $0x2a40] ss:$16 sps:$4 sm:$0xff]   ;;  %v18786_v60 = vld [vmem:[#allocation6 + $0x2c24] ss:$16 sps:$4 sm:$0xff]  }
 0x5cc   : > { %v9691_v50 = vadd.f32 %v9690_v19, %v20902_v15  ;;  %v20975_v53 = vadd.f32 %v9736_v9, %v8258_v52  ;;  %12661 = vmatpush1.bf16.msra.mxu1 %v18760_v18  ;;  %v9740_v10 = vadd.f32 %v9739_v6, %v9689_v46  ;;  %12688 = vmatprep.mubr.bf16.mxu1 %v20966_v48  ;;  %v18781_v37 = vld [vmem:[#allocation6 + $0x2a20] ss:$16 sps:$4 sm:$0xff]   ;;  %v18789_v28 = vld [vmem:[#allocation6 + $0x2a04] ss:$16 sps:$4 sm:$0xff]  }
 0x5cd   : > { %v9692_v41 = vpop.f32.mrf.mxu0  ;;  %v9741_v27 = vpop.f32.mrf.mxu1  ;;  %12662 = vmatprep.subr.bf16.mxu1 %v18768_v29  ;;  %v18787_v11 = vld [vmem:[#allocation6 + $0x2a00] ss:$16 sps:$4 sm:$0xff]   ;;  %v18792_v35 = vld [vmem:[#allocation6 + $0x2c04] ss:$16 sps:$4 sm:$0xff]  }
 0x5ce   : > { %12612 = vmatpush1.bf16.msra.mxu0 %v18763_v44  ;;  %v20979_v7 = vadd.f32 %v9740_v10, %v20761_v39  ;;  %v9742_v15 = vadd.f32 %v9741_v27, %v9691_v50  ;;  %v18778_v39 = vld [vmem:[#allocation6 + $0x2c40] ss:$16 sps:$4 sm:$0xff]   ;;  %v18795_v26 = vld [vmem:[#allocation6 + $0x2be4] ss:$16 sps:$4 sm:$0xff]   ;;  %v20986_v41 = vcombine.low %v20908_v3, %v20904_v14 }
 0x5cf   : > { %12613 = vmatprep.subr.bf16.mxu0 %v18771_v43  ;;  %v9693_v31 = vpop.f32.mrf.mxu0  ;;  %v9743_v4 = vpop.f32.mrf.mxu1  ;;  %v18790_v51 = vld [vmem:[#allocation6 + $0x2c00] ss:$16 sps:$4 sm:$0xff]   ;;  %v18798_v59 = vld [vmem:[#allocation6 + $0x2de4] ss:$16 sps:$4 sm:$0xff]  }
 0x5d0   : > { %v20982_v38 = vadd.f32 %v9742_v15, %v21479_v47  ;;  %12663 = vmatpush1.bf16.msra.mxu1 %v18766_v1  ;;  %v18793_v58 = vld [vmem:[#allocation6 + $0x2be0] ss:$16 sps:$4 sm:$0xff]   ;;  %v18801_v56 = vld [vmem:[#allocation6 + $0x2bc4] ss:$16 sps:$4 sm:$0xff]   ;;  %v20990_v15 = vcombine.low %v20916_v40, %v20906_v12  ;;  %v21480_v31 = vld [vmem:[#allocation28_spill] sm:$0xff]  ;;  %v11543_v14 = vshll.u32 %v20986_v41, 16 }
 0x5d1   : > { %12664 = vmatprep.subr.bf16.mxu1 %v18774_v61  ;;  %v9744_v8 = vpop.f32.mrf.mxu1  ;;  %v18796_v5 = vld [vmem:[#allocation6 + $0x2de0] ss:$16 sps:$4 sm:$0xff]   ;;  %v18804_v18 = vld [vmem:[#allocation6 + $0x2dc4] ss:$16 sps:$4 sm:$0xff]   ;;  %v11532_v4 = vshrl.u32 %v21480_v31, 16  ;;  %v11535_v47 = vshll.u32 %v21480_v31, 16 }
 0x5d2   : > { %12614 = vmatpush1.bf16.msra.mxu0 %v18769_v62  ;;  %v18799_v32 = vld [vmem:[#allocation6 + $0x2bc0] ss:$16 sps:$4 sm:$0xff]   ;;  %v18807_v21 = vld [vmem:[#allocation6 + $0x2ba4] ss:$16 sps:$4 sm:$0xff]   ;;  %v11574_v40 = vshrl.u32 %v20990_v15, 16 }
 0x5d3   : > { %12615 = vmatprep.subr.bf16.mxu0 %v18777_v2  ;;  %v18802_v46 = vld [vmem:[#allocation6 + $0x2dc0] ss:$16 sps:$4 sm:$0xff]   ;;  %v18810_v29 = vld [vmem:[#allocation6 + $0x2da4] ss:$16 sps:$4 sm:$0xff]  }
 0x5d4   : > { %12665 = vmatpush1.bf16.msra.mxu1 %v18772_v23  ;;  %v18805_v44 = vld [vmem:[#allocation6 + $0x2ba0] ss:$16 sps:$4 sm:$0xff]   ;;  %v18813_v52 = vld [vmem:[#allocation6 + $0x2b84] ss:$16 sps:$4 sm:$0xff]   ;;  %v11540_v23 = vshrl.u32 %v20986_v41, 16 }
 0x5d5   : > { %12666 = vmatprep.subr.bf16.mxu1 %v18780_v24  ;;  %v18808_v9 = vld [vmem:[#allocation6 + $0x2da0] ss:$16 sps:$4 sm:$0xff]   ;;  %v18816_v43 = vld [vmem:[#allocation6 + $0x2d84] ss:$16 sps:$4 sm:$0xff]  }
 0x5d6   : > { %12616 = vmatpush1.bf16.msra.mxu0 %v18775_v13  ;;  %v18811_v19 = vld [vmem:[#allocation6 + $0x2b80] ss:$16 sps:$4 sm:$0xff]   ;;  %v18819_v50 = vld [vmem:[#allocation6 + $0x2b64] ss:$16 sps:$4 sm:$0xff]  }
 0x5d7   : > { %12617 = vmatprep.subr.bf16.mxu0 %v18783_v42  ;;  %v18814_v6 = vld [vmem:[#allocation6 + $0x2d80] ss:$16 sps:$4 sm:$0xff]   ;;  %v18822_v1 = vld [vmem:[#allocation6 + $0x2d64] ss:$16 sps:$4 sm:$0xff]  }
 0x5d8   : > { %12667 = vmatpush1.bf16.msra.mxu1 %v18778_v39  ;;  %v18817_v10 = vld [vmem:[#allocation6 + $0x2b60] ss:$16 sps:$4 sm:$0xff]   ;;  %v18825_v27 = vld [vmem:[#allocation6 + $0x2b44] ss:$16 sps:$4 sm:$0xff]   ;;  %v11577_v39 = vshll.u32 %v20990_v15, 16 }
 0x5d9   : > { %12668 = vmatprep.subr.bf16.mxu1 %v18786_v60  ;;  %v18820_v62 = vld [vmem:[#allocation6 + $0x2d60] ss:$16 sps:$4 sm:$0xff]   ;;  %v18828_v2 = vld [vmem:[#allocation6 + $0x2d44] ss:$16 sps:$4 sm:$0xff]  }
 0x5da   : > { %12618 = vmatpush1.bf16.msra.mxu0 %v18781_v37  ;;  %v18823_v61 = vld [vmem:[#allocation6 + $0x2b40] ss:$16 sps:$4 sm:$0xff]   ;;  %v18831_v3 = vld [vmem:[#allocation6 + $0x2b24] ss:$16 sps:$4 sm:$0xff]  }
 0x5db   : > { %12619 = vmatprep.subr.bf16.mxu0 %v18789_v28  ;;  %v18826_v13 = vld [vmem:[#allocation6 + $0x2d40] ss:$16 sps:$4 sm:$0xff]   ;;  %v18834_v60 = vld [vmem:[#allocation6 + $0x2d24] ss:$16 sps:$4 sm:$0xff]   ;;  %v11534_v28 = vrot.slane %v11532_v4, 2 }
 0x5dc   : > { %12669 = vmatpush1.bf16.msra.mxu1 %v18784_v63  ;;  %v18829_v24 = vld [vmem:[#allocation6 + $0x2b20] ss:$16 sps:$4 sm:$0xff]   ;;  %v11537_v63 = vrot.slane %v11535_v47, 3  ;;  %v18849_v31 = vld [vmem:[#allocation6 + $0x2ec4] ss:$16 sps:$4 sm:$0xff]  }
 0x5dd   : > { %12670 = vmatprep.subr.bf16.mxu1 %v18792_v35  ;;  %v21481_v8 = vld [vmem:[#allocation29_spill] sm:$0xff]  ;;  %v11545_v35 = vrot.slane %v11543_v14, 3 }
 0x5de   : > { %12620 = vmatpush1.bf16.msra.mxu0 %v18787_v11  ;;  %v11566_v42 = vshrl.u32 %v21481_v8, 16  ;;  %v11569_v12 = vshll.u32 %v21481_v8, 16  ;;  %v21000_v37 = vld [vmem:[#allocation2 + $0x28] sm:$0x77]  ;;  %v11542_v11 = vrot.slane %v11540_v23, 2 }
 0x5df   : > { %12621 = vmatprep.subr.bf16.mxu0 %v18795_v26  ;;  %v18837_v26 = vld [vmem:[#allocation6 + $0x2b04] ss:$16 sps:$4 sm:$0xff]   ;;  %v18847_v8 = vld [vmem:[#allocation6 + $0x2ec0] ss:$16 sps:$4 sm:$0xff]  }
 0x5e0   : > { %12671 = vmatpush1.bf16.msra.mxu1 %v18790_v51  ;;  %v21002_v51 = vld [vmem:[#allocation2 + $0x38] sm:$0xff] }
 0x5e1   : > { %12672 = vmatprep.subr.bf16.mxu1 %v18798_v59  ;;  %v18832_v59 = vld [vmem:[#allocation6 + $0x2d20] ss:$16 sps:$4 sm:$0xff]  }
 0x5e2   : > { %12622 = vmatpush2.bf16.msra.mxu0 %v18793_v58  ;;  %v21006_v58 = vcombine.high %v21002_v51, %v21000_v37 }
 0x5e3   : > { %12623 = vmatprep.subr.bf16.mxu0 %v18801_v56  ;;  %v11568_v56 = vrot.slane %v11566_v42, 2  ;;  %v18852_v42 = vld [vmem:[#allocation6 + $0x2acc] ss:$16 sps:$4 sm:$0xff]  }
 0x5e4   : > { %12673 = vmatpush2.bf16.msra.mxu1 %v18796_v5  ;;  %v11571_v5 = vrot.slane %v11569_v12, 3 }
 0x5e5   : > { %12674 = vmatprep.subr.bf16.mxu1 %v18804_v18  ;;  %v11579_v18 = vrot.slane %v11577_v39, 3 }
 0x5e6   : > { %12624 = vmatpush2.bf16.msra.mxu0 %v18799_v32  ;;  %v11576_v32 = vrot.slane %v11574_v40, 2  ;;  %v18855_v40 = vld [vmem:[#allocation6 + $0x2ea4] ss:$16 sps:$4 sm:$0xff]  }
 0x5e7   : > { %12625 = vmatprep.subr.bf16.mxu0 %v18807_v21  ;;  %v18835_v21 = vld [vmem:[#allocation6 + $0x2b00] ss:$16 sps:$4 sm:$0xff]  }
 0x5e8   : > { %12675 = vmatpush2.bf16.msra.mxu1 %v18802_v46  ;;  %v18840_v46 = vld [vmem:[#allocation6 + $0x2d04] ss:$16 sps:$4 sm:$0xff]  }
 0x5e9   : > { %12676 = vmatprep.subr.bf16.mxu1 %v18810_v29  ;;  %v21008_v29 = vor.u32 %v11545_v35, %v11542_v11  ;;  %v18850_v35 = vld [vmem:[#allocation6 + $0x2ac8] ss:$16 sps:$4 sm:$0xff]  }
 0x5ea   : > { %12626 = vmatpush2.bf16.msra.mxu0 %v18805_v44  ;;  %v11538_v44 = vor.u32 %v11537_v63, %v11534_v28 }
 0x5eb   : > { %12627 = vmatprep.subr.bf16.mxu0 %v18813_v52  ;;  %v18843_v52 = vld [vmem:[#allocation6 + $0x2ee4] ss:$16 sps:$4 sm:$0xff]  }
 0x5ec   : > { %12677 = vmatpush2.bf16.msra.mxu1 %v18808_v9  ;;  %v21482_v9 = vld [vmem:[#allocation30_spill] sm:$0xff] }
 0x5ed   : > { %12678 = vmatprep.subr.bf16.mxu1 %v18816_v43  ;;  %v11620_v43 = vshll.u32 %v21482_v9, 16 }
 0x5ee   : > { %12628 = vmatpush2.bf16.msra.mxu0 %v18811_v19  ;;  %v11617_v19 = vshrl.u32 %v21482_v9, 16 }
 0x5ef   : > { %12629 = vmatprep.subr.bf16.mxu0 %v18819_v50  ;;  %v11625_v50 = vshrl.u32 %v21006_v58, 16  ;;  %v11622_v47 = vrot.slane %v11620_v43, 3  ;;  %v18859_v43 = vld [vmem:[#allocation6 + $0x2e80] ss:$16 sps:$4 sm:$0xff]  }
 0x5f0   : > { %12679 = vmatpush2.bf16.msra.mxu1 %v18814_v6  ;;  %v11628_v6 = vshll.u32 %v21006_v58, 16  ;;  %v11619_v4 = vrot.slane %v11617_v19, 2 }
 0x5f1   : > { %12680 = vmatprep.subr.bf16.mxu1 %v18822_v1  ;;  %v11572_v1 = vor.u32 %v11571_v5, %v11568_v56  ;;  %v11627_v23 = vrot.slane %v11625_v50, 2  ;;  %v18858_v56 = vld [vmem:[#allocation6 + $0x2aac] ss:$16 sps:$4 sm:$0xff]  }
 0x5f2   : > { %12630 = vmatpush2.bf16.msra.mxu0 %v18817_v10  ;;  %v18838_v10 = vld [vmem:[#allocation6 + $0x2d00] ss:$16 sps:$4 sm:$0xff]   ;;  %v11630_v14 = vrot.slane %v11628_v6, 3  ;;  %v18864_v50 = vld [vmem:[#allocation6 + $0x2a8c] ss:$16 sps:$4 sm:$0xff]  }
 0x5f3   : > { %12631 = vmatprep.subr.bf16.mxu0 %v18825_v27  ;;  %v21014_v27 = vor.u32 %v11579_v18, %v11576_v32  ;;  %v18861_v18 = vld [vmem:[#allocation6 + $0x2e84] ss:$16 sps:$4 sm:$0xff]  }
 0x5f4   : > { %12681 = vmatpush2.bf16.msra.mxu1 %v18820_v62  ;;  %v21018_v62 = vsel %vm21483_vm2, %v11538_v44, %v21008_v29  ;;  %v21027_v28 = vor.u32 %v11630_v14, %v11627_v23  ;;  %v18870_v23 = vld [vmem:[#allocation6 + $0x2a6c] ss:$16 sps:$4 sm:$0xff]  }
 0x5f5   : > { %12682 = vmatprep.subr.bf16.mxu1 %v18828_v2  ;;  %v18846_v2 = vld [vmem:[#allocation6 + $0x2aec] ss:$16 sps:$4 sm:$0xff]  }
 0x5f6   : > { %12632 = vmatpush2.bf16.msra.mxu0 %v18823_v61  ;;  %v18841_v61 = vld [vmem:[#allocation6 + $0x2ee0] ss:$16 sps:$4 sm:$0xff]  }
 0x5f7   : > { %12633 = vmatprep.subr.bf16.mxu0 %v18831_v3 }
 0x5f8   : > { %12683 = vmatpush2.bf16.msra.mxu1 %v18826_v13  ;;  %v21023_v13 = vsel %vm21484_vm9, %v11572_v1, %v21014_v27 }
 0x5f9   : > { %12684 = vmatprep.subr.bf16.mxu1 %v18834_v60  ;;  %v11623_v60 = vor.u32 %v11622_v47, %v11619_v4  ;;  %v18865_v47 = vld [vmem:[#allocation6 + $0x2e60] ss:$16 sps:$4 sm:$0xff]  }
 0x5fa   : > { %12634 = vmatpush2.bf16.msra.mxu0 %v18829_v24  ;;  %v18844_v24 = vld [vmem:[#allocation6 + $0x2ae8] ss:$16 sps:$4 sm:$0xff]  }
 0x5fb   : > { %12635 = vmatprep.subr.bf16.mxu0 %v18837_v26 }
 0x5fc   : > { %12685 = vmatpush2.bf16.msra.mxu1 %v18832_v59  ;;  %v18853_v59 = vld [vmem:[#allocation6 + $0x2ea0] ss:$16 sps:$4 sm:$0xff]  }
 0x5fd   : > { %12686 = vmatprep.subr.bf16.mxu1 %v18840_v46  ;;  %v21036_v46 = vsel %vm21485_vm7, %v11623_v60, %v21027_v28 }
 0x5fe   : > { %12636 = vmatpush2.bf16.msra.mxu0 %v18835_v21 }
 0x5ff   : > { %12707 = vmatprep.subr.bf16.mxu0 %v18843_v52  ;;  %v18856_v52 = vld [vmem:[#allocation6 + $0x2aa8] ss:$16 sps:$4 sm:$0xff]  }
 0x600   : > { %12687 = vmatpush2.bf16.msra.mxu1 %v18838_v10  ;;  %v18867_v10 = vld [vmem:[#allocation6 + $0x2e64] ss:$16 sps:$4 sm:$0xff]  }
 0x601   : > { %v11036_v3 = vpop.f32.mrf.mxu0  ;;  %12638 = vmatmul.mubr.bf16.vlgmr.msra.gmra.mxu0 %v21018_v62  ;;  %12758 = vmatprep.subr.bf16.mxu1 %v18846_v2  ;;  %v18862_v2 = vld [vmem:[#allocation6 + $0x2a88] ss:$16 sps:$4 sm:$0xff]  }
 0x602   : > { %12708 = vmatpush1.bf16.msra.mxu0 %v18841_v61  ;;  %12647 = vmatprep.mubr.bf16.mxu0 %v20943_v33 }
 0x603   : > { %v11038_v12 = vpop.f32.mrf.mxu0  ;;  %12709 = vmatprep.subr.bf16.mxu0 %v18849_v31  ;;  %v11087_v39 = vpop.f32.mrf.mxu1  ;;  %12689 = vmatmul.mubr.bf16.vlgmr.msra.gmra.mxu1 %v21023_v13 }
 0x604   : > { %v21029_v63 = vadd.f32 %v11087_v39, %v11036_v3  ;;  %12759 = vmatpush1.bf16.msra.mxu1 %v18844_v24  ;;  %12698 = vmatprep.mubr.bf16.mxu1 %v20949_v25  ;;  %v18873_v3 = vld [vmem:[#allocation6 + $0x2e44] ss:$16 sps:$4 sm:$0xff]   ;;  %v18876_v39 = vld [vmem:[#allocation6 + $0x2a4c] ss:$16 sps:$4 sm:$0xff]  }
 0x605   : > { %v11040_v11 = vpop.f32.mrf.mxu0  ;;  %v11089_v26 = vpop.f32.mrf.mxu1  ;;  %12760 = vmatprep.subr.bf16.mxu1 %v18852_v42 }
 0x606   : > { %12710 = vmatpush1.bf16.msra.mxu0 %v18847_v8  ;;  %v21032_v5 = vadd.f32 %v11089_v26, %v11038_v12  ;;  %v18868_v12 = vld [vmem:[#allocation6 + $0x2a68] ss:$16 sps:$4 sm:$0xff]   ;;  %v18882_v26 = vld [vmem:[#allocation6 + $0x2a2c] ss:$16 sps:$4 sm:$0xff]  }
 0x607   : > { %v11042_v32 = vpop.f32.mrf.mxu0  ;;  %12711 = vmatprep.subr.bf16.mxu0 %v18855_v40  ;;  %v11091_v21 = vpop.f32.mrf.mxu1  ;;  %v18871_v40 = vld [vmem:[#allocation6 + $0x2e40] ss:$16 sps:$4 sm:$0xff]  }
 0x608   : > { %v21038_v44 = vadd.f32 %v11091_v21, %v11040_v11  ;;  %12761 = vmatpush1.bf16.msra.mxu1 %v18850_v35  ;;  %v18874_v11 = vld [vmem:[#allocation6 + $0x2a48] ss:$16 sps:$4 sm:$0xff]   ;;  %v18877_v35 = vld [vmem:[#allocation6 + $0x2e20] ss:$16 sps:$4 sm:$0xff]   ;;  %v18891_v21 = vld [vmem:[#allocation6 + $0x2fe4] ss:$16 sps:$4 sm:$0xff]  }
 0x609   : > { %v11046_v9 = vpop.f32.mrf.mxu0  ;;  %12648 = vmatmul.mubr.bf16.gmra.mxu0 %v21008_v29  ;;  %v11093_v19 = vpop.f32.mrf.mxu1  ;;  %12762 = vmatprep.subr.bf16.mxu1 %v18858_v56  ;;  %v18880_v56 = vld [vmem:[#allocation6 + $0x2a28] ss:$16 sps:$4 sm:$0xff]  }
 0x60a   : > { %12712 = vmatpush1.bf16.msra.mxu0 %v18853_v59  ;;  %v21041_v6 = vadd.f32 %v11093_v19, %v11042_v32  ;;  %12739 = vmatprep.mubr.bf16.mxu0 %v21036_v46  ;;  %v18885_v59 = vld [vmem:[#allocation6 + $0x2e04] ss:$16 sps:$4 sm:$0xff]   ;;  %v18883_v32 = vld [vmem:[#allocation6 + $0x2e00] ss:$16 sps:$4 sm:$0xff]   ;;  %v18894_v19 = vld [vmem:[#allocation6 + $0x2bec] ss:$16 sps:$4 sm:$0xff]  }
 0x60b   : > { %12713 = vmatprep.subr.bf16.mxu0 %v18861_v18  ;;  %v11048_v1 = vpop.f32.mrf.mxu0  ;;  %v11097_v61 = vpop.f32.mrf.mxu1  ;;  %12699 = vmatmul.mubr.bf16.gmra.mxu1 %v21014_v27  ;;  %v18888_v18 = vld [vmem:[#allocation6 + $0x2a0c] ss:$16 sps:$4 sm:$0xff]  }
 0x60c   : > { %12763 = vmatpush1.bf16.msra.mxu1 %v18856_v52  ;;  %v21045_v31 = vadd.f32 %v11097_v61, %v11046_v9  ;;  %12790 = vmatprep.mubr.bf16.mxu1 %v20957_v30  ;;  %v18879_v30 = vld [vmem:[#allocation6 + $0x2e24] ss:$16 sps:$4 sm:$0xff]   ;;  %v18886_v52 = vld [vmem:[#allocation6 + $0x2a08] ss:$16 sps:$4 sm:$0xff]   ;;  %v18889_v9 = vld [vmem:[#allocation6 + $0x2fe0] ss:$16 sps:$4 sm:$0xff]  }
 0x60d   : > { %v11050_v4 = vpop.f32.mrf.mxu0  ;;  %12764 = vmatprep.subr.bf16.mxu1 %v18864_v50  ;;  %v11099_v14 = vpop.f32.mrf.mxu1  ;;  %v18892_v50 = vld [vmem:[#allocation6 + $0x2be8] ss:$16 sps:$4 sm:$0xff]   ;;  %v18903_v61 = vld [vmem:[#allocation6 + $0x2fa4] ss:$16 sps:$4 sm:$0xff]  }
 0x60e   : > { %12714 = vmatpush1.bf16.msra.mxu0 %v18859_v43  ;;  %v21048_v24 = vadd.f32 %v11099_v14, %v11048_v1  ;;  %v18897_v43 = vld [vmem:[#allocation6 + $0x2fc4] ss:$16 sps:$4 sm:$0xff]   ;;  %v18900_v1 = vld [vmem:[#allocation6 + $0x2bcc] ss:$16 sps:$4 sm:$0xff]   ;;  %v18901_v4 = vld [vmem:[#allocation6 + $0x2fa0] ss:$16 sps:$4 sm:$0xff]  }
 0x60f   : > { %12715 = vmatprep.subr.bf16.mxu0 %v18867_v10  ;;  %v11051_v8 = vpop.f32.mrf.mxu0  ;;  %v11101_v42 = vpop.f32.mrf.mxu1  ;;  %v18895_v10 = vld [vmem:[#allocation6 + $0x2fc0] ss:$16 sps:$4 sm:$0xff]   ;;  %v18904_v14 = vld [vmem:[#allocation6 + $0x2ba8] ss:$16 sps:$4 sm:$0xff]  }
 0x610   : > { %12765 = vmatpush1.bf16.msra.mxu1 %v18862_v2  ;;  %v18898_v2 = vld [vmem:[#allocation6 + $0x2bc8] ss:$16 sps:$4 sm:$0xff]   ;;  %v18912_v8 = vld [vmem:[#allocation6 + $0x2b8c] ss:$16 sps:$4 sm:$0xff]   ;;  %v18915_v42 = vld [vmem:[#allocation6 + $0x2f64] ss:$16 sps:$4 sm:$0xff]  }
 0x611   : > { %12766 = vmatprep.subr.bf16.mxu1 %v18870_v23  ;;  %v11102_v60 = vpop.f32.mrf.mxu1  ;;  %v18909_v23 = vld [vmem:[#allocation6 + $0x2f84] ss:$16 sps:$4 sm:$0xff]  }
 0x612   : > { %12716 = vmatpush1.bf16.msra.mxu0 %v18865_v47  ;;  %v18906_v47 = vld [vmem:[#allocation6 + $0x2bac] ss:$16 sps:$4 sm:$0xff]   ;;  %v21052_v60 = vcombine.low %v21002_v51, %v21000_v37  ;;  %v18922_v37 = vld [vmem:[#allocation6 + $0x2b48] ss:$16 sps:$4 sm:$0xff]   ;;  %v18925_v51 = vld [vmem:[#allocation6 + $0x2f20] ss:$16 sps:$4 sm:$0xff]  }
 0x613   : > { %12717 = vmatprep.subr.bf16.mxu0 %v18873_v3  ;;  %v18907_v3 = vld [vmem:[#allocation6 + $0x2f80] ss:$16 sps:$4 sm:$0xff]  }
 0x614   : > { %12767 = vmatpush1.bf16.msra.mxu1 %v18868_v12  ;;  %v18910_v12 = vld [vmem:[#allocation6 + $0x2b88] ss:$16 sps:$4 sm:$0xff]  }
 0x615   : > { %12768 = vmatprep.subr.bf16.mxu1 %v18876_v39  ;;  %v18918_v39 = vld [vmem:[#allocation6 + $0x2b6c] ss:$16 sps:$4 sm:$0xff]  }
 0x616   : > { %12718 = vmatpush1.bf16.msra.mxu0 %v18871_v40  ;;  %v18913_v40 = vld [vmem:[#allocation6 + $0x2f60] ss:$16 sps:$4 sm:$0xff]  }
 0x617   : > { %12719 = vmatprep.subr.bf16.mxu0 %v18879_v30  ;;  %v18921_v30 = vld [vmem:[#allocation6 + $0x2f44] ss:$16 sps:$4 sm:$0xff]  }
 0x618   : > { %12769 = vmatpush1.bf16.msra.mxu1 %v18874_v11  ;;  %v18916_v11 = vld [vmem:[#allocation6 + $0x2b68] ss:$16 sps:$4 sm:$0xff]  }
 0x619   : > { %12770 = vmatprep.subr.bf16.mxu1 %v18882_v26  ;;  %v18924_v26 = vld [vmem:[#allocation6 + $0x2b4c] ss:$16 sps:$4 sm:$0xff]  }
 0x61a   : > { %12720 = vmatpush1.bf16.msra.mxu0 %v18877_v35  ;;  %v18919_v35 = vld [vmem:[#allocation6 + $0x2f40] ss:$16 sps:$4 sm:$0xff]  }
 0x61b   : > { %12721 = vmatprep.subr.bf16.mxu0 %v18885_v59  ;;  %v11600_v59 = vshrl.u32 %v20835_v20, 16 }
 0x61c   : > { %12771 = vmatpush1.bf16.msra.mxu1 %v18880_v56  ;;  %v11603_v56 = vshll.u32 %v20835_v20, 16  ;;  %v18928_v20 = vld [vmem:[#allocation6 + $0x2b28] ss:$16 sps:$4 sm:$0xff]  }
 0x61d   : > { %12772 = vmatprep.subr.bf16.mxu1 %v18888_v18  ;;  %v11611_v18 = vshll.u32 %v21052_v60, 16 }
 0x61e   : > { %12722 = vmatpush1.bf16.msra.mxu0 %v18883_v32  ;;  %v11608_v32 = vshrl.u32 %v21052_v60, 16 }
 0x61f   : > { %12723 = vmatprep.subr.bf16.mxu0 %v18891_v21  ;;  %v18927_v21 = vld [vmem:[#allocation6 + $0x2f24] ss:$16 sps:$4 sm:$0xff]  }
 0x620   : > { %12773 = vmatpush1.bf16.msra.mxu1 %v18886_v52  ;;  %v18930_v52 = vld [vmem:[#allocation6 + $0x2b2c] ss:$16 sps:$4 sm:$0xff]  }
 0x621   : > { %12774 = vmatprep.subr.bf16.mxu1 %v18894_v19  ;;  %v11605_v19 = vrot.slane %v11603_v56, 3 }
 0x622   : > { %12724 = vmatpush2.bf16.msra.mxu0 %v18889_v9  ;;  %v11602_v9 = vrot.slane %v11600_v59, 2 }
 0x623   : > { %12725 = vmatprep.subr.bf16.mxu0 %v18897_v43  ;;  %v11610_v43 = vrot.slane %v11608_v32, 2 }
 0x624   : > { %12775 = vmatpush2.bf16.msra.mxu1 %v18892_v50  ;;  %v11613_v50 = vrot.slane %v11611_v18, 3  ;;  %v18948_v18 = vld [vmem:[#allocation6 + $0x2ec8] ss:$16 sps:$4 sm:$0xff]  }
 0x625   : > { %12776 = vmatprep.subr.bf16.mxu1 %v18900_v1  ;;  %v18931_v1 = vld [vmem:[#allocation6 + $0x2f00] ss:$16 sps:$4 sm:$0xff]  }
 0x626   : > { %12726 = vmatpush2.bf16.msra.mxu0 %v18895_v10  ;;  %v18933_v10 = vld [vmem:[#allocation6 + $0x2f04] ss:$16 sps:$4 sm:$0xff]  }
 0x627   : > { %12727 = vmatprep.subr.bf16.mxu0 %v18903_v61  ;;  %v18936_v61 = vld [vmem:[#allocation6 + $0x2b0c] ss:$16 sps:$4 sm:$0xff]  }
 0x628   : > { %12777 = vmatpush2.bf16.msra.mxu1 %v18898_v2  ;;  %v11606_v2 = vor.u32 %v11605_v19, %v11602_v9 }
 0x629   : > { %12778 = vmatprep.subr.bf16.mxu1 %v18906_v47  ;;  %v18941_v47 = vld [vmem:[#allocation6 + $0x2cec] ss:$16 sps:$4 sm:$0xff]  }
 0x62a   : > { %12728 = vmatpush2.bf16.msra.mxu0 %v18901_v4  ;;  %v21058_v4 = vor.u32 %v11613_v50, %v11610_v43  ;;  %v18954_v43 = vld [vmem:[#allocation6 + $0x2ea8] ss:$16 sps:$4 sm:$0xff]  }
 0x62b   : > { %12729 = vmatprep.subr.bf16.mxu0 %v18909_v23  ;;  %v18934_v23 = vld [vmem:[#allocation6 + $0x2b08] ss:$16 sps:$4 sm:$0xff]  }
 0x62c   : > { %12779 = vmatpush2.bf16.msra.mxu1 %v18904_v14  ;;  %v21062_v14 = vsel %vm21486_vm0, %v11606_v2, %v21058_v4 }
 0x62d   : > { %12780 = vmatprep.subr.bf16.mxu1 %v18912_v8  ;;  %v18944_v8 = vld [vmem:[#allocation6 + $0x2eec] ss:$16 sps:$4 sm:$0xff]  }
 0x62e   : > { %12730 = vmatpush2.bf16.msra.mxu0 %v18907_v3  ;;  %v18939_v3 = vld [vmem:[#allocation6 + $0x2ce8] ss:$16 sps:$4 sm:$0xff]  }
 0x62f   : > { %12731 = vmatprep.subr.bf16.mxu0 %v18915_v42  ;;  %v18947_v42 = vld [vmem:[#allocation6 + $0x2ccc] ss:$16 sps:$4 sm:$0xff]  }
 0x630   : > { %12781 = vmatpush2.bf16.msra.mxu1 %v18910_v12 }
 0x631   : > { %12782 = vmatprep.subr.bf16.mxu1 %v18918_v39 }
 0x632   : > { %12732 = vmatpush2.bf16.msra.mxu0 %v18913_v40  ;;  %v18942_v40 = vld [vmem:[#allocation6 + $0x2ee8] ss:$16 sps:$4 sm:$0xff]  }
 0x633   : > { %12733 = vmatprep.subr.bf16.mxu0 %v18921_v30  ;;  %v18945_v30 = vld [vmem:[#allocation6 + $0x2cc8] ss:$16 sps:$4 sm:$0xff]  }
 0x634   : > { %12783 = vmatpush2.bf16.msra.mxu1 %v18916_v11  ;;  %v18950_v11 = vld [vmem:[#allocation6 + $0x2ecc] ss:$16 sps:$4 sm:$0xff]  }
 0x635   : > { %12784 = vmatprep.subr.bf16.mxu1 %v18924_v26  ;;  %v18953_v26 = vld [vmem:[#allocation6 + $0x2cac] ss:$16 sps:$4 sm:$0xff]  }
 0x636   : > { %12734 = vmatpush2.bf16.msra.mxu0 %v18919_v35 }
 0x637   : > { %12735 = vmatprep.subr.bf16.mxu0 %v18927_v21 }
 0x638   : > { %12785 = vmatpush2.bf16.msra.mxu1 %v18922_v37 }
 0x639   : > { %12786 = vmatprep.subr.bf16.mxu1 %v18930_v52  ;;  %v18956_v52 = vld [vmem:[#allocation6 + $0x2eac] ss:$16 sps:$4 sm:$0xff]  }
 0x63a   : > { %12736 = vmatpush2.bf16.msra.mxu0 %v18925_v51 }
 0x63b   : > { %12737 = vmatprep.subr.bf16.mxu0 %v18933_v10 }
 0x63c   : > { %12787 = vmatpush2.bf16.msra.mxu1 %v18928_v20  ;;  %v18962_v20 = vld [vmem:[#allocation6 + $0x2e8c] ss:$16 sps:$4 sm:$0xff]  }
 0x63d   : > { %12788 = vmatprep.subr.bf16.mxu1 %v18936_v61  ;;  %v18965_v61 = vld [vmem:[#allocation6 + $0x2c6c] ss:$16 sps:$4 sm:$0xff]  }
 0x63e   : > { %12738 = vmatpush2.bf16.msra.mxu0 %v18931_v1 }
 0x63f   : > { %12809 = vmatprep.subr.bf16.mxu0 %v18941_v47 }
 0x640   : > { %12789 = vmatpush2.bf16.msra.mxu1 %v18934_v23 }
 0x641   : > { %v11138_v12 = vpop.f32.mrf.mxu0  ;;  %12740 = vmatmul.mubr.bf16.vlgmr.msra.gmra.mxu0 %v21062_v14  ;;  %12860 = vmatprep.subr.bf16.mxu1 %v18944_v8 }
 0x642   : > { %v11139_v39 = vadd.f32 %v11138_v12, %v21029_v63  ;;  %12810 = vmatpush1.bf16.msra.mxu0 %v18939_v3  ;;  %12749 = vmatprep.mubr.bf16.mxu0 %v21027_v28  ;;  %v18968_v3 = vld [vmem:[#allocation6 + $0x2e6c] ss:$16 sps:$4 sm:$0xff]   ;;  %v18969_v12 = vld [vmem:[#allocation6 + $0x2c48] ss:$16 sps:$4 sm:$0xff]  }
 0x643   : > { %v11140_v35 = vpop.f32.mrf.mxu0  ;;  %12811 = vmatprep.subr.bf16.mxu0 %v18947_v42  ;;  %v21070_v56 = vpop.f32.mrf.mxu1  ;;  %12791 = vmatmul.mubr.bf16.vlgmr.msra.gmra.mxu1 %v21018_v62  ;;  %v18959_v62 = vld [vmem:[#allocation6 + $0x2c8c] ss:$16 sps:$4 sm:$0xff]  }
 0x644   : > { %v21068_v59 = vadd.f32 %v11139_v39, %v20865_v17  ;;  %v11141_v32 = vadd.f32 %v11140_v35, %v21032_v5  ;;  %12861 = vmatpush1.bf16.msra.mxu1 %v18942_v40  ;;  %12800 = vmatprep.mubr.bf16.mxu1 %v20943_v33  ;;  %v18951_v17 = vld [vmem:[#allocation6 + $0x2ca8] ss:$16 sps:$4 sm:$0xff]   ;;  %v18974_v40 = vld [vmem:[#allocation6 + $0x2e4c] ss:$16 sps:$4 sm:$0xff]  }
 0x645   : > { %v11142_v63 = vpop.f32.mrf.mxu0  ;;  %v21078_v37 = vpop.f32.mrf.mxu1  ;;  %12862 = vmatprep.subr.bf16.mxu1 %v18950_v11  ;;  %v18972_v39 = vld [vmem:[#allocation6 + $0x2e48] ss:$16 sps:$4 sm:$0xff]   ;;  %v18980_v11 = vld [vmem:[#allocation6 + $0x2e2c] ss:$16 sps:$4 sm:$0xff]  }
 0x646   : > { %v21076_v21 = vadd.f32 %v11141_v32, %v20873_v45  ;;  %v11143_v51 = vadd.f32 %v11142_v63, %v21038_v44  ;;  %12812 = vmatpush1.bf16.msra.mxu0 %v18945_v30  ;;  %v18975_v30 = vld [vmem:[#allocation6 + $0x2c28] ss:$16 sps:$4 sm:$0xff]   ;;  %v18983_v35 = vld [vmem:[#allocation6 + $0x2c0c] ss:$16 sps:$4 sm:$0xff]  }
 0x647   : > { %v11144_v9 = vpop.f32.mrf.mxu0  ;;  %12813 = vmatprep.subr.bf16.mxu0 %v18953_v26  ;;  %v21084_v19 = vpop.f32.mrf.mxu1  ;;  %v18978_v26 = vld [vmem:[#allocation6 + $0x2e28] ss:$16 sps:$4 sm:$0xff]   ;;  %v18986_v63 = vld [vmem:[#allocation6 + $0x2e0c] ss:$16 sps:$4 sm:$0xff]  }
 0x648   : > { %v21082_v5 = vadd.f32 %v11143_v51, %v20879_v55  ;;  %v11145_v33 = vadd.f32 %v11144_v9, %v21041_v6  ;;  %12863 = vmatpush1.bf16.msra.mxu1 %v18948_v18  ;;  %v18957_v55 = vld [vmem:[#allocation6 + $0x2c88] ss:$16 sps:$4 sm:$0xff]   ;;  %v18989_v18 = vld [vmem:[#allocation6 + $0x2dec] ss:$16 sps:$4 sm:$0xff]  }
 0x649   : > { %v11148_v45 = vpop.f32.mrf.mxu0  ;;  %12750 = vmatmul.mubr.bf16.gmra.mxu0 %v21058_v4  ;;  %v21091_v50 = vpop.f32.mrf.mxu1  ;;  %12864 = vmatprep.subr.bf16.mxu1 %v18956_v52  ;;  %v18981_v32 = vld [vmem:[#allocation6 + $0x2c08] ss:$16 sps:$4 sm:$0xff]   ;;  %v18992_v52 = vld [vmem:[#allocation6 + $0x2fec] ss:$16 sps:$4 sm:$0xff]  }
 0x64a   : > { %v21089_v44 = vadd.f32 %v11145_v33, %v20885_v22  ;;  %v11149_v10 = vadd.f32 %v11148_v45, %v21045_v31  ;;  %12814 = vmatpush1.bf16.msra.mxu0 %v18951_v17  ;;  %12841 = vmatprep.mubr.bf16.mxu0 %v20966_v48  ;;  %v18960_v31 = vld [vmem:[#allocation6 + $0x2e88] ss:$16 sps:$4 sm:$0xff]   ;;  %v18995_v9 = vld [vmem:[#allocation6 + $0x2dcc] ss:$16 sps:$4 sm:$0xff]  }
 0x64b   : > { %v11150_v1 = vpop.f32.mrf.mxu0  ;;  %12815 = vmatprep.subr.bf16.mxu0 %v18959_v62  ;;  %v21099_v22 = vpop.f32.mrf.mxu1  ;;  %12801 = vmatmul.mubr.bf16.gmra.mxu1 %v21008_v29  ;;  %v18963_v48 = vld [vmem:[#allocation6 + $0x2c68] ss:$16 sps:$4 sm:$0xff]   ;;  %v18998_v45 = vld [vmem:[#allocation6 + $0x2fcc] ss:$16 sps:$4 sm:$0xff]  }
 0x64c   : > { %v21096_v6 = vadd.f32 %v11149_v10, %v20892_v57  ;;  %v11151_v2 = vadd.f32 %v11150_v1, %v21048_v24  ;;  %12865 = vmatpush1.bf16.msra.mxu1 %v18954_v43  ;;  %12892 = vmatprep.mubr.bf16.mxu1 %v21036_v46  ;;  %v18971_v24 = vld [vmem:[#allocation6 + $0x2c4c] ss:$16 sps:$4 sm:$0xff]   ;;  %v18966_v29 = vld [vmem:[#allocation6 + $0x2e68] ss:$16 sps:$4 sm:$0xff]  }
 0x64d   : > { %v11152_v47 = vpop.f32.mrf.mxu0  ;;  %12866 = vmatprep.subr.bf16.mxu1 %v18962_v20  ;;  %v21106_v57 = vpop.f32.mrf.mxu1  ;;  %v18984_v51 = vld [vmem:[#allocation6 + $0x2e08] ss:$16 sps:$4 sm:$0xff]   ;;  %v19001_v43 = vld [vmem:[#allocation6 + $0x2dac] ss:$16 sps:$4 sm:$0xff]  }
 0x64e   : > { %v21104_v23 = vadd.f32 %v11151_v2, %v20900_v49  ;;  %12816 = vmatpush1.bf16.msra.mxu0 %v18957_v55  ;;  %v18977_v49 = vld [vmem:[#allocation6 + $0x2c2c] ss:$16 sps:$4 sm:$0xff]   ;;  %v18987_v17 = vld [vmem:[#allocation6 + $0x2de8] ss:$16 sps:$4 sm:$0xff]  }
 0x64f   : > { %12817 = vmatprep.subr.bf16.mxu0 %v18965_v61  ;;  %v11153_v8 = vpop.f32.mrf.mxu0  ;;  %v11203_v42 = vpop.f32.mrf.mxu1  ;;  %v18990_v62 = vld [vmem:[#allocation6 + $0x2fe8] ss:$16 sps:$4 sm:$0xff]   ;;  %v19004_v20 = vld [vmem:[#allocation6 + $0x2fac] ss:$16 sps:$4 sm:$0xff]  }
 0x650   : > { %12867 = vmatpush1.bf16.msra.mxu1 %v18960_v31  ;;  %v18993_v33 = vld [vmem:[#allocation6 + $0x2dc8] ss:$16 sps:$4 sm:$0xff]   ;;  %v19007_v1 = vld [vmem:[#allocation6 + $0x2d8c] ss:$16 sps:$4 sm:$0xff]  }
 0x651   : > { %12868 = vmatprep.subr.bf16.mxu1 %v18968_v3  ;;  %v11204_v46 = vpop.f32.mrf.mxu1  ;;  %v18996_v10 = vld [vmem:[#allocation6 + $0x2fc8] ss:$16 sps:$4 sm:$0xff]   ;;  %v19010_v31 = vld [vmem:[#allocation6 + $0x2f8c] ss:$16 sps:$4 sm:$0xff]  }
 0x652   : > { %12818 = vmatpush1.bf16.msra.mxu0 %v18963_v48  ;;  %v18999_v55 = vld [vmem:[#allocation6 + $0x2da8] ss:$16 sps:$4 sm:$0xff]   ;;  %v19013_v47 = vld [vmem:[#allocation6 + $0x2d6c] ss:$16 sps:$4 sm:$0xff]  }
 0x653   : > { %12819 = vmatprep.subr.bf16.mxu0 %v18971_v24  ;;  %v19002_v61 = vld [vmem:[#allocation6 + $0x2fa8] ss:$16 sps:$4 sm:$0xff]   ;;  %v19016_v24 = vld [vmem:[#allocation6 + $0x2f6c] ss:$16 sps:$4 sm:$0xff]  }
 0x654   : > { %12869 = vmatpush1.bf16.msra.mxu1 %v18966_v29  ;;  %v19005_v2 = vld [vmem:[#allocation6 + $0x2d88] ss:$16 sps:$4 sm:$0xff]   ;;  %v19019_v8 = vld [vmem:[#allocation6 + $0x2d4c] ss:$16 sps:$4 sm:$0xff]  }
 0x655   : > { %12870 = vmatprep.subr.bf16.mxu1 %v18974_v40  ;;  %v19008_v48 = vld [vmem:[#allocation6 + $0x2f88] ss:$16 sps:$4 sm:$0xff]   ;;  %v19025_v40 = vld [vmem:[#allocation6 + $0x2d2c] ss:$16 sps:$4 sm:$0xff]  }
 0x656   : > { %12820 = vmatpush1.bf16.msra.mxu0 %v18969_v12  ;;  %v19011_v3 = vld [vmem:[#allocation6 + $0x2d68] ss:$16 sps:$4 sm:$0xff]   ;;  %v19022_v12 = vld [vmem:[#allocation6 + $0x2f4c] ss:$16 sps:$4 sm:$0xff]  }
 0x657   : > { %12821 = vmatprep.subr.bf16.mxu0 %v18977_v49  ;;  %v19014_v42 = vld [vmem:[#allocation6 + $0x2f68] ss:$16 sps:$4 sm:$0xff]  }
 0x658   : > { %12871 = vmatpush1.bf16.msra.mxu1 %v18972_v39  ;;  %v19017_v29 = vld [vmem:[#allocation6 + $0x2d48] ss:$16 sps:$4 sm:$0xff]   ;;  %v19028_v39 = vld [vmem:[#allocation6 + $0x2f2c] ss:$16 sps:$4 sm:$0xff]  }
 0x659   : > { %12872 = vmatprep.subr.bf16.mxu1 %v18980_v11  ;;  %v19020_v46 = vld [vmem:[#allocation6 + $0x2f48] ss:$16 sps:$4 sm:$0xff]  }
 0x65a   : > { %12822 = vmatpush1.bf16.msra.mxu0 %v18975_v30  ;;  %v19023_v49 = vld [vmem:[#allocation6 + $0x2d28] ss:$16 sps:$4 sm:$0xff]   ;;  %v19031_v30 = vld [vmem:[#allocation6 + $0x2d0c] ss:$16 sps:$4 sm:$0xff]  }
 0x65b   : > { %12823 = vmatprep.subr.bf16.mxu0 %v18983_v35  ;;  %v19026_v11 = vld [vmem:[#allocation6 + $0x2f28] ss:$16 sps:$4 sm:$0xff]  }
 0x65c   : > { %12873 = vmatpush1.bf16.msra.mxu1 %v18978_v26  ;;  %v19029_v35 = vld [vmem:[#allocation6 + $0x2d08] ss:$16 sps:$4 sm:$0xff]   ;;  %v19034_v26 = vld [vmem:[#allocation6 + $0x2f0c] ss:$16 sps:$4 sm:$0xff]  }
 0x65d   : > { %12874 = vmatprep.subr.bf16.mxu1 %v18986_v63  ;;  %v19032_v63 = vld [vmem:[#allocation6 + $0x2f08] ss:$16 sps:$4 sm:$0xff]  }
 0x65e   : > { %12824 = vmatpush1.bf16.msra.mxu0 %v18981_v32  ;;  %v19037_v32 = vld [vmem:[#allocation6 + $0x30e4] ss:$16 sps:$4 sm:$0xff]  }
 0x65f   : > { %12825 = vmatprep.subr.bf16.mxu0 %v18989_v18  ;;  %v21108_v18 = vld [vmem:[#allocation2 + $0x18] sm:$0x88] }
 0x660   : > { %12875 = vmatpush1.bf16.msra.mxu1 %v18984_v51  ;;  %v19035_v51 = vld [vmem:[#allocation6 + $0x30e0] ss:$16 sps:$4 sm:$0xff]  }
 0x661   : > { %12876 = vmatprep.subr.bf16.mxu1 %v18992_v52  ;;  %v19043_v52 = vld [vmem:[#allocation6 + $0x30c4] ss:$16 sps:$4 sm:$0xff]  }
 0x662   : > { %12826 = vmatpush2.bf16.msra.mxu0 %v18987_v17  ;;  %v19040_v17 = vld [vmem:[#allocation6 + $0x32e4] ss:$16 sps:$4 sm:$0xff]  }
 0x663   : > { %12827 = vmatprep.subr.bf16.mxu0 %v18995_v9  ;;  %v21110_v9 = vld [vmem:[#allocation2 + $0x50] sm:$0x88] }
 0x664   : > { %12877 = vmatpush2.bf16.msra.mxu1 %v18990_v62  ;;  %v21112_v62 = vld [vmem:[#allocation2 + $0x8] sm:$0xff] }
 0x665   : > { %12878 = vmatprep.subr.bf16.mxu1 %v18998_v45 }
 0x666   : > { %12828 = vmatpush2.bf16.msra.mxu0 %v18993_v33  ;;  %v16353_v33 = vcombine.high %v21108_v18, %v21112_v62 }
 0x667   : > { %12829 = vmatprep.subr.bf16.mxu0 %v19001_v43  ;;  %v19038_v43 = vld [vmem:[#allocation6 + $0x32e0] ss:$16 sps:$4 sm:$0xff]  }
 0x668   : > { %12879 = vmatpush2.bf16.msra.mxu1 %v18996_v10 }
 0x669   : > { %12880 = vmatprep.subr.bf16.mxu1 %v19004_v20  ;;  %v19046_v20 = vld [vmem:[#allocation6 + $0x32c4] ss:$16 sps:$4 sm:$0xff]  }
 0x66a   : > { %12830 = vmatpush2.bf16.msra.mxu0 %v18999_v55  ;;  %v19041_v55 = vld [vmem:[#allocation6 + $0x30c0] ss:$16 sps:$4 sm:$0xff]  }
 0x66b   : > { %12831 = vmatprep.subr.bf16.mxu0 %v19007_v1  ;;  %v21118_v1 = vld [vmem:[#allocation2 + $0x48] sm:$0xff] }
 0x66c   : > { %12881 = vmatpush2.bf16.msra.mxu1 %v19002_v61  ;;  %v16355_v61 = vcombine.high %v21110_v9, %v21118_v1 }
 0x66d   : > { %12882 = vmatprep.subr.bf16.mxu1 %v19010_v31  ;;  %v19049_v31 = vld [vmem:[#allocation6 + $0x30a4] ss:$16 sps:$4 sm:$0xff]  }
 0x66e   : > { %12832 = vmatpush2.bf16.msra.mxu0 %v19005_v2 }
 0x66f   : > { %12833 = vmatprep.subr.bf16.mxu0 %v19013_v47 }
 0x670   : > { %12883 = vmatpush2.bf16.msra.mxu1 %v19008_v48  ;;  %v21126_v48 = vrot.slane %v20912_v0, 3 }
 0x671   : > { %12884 = vmatprep.subr.bf16.mxu1 %v19016_v24 }
 0x672   : > { %12834 = vmatpush2.bf16.msra.mxu0 %v19011_v3 }
 0x673   : > { %12835 = vmatprep.subr.bf16.mxu0 %v19019_v8  ;;  %v19044_v8 = vld [vmem:[#allocation6 + $0x32c0] ss:$16 sps:$4 sm:$0xff]  }
 0x674   : > { %12885 = vmatpush2.bf16.msra.mxu1 %v19014_v42 }
 0x675   : > { %12886 = vmatprep.subr.bf16.mxu1 %v19022_v12  ;;  %v19052_v12 = vld [vmem:[#allocation6 + $0x32a4] ss:$16 sps:$4 sm:$0xff]  }
 0x676   : > { %12836 = vmatpush2.bf16.msra.mxu0 %v19017_v29 }
 0x677   : > { %12837 = vmatprep.subr.bf16.mxu0 %v19025_v40 }
 0x678   : > { %12887 = vmatpush2.bf16.msra.mxu1 %v19020_v46 }
 0x679   : > { %12888 = vmatprep.subr.bf16.mxu1 %v19028_v39 }
 0x67a   : > { %12838 = vmatpush2.bf16.msra.mxu0 %v19023_v49  ;;  %v19055_v49 = vld [vmem:[#allocation6 + $0x3084] ss:$16 sps:$4 sm:$0xff]  }
 0x67b   : > { %12839 = vmatprep.subr.bf16.mxu0 %v19031_v30 }
 0x67c   : > { %12889 = vmatpush2.bf16.msra.mxu1 %v19026_v11 }
 0x67d   : > { %12890 = vmatprep.subr.bf16.mxu1 %v19034_v26 }
 0x67e   : > { %12840 = vmatpush2.bf16.msra.mxu0 %v19029_v35 }
 0x67f   : > { %14124 = vmatprep.subr.bf16.mxu0 %v19037_v32  ;;  %v19053_v32 = vld [vmem:[#allocation6 + $0x3080] ss:$16 sps:$4 sm:$0xff]  }
 0x680   : > { %12891 = vmatpush2.bf16.msra.mxu1 %v19032_v63 }
 0x681   : > { %v11240_v45 = vpop.f32.mrf.mxu0  ;;  %12842 = vmatmul.mubr.bf16.vlgmr.msra.gmra.mxu0 %v21023_v13  ;;  %14175 = vmatprep.subr.bf16.mxu1 %v19040_v17 }
 0x682   : > { %v11241_v10 = vadd.f32 %v11240_v45, %v21070_v56  ;;  %14125 = vmatpush1.bf16.msra.mxu0 %v19035_v51  ;;  %12851 = vmatprep.mubr.bf16.mxu0 %v20949_v25  ;;  %v13137_v56 = vrot.slane %v16353_v33, 3  ;;  %v19047_v25 = vld [vmem:[#allocation6 + $0x30a0] ss:$16 sps:$4 sm:$0xff]  }
 0x683   : > { %v11242_v2 = vpop.f32.mrf.mxu0  ;;  %14126 = vmatprep.subr.bf16.mxu0 %v19043_v52  ;;  %v11291_v47 = vpop.f32.mrf.mxu1  ;;  %12893 = vmatmul.mubr.bf16.vlgmr.msra.gmra.mxu1 %v21062_v14  ;;  %v13143_v14 = vrot.slane %v16355_v61, 3  ;;  %v19061_v52 = vld [vmem:[#allocation6 + $0x3064] ss:$16 sps:$4 sm:$0xff]  }
 0x684   : > { %v11243_v13 = vadd.f32 %v11242_v2, %v21078_v37  ;;  %v11292_v3 = vadd.f32 %v11291_v47, %v11241_v10  ;;  %14176 = vmatpush1.bf16.msra.mxu1 %v19038_v43  ;;  %12902 = vmatprep.mubr.bf16.mxu1 %v21027_v28  ;;  %v21131_v37 = vrot.slane %v20920_v36, 3  ;;  %v19056_v43 = vld [vmem:[#allocation6 + $0x3280] ss:$16 sps:$4 sm:$0xff]  }
 0x685   : > { %v11244_v24 = vpop.f32.mrf.mxu0  ;;  %v11293_v42 = vpop.f32.mrf.mxu1  ;;  %14177 = vmatprep.subr.bf16.mxu1 %v19046_v20  ;;  %v19064_v20 = vld [vmem:[#allocation6 + $0x3264] ss:$16 sps:$4 sm:$0xff]   ;;  %v19062_v47 = vld [vmem:[#allocation6 + $0x3260] ss:$16 sps:$4 sm:$0xff]  }
 0x686   : > { %v11245_v29 = vadd.f32 %v11244_v24, %v21084_v19  ;;  %14127 = vmatpush1.bf16.msra.mxu0 %v19041_v55  ;;  %v21134_v0 = vadd.f32 %v11292_v3, %v20952_v54  ;;  %v11294_v40 = vadd.f32 %v11293_v42, %v11243_v13  ;;  %v21139_v19 = vsel %vm5351_vm4, %v13137_v56, %v21126_v48  ;;  %v19050_v54 = vld [vmem:[#allocation6 + $0x32a0] ss:$16 sps:$4 sm:$0xff]   ;;  %v19070_v56 = vld [vmem:[#allocation6 + $0x3244] ss:$16 sps:$4 sm:$0xff]  }
 0x687   : > { %v11246_v46 = vpop.f32.mrf.mxu0  ;;  %14128 = vmatprep.subr.bf16.mxu0 %v19049_v31  ;;  %v11295_v39 = vpop.f32.mrf.mxu1  ;;  %v21148_v63 = vsel %vm5351_vm4, %v13143_v14, %v21131_v37  ;;  %v19059_v55 = vld [vmem:[#allocation6 + $0x3060] ss:$16 sps:$4 sm:$0xff]   ;;  %v19073_v24 = vld [vmem:[#allocation6 + $0x3024] ss:$16 sps:$4 sm:$0xff]  }
 0x688   : > { %v11247_v28 = vadd.f32 %v11246_v46, %v21091_v50  ;;  %v21142_v30 = vadd.f32 %v11294_v40, %v20960_v16  ;;  %v11296_v11 = vadd.f32 %v11295_v39, %v11245_v29  ;;  %14178 = vmatpush1.bf16.msra.mxu1 %v19044_v8  ;;  %v19058_v50 = vld [vmem:[#allocation6 + $0x3284] ss:$16 sps:$4 sm:$0xff]   ;;  %v19065_v13 = vld [vmem:[#allocation6 + $0x3040] ss:$16 sps:$4 sm:$0xff]  }
 0x689   : > { %v11250_v36 = vpop.f32.mrf.mxu0  ;;  %12852 = vmatmul.mubr.bf16.gmra.mxu0 %v21014_v27  ;;  %v11297_v35 = vpop.f32.mrf.mxu1  ;;  %14179 = vmatprep.subr.bf16.mxu1 %v19052_v12  ;;  %v19071_v8 = vld [vmem:[#allocation6 + $0x3020] ss:$16 sps:$4 sm:$0xff]   ;;  %v19076_v42 = vld [vmem:[#allocation6 + $0x3224] ss:$16 sps:$4 sm:$0xff]  }
 0x68a   : > { %v11251_v26 = vadd.f32 %v11250_v36, %v21099_v22  ;;  %14129 = vmatpush1.bf16.msra.mxu0 %v19047_v25  ;;  %v21151_v16 = vadd.f32 %v11296_v11, %v20970_v34  ;;  %v11298_v51 = vadd.f32 %v11297_v35, %v11247_v28  ;;  %14156 = vmatprep.mubr.bf16.mxu0 %v21139_v19  ;;  %v19079_v29 = vld [vmem:[#allocation6 + $0x3004] ss:$16 sps:$4 sm:$0xff]   ;;  %v19077_v25 = vld [vmem:[#allocation6 + $0x3000] ss:$16 sps:$4 sm:$0xff]  }
 0x68b   : > { %v11252_v17 = vpop.f32.mrf.mxu0  ;;  %14130 = vmatprep.subr.bf16.mxu0 %v19055_v49  ;;  %v11301_v22 = vpop.f32.mrf.mxu1  ;;  %12903 = vmatmul.mubr.bf16.gmra.mxu1 %v21058_v4  ;;  %v19067_v4 = vld [vmem:[#allocation6 + $0x3044] ss:$16 sps:$4 sm:$0xff]   ;;  %v19080_v40 = vld [vmem:[#allocation6 + $0x3200] ss:$16 sps:$4 sm:$0xff]  }
 0x68c   : > { %v11253_v27 = vadd.f32 %v11252_v17, %v21106_v57  ;;  %v21157_v33 = vadd.f32 %v11298_v51, %v20975_v53  ;;  %14180 = vmatpush1.bf16.msra.mxu1 %v19050_v54  ;;  %v11302_v45 = vadd.f32 %v11301_v22, %v11251_v26  ;;  %14207 = vmatprep.mubr.bf16.mxu1 %v21148_v63  ;;  %v19082_v12 = vld [vmem:[#allocation6 + $0x3204] ss:$16 sps:$4 sm:$0xff]   ;;  %v19083_v46 = vld [vmem:[#allocation6 + $0x31e0] ss:$16 sps:$4 sm:$0xff]  }
 0x68d   : > { %v11254_v10 = vpop.f32.mrf.mxu0  ;;  %v11303_v34 = vpop.f32.mrf.mxu1  ;;  %14181 = vmatprep.subr.bf16.mxu1 %v19058_v50  ;;  %v19085_v14 = vld [vmem:[#allocation6 + $0x31e4] ss:$16 sps:$4 sm:$0xff]   ;;  %v19086_v28 = vld [vmem:[#allocation6 + $0x33e0] ss:$16 sps:$4 sm:$0xff]  }
 0x68e   : > { %14131 = vmatpush1.bf16.msra.mxu0 %v19053_v32  ;;  %v21161_v61 = vadd.f32 %v11302_v45, %v20979_v7  ;;  %v11304_v57 = vadd.f32 %v11303_v34, %v11253_v27  ;;  %v19068_v7 = vld [vmem:[#allocation6 + $0x3240] ss:$16 sps:$4 sm:$0xff]   ;;  %v19088_v49 = vld [vmem:[#allocation6 + $0x33e4] ss:$16 sps:$4 sm:$0xff]  }
 0x68f   : > { %14132 = vmatprep.subr.bf16.mxu0 %v19061_v52  ;;  %v11255_v2 = vpop.f32.mrf.mxu0  ;;  %v11305_v53 = vpop.f32.mrf.mxu1  ;;  %v19091_v39 = vld [vmem:[#allocation6 + $0x31c4] ss:$16 sps:$4 sm:$0xff]   ;;  %v19089_v11 = vld [vmem:[#allocation6 + $0x31c0] ss:$16 sps:$4 sm:$0xff]  }
 0x690   : > { %v21164_v31 = vadd.f32 %v11304_v57, %v20982_v38  ;;  %14182 = vmatpush1.bf16.msra.mxu1 %v19056_v43  ;;  %v19074_v38 = vld [vmem:[#allocation6 + $0x3220] ss:$16 sps:$4 sm:$0xff]   ;;  %v19094_v36 = vld [vmem:[#allocation6 + $0x33c4] ss:$16 sps:$4 sm:$0xff]  }
 0x691   : > { %14183 = vmatprep.subr.bf16.mxu1 %v19064_v20  ;;  %v11306_v3 = vpop.f32.mrf.mxu1  ;;  %v19097_v54 = vld [vmem:[#allocation6 + $0x31a4] ss:$16 sps:$4 sm:$0xff]   ;;  %v19092_v35 = vld [vmem:[#allocation6 + $0x33c0] ss:$16 sps:$4 sm:$0xff]  }
 0x692   : > { %14133 = vmatpush1.bf16.msra.mxu0 %v19059_v55  ;;  %v19095_v26 = vld [vmem:[#allocation6 + $0x31a0] ss:$16 sps:$4 sm:$0xff]   ;;  %v19100_v32 = vld [vmem:[#allocation6 + $0x33a4] ss:$16 sps:$4 sm:$0xff]   ;;  %v16354_v3 = vcombine.low %v21110_v9, %v21118_v1 }
 0x693   : > { %14134 = vmatprep.subr.bf16.mxu0 %v19067_v4  ;;  %v19103_v50 = vld [vmem:[#allocation6 + $0x3184] ss:$16 sps:$4 sm:$0xff]   ;;  %v19098_v51 = vld [vmem:[#allocation6 + $0x33a0] ss:$16 sps:$4 sm:$0xff]  }
 0x694   : > { %14184 = vmatpush1.bf16.msra.mxu1 %v19062_v47  ;;  %v19101_v17 = vld [vmem:[#allocation6 + $0x3180] ss:$16 sps:$4 sm:$0xff]   ;;  %v19106_v52 = vld [vmem:[#allocation6 + $0x3384] ss:$16 sps:$4 sm:$0xff]   ;;  %v16352_v47 = vcombine.low %v21108_v18, %v21112_v62  ;;  %v13140_v18 = vrot.slane %v16354_v3, 3  ;;  %v21174_v62 = vrot.slane %v20990_v15, 3 }
 0x695   : > { %14185 = vmatprep.subr.bf16.mxu1 %v19070_v56  ;;  %v19109_v27 = vld [vmem:[#allocation6 + $0x3164] ss:$16 sps:$4 sm:$0xff]   ;;  %v19104_v22 = vld [vmem:[#allocation6 + $0x3380] ss:$16 sps:$4 sm:$0xff]   ;;  %v19156_v3 = vld [vmem:[#allocation6 + $0x3088] ss:$16 sps:$4 sm:$0xff]  }
 0x696   : > { %14135 = vmatpush1.bf16.msra.mxu0 %v19065_v13  ;;  %v19107_v45 = vld [vmem:[#allocation6 + $0x3160] ss:$16 sps:$4 sm:$0xff]   ;;  %v19112_v43 = vld [vmem:[#allocation6 + $0x3364] ss:$16 sps:$4 sm:$0xff]  }
 0x697   : > { %14136 = vmatprep.subr.bf16.mxu0 %v19073_v24  ;;  %v19115_v10 = vld [vmem:[#allocation6 + $0x3144] ss:$16 sps:$4 sm:$0xff]   ;;  %v19110_v34 = vld [vmem:[#allocation6 + $0x3360] ss:$16 sps:$4 sm:$0xff]  }
 0x698   : > { %14186 = vmatpush1.bf16.msra.mxu1 %v19068_v7  ;;  %v19113_v55 = vld [vmem:[#allocation6 + $0x3140] ss:$16 sps:$4 sm:$0xff]   ;;  %v19118_v20 = vld [vmem:[#allocation6 + $0x3344] ss:$16 sps:$4 sm:$0xff]  }
 0x699   : > { %14187 = vmatprep.subr.bf16.mxu1 %v19076_v42  ;;  %v19121_v57 = vld [vmem:[#allocation6 + $0x3124] ss:$16 sps:$4 sm:$0xff]   ;;  %v19116_v4 = vld [vmem:[#allocation6 + $0x3340] ss:$16 sps:$4 sm:$0xff]   ;;  %v21171_v42 = vrot.slane %v20986_v41, 3 }
 0x69a   : > { %14137 = vmatpush1.bf16.msra.mxu0 %v19071_v8  ;;  %v19119_v2 = vld [vmem:[#allocation6 + $0x3120] ss:$16 sps:$4 sm:$0xff]   ;;  %v19124_v53 = vld [vmem:[#allocation6 + $0x3324] ss:$16 sps:$4 sm:$0xff]   ;;  %v13134_v8 = vrot.slane %v16352_v47, 3 }
 0x69b   : > { %14138 = vmatprep.subr.bf16.mxu0 %v19079_v29  ;;  %v19127_v13 = vld [vmem:[#allocation6 + $0x3104] ss:$16 sps:$4 sm:$0xff]   ;;  %v19122_v56 = vld [vmem:[#allocation6 + $0x3320] ss:$16 sps:$4 sm:$0xff]  }
 0x69c   : > { %14188 = vmatpush1.bf16.msra.mxu1 %v19074_v38  ;;  %v19125_v24 = vld [vmem:[#allocation6 + $0x3100] ss:$16 sps:$4 sm:$0xff]   ;;  %v19130_v7 = vld [vmem:[#allocation6 + $0x3304] ss:$16 sps:$4 sm:$0xff]   ;;  %v21180_v9 = vsel %vm5351_vm4, %v13134_v8, %v21171_v42 }
 0x69d   : > { %14189 = vmatprep.subr.bf16.mxu1 %v19082_v12  ;;  %v19137_v29 = vld [vmem:[#allocation6 + $0x34e4] ss:$16 sps:$4 sm:$0xff]   ;;  %v19128_v38 = vld [vmem:[#allocation6 + $0x3300] ss:$16 sps:$4 sm:$0xff]   ;;  %v19140_v12 = vld [vmem:[#allocation6 + $0x30ec] ss:$16 sps:$4 sm:$0xff]  }
 0x69e   : > { %14139 = vmatpush1.bf16.msra.mxu0 %v19077_v25  ;;  %v21176_v25 = vld [vmem:[#allocation2 + $0x68] sm:$0x88] }
 0x69f   : > { %14140 = vmatprep.subr.bf16.mxu0 %v19085_v14  ;;  %v19135_v1 = vld [vmem:[#allocation6 + $0x34e0] ss:$16 sps:$4 sm:$0xff]   ;;  %v19143_v41 = vld [vmem:[#allocation6 + $0x34c4] ss:$16 sps:$4 sm:$0xff]   ;;  %v21182_v14 = vld [vmem:[#allocation2 + $0x40] sm:$0xff] }
 0x6a0   : > { %14190 = vmatpush1.bf16.msra.mxu1 %v19080_v40  ;;  %v16357_v40 = vcombine.high %v21176_v25, %v21182_v14  ;;  %v19161_v47 = vld [vmem:[#allocation6 + $0x3464] ss:$16 sps:$4 sm:$0xff]   ;;  %v19159_v8 = vld [vmem:[#allocation6 + $0x3460] ss:$16 sps:$4 sm:$0xff]  }
 0x6a1   : > { %14191 = vmatprep.subr.bf16.mxu1 %v19088_v49  ;;  %v19138_v49 = vld [vmem:[#allocation6 + $0x30e8] ss:$16 sps:$4 sm:$0xff]  }
 0x6a2   : > { %14141 = vmatpush2.bf16.msra.mxu0 %v19083_v46  ;;  %v21189_v46 = vsel %vm5351_vm4, %v13140_v18, %v21174_v62  ;;  %v19167_v18 = vld [vmem:[#allocation6 + $0x3444] ss:$16 sps:$4 sm:$0xff]  }
 0x6a3   : > { %14142 = vmatprep.subr.bf16.mxu0 %v19091_v39  ;;  %v19141_v39 = vld [vmem:[#allocation6 + $0x34c0] ss:$16 sps:$4 sm:$0xff]  }
 0x6a4   : > { %14192 = vmatpush2.bf16.msra.mxu1 %v19086_v28  ;;  %v19146_v28 = vld [vmem:[#allocation6 + $0x30cc] ss:$16 sps:$4 sm:$0xff]  }
 0x6a5   : > { %14193 = vmatprep.subr.bf16.mxu1 %v19094_v36  ;;  %v19149_v36 = vld [vmem:[#allocation6 + $0x34a4] ss:$16 sps:$4 sm:$0xff]  }
 0x6a6   : > { %14143 = vmatpush2.bf16.msra.mxu0 %v19089_v11 }
 0x6a7   : > { %14144 = vmatprep.subr.bf16.mxu0 %v19097_v54 }
 0x6a8   : > { %14194 = vmatpush2.bf16.msra.mxu1 %v19092_v35  ;;  %v13149_v35 = vrot.slane %v16357_v40, 3  ;;  %v19162_v40 = vld [vmem:[#allocation6 + $0x3068] ss:$16 sps:$4 sm:$0xff]  }
 0x6a9   : > { %14195 = vmatprep.subr.bf16.mxu1 %v19100_v32 }
 0x6aa   : > { %14145 = vmatpush2.bf16.msra.mxu0 %v19095_v26  ;;  %v21194_v26 = vrot.slane %v21006_v58, 3 }
 0x6ab   : > { %14146 = vmatprep.subr.bf16.mxu0 %v19103_v50 }
 0x6ac   : > { %14196 = vmatpush2.bf16.msra.mxu1 %v19098_v51  ;;  %v19144_v51 = vld [vmem:[#allocation6 + $0x30c8] ss:$16 sps:$4 sm:$0xff]   ;;  %v21203_v58 = vsel %vm5351_vm4, %v13149_v35, %v21194_v26 }
 0x6ad   : > { %14197 = vmatprep.subr.bf16.mxu1 %v19106_v52  ;;  %v19147_v52 = vld [vmem:[#allocation6 + $0x34a0] ss:$16 sps:$4 sm:$0xff]   ;;  %v19174_v35 = vld [vmem:[#allocation6 + $0x3028] ss:$16 sps:$4 sm:$0xff]  }
 0x6ae   : > { %14147 = vmatpush2.bf16.msra.mxu0 %v19101_v17 }
 0x6af   : > { %14148 = vmatprep.subr.bf16.mxu0 %v19109_v27  ;;  %v19152_v27 = vld [vmem:[#allocation6 + $0x30ac] ss:$16 sps:$4 sm:$0xff]  }
 0x6b0   : > { %14198 = vmatpush2.bf16.msra.mxu1 %v19104_v22 }
 0x6b1   : > { %14199 = vmatprep.subr.bf16.mxu1 %v19112_v43  ;;  %v19155_v43 = vld [vmem:[#allocation6 + $0x3484] ss:$16 sps:$4 sm:$0xff]  }
 0x6b2   : > { %14149 = vmatpush2.bf16.msra.mxu0 %v19107_v45 }
 0x6b3   : > { %14150 = vmatprep.subr.bf16.mxu0 %v19115_v10 }
 0x6b4   : > { %14200 = vmatpush2.bf16.msra.mxu1 %v19110_v34 }
 0x6b5   : > { %14201 = vmatprep.subr.bf16.mxu1 %v19118_v20 }
 0x6b6   : > { %14151 = vmatpush2.bf16.msra.mxu0 %v19113_v55  ;;  %v19150_v55 = vld [vmem:[#allocation6 + $0x30a8] ss:$16 sps:$4 sm:$0xff]  }
 0x6b7   : > { %14152 = vmatprep.subr.bf16.mxu0 %v19121_v57 }
 0x6b8   : > { %14202 = vmatpush2.bf16.msra.mxu1 %v19116_v4  ;;  %v19153_v4 = vld [vmem:[#allocation6 + $0x3480] ss:$16 sps:$4 sm:$0xff]  }
 0x6b9   : > { %14203 = vmatprep.subr.bf16.mxu1 %v19124_v53 }
 0x6ba   : > { %14153 = vmatpush2.bf16.msra.mxu0 %v19119_v2  ;;  %v19158_v2 = vld [vmem:[#allocation6 + $0x308c] ss:$16 sps:$4 sm:$0xff]  }
 0x6bb   : > { %14154 = vmatprep.subr.bf16.mxu0 %v19127_v13 }
 0x6bc   : > { %14204 = vmatpush2.bf16.msra.mxu1 %v19122_v56 }
 0x6bd   : > { %14205 = vmatprep.subr.bf16.mxu1 %v19130_v7 }
 0x6be   : > { %14155 = vmatpush2.bf16.msra.mxu0 %v19125_v24 }
 0x6bf   : > { %14226 = vmatprep.subr.bf16.mxu0 %v19137_v29  ;;  %v19164_v29 = vld [vmem:[#allocation6 + $0x306c] ss:$16 sps:$4 sm:$0xff]  }
 0x6c0   : > { %14206 = vmatpush2.bf16.msra.mxu1 %v19128_v38 }
 0x6c1   : > { %v12639_v15 = vpop.f32.mrf.mxu0  ;;  %14157 = vmatmul.mubr.bf16.vlgmr.msra.gmra.mxu0 %v21180_v9  ;;  %14277 = vmatprep.subr.bf16.mxu1 %v19140_v12 }
 0x6c2   : > { %14227 = vmatpush1.bf16.msra.mxu0 %v19135_v1  ;;  %14166 = vmatprep.mubr.bf16.mxu0 %v21126_v48 }
 0x6c3   : > { %v12641_v11 = vpop.f32.mrf.mxu0  ;;  %14228 = vmatprep.subr.bf16.mxu0 %v19143_v41  ;;  %v12690_v54 = vpop.f32.mrf.mxu1  ;;  %14208 = vmatmul.mubr.bf16.vlgmr.msra.gmra.mxu1 %v21189_v46 }
 0x6c4   : > { %v21196_v32 = vadd.f32 %v12690_v54, %v12639_v15  ;;  %14278 = vmatpush1.bf16.msra.mxu1 %v19138_v49  ;;  %14217 = vmatprep.mubr.bf16.mxu1 %v21131_v37  ;;  %v19165_v15 = vld [vmem:[#allocation6 + $0x3440] ss:$16 sps:$4 sm:$0xff]   ;;  %v19170_v49 = vld [vmem:[#allocation6 + $0x304c] ss:$16 sps:$4 sm:$0xff]   ;;  %v19179_v54 = vld [vmem:[#allocation6 + $0x3404] ss:$16 sps:$4 sm:$0xff]  }
 0x6c5   : > { %v12643_v50 = vpop.f32.mrf.mxu0  ;;  %v12692_v17 = vpop.f32.mrf.mxu1  ;;  %14279 = vmatprep.subr.bf16.mxu1 %v19146_v28  ;;  %v19168_v28 = vld [vmem:[#allocation6 + $0x3048] ss:$16 sps:$4 sm:$0xff]  }
 0x6c6   : > { %14229 = vmatpush1.bf16.msra.mxu0 %v19141_v39  ;;  %v21199_v22 = vadd.f32 %v12692_v17, %v12641_v11  ;;  %v19171_v11 = vld [vmem:[#allocation6 + $0x3420] ss:$16 sps:$4 sm:$0xff]   ;;  %v19185_v17 = vld [vmem:[#allocation6 + $0x35e4] ss:$16 sps:$4 sm:$0xff]  }
 0x6c7   : > { %v12645_v45 = vpop.f32.mrf.mxu0  ;;  %14230 = vmatprep.subr.bf16.mxu0 %v19149_v36  ;;  %v12694_v10 = vpop.f32.mrf.mxu1  ;;  %v19176_v36 = vld [vmem:[#allocation6 + $0x302c] ss:$16 sps:$4 sm:$0xff]  }
 0x6c8   : > { %v21205_v34 = vadd.f32 %v12694_v10, %v12643_v50  ;;  %14280 = vmatpush1.bf16.msra.mxu1 %v19144_v51  ;;  %v19177_v50 = vld [vmem:[#allocation6 + $0x3400] ss:$16 sps:$4 sm:$0xff]   ;;  %v19182_v51 = vld [vmem:[#allocation6 + $0x300c] ss:$16 sps:$4 sm:$0xff]   ;;  %v19186_v10 = vld [vmem:[#allocation6 + $0x31e8] ss:$16 sps:$4 sm:$0xff]  }
 0x6c9   : > { %v12649_v20 = vpop.f32.mrf.mxu0  ;;  %14167 = vmatmul.mubr.bf16.gmra.mxu0 %v21171_v42  ;;  %v12696_v57 = vpop.f32.mrf.mxu1  ;;  %14281 = vmatprep.subr.bf16.mxu1 %v19152_v27  ;;  %v19183_v27 = vld [vmem:[#allocation6 + $0x35e0] ss:$16 sps:$4 sm:$0xff]  }
 0x6ca   : > { %14231 = vmatpush1.bf16.msra.mxu0 %v19147_v52  ;;  %v21208_v53 = vadd.f32 %v12696_v57, %v12645_v45  ;;  %14258 = vmatprep.mubr.bf16.mxu0 %v21203_v58  ;;  %v19180_v52 = vld [vmem:[#allocation6 + $0x3008] ss:$16 sps:$4 sm:$0xff]   ;;  %v19188_v45 = vld [vmem:[#allocation6 + $0x31ec] ss:$16 sps:$4 sm:$0xff]   ;;  %v19197_v57 = vld [vmem:[#allocation6 + $0x35a4] ss:$16 sps:$4 sm:$0xff]  }
 0x6cb   : > { %14232 = vmatprep.subr.bf16.mxu0 %v19155_v43  ;;  %v12651_v13 = vpop.f32.mrf.mxu0  ;;  %v12700_v56 = vpop.f32.mrf.mxu1  ;;  %14218 = vmatmul.mubr.bf16.gmra.mxu1 %v21174_v62  ;;  %v19191_v43 = vld [vmem:[#allocation6 + $0x35c4] ss:$16 sps:$4 sm:$0xff]  }
 0x6cc   : > { %14282 = vmatpush1.bf16.msra.mxu1 %v19150_v55  ;;  %v21212_v24 = vadd.f32 %v12700_v56, %v12649_v20  ;;  %14309 = vmatprep.mubr.bf16.mxu1 %v21139_v19  ;;  %v19173_v19 = vld [vmem:[#allocation6 + $0x3424] ss:$16 sps:$4 sm:$0xff]   ;;  %v19189_v55 = vld [vmem:[#allocation6 + $0x35c0] ss:$16 sps:$4 sm:$0xff]   ;;  %v19194_v20 = vld [vmem:[#allocation6 + $0x31cc] ss:$16 sps:$4 sm:$0xff]  }
 0x6cd   : > { %v12653_v7 = vpop.f32.mrf.mxu0  ;;  %14283 = vmatprep.subr.bf16.mxu1 %v19158_v2  ;;  %v12702_v38 = vpop.f32.mrf.mxu1  ;;  %v19195_v2 = vld [vmem:[#allocation6 + $0x35a0] ss:$16 sps:$4 sm:$0xff]   ;;  %v19198_v56 = vld [vmem:[#allocation6 + $0x31a8] ss:$16 sps:$4 sm:$0xff]  }
 0x6ce   : > { %14233 = vmatpush1.bf16.msra.mxu0 %v19153_v4  ;;  %v21215_v1 = vadd.f32 %v12702_v38, %v12651_v13  ;;  %v19192_v4 = vld [vmem:[#allocation6 + $0x31c8] ss:$16 sps:$4 sm:$0xff]   ;;  %v19203_v13 = vld [vmem:[#allocation6 + $0x3584] ss:$16 sps:$4 sm:$0xff]   ;;  %v19206_v7 = vld [vmem:[#allocation6 + $0x318c] ss:$16 sps:$4 sm:$0xff]  }
 0x6cf   : > { %14234 = vmatprep.subr.bf16.mxu0 %v19161_v47  ;;  %v12654_v12 = vpop.f32.mrf.mxu0  ;;  %v12704_v41 = vpop.f32.mrf.mxu1  ;;  %v19200_v47 = vld [vmem:[#allocation6 + $0x31ac] ss:$16 sps:$4 sm:$0xff]   ;;  %v19207_v38 = vld [vmem:[#allocation6 + $0x3560] ss:$16 sps:$4 sm:$0xff]  }
 0x6d0   : > { %14284 = vmatpush1.bf16.msra.mxu1 %v19156_v3  ;;  %v19201_v3 = vld [vmem:[#allocation6 + $0x3580] ss:$16 sps:$4 sm:$0xff]   ;;  %v19215_v12 = vld [vmem:[#allocation6 + $0x3544] ss:$16 sps:$4 sm:$0xff]   ;;  %v19210_v41 = vld [vmem:[#allocation6 + $0x3168] ss:$16 sps:$4 sm:$0xff]  }
 0x6d1   : > { %14285 = vmatprep.subr.bf16.mxu1 %v19164_v29  ;;  %v12705_v39 = vpop.f32.mrf.mxu1  ;;  %v19204_v29 = vld [vmem:[#allocation6 + $0x3188] ss:$16 sps:$4 sm:$0xff]  }
 0x6d2   : > { %14235 = vmatpush1.bf16.msra.mxu0 %v19159_v8  ;;  %v19209_v8 = vld [vmem:[#allocation6 + $0x3564] ss:$16 sps:$4 sm:$0xff]   ;;  %v19216_v39 = vld [vmem:[#allocation6 + $0x3148] ss:$16 sps:$4 sm:$0xff]  }
 0x6d3   : > { %14236 = vmatprep.subr.bf16.mxu0 %v19167_v18  ;;  %v19212_v18 = vld [vmem:[#allocation6 + $0x316c] ss:$16 sps:$4 sm:$0xff]  }
 0x6d4   : > { %14286 = vmatpush1.bf16.msra.mxu1 %v19162_v40  ;;  %v19213_v40 = vld [vmem:[#allocation6 + $0x3540] ss:$16 sps:$4 sm:$0xff]  }
 0x6d5   : > { %14287 = vmatprep.subr.bf16.mxu1 %v19170_v49  ;;  %v19221_v49 = vld [vmem:[#allocation6 + $0x3524] ss:$16 sps:$4 sm:$0xff]  }
 0x6d6   : > { %14237 = vmatpush1.bf16.msra.mxu0 %v19165_v15  ;;  %v19218_v15 = vld [vmem:[#allocation6 + $0x314c] ss:$16 sps:$4 sm:$0xff]  }
 0x6d7   : > { %14238 = vmatprep.subr.bf16.mxu0 %v19173_v19  ;;  %v19219_v19 = vld [vmem:[#allocation6 + $0x3520] ss:$16 sps:$4 sm:$0xff]  }
 0x6d8   : > { %14288 = vmatpush1.bf16.msra.mxu1 %v19168_v28  ;;  %v19224_v28 = vld [vmem:[#allocation6 + $0x312c] ss:$16 sps:$4 sm:$0xff]  }
 0x6d9   : > { %14289 = vmatprep.subr.bf16.mxu1 %v19176_v36  ;;  %v19227_v36 = vld [vmem:[#allocation6 + $0x3504] ss:$16 sps:$4 sm:$0xff]  }
 0x6da   : > { %14239 = vmatpush1.bf16.msra.mxu0 %v19171_v11  ;;  %v16356_v11 = vcombine.low %v21176_v25, %v21182_v14  ;;  %v19233_v14 = vld [vmem:[#allocation6 + $0x32e8] ss:$16 sps:$4 sm:$0xff]  }
 0x6db   : > { %14240 = vmatprep.subr.bf16.mxu0 %v19179_v54  ;;  %v19222_v54 = vld [vmem:[#allocation6 + $0x3128] ss:$16 sps:$4 sm:$0xff]  }
 0x6dc   : > { %14290 = vmatpush1.bf16.msra.mxu1 %v19174_v35  ;;  %v19225_v35 = vld [vmem:[#allocation6 + $0x3500] ss:$16 sps:$4 sm:$0xff]  }
 0x6dd   : > { %14291 = vmatprep.subr.bf16.mxu1 %v19182_v51  ;;  %v13146_v51 = vrot.slane %v16356_v11, 3 }
 0x6de   : > { %14241 = vmatpush1.bf16.msra.mxu0 %v19177_v50  ;;  %v19230_v50 = vld [vmem:[#allocation6 + $0x310c] ss:$16 sps:$4 sm:$0xff]  }
 0x6df   : > { %14242 = vmatprep.subr.bf16.mxu0 %v19185_v17  ;;  %v21220_v17 = vrot.slane %v21052_v60, 3  ;;  %v19236_v60 = vld [vmem:[#allocation6 + $0x34e8] ss:$16 sps:$4 sm:$0xff]  }
 0x6e0   : > { %14292 = vmatpush1.bf16.msra.mxu1 %v19180_v52  ;;  %v19235_v52 = vld [vmem:[#allocation6 + $0x32ec] ss:$16 sps:$4 sm:$0xff]  }
 0x6e1   : > { %14293 = vmatprep.subr.bf16.mxu1 %v19188_v45  ;;  %v21224_v25 = vsel %vm5351_vm4, %v13146_v51, %v21220_v17  ;;  %v19238_v45 = vld [vmem:[#allocation6 + $0x34ec] ss:$16 sps:$4 sm:$0xff]   ;;  %v19263_v51 = vld [vmem:[#allocation6 + $0x3248] ss:$16 sps:$4 sm:$0xff]  }
 0x6e2   : > { %14243 = vmatpush2.bf16.msra.mxu0 %v19183_v27  ;;  %v19228_v27 = vld [vmem:[#allocation6 + $0x3108] ss:$16 sps:$4 sm:$0xff]  }
 0x6e3   : > { %14244 = vmatprep.subr.bf16.mxu0 %v19191_v43  ;;  %v19241_v43 = vld [vmem:[#allocation6 + $0x32cc] ss:$16 sps:$4 sm:$0xff]  }
 0x6e4   : > { %14294 = vmatpush2.bf16.msra.mxu1 %v19186_v10 }
 0x6e5   : > { %14295 = vmatprep.subr.bf16.mxu1 %v19194_v20  ;;  %v19239_v20 = vld [vmem:[#allocation6 + $0x32c8] ss:$16 sps:$4 sm:$0xff]  }
 0x6e6   : > { %14245 = vmatpush2.bf16.msra.mxu0 %v19189_v55 }
 0x6e7   : > { %14246 = vmatprep.subr.bf16.mxu0 %v19197_v57  ;;  %v19244_v57 = vld [vmem:[#allocation6 + $0x34cc] ss:$16 sps:$4 sm:$0xff]  }
 0x6e8   : > { %14296 = vmatpush2.bf16.msra.mxu1 %v19192_v4 }
 0x6e9   : > { %14297 = vmatprep.subr.bf16.mxu1 %v19200_v47 }
 0x6ea   : > { %14247 = vmatpush2.bf16.msra.mxu0 %v19195_v2  ;;  %v19247_v2 = vld [vmem:[#allocation6 + $0x32ac] ss:$16 sps:$4 sm:$0xff]  }
 0x6eb   : > { %14248 = vmatprep.subr.bf16.mxu0 %v19203_v13 }
 0x6ec   : > { %14298 = vmatpush2.bf16.msra.mxu1 %v19198_v56 }
 0x6ed   : > { %14299 = vmatprep.subr.bf16.mxu1 %v19206_v7 }
 0x6ee   : > { %14249 = vmatpush2.bf16.msra.mxu0 %v19201_v3  ;;  %v19242_v3 = vld [vmem:[#allocation6 + $0x34c8] ss:$16 sps:$4 sm:$0xff]  }
 0x6ef   : > { %14250 = vmatprep.subr.bf16.mxu0 %v19209_v8 }
 0x6f0   : > { %14300 = vmatpush2.bf16.msra.mxu1 %v19204_v29 }
 0x6f1   : > { %14301 = vmatprep.subr.bf16.mxu1 %v19212_v18 }
 0x6f2   : > { %14251 = vmatpush2.bf16.msra.mxu0 %v19207_v38  ;;  %v19250_v38 = vld [vmem:[#allocation6 + $0x34ac] ss:$16 sps:$4 sm:$0xff]  }
 0x6f3   : > { %14252 = vmatprep.subr.bf16.mxu0 %v19215_v12 }
 0x6f4   : > { %14302 = vmatpush2.bf16.msra.mxu1 %v19210_v41  ;;  %v19248_v41 = vld [vmem:[#allocation6 + $0x34a8] ss:$16 sps:$4 sm:$0xff]  }
 0x6f5   : > { %14303 = vmatprep.subr.bf16.mxu1 %v19218_v15 }
 0x6f6   : > { %14253 = vmatpush2.bf16.msra.mxu0 %v19213_v40 }
 0x6f7   : > { %14254 = vmatprep.subr.bf16.mxu0 %v19221_v49  ;;  %v19256_v49 = vld [vmem:[#allocation6 + $0x348c] ss:$16 sps:$4 sm:$0xff]  }
 0x6f8   : > { %14304 = vmatpush2.bf16.msra.mxu1 %v19216_v39 }
 0x6f9   : > { %14305 = vmatprep.subr.bf16.mxu1 %v19224_v28 }
 0x6fa   : > { %14255 = vmatpush2.bf16.msra.mxu0 %v19219_v19  ;;  %v19259_v19 = vld [vmem:[#allocation6 + $0x326c] ss:$16 sps:$4 sm:$0xff]  }
 0x6fb   : > { %14256 = vmatprep.subr.bf16.mxu0 %v19227_v36 }
 0x6fc   : > { %14306 = vmatpush2.bf16.msra.mxu1 %v19222_v54  ;;  %v19262_v54 = vld [vmem:[#allocation6 + $0x346c] ss:$16 sps:$4 sm:$0xff]  }
 0x6fd   : > { %14307 = vmatprep.subr.bf16.mxu1 %v19230_v50  ;;  %v19260_v50 = vld [vmem:[#allocation6 + $0x3468] ss:$16 sps:$4 sm:$0xff]  }
 0x6fe   : > { %14257 = vmatpush2.bf16.msra.mxu0 %v19225_v35 }
 0x6ff   : > { %14328 = vmatprep.subr.bf16.mxu0 %v19235_v52  ;;  %v19268_v52 = vld [vmem:[#allocation6 + $0x344c] ss:$16 sps:$4 sm:$0xff]  }
 0x700   : > { %14308 = vmatpush2.bf16.msra.mxu1 %v19228_v27  ;;  %v19266_v27 = vld [vmem:[#allocation6 + $0x3448] ss:$16 sps:$4 sm:$0xff]  }
 0x701   : > { %v12741_v10 = vpop.f32.mrf.mxu0  ;;  %14259 = vmatmul.mubr.bf16.vlgmr.msra.gmra.mxu0 %v21224_v25  ;;  %14379 = vmatprep.subr.bf16.mxu1 %v19238_v45  ;;  %v19274_v45 = vld [vmem:[#allocation6 + $0x342c] ss:$16 sps:$4 sm:$0xff]  }
 0x702   : > { %v12742_v55 = vadd.f32 %v12741_v10, %v21196_v32  ;;  %14329 = vmatpush1.bf16.msra.mxu0 %v19233_v14  ;;  %14268 = vmatprep.mubr.bf16.mxu0 %v21194_v26  ;;  %v19269_v14 = vld [vmem:[#allocation6 + $0x3228] ss:$16 sps:$4 sm:$0xff]  }
 0x703   : > { %v12743_v4 = vpop.f32.mrf.mxu0  ;;  %14330 = vmatprep.subr.bf16.mxu0 %v19241_v43  ;;  %v21232_v13 = vpop.f32.mrf.mxu1  ;;  %14310 = vmatmul.mubr.bf16.vlgmr.msra.gmra.mxu1 %v21180_v9  ;;  %v19253_v9 = vld [vmem:[#allocation6 + $0x328c] ss:$16 sps:$4 sm:$0xff]   ;;  %v19272_v10 = vld [vmem:[#allocation6 + $0x3428] ss:$16 sps:$4 sm:$0xff]  }
 0x704   : > { %v21230_v47 = vadd.f32 %v12742_v55, %v21068_v59  ;;  %v12744_v56 = vadd.f32 %v12743_v4, %v21199_v22  ;;  %14380 = vmatpush1.bf16.msra.mxu1 %v19236_v60  ;;  %14319 = vmatprep.mubr.bf16.mxu1 %v21126_v48  ;;  %v19245_v59 = vld [vmem:[#allocation6 + $0x32a8] ss:$16 sps:$4 sm:$0xff]   ;;  %v19277_v43 = vld [vmem:[#allocation6 + $0x320c] ss:$16 sps:$4 sm:$0xff]  }
 0x705   : > { %v12745_v32 = vpop.f32.mrf.mxu0  ;;  %v21240_v8 = vpop.f32.mrf.mxu1  ;;  %14381 = vmatprep.subr.bf16.mxu1 %v19244_v57  ;;  %v19275_v60 = vld [vmem:[#allocation6 + $0x3208] ss:$16 sps:$4 sm:$0xff]   ;;  %v19280_v55 = vld [vmem:[#allocation6 + $0x340c] ss:$16 sps:$4 sm:$0xff]  }
 0x706   : > { %v21238_v7 = vadd.f32 %v12744_v56, %v21076_v21  ;;  %v12746_v29 = vadd.f32 %v12745_v32, %v21205_v34  ;;  %14331 = vmatpush1.bf16.msra.mxu0 %v19239_v20  ;;  %v19283_v20 = vld [vmem:[#allocation6 + $0x33ec] ss:$16 sps:$4 sm:$0xff]   ;;  %v19278_v57 = vld [vmem:[#allocation6 + $0x3408] ss:$16 sps:$4 sm:$0xff]  }
 0x707   : > { %v12747_v18 = vpop.f32.mrf.mxu0  ;;  %14332 = vmatprep.subr.bf16.mxu0 %v19247_v2  ;;  %v21246_v12 = vpop.f32.mrf.mxu1  ;;  %v19281_v4 = vld [vmem:[#allocation6 + $0x33e8] ss:$16 sps:$4 sm:$0xff]   ;;  %v19286_v2 = vld [vmem:[#allocation6 + $0x35ec] ss:$16 sps:$4 sm:$0xff]  }
 0x708   : > { %v21244_v22 = vadd.f32 %v12746_v29, %v21082_v5  ;;  %v12748_v48 = vadd.f32 %v12747_v18, %v21208_v53  ;;  %14382 = vmatpush1.bf16.msra.mxu1 %v19242_v3  ;;  %v19251_v5 = vld [vmem:[#allocation6 + $0x3288] ss:$16 sps:$4 sm:$0xff]   ;;  %v19289_v56 = vld [vmem:[#allocation6 + $0x33cc] ss:$16 sps:$4 sm:$0xff]  }
 0x709   : > { %v12751_v21 = vpop.f32.mrf.mxu0  ;;  %14269 = vmatmul.mubr.bf16.gmra.mxu0 %v21220_v17  ;;  %v21253_v40 = vpop.f32.mrf.mxu1  ;;  %14383 = vmatprep.subr.bf16.mxu1 %v19250_v38  ;;  %v19284_v32 = vld [vmem:[#allocation6 + $0x35e8] ss:$16 sps:$4 sm:$0xff]   ;;  %v19292_v29 = vld [vmem:[#allocation6 + $0x35cc] ss:$16 sps:$4 sm:$0xff]  }
 0x70a   : > { %v21251_v34 = vadd.f32 %v12748_v48, %v21089_v44  ;;  %v12752_v15 = vadd.f32 %v12751_v21, %v21212_v24  ;;  %14333 = vmatpush1.bf16.msra.mxu0 %v19245_v59  ;;  %14360 = vmatprep.mubr.bf16.mxu0 %v21148_v63  ;;  %v19254_v24 = vld [vmem:[#allocation6 + $0x3488] ss:$16 sps:$4 sm:$0xff]   ;;  %v19295_v59 = vld [vmem:[#allocation6 + $0x33ac] ss:$16 sps:$4 sm:$0xff]  }
 0x70b   : > { %v12753_v39 = vpop.f32.mrf.mxu0  ;;  %14334 = vmatprep.subr.bf16.mxu0 %v19253_v9  ;;  %14320 = vmatmul.mubr.bf16.gmra.mxu1 %v21171_v42  ;;  %v21262_v44 = vpop.f32.mrf.mxu1  ;;  %v19257_v63 = vld [vmem:[#allocation6 + $0x3268] ss:$16 sps:$4 sm:$0xff]   ;;  %v19298_v9 = vld [vmem:[#allocation6 + $0x35ac] ss:$16 sps:$4 sm:$0xff]  }
 0x70c   : > { %v21258_v53 = vadd.f32 %v12752_v15, %v21096_v6  ;;  %v12754_v28 = vadd.f32 %v12753_v39, %v21215_v1  ;;  %14384 = vmatpush1.bf16.msra.mxu1 %v19248_v41  ;;  %14411 = vmatprep.mubr.bf16.mxu1 %v21203_v58  ;;  %v19265_v1 = vld [vmem:[#allocation6 + $0x324c] ss:$16 sps:$4 sm:$0xff]   ;;  %v19287_v3 = vld [vmem:[#allocation6 + $0x33c8] ss:$16 sps:$4 sm:$0xff]  }
 0x70d   : > { %v12755_v11 = vpop.f32.mrf.mxu0  ;;  %14385 = vmatprep.subr.bf16.mxu1 %v19256_v49  ;;  %v21268_v6 = vpop.f32.mrf.mxu1  ;;  %v19290_v38 = vld [vmem:[#allocation6 + $0x35c8] ss:$16 sps:$4 sm:$0xff]   ;;  %v19301_v48 = vld [vmem:[#allocation6 + $0x338c] ss:$16 sps:$4 sm:$0xff]  }
 0x70e   : > { %v21266_v36 = vadd.f32 %v12754_v28, %v21104_v23  ;;  %14335 = vmatpush1.bf16.msra.mxu0 %v19251_v5  ;;  %v19271_v23 = vld [vmem:[#allocation6 + $0x322c] ss:$16 sps:$4 sm:$0xff]   ;;  %v19293_v18 = vld [vmem:[#allocation6 + $0x33a8] ss:$16 sps:$4 sm:$0xff]  }
 0x70f   : > { %14336 = vmatprep.subr.bf16.mxu0 %v19259_v19  ;;  %v12756_v35 = vpop.f32.mrf.mxu0  ;;  %v12806_v42 = vpop.f32.mrf.mxu1  ;;  %v19296_v21 = vld [vmem:[#allocation6 + $0x35a8] ss:$16 sps:$4 sm:$0xff]   ;;  %v19304_v15 = vld [vmem:[#allocation6 + $0x358c] ss:$16 sps:$4 sm:$0xff]  }
 0x710   : > { %14386 = vmatpush1.bf16.msra.mxu1 %v19254_v24  ;;  %v19299_v41 = vld [vmem:[#allocation6 + $0x3388] ss:$16 sps:$4 sm:$0xff]   ;;  %v19307_v5 = vld [vmem:[#allocation6 + $0x336c] ss:$16 sps:$4 sm:$0xff]  }
 0x711   : > { %14387 = vmatprep.subr.bf16.mxu1 %v19262_v54  ;;  %v12807_v58 = vpop.f32.mrf.mxu1  ;;  %v19302_v49 = vld [vmem:[#allocation6 + $0x3588] ss:$16 sps:$4 sm:$0xff]   ;;  %v19310_v19 = vld [vmem:[#allocation6 + $0x356c] ss:$16 sps:$4 sm:$0xff]  }
 0x712   : > { %14337 = vmatpush1.bf16.msra.mxu0 %v19257_v63  ;;  %v19305_v39 = vld [vmem:[#allocation6 + $0x3368] ss:$16 sps:$4 sm:$0xff]   ;;  %v19313_v28 = vld [vmem:[#allocation6 + $0x334c] ss:$16 sps:$4 sm:$0xff]  }
 0x713   : > { %14338 = vmatprep.subr.bf16.mxu0 %v19265_v1  ;;  %v19308_v24 = vld [vmem:[#allocation6 + $0x3568] ss:$16 sps:$4 sm:$0xff]   ;;  %v19316_v63 = vld [vmem:[#allocation6 + $0x354c] ss:$16 sps:$4 sm:$0xff]  }
 0x714   : > { %14388 = vmatpush1.bf16.msra.mxu1 %v19260_v50  ;;  %v19311_v11 = vld [vmem:[#allocation6 + $0x3348] ss:$16 sps:$4 sm:$0xff]   ;;  %v19319_v54 = vld [vmem:[#allocation6 + $0x332c] ss:$16 sps:$4 sm:$0xff]  }
 0x715   : > { %14389 = vmatprep.subr.bf16.mxu1 %v19268_v52  ;;  %v19314_v1 = vld [vmem:[#allocation6 + $0x3548] ss:$16 sps:$4 sm:$0xff]   ;;  %v19322_v42 = vld [vmem:[#allocation6 + $0x352c] ss:$16 sps:$4 sm:$0xff]  }
 0x716   : > { %14339 = vmatpush1.bf16.msra.mxu0 %v19263_v51  ;;  %v19317_v35 = vld [vmem:[#allocation6 + $0x3328] ss:$16 sps:$4 sm:$0xff]   ;;  %v19325_v50 = vld [vmem:[#allocation6 + $0x330c] ss:$16 sps:$4 sm:$0xff]  }
 0x717   : > { %14340 = vmatprep.subr.bf16.mxu0 %v19271_v23  ;;  %v19320_v51 = vld [vmem:[#allocation6 + $0x3528] ss:$16 sps:$4 sm:$0xff]   ;;  %v19328_v58 = vld [vmem:[#allocation6 + $0x350c] ss:$16 sps:$4 sm:$0xff]  }
 0x718   : > { %14390 = vmatpush1.bf16.msra.mxu1 %v19266_v27  ;;  %v19323_v52 = vld [vmem:[#allocation6 + $0x3308] ss:$16 sps:$4 sm:$0xff]  }
 0x719   : > { %14391 = vmatprep.subr.bf16.mxu1 %v19274_v45  ;;  %v19326_v23 = vld [vmem:[#allocation6 + $0x3508] ss:$16 sps:$4 sm:$0xff]  }
 0x71a   : > { %14341 = vmatpush1.bf16.msra.mxu0 %v19269_v14 }
 0x71b   : > { %14342 = vmatprep.subr.bf16.mxu0 %v19277_v43 }
 0x71c   : > { %14392 = vmatpush1.bf16.msra.mxu1 %v19272_v10 }
 0x71d   : > { %14393 = vmatprep.subr.bf16.mxu1 %v19280_v55 }
 0x71e   : > { %14343 = vmatpush1.bf16.msra.mxu0 %v19275_v60 }
 0x71f   : > { %14344 = vmatprep.subr.bf16.mxu0 %v19283_v20 }
 0x720   : > { %14394 = vmatpush1.bf16.msra.mxu1 %v19278_v57 }
 0x721   : > { %14395 = vmatprep.subr.bf16.mxu1 %v19286_v2 }
 0x722   : > { %14345 = vmatpush2.bf16.msra.mxu0 %v19281_v4 }
 0x723   : > { %14346 = vmatprep.subr.bf16.mxu0 %v19289_v56 }
 0x724   : > { %14396 = vmatpush2.bf16.msra.mxu1 %v19284_v32 }
 0x725   : > { %14397 = vmatprep.subr.bf16.mxu1 %v19292_v29 }
 0x726   : > { %14347 = vmatpush2.bf16.msra.mxu0 %v19287_v3 }
 0x727   : > { %14348 = vmatprep.subr.bf16.mxu0 %v19295_v59 }
 0x728   : > { %14398 = vmatpush2.bf16.msra.mxu1 %v19290_v38 }
 0x729   : > { %14399 = vmatprep.subr.bf16.mxu1 %v19298_v9 }
 0x72a   : > { %14349 = vmatpush2.bf16.msra.mxu0 %v19293_v18 }
 0x72b   : > { %14350 = vmatprep.subr.bf16.mxu0 %v19301_v48 }
 0x72c   : > { %14400 = vmatpush2.bf16.msra.mxu1 %v19296_v21 }
 0x72d   : > { %14401 = vmatprep.subr.bf16.mxu1 %v19304_v15 }
 0x72e   : > { %14351 = vmatpush2.bf16.msra.mxu0 %v19299_v41 }
 0x72f   : > { %14352 = vmatprep.subr.bf16.mxu0 %v19307_v5 }
 0x730   : > { %14402 = vmatpush2.bf16.msra.mxu1 %v19302_v49 }
 0x731   : > { %14403 = vmatprep.subr.bf16.mxu1 %v19310_v19 }
 0x732   : > { %14353 = vmatpush2.bf16.msra.mxu0 %v19305_v39 }
 0x733   : > { %14354 = vmatprep.subr.bf16.mxu0 %v19313_v28 }
 0x734   : > { %14404 = vmatpush2.bf16.msra.mxu1 %v19308_v24 }
 0x735   : > { %14405 = vmatprep.subr.bf16.mxu1 %v19316_v63 }
 0x736   : > { %14355 = vmatpush2.bf16.msra.mxu0 %v19311_v11 }
 0x737   : > { %14356 = vmatprep.subr.bf16.mxu0 %v19319_v54 }
 0x738   : > { %14406 = vmatpush2.bf16.msra.mxu1 %v19314_v1 }
 0x739   : > { %14407 = vmatprep.subr.bf16.mxu1 %v19322_v42 }
 0x73a   : > { %14357 = vmatpush2.bf16.msra.mxu0 %v19317_v35  ;;  %v14444_v35 = vlaneseq }
 0x73b   : > { %14358 = vmatprep.subr.bf16.mxu0 %v19325_v50  ;;  %v21303_v50 = vld [vmem:[#allocation8] sm:$0xf] }
 0x73c   : > { %14408 = vmatpush2.bf16.msra.mxu1 %v19320_v51 }
 0x73d   : > { %14409 = vmatprep.subr.bf16.mxu1 %v19328_v58 }
 0x73e   : > { %14359 = vmatpush2.bf16.msra.mxu0 %v19323_v52  ;;  %v21305_v52 = vld [vmem:[#allocation9] sm:$0xf] }
 0x740   : > { %14410 = vmatpush2.bf16.msra.mxu1 %v19326_v23 }
 0x741   : > { %v12843_v27 = vpop.f32.mrf.mxu0  ;;  %14361 = vmatmul.mubr.bf16.vlgmr.msra.gmra.mxu0 %v21189_v46 }
 0x742   : > { %v12844_v14 = vadd.f32 %v12843_v27, %v21232_v13  ;;  %14370 = vmatprep.mubr.bf16.mxu0 %v21131_v37 }
 0x743   : > { %v12845_v45 = vpop.f32.mrf.mxu0  ;;  %v12894_v43 = vpop.f32.mrf.mxu1  ;;  %14412 = vmatmul.mubr.bf16.vlgmr.msra.gmra.mxu1 %v21224_v25 }
 0x744   : > { %v12846_v10 = vadd.f32 %v12845_v45, %v21240_v8  ;;  %v12895_v60 = vadd.f32 %v12894_v43, %v12844_v14  ;;  %14421 = vmatprep.mubr.bf16.mxu1 %v21194_v26 }
 0x745   : > { %v12847_v55 = vpop.f32.mrf.mxu0  ;;  %v12896_v20 = vpop.f32.mrf.mxu1 }
 0x746   : > { %v12848_v57 = vadd.f32 %v12847_v55, %v21246_v12  ;;  %v21278_v4 = vadd.f32 %v12895_v60, %v21134_v0  ;;  %v12897_v46 = vadd.f32 %v12896_v20, %v12846_v10 }
 0x747   : > { %v12849_v13 = vpop.f32.mrf.mxu0  ;;  %v12898_v2 = vpop.f32.mrf.mxu1 }
 0x748   : > { %v12850_v37 = vadd.f32 %v12849_v13, %v21253_v40  ;;  %v21282_v56 = vadd.f32 %v12897_v46, %v21142_v30  ;;  %v12899_v25 = vadd.f32 %v12898_v2, %v12848_v57 }
 0x749   : > { %v12853_v8 = vpop.f32.mrf.mxu0  ;;  %14371 = vmatmul.mubr.bf16.gmra.mxu0 %v21174_v62  ;;  %v12900_v32 = vpop.f32.mrf.mxu1 }
 0x74a   : > { %v12854_v26 = vadd.f32 %v12853_v8, %v21262_v44  ;;  %v21287_v12 = vadd.f32 %v12899_v25, %v21151_v16  ;;  %v12901_v0 = vadd.f32 %v12900_v32, %v12850_v37 }
 0x74b   : > { %v12855_v3 = vpop.f32.mrf.mxu0  ;;  %14422 = vmatmul.mubr.bf16.gmra.mxu1 %v21220_v17  ;;  %v12904_v40 = vpop.f32.mrf.mxu1 }
 0x74c   : > { %v12856_v29 = vadd.f32 %v12855_v3, %v21268_v6  ;;  %v21292_v30 = vadd.f32 %v12901_v0, %v21157_v33  ;;  %v12905_v59 = vadd.f32 %v12904_v40, %v12854_v26 }
 0x74d   : > { %v12857_v38 = vpop.f32.mrf.mxu0  ;;  %v12906_v18 = vpop.f32.mrf.mxu1 }
 0x74e   : > { %v21295_v62 = vadd.f32 %v12905_v59, %v21161_v61  ;;  %v12907_v44 = vadd.f32 %v12906_v18, %v12856_v29 }
 0x74f   : > { %v12858_v9 = vpop.f32.mrf.mxu0  ;;  %v12908_v16 = vpop.f32.mrf.mxu1 }
 0x750   : > { %v21298_v48 = vadd.f32 %v12907_v44, %v21164_v31  ;;  %v21300_v31 = vshrl.u32 %v14444_v35, 7 }
 0x751   : > { %v12909_v21 = vpop.f32.mrf.mxu1 }
 0x752   : > { %v14446_v42 = vsub.s32 0, %v21300_v31  ;;  %v14450_v58 = vsub.s32 1, %v21300_v31 }
 0x754   : > { %v14447_v45 = vrot.slane %v21303_v50, %v14446_v42  ;;  %v14481_v43 = vrot.slane %v21305_v52, %v14446_v42  ;;  %v14451_v46 = vrot.slane %v21303_v50, %v14450_v58  ;;  %v14485_v13 = vrot.slane %v21305_v52, %v14450_v58 }
 0x781   : > { %v14158_v17 = vpop.f32.mrf.mxu0 }
 0x783   : > { %v14160_v41 = vpop.f32.mrf.mxu0  ;;  %v14209_v6 = vpop.f32.mrf.mxu1 }
 0x784   : > { %v14210_v51 = vadd.f32 %v14209_v6, %v14158_v17 }
 0x785   : > { %v14162_v15 = vpop.f32.mrf.mxu0  ;;  %v14211_v5 = vpop.f32.mrf.mxu1 }
 0x786   : > { %v14212_v27 = vadd.f32 %v14211_v5, %v14160_v41 }
 0x787   : > { %v14164_v33 = vpop.f32.mrf.mxu0  ;;  %v14213_v49 = vpop.f32.mrf.mxu1 }
 0x788   : > { %v14214_v60 = vadd.f32 %v14213_v49, %v14162_v15 }
 0x789   : > { %v14168_v39 = vpop.f32.mrf.mxu0  ;;  %v14215_v19 = vpop.f32.mrf.mxu1 }
 0x78a   : > { %v14216_v37 = vadd.f32 %v14215_v19, %v14164_v33 }
 0x78b   : > { %v14170_v28 = vpop.f32.mrf.mxu0  ;;  %v14219_v24 = vpop.f32.mrf.mxu1 }
 0x78c   : > { %v14220_v38 = vadd.f32 %v14219_v24, %v14168_v39 }
 0x78d   : > { %v14172_v61 = vpop.f32.mrf.mxu0  ;;  %v14221_v11 = vpop.f32.mrf.mxu1 }
 0x78e   : > { %v14222_v44 = vadd.f32 %v14221_v11, %v14170_v28 }
 0x78f   : > { %v14173_v63 = vpop.f32.mrf.mxu0  ;;  %v14223_v54 = vpop.f32.mrf.mxu1 }
 0x791   : > { %v14224_v1 = vpop.f32.mrf.mxu1 }
 0x7c1   : > { %v14260_v23 = vpop.f32.mrf.mxu0 }
 0x7c2   : > { %v14261_v14 = vadd.f32 %v14260_v23, %v14210_v51 }
 0x7c3   : > { %v14262_v10 = vpop.f32.mrf.mxu0  ;;  %v14311_v20 = vpop.f32.mrf.mxu1 }
 0x7c4   : > { %v14430_v55 = vadd.f32 %v14261_v14, %v21230_v47  ;;  %v14263_v57 = vadd.f32 %v14262_v10, %v14212_v27 }
 0x7c5   : > { %v14264_v2 = vpop.f32.mrf.mxu0  ;;  %v14313_v32 = vpop.f32.mrf.mxu1 }
 0x7c6   : > { %v14464_v25 = vmul.f32 %v14447_v45, %v14430_v55  ;;  %v14431_v8 = vadd.f32 %v14263_v57, %v21238_v7  ;;  %v14265_v26 = vadd.f32 %v14264_v2, %v14214_v60 }
 0x7c7   : > { %v14266_v0 = vpop.f32.mrf.mxu0  ;;  %v14315_v59 = vpop.f32.mrf.mxu1 }
 0x7c8   : > { %v14498_v3 = vadd.f32 %v14481_v43, %v14464_v25  ;;  %v14465_v29 = vmul.f32 %v14451_v46, %v14431_v8  ;;  %v14434_v40 = vadd.f32 %v14265_v26, %v21244_v22  ;;  %v14267_v47 = vadd.f32 %v14266_v0, %v14216_v37 }
 0x7c9   : > { %v14270_v18 = vpop.f32.mrf.mxu0  ;;  %v14317_v17 = vpop.f32.mrf.mxu1  ;;  %v14458_v25 = vsub.s32 3, %v21300_v31 }
 0x7ca   : > { %v14499_v9 = vadd.f32 %v14485_v13, %v14465_v29  ;;  %v14468_v16 = vmul.f32 %v14447_v45, %v14434_v40  ;;  %v14435_v21 = vadd.f32 %v14267_v47, %v21251_v34  ;;  %v14510_v41 = vmax.f32 %v14498_v3, 0.0 }
 0x7cb   : > { %v14271_v7 = vadd.f32 %v14270_v18, %v14220_v38  ;;  %v14272_v6 = vpop.f32.mrf.mxu0  ;;  %v14321_v19 = vpop.f32.mrf.mxu1 }
 0x7cc   : > { %v14511_v15 = vmax.f32 %v14499_v9, 0.0  ;;  %v14502_v5 = vadd.f32 %v14481_v43, %v14468_v16  ;;  %v14469_v33 = vmul.f32 %v14451_v46, %v14435_v21  ;;  %v14273_v49 = vadd.f32 %v14272_v6, %v14222_v44 }
 0x7cd   : > { %v14438_v22 = vadd.f32 %v14271_v7, %v21258_v53  ;;  %v14274_v61 = vpop.f32.mrf.mxu0  ;;  %v14323_v11 = vpop.f32.mrf.mxu1  ;;  %v14459_v9 = vrot.slane %v21303_v50, %v14458_v25 }
 0x7ce   : > { %v16569_v39 = vpack.c.bf16 %v14511_v15, %v14510_v41  ;;  %v14503_v24 = vadd.f32 %v14485_v13, %v14469_v33  ;;  %v14439_v28 = vadd.f32 %v14273_v49, %v21266_v36  ;;  %v14514_v54 = vmax.f32 %v14502_v5, 0.0 }
 0x7cf   : > { %v14472_v63 = vmul.f32 %v14447_v45, %v14438_v22  ;;  %v14275_v34 = vpop.f32.mrf.mxu0  ;;  %v14325_v42 = vpop.f32.mrf.mxu1 }
 0x7d0   : > { %14538 = vst [vmem:[%s19731_s8] sm:$0x33] %v16569_v39  ;;  %v14515_v1 = vmax.f32 %v14503_v24, 0.0  ;;  %v14473_v35 = vmul.f32 %v14451_v46, %v14439_v28  ;;  %v16556_v27 = vrot.slane %v16569_v39, 9 }
 0x7d1   : > { %v14506_v51 = vadd.f32 %v14481_v43, %v14472_v63  ;;  %v14326_v53 = vpop.f32.mrf.mxu1 }
 0x7d2   : > { %v16573_v58 = vpack.c.bf16 %v14515_v1, %v14514_v54  ;;  %v14507_v23 = vadd.f32 %v14485_v13, %v14473_v35  ;;  %v14454_v13 = vsub.s32 2, %v21300_v31 }
 0x7d3   : > { %v14518_v10 = vmax.f32 %v14506_v51, 0.0 }
 0x7d4   : > { %v14563_v14 = vrot.slane %v16573_v58, 5  ;;  %v16560_v45 = vrot.slane %v16573_v58, 10  ;;  %v14519_v60 = vmax.f32 %v14507_v23, 0.0  ;;  %v14455_v3 = vrot.slane %v21303_v50, %v14454_v13 }
 0x7d5   : > { %v14489_v18 = vrot.slane %v21305_v52, %v14454_v13 }
 0x7d6   : > { %v14564_v55 = vsel %vm21321_vm12, %v16556_v27, %v14563_v14  ;;  %14593 = vst [vmem:[%s19731_s8 + $0x10] sm:$0x33] %v16560_v45  ;;  %v16577_v57 = vpack.c.bf16 %v14519_v60, %v14518_v10 }
 0x7d7   : > { %14571 = vst [vmem:[%s19731_s8] sm:$0xcc] %v14564_v55 }
 0x7d8   : > { %v14609_v43 = vrot.slane %v16577_v57, 7 }
 0x7da   : > { %14613 = vst [vmem:[%s19731_s8 + $0x10] sm:$0xcc] %v14609_v43 }
 0x801   : > { %v14362_v46 = vpop.f32.mrf.mxu0 }
 0x802   : > { %v14363_v2 = vadd.f32 %v14362_v46, %v14311_v20 }
 0x803   : > { %v14364_v37 = vpop.f32.mrf.mxu0  ;;  %v14413_v8 = vpop.f32.mrf.mxu1 }
 0x804   : > { %v14365_v26 = vadd.f32 %v14364_v37, %v14313_v32  ;;  %v14414_v0 = vadd.f32 %v14413_v8, %v14363_v2  ;;  %v14493_v32 = vrot.slane %v21305_v52, %v14458_v25 }
 0x805   : > { %v14366_v29 = vpop.f32.mrf.mxu0  ;;  %v14415_v40 = vpop.f32.mrf.mxu1 }
 0x806   : > { %v14367_v47 = vadd.f32 %v14366_v29, %v14315_v59  ;;  %v14432_v38 = vadd.f32 %v14414_v0, %v21278_v4  ;;  %v14416_v44 = vadd.f32 %v14415_v40, %v14365_v26 }
 0x807   : > { %v14368_v16 = vpop.f32.mrf.mxu0  ;;  %v14417_v20 = vpop.f32.mrf.mxu1 }
 0x808   : > { %v14369_v21 = vadd.f32 %v14368_v16, %v14317_v17  ;;  %v14466_v41 = vmul.f32 %v14455_v3, %v14432_v38  ;;  %v14433_v31 = vadd.f32 %v14416_v44, %v21282_v56  ;;  %v14418_v7 = vadd.f32 %v14417_v20, %v14367_v47 }
 0x809   : > { %v14372_v6 = vpop.f32.mrf.mxu0  ;;  %v14419_v15 = vpop.f32.mrf.mxu1 }
 0x80a   : > { %v14373_v5 = vadd.f32 %v14372_v6, %v14321_v19  ;;  %v14500_v59 = vadd.f32 %v14489_v18, %v14466_v41  ;;  %v14467_v33 = vmul.f32 %v14459_v9, %v14433_v31  ;;  %v14436_v4 = vadd.f32 %v14418_v7, %v21287_v12 }
 0x80b   : > { %v14420_v49 = vadd.f32 %v14419_v15, %v14369_v21  ;;  %v14374_v22 = vpop.f32.mrf.mxu0  ;;  %v14423_v61 = vpop.f32.mrf.mxu1 }
 0x80c   : > { %v14375_v50 = vadd.f32 %v14374_v22, %v14323_v11  ;;  %v14501_v39 = vadd.f32 %v14493_v32, %v14467_v33  ;;  %v14470_v24 = vmul.f32 %v14455_v3, %v14436_v4  ;;  %v14512_v56 = vmax.f32 %v14500_v59, 0.0 }
 0x80d   : > { %v14437_v17 = vadd.f32 %v14420_v49, %v21292_v30  ;;  %v14376_v28 = vpop.f32.mrf.mxu0  ;;  %v14424_v52 = vadd.f32 %v14423_v61, %v14373_v5  ;;  %v14425_v63 = vpop.f32.mrf.mxu1 }
 0x80e   : > { %v14513_v34 = vmax.f32 %v14501_v39, 0.0  ;;  %v14504_v54 = vadd.f32 %v14489_v18, %v14470_v24  ;;  %v14426_v1 = vadd.f32 %v14425_v63, %v14375_v50 }
 0x80f   : > { %v14471_v19 = vmul.f32 %v14459_v9, %v14437_v17  ;;  %v14377_v35 = vpop.f32.mrf.mxu0  ;;  %v14440_v12 = vadd.f32 %v14424_v52, %v21295_v62  ;;  %v14427_v42 = vpop.f32.mrf.mxu1 }
 0x810   : > { %v16570_v51 = vpack.c.bf16 %v14513_v34, %v14512_v56  ;;  %v14441_v11 = vadd.f32 %v14426_v1, %v21298_v48  ;;  %v14516_v53 = vmax.f32 %v14504_v54, 0.0 }
 0x811   : > { %v14505_v58 = vadd.f32 %v14493_v32, %v14471_v19  ;;  %v14474_v30 = vmul.f32 %v14455_v3, %v14440_v12  ;;  %v14428_v23 = vpop.f32.mrf.mxu1 }
 0x812   : > { %14539 = vst [vmem:[%s19731_s8 + $0x8] sm:$0x33] %v16570_v51  ;;  %v14475_v14 = vmul.f32 %v14459_v9, %v14441_v11  ;;  %v16557_v62 = vrot.slane %v16570_v51, 9 }
 0x813   : > { %v14517_v27 = vmax.f32 %v14505_v58, 0.0  ;;  %v14508_v45 = vadd.f32 %v14489_v18, %v14474_v30 }
 0x814   : > { %v14509_v60 = vadd.f32 %v14493_v32, %v14475_v14 }
 0x815   : > { %v16574_v10 = vpack.c.bf16 %v14517_v27, %v14516_v53  ;;  %v14520_v43 = vmax.f32 %v14508_v45, 0.0 }
 0x816   : > { %v14521_v48 = vmax.f32 %v14509_v60, 0.0 }
 0x817   : > { %v14567_v55 = vrot.slane %v16574_v10, 5  ;;  %v16561_v57 = vrot.slane %v16574_v10, 10 }
 0x818   : > { %v16578_v13 = vpack.c.bf16 %v14521_v48, %v14520_v43 }
 0x819   : > { %v14568_v46 = vsel %vm21321_vm12, %v16557_v62, %v14567_v55  ;;  %14594 = vst [vmem:[%s19731_s8 + $0x18] sm:$0x33] %v16561_v57 }
 0x81a   : > { %14572 = vst [vmem:[%s19731_s8 + $0x8] sm:$0xcc] %v14568_v46  ;;  %v14610_v2 = vrot.slane %v16578_v13, 7 }
 0x81c   : > { %14614 = vst [vmem:[%s19731_s8 + $0x18] sm:$0xcc] %v14610_v2 }
 0x81d   : > { %19478 = shalt.err (!%p19475_p1)
}
 0x81e   : > { %s19479_s10 = scalar_lea.hbm %s21352_s5, 512  ;;  %s19483_s25 = scalar_lea.hbm %s21402_s4, 1024 }
 0x81f   : > { %p19480_p9 = scmp.ne.s32.totalorder %s21352_s5, %s19479_s10  ;;  %p19484_p0 = scmp.lt.s32.totalorder %s21352_s5, %s21402_s4 }
 0x820   : > { %p19485_p2 = scmp.lt.s32.totalorder %s19483_s25, %s19479_s10 }
 0x821   : > { %p19481_p8 = pnand %p19480_p9, %p21489_p13 }
 0x822   : > { %p19486_p4 = por %p19485_p2, %p19484_p0 }
 0x823   : > { %p19482_p12 = pneg %p19481_p8 }
 0x825   : > { %p19487_p6 = pnand %p19486_p4, %p19482_p12 }
 0x827   : > { %19490 = shalt.err (!%p19487_p6)
}
 0x828   : > { %s19549_s8 = smov 256   ;;  %s19550_s21 = smov 16  }
 0x829   : > { %16597 = dma.vmem_to_hbm [thread:$0]  (%p21489_p13), %s21354_s9, 512, %s21352_s5, %s14616_s19, %s19549_s8, %s19549_s8, %s19550_s21  }
 0x82a PF: > { %s14644_s11 = sand.u32 1, %s19525_s15   ;;  %p21490_p3 = scmp.ne.s32.totalorder %s21415_s22, 0 }
 0x82b   : > { %p21491_p7 = scmp.ge.s32.totalorder %s19537_s18, 2  ;;  %s14645_s12 = scalar_lea.sflag [#allocation5], %s14644_s11 }
 0x82d   : > { %p16614_p11 = pnand %p21491_p7, %p21490_p3 }
 0x82f   : > { %p16615_p5 = pneg %p16614_p11 }
 0x831   : > { %19520 = dma.done.wait (%p16615_p5), %s14645_s12, 512  }
 0x832   : > { %19522 = vsyncadd (%p16615_p5), %s14645_s12, 4294966784  ;;  %p19_p10 = scmp.ge.s32.totalorder %s19657_s24, 4   ;;  %s21492_s15 = smov %s19529_s16 }
 0x833   : > { %s21493_s16 = smov %s19533_s17  ;;  %s21494_s17 = smov %s19667_s27 }
 0x834   : > { %s21495_s18 = smov %s19657_s24  ;;  %21 = sbr.rel (!%p19_p10) target bundleno = 7 (0x7), region = 105 }
 0x839   :  { %14650 = vsyncpa [#allocation4], 1 }
 0x83a   :  { %14652 = vsyncpa [#allocation4 + $0x1], 1 }
 0x83b   :  { %14653 = vsyncpa [#allocation7], 1 }
 0x83c   :  { %14654 = vsyncpa [#allocation10], 1 }
 0x83d   :  { %14655 = vsyncpa [#allocation5], 1 }
 0x83e   :  { %14657 = vsyncpa [#allocation5 + $0x1], 1 }

</bundles_post_ra>
